<compile_context>
chip_gen: v5e
topology: v5e:2x2
jax: 0.10.0
libtpu: 0.0.40
codegen_flags: <defaults>
</compile_context>

<pallas_src>
import functools

import jax
import jax.numpy as jnp
from jax.experimental import pallas as pl
from jax.experimental.pallas import tpu as pltpu


# ----------------------------------------------------------------------------
# Fused whole-network kernel: one grid step per batch element; the token state
# and the encoder skip activations never leave VMEM.
# ----------------------------------------------------------------------------
def _vigunet_kernel(x_ref, w_in_ref, we_ref, wqkv_ref, wproj_ref, wf1_ref,
                    wf2_ref, wo_ref, wra_ref, wrb_ref, o_ref,
                    *, deep, head, dh, dim, res_layers):

    def vig_block(tok, layer):
        """tok: (N, td) fp32 residual stream -> (N, td) fp32."""
        tok_bf = tok.astype(jnp.bfloat16)
        # patch embedding
        t = jnp.dot(tok_bf, we_ref[layer], preferred_element_type=jnp.float32)
        t_bf = t.astype(jnp.bfloat16)

        # single lane-dense QKV matmul (1/sqrt(dh) is folded into W_q at init)
        qkv = jnp.dot(t_bf, wqkv_ref[layer],
                      preferred_element_type=jnp.float32).astype(jnp.bfloat16)

        # per-head score/softmax/PV (head-local by definition); the head
        # outputs are staged into one (N, dim) slab and projected with ONE
        # lane-dense matmul instead of a serialized attn += o_h @ Wp_h chain.
        ctx = []
        for h in range(head):
            q = qkv[:, h * dh:(h + 1) * dh]
            k = qkv[:, dim + h * dh:dim + (h + 1) * dh]
            v = qkv[:, 2 * dim + h * dh:2 * dim + (h + 1) * dh]
            s = jax.lax.dot_general(q, k, (((1,), (1,)), ((), ())),
                                    preferred_element_type=jnp.float32)
            s = s - jnp.max(s, axis=-1, keepdims=True)
            p = jnp.exp(s)
            p = p * pl.reciprocal(jnp.sum(p, axis=-1, keepdims=True),
                                  approx=True)
            ctx.append(jnp.dot(p.astype(jnp.bfloat16), v,
                               preferred_element_type=jnp.float32))
        attn = jnp.concatenate(ctx, axis=-1).astype(jnp.bfloat16)    # (N, dim)
        t = t + jnp.dot(attn, wproj_ref[layer],
                        preferred_element_type=jnp.float32)

        # GELU FFN
        t_bf = t.astype(jnp.bfloat16)
        h1 = jax.nn.gelu(jnp.dot(t_bf, wf1_ref[layer],
                                 preferred_element_type=jnp.float32))
        t = t + jnp.dot(h1.astype(jnp.bfloat16), wf2_ref[layer],
                        preferred_element_type=jnp.float32)

        # un-embed + residual in token space (lane-dense td-wide slab)
        out = jnp.dot(t.astype(jnp.bfloat16), wo_ref[layer],
                      preferred_element_type=jnp.float32)
        return tok + out

    # input 1x1 conv, folded into token space as a block-diagonal matmul
    tok = jnp.dot(x_ref[0], w_in_ref[...], preferred_element_type=jnp.float32)

    # encoder; skip activations stay as VMEM-resident values
    en = []
    for layer in range(deep):
        tok = vig_block(tok, layer)
        en.append(tok)

    # decoder with U-net residual 1x1 convs (block-diagonal token matmuls)
    for i in range(deep - 1, -1, -1):
        if i in res_layers:
            r = res_layers.index(i)
            tok = (jnp.dot(en[i].astype(jnp.bfloat16), wra_ref[r],
                           preferred_element_type=jnp.float32) +
                   jnp.dot(tok.astype(jnp.bfloat16), wrb_ref[r],
                           preferred_element_type=jnp.float32))
        tok = vig_block(tok, deep + i)

    o_ref[0] = tok.astype(o_ref.dtype)


def _net_cost_estimate(b, n, td_in, td, dim, head, deep, nres):
    per_block = 4 * n * td * dim + 24 * n * dim * dim + 4 * n * n * dim
    flops = b * (2 * n * td_in * td + 2 * deep * per_block
                 + nres * 4 * n * td * td)
    transcendentals = b * 2 * deep * (head * n * n + 4 * n * dim)
    weight_bytes = 2 * (td_in * td + 2 * deep * (2 * td * dim + 12 * dim * dim)
                        + nres * 2 * td * td)
    bytes_accessed = b * n * (td_in + td) * 2 + weight_bytes
    return pl.CostEstimate(flops=int(flops),
                           transcendentals=int(transcendentals),
                           bytes_accessed=int(bytes_accessed))


@functools.lru_cache(maxsize=None)
def _vigunet_call(b, n, td_in, td, dim, head, deep, res_layers):
    num_layers = 2 * deep
    nres = len(res_layers)
    kernel = functools.partial(_vigunet_kernel, deep=deep, head=head,
                               dh=dim // head, dim=dim, res_layers=res_layers)

    def wfull(shape):
        rank = len(shape)
        return pl.BlockSpec(shape, lambda i: (0,) * rank)

    return pl.pallas_call(
        kernel,
        out_shape=jax.ShapeDtypeStruct((b, n, td), jnp.bfloat16),
        grid=(b,),
        in_specs=[pl.BlockSpec((1, n, td_in), lambda i: (i, 0, 0)),
                  wfull((td_in, td)),
                  wfull((num_layers, td, dim)),
                  wfull((num_layers, dim, 3 * dim)),
                  wfull((num_layers, dim, dim)),
                  wfull((num_layers, dim, 4 * dim)),
                  wfull((num_layers, 4 * dim, dim)),
                  wfull((num_layers, dim, td)),
                  wfull((nres, td, td)),
                  wfull((nres, td, td))],
        out_specs=pl.BlockSpec((1, n, td), lambda i: (i, 0, 0)),
        compiler_params=pltpu.CompilerParams(
            dimension_semantics=("parallel",),
            vmem_limit_bytes=32 * 1024 * 1024),
        cost_estimate=_net_cost_estimate(b, n, td_in, td, dim, head, deep,
                                         nres),
    )


# ----------------------------------------------------------------------------
# 3x3 output conv: padded image read once, 9 taps taken with pl.ds row shifts,
# lane-dense transposed (cout, H*(W+2)) store -> result is already NCHW.
# ----------------------------------------------------------------------------
def _conv3x3_kernel(x_ref, w_ref, o_ref, *, wpad, rows):
    cout = o_ref.shape[1]
    acc = jnp.zeros((cout, rows), jnp.float32)
    for dy in range(3):
        for dx in range(3):
            tap = x_ref[0, pl.ds(dy * wpad + dx, rows), :]       # (rows, C) bf16
            acc = acc + jax.lax.dot_general(
                w_ref[dy * 3 + dx], tap, (((1,), (1,)), ((), ())),
                preferred_element_type=jnp.float32)              # (cout, rows)
    o_ref[0] = acc


@functools.lru_cache(maxsize=None)
def _conv3x3_call(b, h, w, c, cout):
    wpad = w + 2
    rows = h * wpad
    kernel = functools.partial(_conv3x3_kernel, wpad=wpad, rows=rows)
    return pl.pallas_call(
        kernel,
        out_shape=jax.ShapeDtypeStruct((b, cout, rows), jnp.float32),
        grid=(b,),
        in_specs=[pl.BlockSpec((1, (h + 3) * wpad, c), lambda i: (i, 0, 0)),
                  pl.BlockSpec((9, cout, c), lambda i: (0, 0, 0))],
        out_specs=pl.BlockSpec((1, cout, rows), lambda i: (i, 0, 0)),
        compiler_params=pltpu.CompilerParams(
            dimension_semantics=("parallel",)),
    )


def conv3x3_nchw(x_img, w_taps):
    """x_img: (B, H, W, C) bf16; w_taps: (9, cout, C). Returns (B, cout, H, W)."""
    b, h, w, c = x_img.shape
    cout = w_taps.shape[1]
    wpad = w + 2
    # 1 top / 1 left / 1 right halo, plus 2 extra bottom rows so every pl.ds
    # tap window stays in bounds (the wrap columns are sliced off afterwards).
    xp = jnp.pad(x_img, ((0, 0), (1, 2), (1, 1), (0, 0)))
    xflat = xp.reshape(b, (h + 3) * wpad, c)
    y = _conv3x3_call(b, h, w, c, cout)(xflat, w_taps)           # (B,cout,H*wpad)
    return y.reshape(b, cout, h, wpad)[:, :, :, :w]              # NCHW


# ----------------------------------------------------------------------------
# Patch <-> token layout glue (XLA, done once per forward)
# ----------------------------------------------------------------------------
def patchify(x, ps):
    b, h, w, c = x.shape
    hp, wp = h // ps, w // ps
    t = x.reshape(b, hp, ps, wp, ps, c).transpose(0, 1, 3, 2, 4, 5)
    return t.reshape(b, hp * wp, ps * ps * c)


def unpatchify(t, hp, wp, ps, c):
    b = t.shape[0]
    x = t.reshape(b, hp, wp, ps, ps, c).transpose(0, 1, 3, 2, 4, 5)
    return x.reshape(b, hp * ps, wp * ps, c)


# ----------------------------------------------------------------------------
# Parameter initialization (deterministic, in-script; weights stored in bf16)
# ----------------------------------------------------------------------------
def init_vigunet(key, cin, cout, dim, head, patch_size, u_res_layers):
    deep = max(u_res_layers) + 2
    cmid = max(dim // patch_size, int(cout ** 0.5) + 1)
    pp = patch_size * patch_size
    td = cmid * pp
    dh = dim // head
    num_layers = 2 * deep
    nres = len(u_res_layers)

    keys = jax.random.split(key, 10)

    def rnd(k, shape, fan_in, scale=1.0):
        return jax.random.normal(k, shape, jnp.float32) * (scale / float(fan_in) ** 0.5)

    eye_pp = jnp.eye(pp, dtype=jnp.float32)

    # input 1x1 conv, folded into token space (block-diagonal / kron weight)
    w_in = rnd(keys[0], (cin, cmid), cin)
    w_in_tok = jnp.kron(eye_pp, w_in).astype(jnp.bfloat16)        # (pp*cin, td)

    # per-block weights stacked on a leading layer axis:
    #   layers [0, deep) = encoder, [deep, 2*deep) = decoder
    w_embed = rnd(keys[1], (num_layers, td, dim), td).astype(jnp.bfloat16)
    wq = rnd(keys[2], (num_layers, dim, dim), dim) / float(dh) ** 0.5  # scale folded
    wk = rnd(keys[3], (num_layers, dim, dim), dim)
    wv = rnd(keys[4], (num_layers, dim, dim), dim)
    w_qkv = jnp.concatenate([wq, wk, wv], axis=-1).astype(jnp.bfloat16)
    w_proj = rnd(keys[5], (num_layers, dim, dim), dim).astype(jnp.bfloat16)
    w_fc1 = rnd(keys[6], (num_layers, dim, 4 * dim), dim).astype(jnp.bfloat16)
    w_fc2 = rnd(keys[7], (num_layers, 4 * dim, dim), 4 * dim).astype(jnp.bfloat16)
    w_out = rnd(keys[8], (num_layers, dim, td), dim, scale=0.1).astype(jnp.bfloat16)

    # U-net residual 1x1 convs on concatenated channels -> two block-diagonal
    # token-space matrices (en-half and x-half of the concat).
    kres = jax.random.split(keys[9], 2 * nres + 1)
    res_a = jnp.stack([jnp.kron(eye_pp, rnd(kres[2 * i], (cmid, cmid), 2 * cmid))
                       for i in range(nres)]).astype(jnp.bfloat16)
    res_b = jnp.stack([jnp.kron(eye_pp, rnd(kres[2 * i + 1], (cmid, cmid), 2 * cmid))
                       for i in range(nres)]).astype(jnp.bfloat16)

    # 3x3 output conv taps: (9, cout, cmid), tap index t = dy*3 + dx
    w3 = rnd(kres[-1], (3, 3, cmid, cout), 9 * cmid)
    w_out3 = jnp.transpose(w3.reshape(9, cmid, cout), (0, 2, 1)).astype(jnp.bfloat16)

    params = dict(w_in=w_in_tok, w_embed=w_embed, w_qkv=w_qkv, w_proj=w_proj,
                  w_fc1=w_fc1, w_fc2=w_fc2, w_out=w_out,
                  res_a=res_a, res_b=res_b, out3=w_out3)
    return params, deep, cmid


# ----------------------------------------------------------------------------
# ViGUnet forward (matches the PyTorch module's control flow)
# ----------------------------------------------------------------------------
def vigunet_forward(params, x_nchw, *, deep, patch_size, head, u_res_layers):
    x = jnp.transpose(x_nchw, (0, 2, 3, 1)).astype(jnp.float32)   # NCHW -> NHWC
    b, hh, ww, _ = x.shape
    td = params["w_in"].shape[1]
    pp = patch_size * patch_size
    cmid = td // pp
    dim = params["w_embed"].shape[-1]

    tok_in = patchify(x, patch_size).astype(jnp.bfloat16)         # (B, N, pp*cin)
    n, td_in = tok_in.shape[1], tok_in.shape[2]

    tok = _vigunet_call(b, n, td_in, td, dim, head, deep, tuple(u_res_layers))(
        tok_in, params["w_in"], params["w_embed"], params["w_qkv"],
        params["w_proj"], params["w_fc1"], params["w_fc2"], params["w_out"],
        params["res_a"], params["res_b"])                         # (B,N,td) bf16

    x_img = unpatchify(tok, hh // patch_size, ww // patch_size, patch_size, cmid)
    return conv3x3_nchw(x_img, params["out3"])                    # (B,cout,H,W)


# ----------------------------------------------------------------------------
if __name__ == "__main__":
    B, H, W = 2, 16, 16
    cin, cout = 4, 3
    dim, head, patch_size = 32, 4, 4
    u_res_layers = (1, 2)            # small depth for the example (deep = 4)

    kp, kx = jax.random.split(jax.random.PRNGKey(0))
    params, deep, cmid = init_vigunet(kp, cin, cout, dim, head,
                                      patch_size, u_res_layers)
    x = jax.random.normal(kx, (B, cin, H, W), jnp.float32)

    fwd = jax.jit(functools.partial(
        vigunet_forward, deep=deep, patch_size=patch_size, head=head,
        u_res_layers=u_res_layers))
    y = jax.block_until_ready(fwd(params, x))

    assert y.shape == (B, cout, H, W), y.shape
    assert bool(jnp.all(jnp.isfinite(y)))
    print("KERNEL_OK")
</pallas_src>

<mosaic_0001>
module attributes {stable_mosaic.version = 11 : i64} {
  func.func @_vigunet_kernel(%arg0: i32, %arg1: memref<1x16x64xbf16, #tpu.memory_space<vmem>>, %arg2: memref<64x128xbf16, #tpu.memory_space<vmem>>, %arg3: memref<8x128x32xbf16, #tpu.memory_space<vmem>>, %arg4: memref<8x32x96xbf16, #tpu.memory_space<vmem>>, %arg5: memref<8x32x32xbf16, #tpu.memory_space<vmem>>, %arg6: memref<8x32x128xbf16, #tpu.memory_space<vmem>>, %arg7: memref<8x128x32xbf16, #tpu.memory_space<vmem>>, %arg8: memref<8x32x128xbf16, #tpu.memory_space<vmem>>, %arg9: memref<2x128x128xbf16, #tpu.memory_space<vmem>>, %arg10: memref<2x128x128xbf16, #tpu.memory_space<vmem>>, %arg11: memref<1x16x128xbf16, #tpu.memory_space<vmem>>) attributes {dimension_semantics = [#tpu.dimension_semantics<parallel>], iteration_bounds = array<i64: 2>, scalar_prefetch = 0 : i64, scratch_operands = 0 : i64, tpu.core_type = #tpu.core_type<tc>, window_params = [{transform_indices = @transform_0, window_bounds = array<i64: 1, 16, 64>}, {pipeline_mode = #tpu.pipeline_mode<synchronous>, transform_indices = @transform_1, window_bounds = array<i64: 64, 128>}, {pipeline_mode = #tpu.pipeline_mode<synchronous>, transform_indices = @transform_2, window_bounds = array<i64: 8, 128, 32>}, {pipeline_mode = #tpu.pipeline_mode<synchronous>, transform_indices = @transform_3, window_bounds = array<i64: 8, 32, 96>}, {pipeline_mode = #tpu.pipeline_mode<synchronous>, transform_indices = @transform_4, window_bounds = array<i64: 8, 32, 32>}, {pipeline_mode = #tpu.pipeline_mode<synchronous>, transform_indices = @transform_5, window_bounds = array<i64: 8, 32, 128>}, {pipeline_mode = #tpu.pipeline_mode<synchronous>, transform_indices = @transform_6, window_bounds = array<i64: 8, 128, 32>}, {pipeline_mode = #tpu.pipeline_mode<synchronous>, transform_indices = @transform_7, window_bounds = array<i64: 8, 32, 128>}, {pipeline_mode = #tpu.pipeline_mode<synchronous>, transform_indices = @transform_8, window_bounds = array<i64: 2, 128, 128>}, {pipeline_mode = #tpu.pipeline_mode<synchronous>, transform_indices = @transform_9, window_bounds = array<i64: 2, 128, 128>}, {transform_indices = @transform_10, window_bounds = array<i64: 1, 16, 128>}]} {
    %c0 = arith.constant 0 : index
    %c0_0 = arith.constant 0 : index
    %c0_1 = arith.constant 0 : index
    %0 = vector.load %arg1[%c0, %c0_0, %c0_1] : memref<1x16x64xbf16, #tpu.memory_space<vmem>>, vector<1x16x64xbf16>
    %1 = vector.shape_cast %0 : vector<1x16x64xbf16> to vector<16x64xbf16>
    %c0_2 = arith.constant 0 : index
    %c0_3 = arith.constant 0 : index
    %2 = vector.load %arg2[%c0_2, %c0_3] : memref<64x128xbf16, #tpu.memory_space<vmem>>, vector<64x128xbf16>
    %cst = arith.constant dense<0.000000e+00> : vector<16x128xf32>
    %3 = tpu.matmul %1, %2, %cst {dimension_numbers = #tpu.dot_dimension_numbers<[1], [0], [0], [1], [0, 0, 1, 1], [], []>} : vector<16x64xbf16>, vector<64x128xbf16>, vector<16x128xf32> -> vector<16x128xf32>
    %4 = arith.truncf %3 : vector<16x128xf32> to vector<16x128xbf16>
    %c0_4 = arith.constant 0 : index
    %c0_5 = arith.constant 0 : index
    %c0_6 = arith.constant 0 : index
    %5 = vector.load %arg3[%c0_4, %c0_5, %c0_6] : memref<8x128x32xbf16, #tpu.memory_space<vmem>>, vector<1x128x32xbf16>
    %6 = vector.shape_cast %5 : vector<1x128x32xbf16> to vector<128x32xbf16>
    %cst_7 = arith.constant dense<0.000000e+00> : vector<16x32xf32>
    %7 = tpu.matmul %4, %6, %cst_7 {dimension_numbers = #tpu.dot_dimension_numbers<[1], [0], [0], [1], [0, 0, 1, 1], [], []>} : vector<16x128xbf16>, vector<128x32xbf16>, vector<16x32xf32> -> vector<16x32xf32>
    %8 = arith.truncf %7 : vector<16x32xf32> to vector<16x32xbf16>
    %c0_8 = arith.constant 0 : index
    %c0_9 = arith.constant 0 : index
    %c0_10 = arith.constant 0 : index
    %9 = vector.load %arg4[%c0_8, %c0_9, %c0_10] : memref<8x32x96xbf16, #tpu.memory_space<vmem>>, vector<1x32x96xbf16>
    %10 = vector.shape_cast %9 : vector<1x32x96xbf16> to vector<32x96xbf16>
    %cst_11 = arith.constant dense<0.000000e+00> : vector<16x96xf32>
    %11 = tpu.matmul %8, %10, %cst_11 {dimension_numbers = #tpu.dot_dimension_numbers<[1], [0], [0], [1], [0, 0, 1, 1], [], []>} : vector<16x32xbf16>, vector<32x96xbf16>, vector<16x96xf32> -> vector<16x96xf32>
    %12 = arith.truncf %11 : vector<16x96xf32> to vector<16x96xbf16>
    %13 = vector.extract_strided_slice %12 {offsets = [0, 0], sizes = [16, 8], strides = [1, 1]} : vector<16x96xbf16> to vector<16x8xbf16>
    %14 = vector.extract_strided_slice %12 {offsets = [0, 32], sizes = [16, 8], strides = [1, 1]} : vector<16x96xbf16> to vector<16x8xbf16>
    %15 = vector.extract_strided_slice %12 {offsets = [0, 64], sizes = [16, 8], strides = [1, 1]} : vector<16x96xbf16> to vector<16x8xbf16>
    %cst_12 = arith.constant dense<0.000000e+00> : vector<16x16xf32>
    %16 = tpu.matmul %13, %14, %cst_12 {dimension_numbers = #tpu.dot_dimension_numbers<[1], [1], [0], [0], [0, 0, 1, 0], [], []>} : vector<16x8xbf16>, vector<16x8xbf16>, vector<16x16xf32> -> vector<16x16xf32>
    %cst_13 = arith.constant dense<0xFF800000> : vector<16xf32>
    %17 = vector.multi_reduction <maximumf>, %16, %cst_13 [1] : vector<16x16xf32> to vector<16xf32>
    %18 = vector.shape_cast %17 : vector<16xf32> to vector<16x1xf32>
    %19 = vector.broadcast %18 : vector<16x1xf32> to vector<16x16xf32>
    %20 = arith.subf %16, %19 : vector<16x16xf32>
    %21 = math.exp %20 : vector<16x16xf32>
    %cst_14 = arith.constant dense<0.000000e+00> : vector<16xf32>
    %22 = vector.multi_reduction <add>, %21, %cst_14 [1] : vector<16x16xf32> to vector<16xf32>
    %23 = vector.shape_cast %22 : vector<16xf32> to vector<16x1xf32>
    %24 = tpu.reciprocal %23 {approx = true} : vector<16x1xf32> -> vector<16x1xf32>
    %25 = vector.broadcast %24 : vector<16x1xf32> to vector<16x16xf32>
    %26 = arith.mulf %21, %25 : vector<16x16xf32>
    %27 = arith.truncf %26 : vector<16x16xf32> to vector<16x16xbf16>
    %cst_15 = arith.constant dense<0.000000e+00> : vector<16x8xf32>
    %28 = tpu.matmul %27, %15, %cst_15 {dimension_numbers = #tpu.dot_dimension_numbers<[1], [0], [0], [1], [0, 0, 1, 1], [], []>} : vector<16x16xbf16>, vector<16x8xbf16>, vector<16x8xf32> -> vector<16x8xf32>
    %29 = vector.extract_strided_slice %12 {offsets = [0, 8], sizes = [16, 8], strides = [1, 1]} : vector<16x96xbf16> to vector<16x8xbf16>
    %30 = vector.extract_strided_slice %12 {offsets = [0, 40], sizes = [16, 8], strides = [1, 1]} : vector<16x96xbf16> to vector<16x8xbf16>
    %31 = vector.extract_strided_slice %12 {offsets = [0, 72], sizes = [16, 8], strides = [1, 1]} : vector<16x96xbf16> to vector<16x8xbf16>
    %cst_16 = arith.constant dense<0.000000e+00> : vector<16x16xf32>
    %32 = tpu.matmul %29, %30, %cst_16 {dimension_numbers = #tpu.dot_dimension_numbers<[1], [1], [0], [0], [0, 0, 1, 0], [], []>} : vector<16x8xbf16>, vector<16x8xbf16>, vector<16x16xf32> -> vector<16x16xf32>
    %cst_17 = arith.constant dense<0xFF800000> : vector<16xf32>
    %33 = vector.multi_reduction <maximumf>, %32, %cst_17 [1] : vector<16x16xf32> to vector<16xf32>
    %34 = vector.shape_cast %33 : vector<16xf32> to vector<16x1xf32>
    %35 = vector.broadcast %34 : vector<16x1xf32> to vector<16x16xf32>
    %36 = arith.subf %32, %35 : vector<16x16xf32>
    %37 = math.exp %36 : vector<16x16xf32>
    %cst_18 = arith.constant dense<0.000000e+00> : vector<16xf32>
    %38 = vector.multi_reduction <add>, %37, %cst_18 [1] : vector<16x16xf32> to vector<16xf32>
    %39 = vector.shape_cast %38 : vector<16xf32> to vector<16x1xf32>
    %40 = tpu.reciprocal %39 {approx = true} : vector<16x1xf32> -> vector<16x1xf32>
    %41 = vector.broadcast %40 : vector<16x1xf32> to vector<16x16xf32>
    %42 = arith.mulf %37, %41 : vector<16x16xf32>
    %43 = arith.truncf %42 : vector<16x16xf32> to vector<16x16xbf16>
    %cst_19 = arith.constant dense<0.000000e+00> : vector<16x8xf32>
    %44 = tpu.matmul %43, %31, %cst_19 {dimension_numbers = #tpu.dot_dimension_numbers<[1], [0], [0], [1], [0, 0, 1, 1], [], []>} : vector<16x16xbf16>, vector<16x8xbf16>, vector<16x8xf32> -> vector<16x8xf32>
    %45 = vector.extract_strided_slice %12 {offsets = [0, 16], sizes = [16, 8], strides = [1, 1]} : vector<16x96xbf16> to vector<16x8xbf16>
    %46 = vector.extract_strided_slice %12 {offsets = [0, 48], sizes = [16, 8], strides = [1, 1]} : vector<16x96xbf16> to vector<16x8xbf16>
    %47 = vector.extract_strided_slice %12 {offsets = [0, 80], sizes = [16, 8], strides = [1, 1]} : vector<16x96xbf16> to vector<16x8xbf16>
    %cst_20 = arith.constant dense<0.000000e+00> : vector<16x16xf32>
    %48 = tpu.matmul %45, %46, %cst_20 {dimension_numbers = #tpu.dot_dimension_numbers<[1], [1], [0], [0], [0, 0, 1, 0], [], []>} : vector<16x8xbf16>, vector<16x8xbf16>, vector<16x16xf32> -> vector<16x16xf32>
    %cst_21 = arith.constant dense<0xFF800000> : vector<16xf32>
    %49 = vector.multi_reduction <maximumf>, %48, %cst_21 [1] : vector<16x16xf32> to vector<16xf32>
    %50 = vector.shape_cast %49 : vector<16xf32> to vector<16x1xf32>
    %51 = vector.broadcast %50 : vector<16x1xf32> to vector<16x16xf32>
    %52 = arith.subf %48, %51 : vector<16x16xf32>
    %53 = math.exp %52 : vector<16x16xf32>
    %cst_22 = arith.constant dense<0.000000e+00> : vector<16xf32>
    %54 = vector.multi_reduction <add>, %53, %cst_22 [1] : vector<16x16xf32> to vector<16xf32>
    %55 = vector.shape_cast %54 : vector<16xf32> to vector<16x1xf32>
    %56 = tpu.reciprocal %55 {approx = true} : vector<16x1xf32> -> vector<16x1xf32>
    %57 = vector.broadcast %56 : vector<16x1xf32> to vector<16x16xf32>
    %58 = arith.mulf %53, %57 : vector<16x16xf32>
    %59 = arith.truncf %58 : vector<16x16xf32> to vector<16x16xbf16>
    %cst_23 = arith.constant dense<0.000000e+00> : vector<16x8xf32>
    %60 = tpu.matmul %59, %47, %cst_23 {dimension_numbers = #tpu.dot_dimension_numbers<[1], [0], [0], [1], [0, 0, 1, 1], [], []>} : vector<16x16xbf16>, vector<16x8xbf16>, vector<16x8xf32> -> vector<16x8xf32>
    %61 = vector.extract_strided_slice %12 {offsets = [0, 24], sizes = [16, 8], strides = [1, 1]} : vector<16x96xbf16> to vector<16x8xbf16>
    %62 = vector.extract_strided_slice %12 {offsets = [0, 56], sizes = [16, 8], strides = [1, 1]} : vector<16x96xbf16> to vector<16x8xbf16>
    %63 = vector.extract_strided_slice %12 {offsets = [0, 88], sizes = [16, 8], strides = [1, 1]} : vector<16x96xbf16> to vector<16x8xbf16>
    %cst_24 = arith.constant dense<0.000000e+00> : vector<16x16xf32>
    %64 = tpu.matmul %61, %62, %cst_24 {dimension_numbers = #tpu.dot_dimension_numbers<[1], [1], [0], [0], [0, 0, 1, 0], [], []>} : vector<16x8xbf16>, vector<16x8xbf16>, vector<16x16xf32> -> vector<16x16xf32>
    %cst_25 = arith.constant dense<0xFF800000> : vector<16xf32>
    %65 = vector.multi_reduction <maximumf>, %64, %cst_25 [1] : vector<16x16xf32> to vector<16xf32>
    %66 = vector.shape_cast %65 : vector<16xf32> to vector<16x1xf32>
    %67 = vector.broadcast %66 : vector<16x1xf32> to vector<16x16xf32>
    %68 = arith.subf %64, %67 : vector<16x16xf32>
    %69 = math.exp %68 : vector<16x16xf32>
    %cst_26 = arith.constant dense<0.000000e+00> : vector<16xf32>
    %70 = vector.multi_reduction <add>, %69, %cst_26 [1] : vector<16x16xf32> to vector<16xf32>
    %71 = vector.shape_cast %70 : vector<16xf32> to vector<16x1xf32>
    %72 = tpu.reciprocal %71 {approx = true} : vector<16x1xf32> -> vector<16x1xf32>
    %73 = vector.broadcast %72 : vector<16x1xf32> to vector<16x16xf32>
    %74 = arith.mulf %69, %73 : vector<16x16xf32>
    %75 = arith.truncf %74 : vector<16x16xf32> to vector<16x16xbf16>
    %cst_27 = arith.constant dense<0.000000e+00> : vector<16x8xf32>
    %76 = tpu.matmul %75, %63, %cst_27 {dimension_numbers = #tpu.dot_dimension_numbers<[1], [0], [0], [1], [0, 0, 1, 1], [], []>} : vector<16x16xbf16>, vector<16x8xbf16>, vector<16x8xf32> -> vector<16x8xf32>
    %77 = tpu.concatenate %28, %44, %60, %76 in 1 : vector<16x8xf32>, vector<16x8xf32>, vector<16x8xf32>, vector<16x8xf32> -> vector<16x32xf32>
    %78 = arith.truncf %77 : vector<16x32xf32> to vector<16x32xbf16>
    %c0_28 = arith.constant 0 : index
    %c0_29 = arith.constant 0 : index
    %c0_30 = arith.constant 0 : index
    %79 = vector.load %arg5[%c0_28, %c0_29, %c0_30] : memref<8x32x32xbf16, #tpu.memory_space<vmem>>, vector<1x32x32xbf16>
    %80 = vector.shape_cast %79 : vector<1x32x32xbf16> to vector<32x32xbf16>
    %cst_31 = arith.constant dense<0.000000e+00> : vector<16x32xf32>
    %81 = tpu.matmul %78, %80, %cst_31 {dimension_numbers = #tpu.dot_dimension_numbers<[1], [0], [0], [1], [0, 0, 1, 1], [], []>} : vector<16x32xbf16>, vector<32x32xbf16>, vector<16x32xf32> -> vector<16x32xf32>
    %82 = arith.addf %7, %81 : vector<16x32xf32>
    %83 = arith.truncf %82 : vector<16x32xf32> to vector<16x32xbf16>
    %c0_32 = arith.constant 0 : index
    %c0_33 = arith.constant 0 : index
    %c0_34 = arith.constant 0 : index
    %84 = vector.load %arg6[%c0_32, %c0_33, %c0_34] : memref<8x32x128xbf16, #tpu.memory_space<vmem>>, vector<1x32x128xbf16>
    %85 = vector.shape_cast %84 : vector<1x32x128xbf16> to vector<32x128xbf16>
    %cst_35 = arith.constant dense<0.000000e+00> : vector<16x128xf32>
    %86 = tpu.matmul %83, %85, %cst_35 {dimension_numbers = #tpu.dot_dimension_numbers<[1], [0], [0], [1], [0, 0, 1, 1], [], []>} : vector<16x32xbf16>, vector<32x128xbf16>, vector<16x128xf32> -> vector<16x128xf32>
    %87 = arith.mulf %86, %86 : vector<16x128xf32>
    %88 = arith.mulf %86, %87 : vector<16x128xf32>
    %cst_36 = arith.constant 4.471500e-02 : f32
    %89 = vector.broadcast %cst_36 : f32 to vector<16x128xf32>
    %90 = arith.mulf %89, %88 : vector<16x128xf32>
    %91 = arith.addf %86, %90 : vector<16x128xf32>
    %cst_37 = arith.constant 0.797884583 : f32
    %92 = vector.broadcast %cst_37 : f32 to vector<16x128xf32>
    %93 = arith.mulf %92, %91 : vector<16x128xf32>
    %94 = math.tanh %93 : vector<16x128xf32>
    %cst_38 = arith.constant 1.000000e+00 : f32
    %95 = vector.broadcast %cst_38 : f32 to vector<16x128xf32>
    %96 = arith.addf %95, %94 : vector<16x128xf32>
    %cst_39 = arith.constant 5.000000e-01 : f32
    %97 = vector.broadcast %cst_39 : f32 to vector<16x128xf32>
    %98 = arith.mulf %97, %96 : vector<16x128xf32>
    %99 = arith.mulf %86, %98 : vector<16x128xf32>
    %100 = arith.truncf %99 : vector<16x128xf32> to vector<16x128xbf16>
    %c0_40 = arith.constant 0 : index
    %c0_41 = arith.constant 0 : index
    %c0_42 = arith.constant 0 : index
    %101 = vector.load %arg7[%c0_40, %c0_41, %c0_42] : memref<8x128x32xbf16, #tpu.memory_space<vmem>>, vector<1x128x32xbf16>
    %102 = vector.shape_cast %101 : vector<1x128x32xbf16> to vector<128x32xbf16>
    %cst_43 = arith.constant dense<0.000000e+00> : vector<16x32xf32>
    %103 = tpu.matmul %100, %102, %cst_43 {dimension_numbers = #tpu.dot_dimension_numbers<[1], [0], [0], [1], [0, 0, 1, 1], [], []>} : vector<16x128xbf16>, vector<128x32xbf16>, vector<16x32xf32> -> vector<16x32xf32>
    %104 = arith.addf %82, %103 : vector<16x32xf32>
    %105 = arith.truncf %104 : vector<16x32xf32> to vector<16x32xbf16>
    %c0_44 = arith.constant 0 : index
    %c0_45 = arith.constant 0 : index
    %c0_46 = arith.constant 0 : index
    %106 = vector.load %arg8[%c0_44, %c0_45, %c0_46] : memref<8x32x128xbf16, #tpu.memory_space<vmem>>, vector<1x32x128xbf16>
    %107 = vector.shape_cast %106 : vector<1x32x128xbf16> to vector<32x128xbf16>
    %cst_47 = arith.constant dense<0.000000e+00> : vector<16x128xf32>
    %108 = tpu.matmul %105, %107, %cst_47 {dimension_numbers = #tpu.dot_dimension_numbers<[1], [0], [0], [1], [0, 0, 1, 1], [], []>} : vector<16x32xbf16>, vector<32x128xbf16>, vector<16x128xf32> -> vector<16x128xf32>
    %109 = arith.addf %3, %108 : vector<16x128xf32>
    %110 = arith.truncf %109 : vector<16x128xf32> to vector<16x128xbf16>
    %c1 = arith.constant 1 : index
    %c0_48 = arith.constant 0 : index
    %c0_49 = arith.constant 0 : index
    %111 = vector.load %arg3[%c1, %c0_48, %c0_49] : memref<8x128x32xbf16, #tpu.memory_space<vmem>>, vector<1x128x32xbf16>
    %112 = vector.shape_cast %111 : vector<1x128x32xbf16> to vector<128x32xbf16>
    %cst_50 = arith.constant dense<0.000000e+00> : vector<16x32xf32>
    %113 = tpu.matmul %110, %112, %cst_50 {dimension_numbers = #tpu.dot_dimension_numbers<[1], [0], [0], [1], [0, 0, 1, 1], [], []>} : vector<16x128xbf16>, vector<128x32xbf16>, vector<16x32xf32> -> vector<16x32xf32>
    %114 = arith.truncf %113 : vector<16x32xf32> to vector<16x32xbf16>
    %c1_51 = arith.constant 1 : index
    %c0_52 = arith.constant 0 : index
    %c0_53 = arith.constant 0 : index
    %115 = vector.load %arg4[%c1_51, %c0_52, %c0_53] : memref<8x32x96xbf16, #tpu.memory_space<vmem>>, vector<1x32x96xbf16>
    %116 = vector.shape_cast %115 : vector<1x32x96xbf16> to vector<32x96xbf16>
    %cst_54 = arith.constant dense<0.000000e+00> : vector<16x96xf32>
    %117 = tpu.matmul %114, %116, %cst_54 {dimension_numbers = #tpu.dot_dimension_numbers<[1], [0], [0], [1], [0, 0, 1, 1], [], []>} : vector<16x32xbf16>, vector<32x96xbf16>, vector<16x96xf32> -> vector<16x96xf32>
    %118 = arith.truncf %117 : vector<16x96xf32> to vector<16x96xbf16>
    %119 = vector.extract_strided_slice %118 {offsets = [0, 0], sizes = [16, 8], strides = [1, 1]} : vector<16x96xbf16> to vector<16x8xbf16>
    %120 = vector.extract_strided_slice %118 {offsets = [0, 32], sizes = [16, 8], strides = [1, 1]} : vector<16x96xbf16> to vector<16x8xbf16>
    %121 = vector.extract_strided_slice %118 {offsets = [0, 64], sizes = [16, 8], strides = [1, 1]} : vector<16x96xbf16> to vector<16x8xbf16>
    %cst_55 = arith.constant dense<0.000000e+00> : vector<16x16xf32>
    %122 = tpu.matmul %119, %120, %cst_55 {dimension_numbers = #tpu.dot_dimension_numbers<[1], [1], [0], [0], [0, 0, 1, 0], [], []>} : vector<16x8xbf16>, vector<16x8xbf16>, vector<16x16xf32> -> vector<16x16xf32>
    %cst_56 = arith.constant dense<0xFF800000> : vector<16xf32>
    %123 = vector.multi_reduction <maximumf>, %122, %cst_56 [1] : vector<16x16xf32> to vector<16xf32>
    %124 = vector.shape_cast %123 : vector<16xf32> to vector<16x1xf32>
    %125 = vector.broadcast %124 : vector<16x1xf32> to vector<16x16xf32>
    %126 = arith.subf %122, %125 : vector<16x16xf32>
    %127 = math.exp %126 : vector<16x16xf32>
    %cst_57 = arith.constant dense<0.000000e+00> : vector<16xf32>
    %128 = vector.multi_reduction <add>, %127, %cst_57 [1] : vector<16x16xf32> to vector<16xf32>
    %129 = vector.shape_cast %128 : vector<16xf32> to vector<16x1xf32>
    %130 = tpu.reciprocal %129 {approx = true} : vector<16x1xf32> -> vector<16x1xf32>
    %131 = vector.broadcast %130 : vector<16x1xf32> to vector<16x16xf32>
    %132 = arith.mulf %127, %131 : vector<16x16xf32>
    %133 = arith.truncf %132 : vector<16x16xf32> to vector<16x16xbf16>
    %cst_58 = arith.constant dense<0.000000e+00> : vector<16x8xf32>
    %134 = tpu.matmul %133, %121, %cst_58 {dimension_numbers = #tpu.dot_dimension_numbers<[1], [0], [0], [1], [0, 0, 1, 1], [], []>} : vector<16x16xbf16>, vector<16x8xbf16>, vector<16x8xf32> -> vector<16x8xf32>
    %135 = vector.extract_strided_slice %118 {offsets = [0, 8], sizes = [16, 8], strides = [1, 1]} : vector<16x96xbf16> to vector<16x8xbf16>
    %136 = vector.extract_strided_slice %118 {offsets = [0, 40], sizes = [16, 8], strides = [1, 1]} : vector<16x96xbf16> to vector<16x8xbf16>
    %137 = vector.extract_strided_slice %118 {offsets = [0, 72], sizes = [16, 8], strides = [1, 1]} : vector<16x96xbf16> to vector<16x8xbf16>
    %cst_59 = arith.constant dense<0.000000e+00> : vector<16x16xf32>
    %138 = tpu.matmul %135, %136, %cst_59 {dimension_numbers = #tpu.dot_dimension_numbers<[1], [1], [0], [0], [0, 0, 1, 0], [], []>} : vector<16x8xbf16>, vector<16x8xbf16>, vector<16x16xf32> -> vector<16x16xf32>
    %cst_60 = arith.constant dense<0xFF800000> : vector<16xf32>
    %139 = vector.multi_reduction <maximumf>, %138, %cst_60 [1] : vector<16x16xf32> to vector<16xf32>
    %140 = vector.shape_cast %139 : vector<16xf32> to vector<16x1xf32>
    %141 = vector.broadcast %140 : vector<16x1xf32> to vector<16x16xf32>
    %142 = arith.subf %138, %141 : vector<16x16xf32>
    %143 = math.exp %142 : vector<16x16xf32>
    %cst_61 = arith.constant dense<0.000000e+00> : vector<16xf32>
    %144 = vector.multi_reduction <add>, %143, %cst_61 [1] : vector<16x16xf32> to vector<16xf32>
    %145 = vector.shape_cast %144 : vector<16xf32> to vector<16x1xf32>
    %146 = tpu.reciprocal %145 {approx = true} : vector<16x1xf32> -> vector<16x1xf32>
    %147 = vector.broadcast %146 : vector<16x1xf32> to vector<16x16xf32>
    %148 = arith.mulf %143, %147 : vector<16x16xf32>
    %149 = arith.truncf %148 : vector<16x16xf32> to vector<16x16xbf16>
    %cst_62 = arith.constant dense<0.000000e+00> : vector<16x8xf32>
    %150 = tpu.matmul %149, %137, %cst_62 {dimension_numbers = #tpu.dot_dimension_numbers<[1], [0], [0], [1], [0, 0, 1, 1], [], []>} : vector<16x16xbf16>, vector<16x8xbf16>, vector<16x8xf32> -> vector<16x8xf32>
    %151 = vector.extract_strided_slice %118 {offsets = [0, 16], sizes = [16, 8], strides = [1, 1]} : vector<16x96xbf16> to vector<16x8xbf16>
    %152 = vector.extract_strided_slice %118 {offsets = [0, 48], sizes = [16, 8], strides = [1, 1]} : vector<16x96xbf16> to vector<16x8xbf16>
    %153 = vector.extract_strided_slice %118 {offsets = [0, 80], sizes = [16, 8], strides = [1, 1]} : vector<16x96xbf16> to vector<16x8xbf16>
    %cst_63 = arith.constant dense<0.000000e+00> : vector<16x16xf32>
    %154 = tpu.matmul %151, %152, %cst_63 {dimension_numbers = #tpu.dot_dimension_numbers<[1], [1], [0], [0], [0, 0, 1, 0], [], []>} : vector<16x8xbf16>, vector<16x8xbf16>, vector<16x16xf32> -> vector<16x16xf32>
    %cst_64 = arith.constant dense<0xFF800000> : vector<16xf32>
    %155 = vector.multi_reduction <maximumf>, %154, %cst_64 [1] : vector<16x16xf32> to vector<16xf32>
    %156 = vector.shape_cast %155 : vector<16xf32> to vector<16x1xf32>
    %157 = vector.broadcast %156 : vector<16x1xf32> to vector<16x16xf32>
    %158 = arith.subf %154, %157 : vector<16x16xf32>
    %159 = math.exp %158 : vector<16x16xf32>
    %cst_65 = arith.constant dense<0.000000e+00> : vector<16xf32>
    %160 = vector.multi_reduction <add>, %159, %cst_65 [1] : vector<16x16xf32> to vector<16xf32>
    %161 = vector.shape_cast %160 : vector<16xf32> to vector<16x1xf32>
    %162 = tpu.reciprocal %161 {approx = true} : vector<16x1xf32> -> vector<16x1xf32>
    %163 = vector.broadcast %162 : vector<16x1xf32> to vector<16x16xf32>
    %164 = arith.mulf %159, %163 : vector<16x16xf32>
    %165 = arith.truncf %164 : vector<16x16xf32> to vector<16x16xbf16>
    %cst_66 = arith.constant dense<0.000000e+00> : vector<16x8xf32>
    %166 = tpu.matmul %165, %153, %cst_66 {dimension_numbers = #tpu.dot_dimension_numbers<[1], [0], [0], [1], [0, 0, 1, 1], [], []>} : vector<16x16xbf16>, vector<16x8xbf16>, vector<16x8xf32> -> vector<16x8xf32>
    %167 = vector.extract_strided_slice %118 {offsets = [0, 24], sizes = [16, 8], strides = [1, 1]} : vector<16x96xbf16> to vector<16x8xbf16>
    %168 = vector.extract_strided_slice %118 {offsets = [0, 56], sizes = [16, 8], strides = [1, 1]} : vector<16x96xbf16> to vector<16x8xbf16>
    %169 = vector.extract_strided_slice %118 {offsets = [0, 88], sizes = [16, 8], strides = [1, 1]} : vector<16x96xbf16> to vector<16x8xbf16>
    %cst_67 = arith.constant dense<0.000000e+00> : vector<16x16xf32>
    %170 = tpu.matmul %167, %168, %cst_67 {dimension_numbers = #tpu.dot_dimension_numbers<[1], [1], [0], [0], [0, 0, 1, 0], [], []>} : vector<16x8xbf16>, vector<16x8xbf16>, vector<16x16xf32> -> vector<16x16xf32>
    %cst_68 = arith.constant dense<0xFF800000> : vector<16xf32>
    %171 = vector.multi_reduction <maximumf>, %170, %cst_68 [1] : vector<16x16xf32> to vector<16xf32>
    %172 = vector.shape_cast %171 : vector<16xf32> to vector<16x1xf32>
    %173 = vector.broadcast %172 : vector<16x1xf32> to vector<16x16xf32>
    %174 = arith.subf %170, %173 : vector<16x16xf32>
    %175 = math.exp %174 : vector<16x16xf32>
    %cst_69 = arith.constant dense<0.000000e+00> : vector<16xf32>
    %176 = vector.multi_reduction <add>, %175, %cst_69 [1] : vector<16x16xf32> to vector<16xf32>
    %177 = vector.shape_cast %176 : vector<16xf32> to vector<16x1xf32>
    %178 = tpu.reciprocal %177 {approx = true} : vector<16x1xf32> -> vector<16x1xf32>
    %179 = vector.broadcast %178 : vector<16x1xf32> to vector<16x16xf32>
    %180 = arith.mulf %175, %179 : vector<16x16xf32>
    %181 = arith.truncf %180 : vector<16x16xf32> to vector<16x16xbf16>
    %cst_70 = arith.constant dense<0.000000e+00> : vector<16x8xf32>
    %182 = tpu.matmul %181, %169, %cst_70 {dimension_numbers = #tpu.dot_dimension_numbers<[1], [0], [0], [1], [0, 0, 1, 1], [], []>} : vector<16x16xbf16>, vector<16x8xbf16>, vector<16x8xf32> -> vector<16x8xf32>
    %183 = tpu.concatenate %134, %150, %166, %182 in 1 : vector<16x8xf32>, vector<16x8xf32>, vector<16x8xf32>, vector<16x8xf32> -> vector<16x32xf32>
    %184 = arith.truncf %183 : vector<16x32xf32> to vector<16x32xbf16>
    %c1_71 = arith.constant 1 : index
    %c0_72 = arith.constant 0 : index
    %c0_73 = arith.constant 0 : index
    %185 = vector.load %arg5[%c1_71, %c0_72, %c0_73] : memref<8x32x32xbf16, #tpu.memory_space<vmem>>, vector<1x32x32xbf16>
    %186 = vector.shape_cast %185 : vector<1x32x32xbf16> to vector<32x32xbf16>
    %cst_74 = arith.constant dense<0.000000e+00> : vector<16x32xf32>
    %187 = tpu.matmul %184, %186, %cst_74 {dimension_numbers = #tpu.dot_dimension_numbers<[1], [0], [0], [1], [0, 0, 1, 1], [], []>} : vector<16x32xbf16>, vector<32x32xbf16>, vector<16x32xf32> -> vector<16x32xf32>
    %188 = arith.addf %113, %187 : vector<16x32xf32>
    %189 = arith.truncf %188 : vector<16x32xf32> to vector<16x32xbf16>
    %c1_75 = arith.constant 1 : index
    %c0_76 = arith.constant 0 : index
    %c0_77 = arith.constant 0 : index
    %190 = vector.load %arg6[%c1_75, %c0_76, %c0_77] : memref<8x32x128xbf16, #tpu.memory_space<vmem>>, vector<1x32x128xbf16>
    %191 = vector.shape_cast %190 : vector<1x32x128xbf16> to vector<32x128xbf16>
    %cst_78 = arith.constant dense<0.000000e+00> : vector<16x128xf32>
    %192 = tpu.matmul %189, %191, %cst_78 {dimension_numbers = #tpu.dot_dimension_numbers<[1], [0], [0], [1], [0, 0, 1, 1], [], []>} : vector<16x32xbf16>, vector<32x128xbf16>, vector<16x128xf32> -> vector<16x128xf32>
    %193 = arith.mulf %192, %192 : vector<16x128xf32>
    %194 = arith.mulf %192, %193 : vector<16x128xf32>
    %cst_79 = arith.constant 4.471500e-02 : f32
    %195 = vector.broadcast %cst_79 : f32 to vector<16x128xf32>
    %196 = arith.mulf %195, %194 : vector<16x128xf32>
    %197 = arith.addf %192, %196 : vector<16x128xf32>
    %cst_80 = arith.constant 0.797884583 : f32
    %198 = vector.broadcast %cst_80 : f32 to vector<16x128xf32>
    %199 = arith.mulf %198, %197 : vector<16x128xf32>
    %200 = math.tanh %199 : vector<16x128xf32>
    %cst_81 = arith.constant 1.000000e+00 : f32
    %201 = vector.broadcast %cst_81 : f32 to vector<16x128xf32>
    %202 = arith.addf %201, %200 : vector<16x128xf32>
    %cst_82 = arith.constant 5.000000e-01 : f32
    %203 = vector.broadcast %cst_82 : f32 to vector<16x128xf32>
    %204 = arith.mulf %203, %202 : vector<16x128xf32>
    %205 = arith.mulf %192, %204 : vector<16x128xf32>
    %206 = arith.truncf %205 : vector<16x128xf32> to vector<16x128xbf16>
    %c1_83 = arith.constant 1 : index
    %c0_84 = arith.constant 0 : index
    %c0_85 = arith.constant 0 : index
    %207 = vector.load %arg7[%c1_83, %c0_84, %c0_85] : memref<8x128x32xbf16, #tpu.memory_space<vmem>>, vector<1x128x32xbf16>
    %208 = vector.shape_cast %207 : vector<1x128x32xbf16> to vector<128x32xbf16>
    %cst_86 = arith.constant dense<0.000000e+00> : vector<16x32xf32>
    %209 = tpu.matmul %206, %208, %cst_86 {dimension_numbers = #tpu.dot_dimension_numbers<[1], [0], [0], [1], [0, 0, 1, 1], [], []>} : vector<16x128xbf16>, vector<128x32xbf16>, vector<16x32xf32> -> vector<16x32xf32>
    %210 = arith.addf %188, %209 : vector<16x32xf32>
    %211 = arith.truncf %210 : vector<16x32xf32> to vector<16x32xbf16>
    %c1_87 = arith.constant 1 : index
    %c0_88 = arith.constant 0 : index
    %c0_89 = arith.constant 0 : index
    %212 = vector.load %arg8[%c1_87, %c0_88, %c0_89] : memref<8x32x128xbf16, #tpu.memory_space<vmem>>, vector<1x32x128xbf16>
    %213 = vector.shape_cast %212 : vector<1x32x128xbf16> to vector<32x128xbf16>
    %cst_90 = arith.constant dense<0.000000e+00> : vector<16x128xf32>
    %214 = tpu.matmul %211, %213, %cst_90 {dimension_numbers = #tpu.dot_dimension_numbers<[1], [0], [0], [1], [0, 0, 1, 1], [], []>} : vector<16x32xbf16>, vector<32x128xbf16>, vector<16x128xf32> -> vector<16x128xf32>
    %215 = arith.addf %109, %214 : vector<16x128xf32>
    %216 = arith.truncf %215 : vector<16x128xf32> to vector<16x128xbf16>
    %c2 = arith.constant 2 : index
    %c0_91 = arith.constant 0 : index
    %c0_92 = arith.constant 0 : index
    %217 = vector.load %arg3[%c2, %c0_91, %c0_92] : memref<8x128x32xbf16, #tpu.memory_space<vmem>>, vector<1x128x32xbf16>
    %218 = vector.shape_cast %217 : vector<1x128x32xbf16> to vector<128x32xbf16>
    %cst_93 = arith.constant dense<0.000000e+00> : vector<16x32xf32>
    %219 = tpu.matmul %216, %218, %cst_93 {dimension_numbers = #tpu.dot_dimension_numbers<[1], [0], [0], [1], [0, 0, 1, 1], [], []>} : vector<16x128xbf16>, vector<128x32xbf16>, vector<16x32xf32> -> vector<16x32xf32>
    %220 = arith.truncf %219 : vector<16x32xf32> to vector<16x32xbf16>
    %c2_94 = arith.constant 2 : index
    %c0_95 = arith.constant 0 : index
    %c0_96 = arith.constant 0 : index
    %221 = vector.load %arg4[%c2_94, %c0_95, %c0_96] : memref<8x32x96xbf16, #tpu.memory_space<vmem>>, vector<1x32x96xbf16>
    %222 = vector.shape_cast %221 : vector<1x32x96xbf16> to vector<32x96xbf16>
    %cst_97 = arith.constant dense<0.000000e+00> : vector<16x96xf32>
    %223 = tpu.matmul %220, %222, %cst_97 {dimension_numbers = #tpu.dot_dimension_numbers<[1], [0], [0], [1], [0, 0, 1, 1], [], []>} : vector<16x32xbf16>, vector<32x96xbf16>, vector<16x96xf32> -> vector<16x96xf32>
    %224 = arith.truncf %223 : vector<16x96xf32> to vector<16x96xbf16>
    %225 = vector.extract_strided_slice %224 {offsets = [0, 0], sizes = [16, 8], strides = [1, 1]} : vector<16x96xbf16> to vector<16x8xbf16>
    %226 = vector.extract_strided_slice %224 {offsets = [0, 32], sizes = [16, 8], strides = [1, 1]} : vector<16x96xbf16> to vector<16x8xbf16>
    %227 = vector.extract_strided_slice %224 {offsets = [0, 64], sizes = [16, 8], strides = [1, 1]} : vector<16x96xbf16> to vector<16x8xbf16>
    %cst_98 = arith.constant dense<0.000000e+00> : vector<16x16xf32>
    %228 = tpu.matmul %225, %226, %cst_98 {dimension_numbers = #tpu.dot_dimension_numbers<[1], [1], [0], [0], [0, 0, 1, 0], [], []>} : vector<16x8xbf16>, vector<16x8xbf16>, vector<16x16xf32> -> vector<16x16xf32>
    %cst_99 = arith.constant dense<0xFF800000> : vector<16xf32>
    %229 = vector.multi_reduction <maximumf>, %228, %cst_99 [1] : vector<16x16xf32> to vector<16xf32>
    %230 = vector.shape_cast %229 : vector<16xf32> to vector<16x1xf32>
    %231 = vector.broadcast %230 : vector<16x1xf32> to vector<16x16xf32>
    %232 = arith.subf %228, %231 : vector<16x16xf32>
    %233 = math.exp %232 : vector<16x16xf32>
    %cst_100 = arith.constant dense<0.000000e+00> : vector<16xf32>
    %234 = vector.multi_reduction <add>, %233, %cst_100 [1] : vector<16x16xf32> to vector<16xf32>
    %235 = vector.shape_cast %234 : vector<16xf32> to vector<16x1xf32>
    %236 = tpu.reciprocal %235 {approx = true} : vector<16x1xf32> -> vector<16x1xf32>
    %237 = vector.broadcast %236 : vector<16x1xf32> to vector<16x16xf32>
    %238 = arith.mulf %233, %237 : vector<16x16xf32>
    %239 = arith.truncf %238 : vector<16x16xf32> to vector<16x16xbf16>
    %cst_101 = arith.constant dense<0.000000e+00> : vector<16x8xf32>
    %240 = tpu.matmul %239, %227, %cst_101 {dimension_numbers = #tpu.dot_dimension_numbers<[1], [0], [0], [1], [0, 0, 1, 1], [], []>} : vector<16x16xbf16>, vector<16x8xbf16>, vector<16x8xf32> -> vector<16x8xf32>
    %241 = vector.extract_strided_slice %224 {offsets = [0, 8], sizes = [16, 8], strides = [1, 1]} : vector<16x96xbf16> to vector<16x8xbf16>
    %242 = vector.extract_strided_slice %224 {offsets = [0, 40], sizes = [16, 8], strides = [1, 1]} : vector<16x96xbf16> to vector<16x8xbf16>
    %243 = vector.extract_strided_slice %224 {offsets = [0, 72], sizes = [16, 8], strides = [1, 1]} : vector<16x96xbf16> to vector<16x8xbf16>
    %cst_102 = arith.constant dense<0.000000e+00> : vector<16x16xf32>
    %244 = tpu.matmul %241, %242, %cst_102 {dimension_numbers = #tpu.dot_dimension_numbers<[1], [1], [0], [0], [0, 0, 1, 0], [], []>} : vector<16x8xbf16>, vector<16x8xbf16>, vector<16x16xf32> -> vector<16x16xf32>
    %cst_103 = arith.constant dense<0xFF800000> : vector<16xf32>
    %245 = vector.multi_reduction <maximumf>, %244, %cst_103 [1] : vector<16x16xf32> to vector<16xf32>
    %246 = vector.shape_cast %245 : vector<16xf32> to vector<16x1xf32>
    %247 = vector.broadcast %246 : vector<16x1xf32> to vector<16x16xf32>
    %248 = arith.subf %244, %247 : vector<16x16xf32>
    %249 = math.exp %248 : vector<16x16xf32>
    %cst_104 = arith.constant dense<0.000000e+00> : vector<16xf32>
    %250 = vector.multi_reduction <add>, %249, %cst_104 [1] : vector<16x16xf32> to vector<16xf32>
    %251 = vector.shape_cast %250 : vector<16xf32> to vector<16x1xf32>
    %252 = tpu.reciprocal %251 {approx = true} : vector<16x1xf32> -> vector<16x1xf32>
    %253 = vector.broadcast %252 : vector<16x1xf32> to vector<16x16xf32>
    %254 = arith.mulf %249, %253 : vector<16x16xf32>
    %255 = arith.truncf %254 : vector<16x16xf32> to vector<16x16xbf16>
    %cst_105 = arith.constant dense<0.000000e+00> : vector<16x8xf32>
    %256 = tpu.matmul %255, %243, %cst_105 {dimension_numbers = #tpu.dot_dimension_numbers<[1], [0], [0], [1], [0, 0, 1, 1], [], []>} : vector<16x16xbf16>, vector<16x8xbf16>, vector<16x8xf32> -> vector<16x8xf32>
    %257 = vector.extract_strided_slice %224 {offsets = [0, 16], sizes = [16, 8], strides = [1, 1]} : vector<16x96xbf16> to vector<16x8xbf16>
    %258 = vector.extract_strided_slice %224 {offsets = [0, 48], sizes = [16, 8], strides = [1, 1]} : vector<16x96xbf16> to vector<16x8xbf16>
    %259 = vector.extract_strided_slice %224 {offsets = [0, 80], sizes = [16, 8], strides = [1, 1]} : vector<16x96xbf16> to vector<16x8xbf16>
    %cst_106 = arith.constant dense<0.000000e+00> : vector<16x16xf32>
    %260 = tpu.matmul %257, %258, %cst_106 {dimension_numbers = #tpu.dot_dimension_numbers<[1], [1], [0], [0], [0, 0, 1, 0], [], []>} : vector<16x8xbf16>, vector<16x8xbf16>, vector<16x16xf32> -> vector<16x16xf32>
    %cst_107 = arith.constant dense<0xFF800000> : vector<16xf32>
    %261 = vector.multi_reduction <maximumf>, %260, %cst_107 [1] : vector<16x16xf32> to vector<16xf32>
    %262 = vector.shape_cast %261 : vector<16xf32> to vector<16x1xf32>
    %263 = vector.broadcast %262 : vector<16x1xf32> to vector<16x16xf32>
    %264 = arith.subf %260, %263 : vector<16x16xf32>
    %265 = math.exp %264 : vector<16x16xf32>
    %cst_108 = arith.constant dense<0.000000e+00> : vector<16xf32>
    %266 = vector.multi_reduction <add>, %265, %cst_108 [1] : vector<16x16xf32> to vector<16xf32>
    %267 = vector.shape_cast %266 : vector<16xf32> to vector<16x1xf32>
    %268 = tpu.reciprocal %267 {approx = true} : vector<16x1xf32> -> vector<16x1xf32>
    %269 = vector.broadcast %268 : vector<16x1xf32> to vector<16x16xf32>
    %270 = arith.mulf %265, %269 : vector<16x16xf32>
    %271 = arith.truncf %270 : vector<16x16xf32> to vector<16x16xbf16>
    %cst_109 = arith.constant dense<0.000000e+00> : vector<16x8xf32>
    %272 = tpu.matmul %271, %259, %cst_109 {dimension_numbers = #tpu.dot_dimension_numbers<[1], [0], [0], [1], [0, 0, 1, 1], [], []>} : vector<16x16xbf16>, vector<16x8xbf16>, vector<16x8xf32> -> vector<16x8xf32>
    %273 = vector.extract_strided_slice %224 {offsets = [0, 24], sizes = [16, 8], strides = [1, 1]} : vector<16x96xbf16> to vector<16x8xbf16>
    %274 = vector.extract_strided_slice %224 {offsets = [0, 56], sizes = [16, 8], strides = [1, 1]} : vector<16x96xbf16> to vector<16x8xbf16>
    %275 = vector.extract_strided_slice %224 {offsets = [0, 88], sizes = [16, 8], strides = [1, 1]} : vector<16x96xbf16> to vector<16x8xbf16>
    %cst_110 = arith.constant dense<0.000000e+00> : vector<16x16xf32>
    %276 = tpu.matmul %273, %274, %cst_110 {dimension_numbers = #tpu.dot_dimension_numbers<[1], [1], [0], [0], [0, 0, 1, 0], [], []>} : vector<16x8xbf16>, vector<16x8xbf16>, vector<16x16xf32> -> vector<16x16xf32>
    %cst_111 = arith.constant dense<0xFF800000> : vector<16xf32>
    %277 = vector.multi_reduction <maximumf>, %276, %cst_111 [1] : vector<16x16xf32> to vector<16xf32>
    %278 = vector.shape_cast %277 : vector<16xf32> to vector<16x1xf32>
    %279 = vector.broadcast %278 : vector<16x1xf32> to vector<16x16xf32>
    %280 = arith.subf %276, %279 : vector<16x16xf32>
    %281 = math.exp %280 : vector<16x16xf32>
    %cst_112 = arith.constant dense<0.000000e+00> : vector<16xf32>
    %282 = vector.multi_reduction <add>, %281, %cst_112 [1] : vector<16x16xf32> to vector<16xf32>
    %283 = vector.shape_cast %282 : vector<16xf32> to vector<16x1xf32>
    %284 = tpu.reciprocal %283 {approx = true} : vector<16x1xf32> -> vector<16x1xf32>
    %285 = vector.broadcast %284 : vector<16x1xf32> to vector<16x16xf32>
    %286 = arith.mulf %281, %285 : vector<16x16xf32>
    %287 = arith.truncf %286 : vector<16x16xf32> to vector<16x16xbf16>
    %cst_113 = arith.constant dense<0.000000e+00> : vector<16x8xf32>
    %288 = tpu.matmul %287, %275, %cst_113 {dimension_numbers = #tpu.dot_dimension_numbers<[1], [0], [0], [1], [0, 0, 1, 1], [], []>} : vector<16x16xbf16>, vector<16x8xbf16>, vector<16x8xf32> -> vector<16x8xf32>
    %289 = tpu.concatenate %240, %256, %272, %288 in 1 : vector<16x8xf32>, vector<16x8xf32>, vector<16x8xf32>, vector<16x8xf32> -> vector<16x32xf32>
    %290 = arith.truncf %289 : vector<16x32xf32> to vector<16x32xbf16>
    %c2_114 = arith.constant 2 : index
    %c0_115 = arith.constant 0 : index
    %c0_116 = arith.constant 0 : index
    %291 = vector.load %arg5[%c2_114, %c0_115, %c0_116] : memref<8x32x32xbf16, #tpu.memory_space<vmem>>, vector<1x32x32xbf16>
    %292 = vector.shape_cast %291 : vector<1x32x32xbf16> to vector<32x32xbf16>
    %cst_117 = arith.constant dense<0.000000e+00> : vector<16x32xf32>
    %293 = tpu.matmul %290, %292, %cst_117 {dimension_numbers = #tpu.dot_dimension_numbers<[1], [0], [0], [1], [0, 0, 1, 1], [], []>} : vector<16x32xbf16>, vector<32x32xbf16>, vector<16x32xf32> -> vector<16x32xf32>
    %294 = arith.addf %219, %293 : vector<16x32xf32>
    %295 = arith.truncf %294 : vector<16x32xf32> to vector<16x32xbf16>
    %c2_118 = arith.constant 2 : index
    %c0_119 = arith.constant 0 : index
    %c0_120 = arith.constant 0 : index
    %296 = vector.load %arg6[%c2_118, %c0_119, %c0_120] : memref<8x32x128xbf16, #tpu.memory_space<vmem>>, vector<1x32x128xbf16>
    %297 = vector.shape_cast %296 : vector<1x32x128xbf16> to vector<32x128xbf16>
    %cst_121 = arith.constant dense<0.000000e+00> : vector<16x128xf32>
    %298 = tpu.matmul %295, %297, %cst_121 {dimension_numbers = #tpu.dot_dimension_numbers<[1], [0], [0], [1], [0, 0, 1, 1], [], []>} : vector<16x32xbf16>, vector<32x128xbf16>, vector<16x128xf32> -> vector<16x128xf32>
    %299 = arith.mulf %298, %298 : vector<16x128xf32>
    %300 = arith.mulf %298, %299 : vector<16x128xf32>
    %cst_122 = arith.constant 4.471500e-02 : f32
    %301 = vector.broadcast %cst_122 : f32 to vector<16x128xf32>
    %302 = arith.mulf %301, %300 : vector<16x128xf32>
    %303 = arith.addf %298, %302 : vector<16x128xf32>
    %cst_123 = arith.constant 0.797884583 : f32
    %304 = vector.broadcast %cst_123 : f32 to vector<16x128xf32>
    %305 = arith.mulf %304, %303 : vector<16x128xf32>
    %306 = math.tanh %305 : vector<16x128xf32>
    %cst_124 = arith.constant 1.000000e+00 : f32
    %307 = vector.broadcast %cst_124 : f32 to vector<16x128xf32>
    %308 = arith.addf %307, %306 : vector<16x128xf32>
    %cst_125 = arith.constant 5.000000e-01 : f32
    %309 = vector.broadcast %cst_125 : f32 to vector<16x128xf32>
    %310 = arith.mulf %309, %308 : vector<16x128xf32>
    %311 = arith.mulf %298, %310 : vector<16x128xf32>
    %312 = arith.truncf %311 : vector<16x128xf32> to vector<16x128xbf16>
    %c2_126 = arith.constant 2 : index
    %c0_127 = arith.constant 0 : index
    %c0_128 = arith.constant 0 : index
    %313 = vector.load %arg7[%c2_126, %c0_127, %c0_128] : memref<8x128x32xbf16, #tpu.memory_space<vmem>>, vector<1x128x32xbf16>
    %314 = vector.shape_cast %313 : vector<1x128x32xbf16> to vector<128x32xbf16>
    %cst_129 = arith.constant dense<0.000000e+00> : vector<16x32xf32>
    %315 = tpu.matmul %312, %314, %cst_129 {dimension_numbers = #tpu.dot_dimension_numbers<[1], [0], [0], [1], [0, 0, 1, 1], [], []>} : vector<16x128xbf16>, vector<128x32xbf16>, vector<16x32xf32> -> vector<16x32xf32>
    %316 = arith.addf %294, %315 : vector<16x32xf32>
    %317 = arith.truncf %316 : vector<16x32xf32> to vector<16x32xbf16>
    %c2_130 = arith.constant 2 : index
    %c0_131 = arith.constant 0 : index
    %c0_132 = arith.constant 0 : index
    %318 = vector.load %arg8[%c2_130, %c0_131, %c0_132] : memref<8x32x128xbf16, #tpu.memory_space<vmem>>, vector<1x32x128xbf16>
    %319 = vector.shape_cast %318 : vector<1x32x128xbf16> to vector<32x128xbf16>
    %cst_133 = arith.constant dense<0.000000e+00> : vector<16x128xf32>
    %320 = tpu.matmul %317, %319, %cst_133 {dimension_numbers = #tpu.dot_dimension_numbers<[1], [0], [0], [1], [0, 0, 1, 1], [], []>} : vector<16x32xbf16>, vector<32x128xbf16>, vector<16x128xf32> -> vector<16x128xf32>
    %321 = arith.addf %215, %320 : vector<16x128xf32>
    %322 = arith.truncf %321 : vector<16x128xf32> to vector<16x128xbf16>
    %c3 = arith.constant 3 : index
    %c0_134 = arith.constant 0 : index
    %c0_135 = arith.constant 0 : index
    %323 = vector.load %arg3[%c3, %c0_134, %c0_135] : memref<8x128x32xbf16, #tpu.memory_space<vmem>>, vector<1x128x32xbf16>
    %324 = vector.shape_cast %323 : vector<1x128x32xbf16> to vector<128x32xbf16>
    %cst_136 = arith.constant dense<0.000000e+00> : vector<16x32xf32>
    %325 = tpu.matmul %322, %324, %cst_136 {dimension_numbers = #tpu.dot_dimension_numbers<[1], [0], [0], [1], [0, 0, 1, 1], [], []>} : vector<16x128xbf16>, vector<128x32xbf16>, vector<16x32xf32> -> vector<16x32xf32>
    %326 = arith.truncf %325 : vector<16x32xf32> to vector<16x32xbf16>
    %c3_137 = arith.constant 3 : index
    %c0_138 = arith.constant 0 : index
    %c0_139 = arith.constant 0 : index
    %327 = vector.load %arg4[%c3_137, %c0_138, %c0_139] : memref<8x32x96xbf16, #tpu.memory_space<vmem>>, vector<1x32x96xbf16>
    %328 = vector.shape_cast %327 : vector<1x32x96xbf16> to vector<32x96xbf16>
    %cst_140 = arith.constant dense<0.000000e+00> : vector<16x96xf32>
    %329 = tpu.matmul %326, %328, %cst_140 {dimension_numbers = #tpu.dot_dimension_numbers<[1], [0], [0], [1], [0, 0, 1, 1], [], []>} : vector<16x32xbf16>, vector<32x96xbf16>, vector<16x96xf32> -> vector<16x96xf32>
    %330 = arith.truncf %329 : vector<16x96xf32> to vector<16x96xbf16>
    %331 = vector.extract_strided_slice %330 {offsets = [0, 0], sizes = [16, 8], strides = [1, 1]} : vector<16x96xbf16> to vector<16x8xbf16>
    %332 = vector.extract_strided_slice %330 {offsets = [0, 32], sizes = [16, 8], strides = [1, 1]} : vector<16x96xbf16> to vector<16x8xbf16>
    %333 = vector.extract_strided_slice %330 {offsets = [0, 64], sizes = [16, 8], strides = [1, 1]} : vector<16x96xbf16> to vector<16x8xbf16>
    %cst_141 = arith.constant dense<0.000000e+00> : vector<16x16xf32>
    %334 = tpu.matmul %331, %332, %cst_141 {dimension_numbers = #tpu.dot_dimension_numbers<[1], [1], [0], [0], [0, 0, 1, 0], [], []>} : vector<16x8xbf16>, vector<16x8xbf16>, vector<16x16xf32> -> vector<16x16xf32>
    %cst_142 = arith.constant dense<0xFF800000> : vector<16xf32>
    %335 = vector.multi_reduction <maximumf>, %334, %cst_142 [1] : vector<16x16xf32> to vector<16xf32>
    %336 = vector.shape_cast %335 : vector<16xf32> to vector<16x1xf32>
    %337 = vector.broadcast %336 : vector<16x1xf32> to vector<16x16xf32>
    %338 = arith.subf %334, %337 : vector<16x16xf32>
    %339 = math.exp %338 : vector<16x16xf32>
    %cst_143 = arith.constant dense<0.000000e+00> : vector<16xf32>
    %340 = vector.multi_reduction <add>, %339, %cst_143 [1] : vector<16x16xf32> to vector<16xf32>
    %341 = vector.shape_cast %340 : vector<16xf32> to vector<16x1xf32>
    %342 = tpu.reciprocal %341 {approx = true} : vector<16x1xf32> -> vector<16x1xf32>
    %343 = vector.broadcast %342 : vector<16x1xf32> to vector<16x16xf32>
    %344 = arith.mulf %339, %343 : vector<16x16xf32>
    %345 = arith.truncf %344 : vector<16x16xf32> to vector<16x16xbf16>
    %cst_144 = arith.constant dense<0.000000e+00> : vector<16x8xf32>
    %346 = tpu.matmul %345, %333, %cst_144 {dimension_numbers = #tpu.dot_dimension_numbers<[1], [0], [0], [1], [0, 0, 1, 1], [], []>} : vector<16x16xbf16>, vector<16x8xbf16>, vector<16x8xf32> -> vector<16x8xf32>
    %347 = vector.extract_strided_slice %330 {offsets = [0, 8], sizes = [16, 8], strides = [1, 1]} : vector<16x96xbf16> to vector<16x8xbf16>
    %348 = vector.extract_strided_slice %330 {offsets = [0, 40], sizes = [16, 8], strides = [1, 1]} : vector<16x96xbf16> to vector<16x8xbf16>
    %349 = vector.extract_strided_slice %330 {offsets = [0, 72], sizes = [16, 8], strides = [1, 1]} : vector<16x96xbf16> to vector<16x8xbf16>
    %cst_145 = arith.constant dense<0.000000e+00> : vector<16x16xf32>
    %350 = tpu.matmul %347, %348, %cst_145 {dimension_numbers = #tpu.dot_dimension_numbers<[1], [1], [0], [0], [0, 0, 1, 0], [], []>} : vector<16x8xbf16>, vector<16x8xbf16>, vector<16x16xf32> -> vector<16x16xf32>
    %cst_146 = arith.constant dense<0xFF800000> : vector<16xf32>
    %351 = vector.multi_reduction <maximumf>, %350, %cst_146 [1] : vector<16x16xf32> to vector<16xf32>
    %352 = vector.shape_cast %351 : vector<16xf32> to vector<16x1xf32>
    %353 = vector.broadcast %352 : vector<16x1xf32> to vector<16x16xf32>
    %354 = arith.subf %350, %353 : vector<16x16xf32>
    %355 = math.exp %354 : vector<16x16xf32>
    %cst_147 = arith.constant dense<0.000000e+00> : vector<16xf32>
    %356 = vector.multi_reduction <add>, %355, %cst_147 [1] : vector<16x16xf32> to vector<16xf32>
    %357 = vector.shape_cast %356 : vector<16xf32> to vector<16x1xf32>
    %358 = tpu.reciprocal %357 {approx = true} : vector<16x1xf32> -> vector<16x1xf32>
    %359 = vector.broadcast %358 : vector<16x1xf32> to vector<16x16xf32>
    %360 = arith.mulf %355, %359 : vector<16x16xf32>
    %361 = arith.truncf %360 : vector<16x16xf32> to vector<16x16xbf16>
    %cst_148 = arith.constant dense<0.000000e+00> : vector<16x8xf32>
    %362 = tpu.matmul %361, %349, %cst_148 {dimension_numbers = #tpu.dot_dimension_numbers<[1], [0], [0], [1], [0, 0, 1, 1], [], []>} : vector<16x16xbf16>, vector<16x8xbf16>, vector<16x8xf32> -> vector<16x8xf32>
    %363 = vector.extract_strided_slice %330 {offsets = [0, 16], sizes = [16, 8], strides = [1, 1]} : vector<16x96xbf16> to vector<16x8xbf16>
    %364 = vector.extract_strided_slice %330 {offsets = [0, 48], sizes = [16, 8], strides = [1, 1]} : vector<16x96xbf16> to vector<16x8xbf16>
    %365 = vector.extract_strided_slice %330 {offsets = [0, 80], sizes = [16, 8], strides = [1, 1]} : vector<16x96xbf16> to vector<16x8xbf16>
    %cst_149 = arith.constant dense<0.000000e+00> : vector<16x16xf32>
    %366 = tpu.matmul %363, %364, %cst_149 {dimension_numbers = #tpu.dot_dimension_numbers<[1], [1], [0], [0], [0, 0, 1, 0], [], []>} : vector<16x8xbf16>, vector<16x8xbf16>, vector<16x16xf32> -> vector<16x16xf32>
    %cst_150 = arith.constant dense<0xFF800000> : vector<16xf32>
    %367 = vector.multi_reduction <maximumf>, %366, %cst_150 [1] : vector<16x16xf32> to vector<16xf32>
    %368 = vector.shape_cast %367 : vector<16xf32> to vector<16x1xf32>
    %369 = vector.broadcast %368 : vector<16x1xf32> to vector<16x16xf32>
    %370 = arith.subf %366, %369 : vector<16x16xf32>
    %371 = math.exp %370 : vector<16x16xf32>
    %cst_151 = arith.constant dense<0.000000e+00> : vector<16xf32>
    %372 = vector.multi_reduction <add>, %371, %cst_151 [1] : vector<16x16xf32> to vector<16xf32>
    %373 = vector.shape_cast %372 : vector<16xf32> to vector<16x1xf32>
    %374 = tpu.reciprocal %373 {approx = true} : vector<16x1xf32> -> vector<16x1xf32>
    %375 = vector.broadcast %374 : vector<16x1xf32> to vector<16x16xf32>
    %376 = arith.mulf %371, %375 : vector<16x16xf32>
    %377 = arith.truncf %376 : vector<16x16xf32> to vector<16x16xbf16>
    %cst_152 = arith.constant dense<0.000000e+00> : vector<16x8xf32>
    %378 = tpu.matmul %377, %365, %cst_152 {dimension_numbers = #tpu.dot_dimension_numbers<[1], [0], [0], [1], [0, 0, 1, 1], [], []>} : vector<16x16xbf16>, vector<16x8xbf16>, vector<16x8xf32> -> vector<16x8xf32>
    %379 = vector.extract_strided_slice %330 {offsets = [0, 24], sizes = [16, 8], strides = [1, 1]} : vector<16x96xbf16> to vector<16x8xbf16>
    %380 = vector.extract_strided_slice %330 {offsets = [0, 56], sizes = [16, 8], strides = [1, 1]} : vector<16x96xbf16> to vector<16x8xbf16>
    %381 = vector.extract_strided_slice %330 {offsets = [0, 88], sizes = [16, 8], strides = [1, 1]} : vector<16x96xbf16> to vector<16x8xbf16>
    %cst_153 = arith.constant dense<0.000000e+00> : vector<16x16xf32>
    %382 = tpu.matmul %379, %380, %cst_153 {dimension_numbers = #tpu.dot_dimension_numbers<[1], [1], [0], [0], [0, 0, 1, 0], [], []>} : vector<16x8xbf16>, vector<16x8xbf16>, vector<16x16xf32> -> vector<16x16xf32>
    %cst_154 = arith.constant dense<0xFF800000> : vector<16xf32>
    %383 = vector.multi_reduction <maximumf>, %382, %cst_154 [1] : vector<16x16xf32> to vector<16xf32>
    %384 = vector.shape_cast %383 : vector<16xf32> to vector<16x1xf32>
    %385 = vector.broadcast %384 : vector<16x1xf32> to vector<16x16xf32>
    %386 = arith.subf %382, %385 : vector<16x16xf32>
    %387 = math.exp %386 : vector<16x16xf32>
    %cst_155 = arith.constant dense<0.000000e+00> : vector<16xf32>
    %388 = vector.multi_reduction <add>, %387, %cst_155 [1] : vector<16x16xf32> to vector<16xf32>
    %389 = vector.shape_cast %388 : vector<16xf32> to vector<16x1xf32>
    %390 = tpu.reciprocal %389 {approx = true} : vector<16x1xf32> -> vector<16x1xf32>
    %391 = vector.broadcast %390 : vector<16x1xf32> to vector<16x16xf32>
    %392 = arith.mulf %387, %391 : vector<16x16xf32>
    %393 = arith.truncf %392 : vector<16x16xf32> to vector<16x16xbf16>
    %cst_156 = arith.constant dense<0.000000e+00> : vector<16x8xf32>
    %394 = tpu.matmul %393, %381, %cst_156 {dimension_numbers = #tpu.dot_dimension_numbers<[1], [0], [0], [1], [0, 0, 1, 1], [], []>} : vector<16x16xbf16>, vector<16x8xbf16>, vector<16x8xf32> -> vector<16x8xf32>
    %395 = tpu.concatenate %346, %362, %378, %394 in 1 : vector<16x8xf32>, vector<16x8xf32>, vector<16x8xf32>, vector<16x8xf32> -> vector<16x32xf32>
    %396 = arith.truncf %395 : vector<16x32xf32> to vector<16x32xbf16>
    %c3_157 = arith.constant 3 : index
    %c0_158 = arith.constant 0 : index
    %c0_159 = arith.constant 0 : index
    %397 = vector.load %arg5[%c3_157, %c0_158, %c0_159] : memref<8x32x32xbf16, #tpu.memory_space<vmem>>, vector<1x32x32xbf16>
    %398 = vector.shape_cast %397 : vector<1x32x32xbf16> to vector<32x32xbf16>
    %cst_160 = arith.constant dense<0.000000e+00> : vector<16x32xf32>
    %399 = tpu.matmul %396, %398, %cst_160 {dimension_numbers = #tpu.dot_dimension_numbers<[1], [0], [0], [1], [0, 0, 1, 1], [], []>} : vector<16x32xbf16>, vector<32x32xbf16>, vector<16x32xf32> -> vector<16x32xf32>
    %400 = arith.addf %325, %399 : vector<16x32xf32>
    %401 = arith.truncf %400 : vector<16x32xf32> to vector<16x32xbf16>
    %c3_161 = arith.constant 3 : index
    %c0_162 = arith.constant 0 : index
    %c0_163 = arith.constant 0 : index
    %402 = vector.load %arg6[%c3_161, %c0_162, %c0_163] : memref<8x32x128xbf16, #tpu.memory_space<vmem>>, vector<1x32x128xbf16>
    %403 = vector.shape_cast %402 : vector<1x32x128xbf16> to vector<32x128xbf16>
    %cst_164 = arith.constant dense<0.000000e+00> : vector<16x128xf32>
    %404 = tpu.matmul %401, %403, %cst_164 {dimension_numbers = #tpu.dot_dimension_numbers<[1], [0], [0], [1], [0, 0, 1, 1], [], []>} : vector<16x32xbf16>, vector<32x128xbf16>, vector<16x128xf32> -> vector<16x128xf32>
    %405 = arith.mulf %404, %404 : vector<16x128xf32>
    %406 = arith.mulf %404, %405 : vector<16x128xf32>
    %cst_165 = arith.constant 4.471500e-02 : f32
    %407 = vector.broadcast %cst_165 : f32 to vector<16x128xf32>
    %408 = arith.mulf %407, %406 : vector<16x128xf32>
    %409 = arith.addf %404, %408 : vector<16x128xf32>
    %cst_166 = arith.constant 0.797884583 : f32
    %410 = vector.broadcast %cst_166 : f32 to vector<16x128xf32>
    %411 = arith.mulf %410, %409 : vector<16x128xf32>
    %412 = math.tanh %411 : vector<16x128xf32>
    %cst_167 = arith.constant 1.000000e+00 : f32
    %413 = vector.broadcast %cst_167 : f32 to vector<16x128xf32>
    %414 = arith.addf %413, %412 : vector<16x128xf32>
    %cst_168 = arith.constant 5.000000e-01 : f32
    %415 = vector.broadcast %cst_168 : f32 to vector<16x128xf32>
    %416 = arith.mulf %415, %414 : vector<16x128xf32>
    %417 = arith.mulf %404, %416 : vector<16x128xf32>
    %418 = arith.truncf %417 : vector<16x128xf32> to vector<16x128xbf16>
    %c3_169 = arith.constant 3 : index
    %c0_170 = arith.constant 0 : index
    %c0_171 = arith.constant 0 : index
    %419 = vector.load %arg7[%c3_169, %c0_170, %c0_171] : memref<8x128x32xbf16, #tpu.memory_space<vmem>>, vector<1x128x32xbf16>
    %420 = vector.shape_cast %419 : vector<1x128x32xbf16> to vector<128x32xbf16>
    %cst_172 = arith.constant dense<0.000000e+00> : vector<16x32xf32>
    %421 = tpu.matmul %418, %420, %cst_172 {dimension_numbers = #tpu.dot_dimension_numbers<[1], [0], [0], [1], [0, 0, 1, 1], [], []>} : vector<16x128xbf16>, vector<128x32xbf16>, vector<16x32xf32> -> vector<16x32xf32>
    %422 = arith.addf %400, %421 : vector<16x32xf32>
    %423 = arith.truncf %422 : vector<16x32xf32> to vector<16x32xbf16>
    %c3_173 = arith.constant 3 : index
    %c0_174 = arith.constant 0 : index
    %c0_175 = arith.constant 0 : index
    %424 = vector.load %arg8[%c3_173, %c0_174, %c0_175] : memref<8x32x128xbf16, #tpu.memory_space<vmem>>, vector<1x32x128xbf16>
    %425 = vector.shape_cast %424 : vector<1x32x128xbf16> to vector<32x128xbf16>
    %cst_176 = arith.constant dense<0.000000e+00> : vector<16x128xf32>
    %426 = tpu.matmul %423, %425, %cst_176 {dimension_numbers = #tpu.dot_dimension_numbers<[1], [0], [0], [1], [0, 0, 1, 1], [], []>} : vector<16x32xbf16>, vector<32x128xbf16>, vector<16x128xf32> -> vector<16x128xf32>
    %427 = arith.addf %321, %426 : vector<16x128xf32>
    %428 = arith.truncf %427 : vector<16x128xf32> to vector<16x128xbf16>
    %c7 = arith.constant 7 : index
    %c0_177 = arith.constant 0 : index
    %c0_178 = arith.constant 0 : index
    %429 = vector.load %arg3[%c7, %c0_177, %c0_178] : memref<8x128x32xbf16, #tpu.memory_space<vmem>>, vector<1x128x32xbf16>
    %430 = vector.shape_cast %429 : vector<1x128x32xbf16> to vector<128x32xbf16>
    %cst_179 = arith.constant dense<0.000000e+00> : vector<16x32xf32>
    %431 = tpu.matmul %428, %430, %cst_179 {dimension_numbers = #tpu.dot_dimension_numbers<[1], [0], [0], [1], [0, 0, 1, 1], [], []>} : vector<16x128xbf16>, vector<128x32xbf16>, vector<16x32xf32> -> vector<16x32xf32>
    %432 = arith.truncf %431 : vector<16x32xf32> to vector<16x32xbf16>
    %c7_180 = arith.constant 7 : index
    %c0_181 = arith.constant 0 : index
    %c0_182 = arith.constant 0 : index
    %433 = vector.load %arg4[%c7_180, %c0_181, %c0_182] : memref<8x32x96xbf16, #tpu.memory_space<vmem>>, vector<1x32x96xbf16>
    %434 = vector.shape_cast %433 : vector<1x32x96xbf16> to vector<32x96xbf16>
    %cst_183 = arith.constant dense<0.000000e+00> : vector<16x96xf32>
    %435 = tpu.matmul %432, %434, %cst_183 {dimension_numbers = #tpu.dot_dimension_numbers<[1], [0], [0], [1], [0, 0, 1, 1], [], []>} : vector<16x32xbf16>, vector<32x96xbf16>, vector<16x96xf32> -> vector<16x96xf32>
    %436 = arith.truncf %435 : vector<16x96xf32> to vector<16x96xbf16>
    %437 = vector.extract_strided_slice %436 {offsets = [0, 0], sizes = [16, 8], strides = [1, 1]} : vector<16x96xbf16> to vector<16x8xbf16>
    %438 = vector.extract_strided_slice %436 {offsets = [0, 32], sizes = [16, 8], strides = [1, 1]} : vector<16x96xbf16> to vector<16x8xbf16>
    %439 = vector.extract_strided_slice %436 {offsets = [0, 64], sizes = [16, 8], strides = [1, 1]} : vector<16x96xbf16> to vector<16x8xbf16>
    %cst_184 = arith.constant dense<0.000000e+00> : vector<16x16xf32>
    %440 = tpu.matmul %437, %438, %cst_184 {dimension_numbers = #tpu.dot_dimension_numbers<[1], [1], [0], [0], [0, 0, 1, 0], [], []>} : vector<16x8xbf16>, vector<16x8xbf16>, vector<16x16xf32> -> vector<16x16xf32>
    %cst_185 = arith.constant dense<0xFF800000> : vector<16xf32>
    %441 = vector.multi_reduction <maximumf>, %440, %cst_185 [1] : vector<16x16xf32> to vector<16xf32>
    %442 = vector.shape_cast %441 : vector<16xf32> to vector<16x1xf32>
    %443 = vector.broadcast %442 : vector<16x1xf32> to vector<16x16xf32>
    %444 = arith.subf %440, %443 : vector<16x16xf32>
    %445 = math.exp %444 : vector<16x16xf32>
    %cst_186 = arith.constant dense<0.000000e+00> : vector<16xf32>
    %446 = vector.multi_reduction <add>, %445, %cst_186 [1] : vector<16x16xf32> to vector<16xf32>
    %447 = vector.shape_cast %446 : vector<16xf32> to vector<16x1xf32>
    %448 = tpu.reciprocal %447 {approx = true} : vector<16x1xf32> -> vector<16x1xf32>
    %449 = vector.broadcast %448 : vector<16x1xf32> to vector<16x16xf32>
    %450 = arith.mulf %445, %449 : vector<16x16xf32>
    %451 = arith.truncf %450 : vector<16x16xf32> to vector<16x16xbf16>
    %cst_187 = arith.constant dense<0.000000e+00> : vector<16x8xf32>
    %452 = tpu.matmul %451, %439, %cst_187 {dimension_numbers = #tpu.dot_dimension_numbers<[1], [0], [0], [1], [0, 0, 1, 1], [], []>} : vector<16x16xbf16>, vector<16x8xbf16>, vector<16x8xf32> -> vector<16x8xf32>
    %453 = vector.extract_strided_slice %436 {offsets = [0, 8], sizes = [16, 8], strides = [1, 1]} : vector<16x96xbf16> to vector<16x8xbf16>
    %454 = vector.extract_strided_slice %436 {offsets = [0, 40], sizes = [16, 8], strides = [1, 1]} : vector<16x96xbf16> to vector<16x8xbf16>
    %455 = vector.extract_strided_slice %436 {offsets = [0, 72], sizes = [16, 8], strides = [1, 1]} : vector<16x96xbf16> to vector<16x8xbf16>
    %cst_188 = arith.constant dense<0.000000e+00> : vector<16x16xf32>
    %456 = tpu.matmul %453, %454, %cst_188 {dimension_numbers = #tpu.dot_dimension_numbers<[1], [1], [0], [0], [0, 0, 1, 0], [], []>} : vector<16x8xbf16>, vector<16x8xbf16>, vector<16x16xf32> -> vector<16x16xf32>
    %cst_189 = arith.constant dense<0xFF800000> : vector<16xf32>
    %457 = vector.multi_reduction <maximumf>, %456, %cst_189 [1] : vector<16x16xf32> to vector<16xf32>
    %458 = vector.shape_cast %457 : vector<16xf32> to vector<16x1xf32>
    %459 = vector.broadcast %458 : vector<16x1xf32> to vector<16x16xf32>
    %460 = arith.subf %456, %459 : vector<16x16xf32>
    %461 = math.exp %460 : vector<16x16xf32>
    %cst_190 = arith.constant dense<0.000000e+00> : vector<16xf32>
    %462 = vector.multi_reduction <add>, %461, %cst_190 [1] : vector<16x16xf32> to vector<16xf32>
    %463 = vector.shape_cast %462 : vector<16xf32> to vector<16x1xf32>
    %464 = tpu.reciprocal %463 {approx = true} : vector<16x1xf32> -> vector<16x1xf32>
    %465 = vector.broadcast %464 : vector<16x1xf32> to vector<16x16xf32>
    %466 = arith.mulf %461, %465 : vector<16x16xf32>
    %467 = arith.truncf %466 : vector<16x16xf32> to vector<16x16xbf16>
    %cst_191 = arith.constant dense<0.000000e+00> : vector<16x8xf32>
    %468 = tpu.matmul %467, %455, %cst_191 {dimension_numbers = #tpu.dot_dimension_numbers<[1], [0], [0], [1], [0, 0, 1, 1], [], []>} : vector<16x16xbf16>, vector<16x8xbf16>, vector<16x8xf32> -> vector<16x8xf32>
    %469 = vector.extract_strided_slice %436 {offsets = [0, 16], sizes = [16, 8], strides = [1, 1]} : vector<16x96xbf16> to vector<16x8xbf16>
    %470 = vector.extract_strided_slice %436 {offsets = [0, 48], sizes = [16, 8], strides = [1, 1]} : vector<16x96xbf16> to vector<16x8xbf16>
    %471 = vector.extract_strided_slice %436 {offsets = [0, 80], sizes = [16, 8], strides = [1, 1]} : vector<16x96xbf16> to vector<16x8xbf16>
    %cst_192 = arith.constant dense<0.000000e+00> : vector<16x16xf32>
    %472 = tpu.matmul %469, %470, %cst_192 {dimension_numbers = #tpu.dot_dimension_numbers<[1], [1], [0], [0], [0, 0, 1, 0], [], []>} : vector<16x8xbf16>, vector<16x8xbf16>, vector<16x16xf32> -> vector<16x16xf32>
    %cst_193 = arith.constant dense<0xFF800000> : vector<16xf32>
    %473 = vector.multi_reduction <maximumf>, %472, %cst_193 [1] : vector<16x16xf32> to vector<16xf32>
    %474 = vector.shape_cast %473 : vector<16xf32> to vector<16x1xf32>
    %475 = vector.broadcast %474 : vector<16x1xf32> to vector<16x16xf32>
    %476 = arith.subf %472, %475 : vector<16x16xf32>
    %477 = math.exp %476 : vector<16x16xf32>
    %cst_194 = arith.constant dense<0.000000e+00> : vector<16xf32>
    %478 = vector.multi_reduction <add>, %477, %cst_194 [1] : vector<16x16xf32> to vector<16xf32>
    %479 = vector.shape_cast %478 : vector<16xf32> to vector<16x1xf32>
    %480 = tpu.reciprocal %479 {approx = true} : vector<16x1xf32> -> vector<16x1xf32>
    %481 = vector.broadcast %480 : vector<16x1xf32> to vector<16x16xf32>
    %482 = arith.mulf %477, %481 : vector<16x16xf32>
    %483 = arith.truncf %482 : vector<16x16xf32> to vector<16x16xbf16>
    %cst_195 = arith.constant dense<0.000000e+00> : vector<16x8xf32>
    %484 = tpu.matmul %483, %471, %cst_195 {dimension_numbers = #tpu.dot_dimension_numbers<[1], [0], [0], [1], [0, 0, 1, 1], [], []>} : vector<16x16xbf16>, vector<16x8xbf16>, vector<16x8xf32> -> vector<16x8xf32>
    %485 = vector.extract_strided_slice %436 {offsets = [0, 24], sizes = [16, 8], strides = [1, 1]} : vector<16x96xbf16> to vector<16x8xbf16>
    %486 = vector.extract_strided_slice %436 {offsets = [0, 56], sizes = [16, 8], strides = [1, 1]} : vector<16x96xbf16> to vector<16x8xbf16>
    %487 = vector.extract_strided_slice %436 {offsets = [0, 88], sizes = [16, 8], strides = [1, 1]} : vector<16x96xbf16> to vector<16x8xbf16>
    %cst_196 = arith.constant dense<0.000000e+00> : vector<16x16xf32>
    %488 = tpu.matmul %485, %486, %cst_196 {dimension_numbers = #tpu.dot_dimension_numbers<[1], [1], [0], [0], [0, 0, 1, 0], [], []>} : vector<16x8xbf16>, vector<16x8xbf16>, vector<16x16xf32> -> vector<16x16xf32>
    %cst_197 = arith.constant dense<0xFF800000> : vector<16xf32>
    %489 = vector.multi_reduction <maximumf>, %488, %cst_197 [1] : vector<16x16xf32> to vector<16xf32>
    %490 = vector.shape_cast %489 : vector<16xf32> to vector<16x1xf32>
    %491 = vector.broadcast %490 : vector<16x1xf32> to vector<16x16xf32>
    %492 = arith.subf %488, %491 : vector<16x16xf32>
    %493 = math.exp %492 : vector<16x16xf32>
    %cst_198 = arith.constant dense<0.000000e+00> : vector<16xf32>
    %494 = vector.multi_reduction <add>, %493, %cst_198 [1] : vector<16x16xf32> to vector<16xf32>
    %495 = vector.shape_cast %494 : vector<16xf32> to vector<16x1xf32>
    %496 = tpu.reciprocal %495 {approx = true} : vector<16x1xf32> -> vector<16x1xf32>
    %497 = vector.broadcast %496 : vector<16x1xf32> to vector<16x16xf32>
    %498 = arith.mulf %493, %497 : vector<16x16xf32>
    %499 = arith.truncf %498 : vector<16x16xf32> to vector<16x16xbf16>
    %cst_199 = arith.constant dense<0.000000e+00> : vector<16x8xf32>
    %500 = tpu.matmul %499, %487, %cst_199 {dimension_numbers = #tpu.dot_dimension_numbers<[1], [0], [0], [1], [0, 0, 1, 1], [], []>} : vector<16x16xbf16>, vector<16x8xbf16>, vector<16x8xf32> -> vector<16x8xf32>
    %501 = tpu.concatenate %452, %468, %484, %500 in 1 : vector<16x8xf32>, vector<16x8xf32>, vector<16x8xf32>, vector<16x8xf32> -> vector<16x32xf32>
    %502 = arith.truncf %501 : vector<16x32xf32> to vector<16x32xbf16>
    %c7_200 = arith.constant 7 : index
    %c0_201 = arith.constant 0 : index
    %c0_202 = arith.constant 0 : index
    %503 = vector.load %arg5[%c7_200, %c0_201, %c0_202] : memref<8x32x32xbf16, #tpu.memory_space<vmem>>, vector<1x32x32xbf16>
    %504 = vector.shape_cast %503 : vector<1x32x32xbf16> to vector<32x32xbf16>
    %cst_203 = arith.constant dense<0.000000e+00> : vector<16x32xf32>
    %505 = tpu.matmul %502, %504, %cst_203 {dimension_numbers = #tpu.dot_dimension_numbers<[1], [0], [0], [1], [0, 0, 1, 1], [], []>} : vector<16x32xbf16>, vector<32x32xbf16>, vector<16x32xf32> -> vector<16x32xf32>
    %506 = arith.addf %431, %505 : vector<16x32xf32>
    %507 = arith.truncf %506 : vector<16x32xf32> to vector<16x32xbf16>
    %c7_204 = arith.constant 7 : index
    %c0_205 = arith.constant 0 : index
    %c0_206 = arith.constant 0 : index
    %508 = vector.load %arg6[%c7_204, %c0_205, %c0_206] : memref<8x32x128xbf16, #tpu.memory_space<vmem>>, vector<1x32x128xbf16>
    %509 = vector.shape_cast %508 : vector<1x32x128xbf16> to vector<32x128xbf16>
    %cst_207 = arith.constant dense<0.000000e+00> : vector<16x128xf32>
    %510 = tpu.matmul %507, %509, %cst_207 {dimension_numbers = #tpu.dot_dimension_numbers<[1], [0], [0], [1], [0, 0, 1, 1], [], []>} : vector<16x32xbf16>, vector<32x128xbf16>, vector<16x128xf32> -> vector<16x128xf32>
    %511 = arith.mulf %510, %510 : vector<16x128xf32>
    %512 = arith.mulf %510, %511 : vector<16x128xf32>
    %cst_208 = arith.constant 4.471500e-02 : f32
    %513 = vector.broadcast %cst_208 : f32 to vector<16x128xf32>
    %514 = arith.mulf %513, %512 : vector<16x128xf32>
    %515 = arith.addf %510, %514 : vector<16x128xf32>
    %cst_209 = arith.constant 0.797884583 : f32
    %516 = vector.broadcast %cst_209 : f32 to vector<16x128xf32>
    %517 = arith.mulf %516, %515 : vector<16x128xf32>
    %518 = math.tanh %517 : vector<16x128xf32>
    %cst_210 = arith.constant 1.000000e+00 : f32
    %519 = vector.broadcast %cst_210 : f32 to vector<16x128xf32>
    %520 = arith.addf %519, %518 : vector<16x128xf32>
    %cst_211 = arith.constant 5.000000e-01 : f32
    %521 = vector.broadcast %cst_211 : f32 to vector<16x128xf32>
    %522 = arith.mulf %521, %520 : vector<16x128xf32>
    %523 = arith.mulf %510, %522 : vector<16x128xf32>
    %524 = arith.truncf %523 : vector<16x128xf32> to vector<16x128xbf16>
    %c7_212 = arith.constant 7 : index
    %c0_213 = arith.constant 0 : index
    %c0_214 = arith.constant 0 : index
    %525 = vector.load %arg7[%c7_212, %c0_213, %c0_214] : memref<8x128x32xbf16, #tpu.memory_space<vmem>>, vector<1x128x32xbf16>
    %526 = vector.shape_cast %525 : vector<1x128x32xbf16> to vector<128x32xbf16>
    %cst_215 = arith.constant dense<0.000000e+00> : vector<16x32xf32>
    %527 = tpu.matmul %524, %526, %cst_215 {dimension_numbers = #tpu.dot_dimension_numbers<[1], [0], [0], [1], [0, 0, 1, 1], [], []>} : vector<16x128xbf16>, vector<128x32xbf16>, vector<16x32xf32> -> vector<16x32xf32>
    %528 = arith.addf %506, %527 : vector<16x32xf32>
    %529 = arith.truncf %528 : vector<16x32xf32> to vector<16x32xbf16>
    %c7_216 = arith.constant 7 : index
    %c0_217 = arith.constant 0 : index
    %c0_218 = arith.constant 0 : index
    %530 = vector.load %arg8[%c7_216, %c0_217, %c0_218] : memref<8x32x128xbf16, #tpu.memory_space<vmem>>, vector<1x32x128xbf16>
    %531 = vector.shape_cast %530 : vector<1x32x128xbf16> to vector<32x128xbf16>
    %cst_219 = arith.constant dense<0.000000e+00> : vector<16x128xf32>
    %532 = tpu.matmul %529, %531, %cst_219 {dimension_numbers = #tpu.dot_dimension_numbers<[1], [0], [0], [1], [0, 0, 1, 1], [], []>} : vector<16x32xbf16>, vector<32x128xbf16>, vector<16x128xf32> -> vector<16x128xf32>
    %533 = arith.addf %427, %532 : vector<16x128xf32>
    %534 = arith.truncf %321 : vector<16x128xf32> to vector<16x128xbf16>
    %c1_220 = arith.constant 1 : index
    %c0_221 = arith.constant 0 : index
    %c0_222 = arith.constant 0 : index
    %535 = vector.load %arg9[%c1_220, %c0_221, %c0_222] : memref<2x128x128xbf16, #tpu.memory_space<vmem>>, vector<1x128x128xbf16>
    %536 = vector.shape_cast %535 : vector<1x128x128xbf16> to vector<128x128xbf16>
    %cst_223 = arith.constant dense<0.000000e+00> : vector<16x128xf32>
    %537 = tpu.matmul %534, %536, %cst_223 {dimension_numbers = #tpu.dot_dimension_numbers<[1], [0], [0], [1], [0, 0, 1, 1], [], []>} : vector<16x128xbf16>, vector<128x128xbf16>, vector<16x128xf32> -> vector<16x128xf32>
    %538 = arith.truncf %533 : vector<16x128xf32> to vector<16x128xbf16>
    %c1_224 = arith.constant 1 : index
    %c0_225 = arith.constant 0 : index
    %c0_226 = arith.constant 0 : index
    %539 = vector.load %arg10[%c1_224, %c0_225, %c0_226] : memref<2x128x128xbf16, #tpu.memory_space<vmem>>, vector<1x128x128xbf16>
    %540 = vector.shape_cast %539 : vector<1x128x128xbf16> to vector<128x128xbf16>
    %cst_227 = arith.constant dense<0.000000e+00> : vector<16x128xf32>
    %541 = tpu.matmul %538, %540, %cst_227 {dimension_numbers = #tpu.dot_dimension_numbers<[1], [0], [0], [1], [0, 0, 1, 1], [], []>} : vector<16x128xbf16>, vector<128x128xbf16>, vector<16x128xf32> -> vector<16x128xf32>
    %542 = arith.addf %537, %541 : vector<16x128xf32>
    %543 = arith.truncf %542 : vector<16x128xf32> to vector<16x128xbf16>
    %c6 = arith.constant 6 : index
    %c0_228 = arith.constant 0 : index
    %c0_229 = arith.constant 0 : index
    %544 = vector.load %arg3[%c6, %c0_228, %c0_229] : memref<8x128x32xbf16, #tpu.memory_space<vmem>>, vector<1x128x32xbf16>
    %545 = vector.shape_cast %544 : vector<1x128x32xbf16> to vector<128x32xbf16>
    %cst_230 = arith.constant dense<0.000000e+00> : vector<16x32xf32>
    %546 = tpu.matmul %543, %545, %cst_230 {dimension_numbers = #tpu.dot_dimension_numbers<[1], [0], [0], [1], [0, 0, 1, 1], [], []>} : vector<16x128xbf16>, vector<128x32xbf16>, vector<16x32xf32> -> vector<16x32xf32>
    %547 = arith.truncf %546 : vector<16x32xf32> to vector<16x32xbf16>
    %c6_231 = arith.constant 6 : index
    %c0_232 = arith.constant 0 : index
    %c0_233 = arith.constant 0 : index
    %548 = vector.load %arg4[%c6_231, %c0_232, %c0_233] : memref<8x32x96xbf16, #tpu.memory_space<vmem>>, vector<1x32x96xbf16>
    %549 = vector.shape_cast %548 : vector<1x32x96xbf16> to vector<32x96xbf16>
    %cst_234 = arith.constant dense<0.000000e+00> : vector<16x96xf32>
    %550 = tpu.matmul %547, %549, %cst_234 {dimension_numbers = #tpu.dot_dimension_numbers<[1], [0], [0], [1], [0, 0, 1, 1], [], []>} : vector<16x32xbf16>, vector<32x96xbf16>, vector<16x96xf32> -> vector<16x96xf32>
    %551 = arith.truncf %550 : vector<16x96xf32> to vector<16x96xbf16>
    %552 = vector.extract_strided_slice %551 {offsets = [0, 0], sizes = [16, 8], strides = [1, 1]} : vector<16x96xbf16> to vector<16x8xbf16>
    %553 = vector.extract_strided_slice %551 {offsets = [0, 32], sizes = [16, 8], strides = [1, 1]} : vector<16x96xbf16> to vector<16x8xbf16>
    %554 = vector.extract_strided_slice %551 {offsets = [0, 64], sizes = [16, 8], strides = [1, 1]} : vector<16x96xbf16> to vector<16x8xbf16>
    %cst_235 = arith.constant dense<0.000000e+00> : vector<16x16xf32>
    %555 = tpu.matmul %552, %553, %cst_235 {dimension_numbers = #tpu.dot_dimension_numbers<[1], [1], [0], [0], [0, 0, 1, 0], [], []>} : vector<16x8xbf16>, vector<16x8xbf16>, vector<16x16xf32> -> vector<16x16xf32>
    %cst_236 = arith.constant dense<0xFF800000> : vector<16xf32>
    %556 = vector.multi_reduction <maximumf>, %555, %cst_236 [1] : vector<16x16xf32> to vector<16xf32>
    %557 = vector.shape_cast %556 : vector<16xf32> to vector<16x1xf32>
    %558 = vector.broadcast %557 : vector<16x1xf32> to vector<16x16xf32>
    %559 = arith.subf %555, %558 : vector<16x16xf32>
    %560 = math.exp %559 : vector<16x16xf32>
    %cst_237 = arith.constant dense<0.000000e+00> : vector<16xf32>
    %561 = vector.multi_reduction <add>, %560, %cst_237 [1] : vector<16x16xf32> to vector<16xf32>
    %562 = vector.shape_cast %561 : vector<16xf32> to vector<16x1xf32>
    %563 = tpu.reciprocal %562 {approx = true} : vector<16x1xf32> -> vector<16x1xf32>
    %564 = vector.broadcast %563 : vector<16x1xf32> to vector<16x16xf32>
    %565 = arith.mulf %560, %564 : vector<16x16xf32>
    %566 = arith.truncf %565 : vector<16x16xf32> to vector<16x16xbf16>
    %cst_238 = arith.constant dense<0.000000e+00> : vector<16x8xf32>
    %567 = tpu.matmul %566, %554, %cst_238 {dimension_numbers = #tpu.dot_dimension_numbers<[1], [0], [0], [1], [0, 0, 1, 1], [], []>} : vector<16x16xbf16>, vector<16x8xbf16>, vector<16x8xf32> -> vector<16x8xf32>
    %568 = vector.extract_strided_slice %551 {offsets = [0, 8], sizes = [16, 8], strides = [1, 1]} : vector<16x96xbf16> to vector<16x8xbf16>
    %569 = vector.extract_strided_slice %551 {offsets = [0, 40], sizes = [16, 8], strides = [1, 1]} : vector<16x96xbf16> to vector<16x8xbf16>
    %570 = vector.extract_strided_slice %551 {offsets = [0, 72], sizes = [16, 8], strides = [1, 1]} : vector<16x96xbf16> to vector<16x8xbf16>
    %cst_239 = arith.constant dense<0.000000e+00> : vector<16x16xf32>
    %571 = tpu.matmul %568, %569, %cst_239 {dimension_numbers = #tpu.dot_dimension_numbers<[1], [1], [0], [0], [0, 0, 1, 0], [], []>} : vector<16x8xbf16>, vector<16x8xbf16>, vector<16x16xf32> -> vector<16x16xf32>
    %cst_240 = arith.constant dense<0xFF800000> : vector<16xf32>
    %572 = vector.multi_reduction <maximumf>, %571, %cst_240 [1] : vector<16x16xf32> to vector<16xf32>
    %573 = vector.shape_cast %572 : vector<16xf32> to vector<16x1xf32>
    %574 = vector.broadcast %573 : vector<16x1xf32> to vector<16x16xf32>
    %575 = arith.subf %571, %574 : vector<16x16xf32>
    %576 = math.exp %575 : vector<16x16xf32>
    %cst_241 = arith.constant dense<0.000000e+00> : vector<16xf32>
    %577 = vector.multi_reduction <add>, %576, %cst_241 [1] : vector<16x16xf32> to vector<16xf32>
    %578 = vector.shape_cast %577 : vector<16xf32> to vector<16x1xf32>
    %579 = tpu.reciprocal %578 {approx = true} : vector<16x1xf32> -> vector<16x1xf32>
    %580 = vector.broadcast %579 : vector<16x1xf32> to vector<16x16xf32>
    %581 = arith.mulf %576, %580 : vector<16x16xf32>
    %582 = arith.truncf %581 : vector<16x16xf32> to vector<16x16xbf16>
    %cst_242 = arith.constant dense<0.000000e+00> : vector<16x8xf32>
    %583 = tpu.matmul %582, %570, %cst_242 {dimension_numbers = #tpu.dot_dimension_numbers<[1], [0], [0], [1], [0, 0, 1, 1], [], []>} : vector<16x16xbf16>, vector<16x8xbf16>, vector<16x8xf32> -> vector<16x8xf32>
    %584 = vector.extract_strided_slice %551 {offsets = [0, 16], sizes = [16, 8], strides = [1, 1]} : vector<16x96xbf16> to vector<16x8xbf16>
    %585 = vector.extract_strided_slice %551 {offsets = [0, 48], sizes = [16, 8], strides = [1, 1]} : vector<16x96xbf16> to vector<16x8xbf16>
    %586 = vector.extract_strided_slice %551 {offsets = [0, 80], sizes = [16, 8], strides = [1, 1]} : vector<16x96xbf16> to vector<16x8xbf16>
    %cst_243 = arith.constant dense<0.000000e+00> : vector<16x16xf32>
    %587 = tpu.matmul %584, %585, %cst_243 {dimension_numbers = #tpu.dot_dimension_numbers<[1], [1], [0], [0], [0, 0, 1, 0], [], []>} : vector<16x8xbf16>, vector<16x8xbf16>, vector<16x16xf32> -> vector<16x16xf32>
    %cst_244 = arith.constant dense<0xFF800000> : vector<16xf32>
    %588 = vector.multi_reduction <maximumf>, %587, %cst_244 [1] : vector<16x16xf32> to vector<16xf32>
    %589 = vector.shape_cast %588 : vector<16xf32> to vector<16x1xf32>
    %590 = vector.broadcast %589 : vector<16x1xf32> to vector<16x16xf32>
    %591 = arith.subf %587, %590 : vector<16x16xf32>
    %592 = math.exp %591 : vector<16x16xf32>
    %cst_245 = arith.constant dense<0.000000e+00> : vector<16xf32>
    %593 = vector.multi_reduction <add>, %592, %cst_245 [1] : vector<16x16xf32> to vector<16xf32>
    %594 = vector.shape_cast %593 : vector<16xf32> to vector<16x1xf32>
    %595 = tpu.reciprocal %594 {approx = true} : vector<16x1xf32> -> vector<16x1xf32>
    %596 = vector.broadcast %595 : vector<16x1xf32> to vector<16x16xf32>
    %597 = arith.mulf %592, %596 : vector<16x16xf32>
    %598 = arith.truncf %597 : vector<16x16xf32> to vector<16x16xbf16>
    %cst_246 = arith.constant dense<0.000000e+00> : vector<16x8xf32>
    %599 = tpu.matmul %598, %586, %cst_246 {dimension_numbers = #tpu.dot_dimension_numbers<[1], [0], [0], [1], [0, 0, 1, 1], [], []>} : vector<16x16xbf16>, vector<16x8xbf16>, vector<16x8xf32> -> vector<16x8xf32>
    %600 = vector.extract_strided_slice %551 {offsets = [0, 24], sizes = [16, 8], strides = [1, 1]} : vector<16x96xbf16> to vector<16x8xbf16>
    %601 = vector.extract_strided_slice %551 {offsets = [0, 56], sizes = [16, 8], strides = [1, 1]} : vector<16x96xbf16> to vector<16x8xbf16>
    %602 = vector.extract_strided_slice %551 {offsets = [0, 88], sizes = [16, 8], strides = [1, 1]} : vector<16x96xbf16> to vector<16x8xbf16>
    %cst_247 = arith.constant dense<0.000000e+00> : vector<16x16xf32>
    %603 = tpu.matmul %600, %601, %cst_247 {dimension_numbers = #tpu.dot_dimension_numbers<[1], [1], [0], [0], [0, 0, 1, 0], [], []>} : vector<16x8xbf16>, vector<16x8xbf16>, vector<16x16xf32> -> vector<16x16xf32>
    %cst_248 = arith.constant dense<0xFF800000> : vector<16xf32>
    %604 = vector.multi_reduction <maximumf>, %603, %cst_248 [1] : vector<16x16xf32> to vector<16xf32>
    %605 = vector.shape_cast %604 : vector<16xf32> to vector<16x1xf32>
    %606 = vector.broadcast %605 : vector<16x1xf32> to vector<16x16xf32>
    %607 = arith.subf %603, %606 : vector<16x16xf32>
    %608 = math.exp %607 : vector<16x16xf32>
    %cst_249 = arith.constant dense<0.000000e+00> : vector<16xf32>
    %609 = vector.multi_reduction <add>, %608, %cst_249 [1] : vector<16x16xf32> to vector<16xf32>
    %610 = vector.shape_cast %609 : vector<16xf32> to vector<16x1xf32>
    %611 = tpu.reciprocal %610 {approx = true} : vector<16x1xf32> -> vector<16x1xf32>
    %612 = vector.broadcast %611 : vector<16x1xf32> to vector<16x16xf32>
    %613 = arith.mulf %608, %612 : vector<16x16xf32>
    %614 = arith.truncf %613 : vector<16x16xf32> to vector<16x16xbf16>
    %cst_250 = arith.constant dense<0.000000e+00> : vector<16x8xf32>
    %615 = tpu.matmul %614, %602, %cst_250 {dimension_numbers = #tpu.dot_dimension_numbers<[1], [0], [0], [1], [0, 0, 1, 1], [], []>} : vector<16x16xbf16>, vector<16x8xbf16>, vector<16x8xf32> -> vector<16x8xf32>
    %616 = tpu.concatenate %567, %583, %599, %615 in 1 : vector<16x8xf32>, vector<16x8xf32>, vector<16x8xf32>, vector<16x8xf32> -> vector<16x32xf32>
    %617 = arith.truncf %616 : vector<16x32xf32> to vector<16x32xbf16>
    %c6_251 = arith.constant 6 : index
    %c0_252 = arith.constant 0 : index
    %c0_253 = arith.constant 0 : index
    %618 = vector.load %arg5[%c6_251, %c0_252, %c0_253] : memref<8x32x32xbf16, #tpu.memory_space<vmem>>, vector<1x32x32xbf16>
    %619 = vector.shape_cast %618 : vector<1x32x32xbf16> to vector<32x32xbf16>
    %cst_254 = arith.constant dense<0.000000e+00> : vector<16x32xf32>
    %620 = tpu.matmul %617, %619, %cst_254 {dimension_numbers = #tpu.dot_dimension_numbers<[1], [0], [0], [1], [0, 0, 1, 1], [], []>} : vector<16x32xbf16>, vector<32x32xbf16>, vector<16x32xf32> -> vector<16x32xf32>
    %621 = arith.addf %546, %620 : vector<16x32xf32>
    %622 = arith.truncf %621 : vector<16x32xf32> to vector<16x32xbf16>
    %c6_255 = arith.constant 6 : index
    %c0_256 = arith.constant 0 : index
    %c0_257 = arith.constant 0 : index
    %623 = vector.load %arg6[%c6_255, %c0_256, %c0_257] : memref<8x32x128xbf16, #tpu.memory_space<vmem>>, vector<1x32x128xbf16>
    %624 = vector.shape_cast %623 : vector<1x32x128xbf16> to vector<32x128xbf16>
    %cst_258 = arith.constant dense<0.000000e+00> : vector<16x128xf32>
    %625 = tpu.matmul %622, %624, %cst_258 {dimension_numbers = #tpu.dot_dimension_numbers<[1], [0], [0], [1], [0, 0, 1, 1], [], []>} : vector<16x32xbf16>, vector<32x128xbf16>, vector<16x128xf32> -> vector<16x128xf32>
    %626 = arith.mulf %625, %625 : vector<16x128xf32>
    %627 = arith.mulf %625, %626 : vector<16x128xf32>
    %cst_259 = arith.constant 4.471500e-02 : f32
    %628 = vector.broadcast %cst_259 : f32 to vector<16x128xf32>
    %629 = arith.mulf %628, %627 : vector<16x128xf32>
    %630 = arith.addf %625, %629 : vector<16x128xf32>
    %cst_260 = arith.constant 0.797884583 : f32
    %631 = vector.broadcast %cst_260 : f32 to vector<16x128xf32>
    %632 = arith.mulf %631, %630 : vector<16x128xf32>
    %633 = math.tanh %632 : vector<16x128xf32>
    %cst_261 = arith.constant 1.000000e+00 : f32
    %634 = vector.broadcast %cst_261 : f32 to vector<16x128xf32>
    %635 = arith.addf %634, %633 : vector<16x128xf32>
    %cst_262 = arith.constant 5.000000e-01 : f32
    %636 = vector.broadcast %cst_262 : f32 to vector<16x128xf32>
    %637 = arith.mulf %636, %635 : vector<16x128xf32>
    %638 = arith.mulf %625, %637 : vector<16x128xf32>
    %639 = arith.truncf %638 : vector<16x128xf32> to vector<16x128xbf16>
    %c6_263 = arith.constant 6 : index
    %c0_264 = arith.constant 0 : index
    %c0_265 = arith.constant 0 : index
    %640 = vector.load %arg7[%c6_263, %c0_264, %c0_265] : memref<8x128x32xbf16, #tpu.memory_space<vmem>>, vector<1x128x32xbf16>
    %641 = vector.shape_cast %640 : vector<1x128x32xbf16> to vector<128x32xbf16>
    %cst_266 = arith.constant dense<0.000000e+00> : vector<16x32xf32>
    %642 = tpu.matmul %639, %641, %cst_266 {dimension_numbers = #tpu.dot_dimension_numbers<[1], [0], [0], [1], [0, 0, 1, 1], [], []>} : vector<16x128xbf16>, vector<128x32xbf16>, vector<16x32xf32> -> vector<16x32xf32>
    %643 = arith.addf %621, %642 : vector<16x32xf32>
    %644 = arith.truncf %643 : vector<16x32xf32> to vector<16x32xbf16>
    %c6_267 = arith.constant 6 : index
    %c0_268 = arith.constant 0 : index
    %c0_269 = arith.constant 0 : index
    %645 = vector.load %arg8[%c6_267, %c0_268, %c0_269] : memref<8x32x128xbf16, #tpu.memory_space<vmem>>, vector<1x32x128xbf16>
    %646 = vector.shape_cast %645 : vector<1x32x128xbf16> to vector<32x128xbf16>
    %cst_270 = arith.constant dense<0.000000e+00> : vector<16x128xf32>
    %647 = tpu.matmul %644, %646, %cst_270 {dimension_numbers = #tpu.dot_dimension_numbers<[1], [0], [0], [1], [0, 0, 1, 1], [], []>} : vector<16x32xbf16>, vector<32x128xbf16>, vector<16x128xf32> -> vector<16x128xf32>
    %648 = arith.addf %542, %647 : vector<16x128xf32>
    %649 = arith.truncf %215 : vector<16x128xf32> to vector<16x128xbf16>
    %c0_271 = arith.constant 0 : index
    %c0_272 = arith.constant 0 : index
    %c0_273 = arith.constant 0 : index
    %650 = vector.load %arg9[%c0_271, %c0_272, %c0_273] : memref<2x128x128xbf16, #tpu.memory_space<vmem>>, vector<1x128x128xbf16>
    %651 = vector.shape_cast %650 : vector<1x128x128xbf16> to vector<128x128xbf16>
    %cst_274 = arith.constant dense<0.000000e+00> : vector<16x128xf32>
    %652 = tpu.matmul %649, %651, %cst_274 {dimension_numbers = #tpu.dot_dimension_numbers<[1], [0], [0], [1], [0, 0, 1, 1], [], []>} : vector<16x128xbf16>, vector<128x128xbf16>, vector<16x128xf32> -> vector<16x128xf32>
    %653 = arith.truncf %648 : vector<16x128xf32> to vector<16x128xbf16>
    %c0_275 = arith.constant 0 : index
    %c0_276 = arith.constant 0 : index
    %c0_277 = arith.constant 0 : index
    %654 = vector.load %arg10[%c0_275, %c0_276, %c0_277] : memref<2x128x128xbf16, #tpu.memory_space<vmem>>, vector<1x128x128xbf16>
    %655 = vector.shape_cast %654 : vector<1x128x128xbf16> to vector<128x128xbf16>
    %cst_278 = arith.constant dense<0.000000e+00> : vector<16x128xf32>
    %656 = tpu.matmul %653, %655, %cst_278 {dimension_numbers = #tpu.dot_dimension_numbers<[1], [0], [0], [1], [0, 0, 1, 1], [], []>} : vector<16x128xbf16>, vector<128x128xbf16>, vector<16x128xf32> -> vector<16x128xf32>
    %657 = arith.addf %652, %656 : vector<16x128xf32>
    %658 = arith.truncf %657 : vector<16x128xf32> to vector<16x128xbf16>
    %c5 = arith.constant 5 : index
    %c0_279 = arith.constant 0 : index
    %c0_280 = arith.constant 0 : index
    %659 = vector.load %arg3[%c5, %c0_279, %c0_280] : memref<8x128x32xbf16, #tpu.memory_space<vmem>>, vector<1x128x32xbf16>
    %660 = vector.shape_cast %659 : vector<1x128x32xbf16> to vector<128x32xbf16>
    %cst_281 = arith.constant dense<0.000000e+00> : vector<16x32xf32>
    %661 = tpu.matmul %658, %660, %cst_281 {dimension_numbers = #tpu.dot_dimension_numbers<[1], [0], [0], [1], [0, 0, 1, 1], [], []>} : vector<16x128xbf16>, vector<128x32xbf16>, vector<16x32xf32> -> vector<16x32xf32>
    %662 = arith.truncf %661 : vector<16x32xf32> to vector<16x32xbf16>
    %c5_282 = arith.constant 5 : index
    %c0_283 = arith.constant 0 : index
    %c0_284 = arith.constant 0 : index
    %663 = vector.load %arg4[%c5_282, %c0_283, %c0_284] : memref<8x32x96xbf16, #tpu.memory_space<vmem>>, vector<1x32x96xbf16>
    %664 = vector.shape_cast %663 : vector<1x32x96xbf16> to vector<32x96xbf16>
    %cst_285 = arith.constant dense<0.000000e+00> : vector<16x96xf32>
    %665 = tpu.matmul %662, %664, %cst_285 {dimension_numbers = #tpu.dot_dimension_numbers<[1], [0], [0], [1], [0, 0, 1, 1], [], []>} : vector<16x32xbf16>, vector<32x96xbf16>, vector<16x96xf32> -> vector<16x96xf32>
    %666 = arith.truncf %665 : vector<16x96xf32> to vector<16x96xbf16>
    %667 = vector.extract_strided_slice %666 {offsets = [0, 0], sizes = [16, 8], strides = [1, 1]} : vector<16x96xbf16> to vector<16x8xbf16>
    %668 = vector.extract_strided_slice %666 {offsets = [0, 32], sizes = [16, 8], strides = [1, 1]} : vector<16x96xbf16> to vector<16x8xbf16>
    %669 = vector.extract_strided_slice %666 {offsets = [0, 64], sizes = [16, 8], strides = [1, 1]} : vector<16x96xbf16> to vector<16x8xbf16>
    %cst_286 = arith.constant dense<0.000000e+00> : vector<16x16xf32>
    %670 = tpu.matmul %667, %668, %cst_286 {dimension_numbers = #tpu.dot_dimension_numbers<[1], [1], [0], [0], [0, 0, 1, 0], [], []>} : vector<16x8xbf16>, vector<16x8xbf16>, vector<16x16xf32> -> vector<16x16xf32>
    %cst_287 = arith.constant dense<0xFF800000> : vector<16xf32>
    %671 = vector.multi_reduction <maximumf>, %670, %cst_287 [1] : vector<16x16xf32> to vector<16xf32>
    %672 = vector.shape_cast %671 : vector<16xf32> to vector<16x1xf32>
    %673 = vector.broadcast %672 : vector<16x1xf32> to vector<16x16xf32>
    %674 = arith.subf %670, %673 : vector<16x16xf32>
    %675 = math.exp %674 : vector<16x16xf32>
    %cst_288 = arith.constant dense<0.000000e+00> : vector<16xf32>
    %676 = vector.multi_reduction <add>, %675, %cst_288 [1] : vector<16x16xf32> to vector<16xf32>
    %677 = vector.shape_cast %676 : vector<16xf32> to vector<16x1xf32>
    %678 = tpu.reciprocal %677 {approx = true} : vector<16x1xf32> -> vector<16x1xf32>
    %679 = vector.broadcast %678 : vector<16x1xf32> to vector<16x16xf32>
    %680 = arith.mulf %675, %679 : vector<16x16xf32>
    %681 = arith.truncf %680 : vector<16x16xf32> to vector<16x16xbf16>
    %cst_289 = arith.constant dense<0.000000e+00> : vector<16x8xf32>
    %682 = tpu.matmul %681, %669, %cst_289 {dimension_numbers = #tpu.dot_dimension_numbers<[1], [0], [0], [1], [0, 0, 1, 1], [], []>} : vector<16x16xbf16>, vector<16x8xbf16>, vector<16x8xf32> -> vector<16x8xf32>
    %683 = vector.extract_strided_slice %666 {offsets = [0, 8], sizes = [16, 8], strides = [1, 1]} : vector<16x96xbf16> to vector<16x8xbf16>
    %684 = vector.extract_strided_slice %666 {offsets = [0, 40], sizes = [16, 8], strides = [1, 1]} : vector<16x96xbf16> to vector<16x8xbf16>
    %685 = vector.extract_strided_slice %666 {offsets = [0, 72], sizes = [16, 8], strides = [1, 1]} : vector<16x96xbf16> to vector<16x8xbf16>
    %cst_290 = arith.constant dense<0.000000e+00> : vector<16x16xf32>
    %686 = tpu.matmul %683, %684, %cst_290 {dimension_numbers = #tpu.dot_dimension_numbers<[1], [1], [0], [0], [0, 0, 1, 0], [], []>} : vector<16x8xbf16>, vector<16x8xbf16>, vector<16x16xf32> -> vector<16x16xf32>
    %cst_291 = arith.constant dense<0xFF800000> : vector<16xf32>
    %687 = vector.multi_reduction <maximumf>, %686, %cst_291 [1] : vector<16x16xf32> to vector<16xf32>
    %688 = vector.shape_cast %687 : vector<16xf32> to vector<16x1xf32>
    %689 = vector.broadcast %688 : vector<16x1xf32> to vector<16x16xf32>
    %690 = arith.subf %686, %689 : vector<16x16xf32>
    %691 = math.exp %690 : vector<16x16xf32>
    %cst_292 = arith.constant dense<0.000000e+00> : vector<16xf32>
    %692 = vector.multi_reduction <add>, %691, %cst_292 [1] : vector<16x16xf32> to vector<16xf32>
    %693 = vector.shape_cast %692 : vector<16xf32> to vector<16x1xf32>
    %694 = tpu.reciprocal %693 {approx = true} : vector<16x1xf32> -> vector<16x1xf32>
    %695 = vector.broadcast %694 : vector<16x1xf32> to vector<16x16xf32>
    %696 = arith.mulf %691, %695 : vector<16x16xf32>
    %697 = arith.truncf %696 : vector<16x16xf32> to vector<16x16xbf16>
    %cst_293 = arith.constant dense<0.000000e+00> : vector<16x8xf32>
    %698 = tpu.matmul %697, %685, %cst_293 {dimension_numbers = #tpu.dot_dimension_numbers<[1], [0], [0], [1], [0, 0, 1, 1], [], []>} : vector<16x16xbf16>, vector<16x8xbf16>, vector<16x8xf32> -> vector<16x8xf32>
    %699 = vector.extract_strided_slice %666 {offsets = [0, 16], sizes = [16, 8], strides = [1, 1]} : vector<16x96xbf16> to vector<16x8xbf16>
    %700 = vector.extract_strided_slice %666 {offsets = [0, 48], sizes = [16, 8], strides = [1, 1]} : vector<16x96xbf16> to vector<16x8xbf16>
    %701 = vector.extract_strided_slice %666 {offsets = [0, 80], sizes = [16, 8], strides = [1, 1]} : vector<16x96xbf16> to vector<16x8xbf16>
    %cst_294 = arith.constant dense<0.000000e+00> : vector<16x16xf32>
    %702 = tpu.matmul %699, %700, %cst_294 {dimension_numbers = #tpu.dot_dimension_numbers<[1], [1], [0], [0], [0, 0, 1, 0], [], []>} : vector<16x8xbf16>, vector<16x8xbf16>, vector<16x16xf32> -> vector<16x16xf32>
    %cst_295 = arith.constant dense<0xFF800000> : vector<16xf32>
    %703 = vector.multi_reduction <maximumf>, %702, %cst_295 [1] : vector<16x16xf32> to vector<16xf32>
    %704 = vector.shape_cast %703 : vector<16xf32> to vector<16x1xf32>
    %705 = vector.broadcast %704 : vector<16x1xf32> to vector<16x16xf32>
    %706 = arith.subf %702, %705 : vector<16x16xf32>
    %707 = math.exp %706 : vector<16x16xf32>
    %cst_296 = arith.constant dense<0.000000e+00> : vector<16xf32>
    %708 = vector.multi_reduction <add>, %707, %cst_296 [1] : vector<16x16xf32> to vector<16xf32>
    %709 = vector.shape_cast %708 : vector<16xf32> to vector<16x1xf32>
    %710 = tpu.reciprocal %709 {approx = true} : vector<16x1xf32> -> vector<16x1xf32>
    %711 = vector.broadcast %710 : vector<16x1xf32> to vector<16x16xf32>
    %712 = arith.mulf %707, %711 : vector<16x16xf32>
    %713 = arith.truncf %712 : vector<16x16xf32> to vector<16x16xbf16>
    %cst_297 = arith.constant dense<0.000000e+00> : vector<16x8xf32>
    %714 = tpu.matmul %713, %701, %cst_297 {dimension_numbers = #tpu.dot_dimension_numbers<[1], [0], [0], [1], [0, 0, 1, 1], [], []>} : vector<16x16xbf16>, vector<16x8xbf16>, vector<16x8xf32> -> vector<16x8xf32>
    %715 = vector.extract_strided_slice %666 {offsets = [0, 24], sizes = [16, 8], strides = [1, 1]} : vector<16x96xbf16> to vector<16x8xbf16>
    %716 = vector.extract_strided_slice %666 {offsets = [0, 56], sizes = [16, 8], strides = [1, 1]} : vector<16x96xbf16> to vector<16x8xbf16>
    %717 = vector.extract_strided_slice %666 {offsets = [0, 88], sizes = [16, 8], strides = [1, 1]} : vector<16x96xbf16> to vector<16x8xbf16>
    %cst_298 = arith.constant dense<0.000000e+00> : vector<16x16xf32>
    %718 = tpu.matmul %715, %716, %cst_298 {dimension_numbers = #tpu.dot_dimension_numbers<[1], [1], [0], [0], [0, 0, 1, 0], [], []>} : vector<16x8xbf16>, vector<16x8xbf16>, vector<16x16xf32> -> vector<16x16xf32>
    %cst_299 = arith.constant dense<0xFF800000> : vector<16xf32>
    %719 = vector.multi_reduction <maximumf>, %718, %cst_299 [1] : vector<16x16xf32> to vector<16xf32>
    %720 = vector.shape_cast %719 : vector<16xf32> to vector<16x1xf32>
    %721 = vector.broadcast %720 : vector<16x1xf32> to vector<16x16xf32>
    %722 = arith.subf %718, %721 : vector<16x16xf32>
    %723 = math.exp %722 : vector<16x16xf32>
    %cst_300 = arith.constant dense<0.000000e+00> : vector<16xf32>
    %724 = vector.multi_reduction <add>, %723, %cst_300 [1] : vector<16x16xf32> to vector<16xf32>
    %725 = vector.shape_cast %724 : vector<16xf32> to vector<16x1xf32>
    %726 = tpu.reciprocal %725 {approx = true} : vector<16x1xf32> -> vector<16x1xf32>
    %727 = vector.broadcast %726 : vector<16x1xf32> to vector<16x16xf32>
    %728 = arith.mulf %723, %727 : vector<16x16xf32>
    %729 = arith.truncf %728 : vector<16x16xf32> to vector<16x16xbf16>
    %cst_301 = arith.constant dense<0.000000e+00> : vector<16x8xf32>
    %730 = tpu.matmul %729, %717, %cst_301 {dimension_numbers = #tpu.dot_dimension_numbers<[1], [0], [0], [1], [0, 0, 1, 1], [], []>} : vector<16x16xbf16>, vector<16x8xbf16>, vector<16x8xf32> -> vector<16x8xf32>
    %731 = tpu.concatenate %682, %698, %714, %730 in 1 : vector<16x8xf32>, vector<16x8xf32>, vector<16x8xf32>, vector<16x8xf32> -> vector<16x32xf32>
    %732 = arith.truncf %731 : vector<16x32xf32> to vector<16x32xbf16>
    %c5_302 = arith.constant 5 : index
    %c0_303 = arith.constant 0 : index
    %c0_304 = arith.constant 0 : index
    %733 = vector.load %arg5[%c5_302, %c0_303, %c0_304] : memref<8x32x32xbf16, #tpu.memory_space<vmem>>, vector<1x32x32xbf16>
    %734 = vector.shape_cast %733 : vector<1x32x32xbf16> to vector<32x32xbf16>
    %cst_305 = arith.constant dense<0.000000e+00> : vector<16x32xf32>
    %735 = tpu.matmul %732, %734, %cst_305 {dimension_numbers = #tpu.dot_dimension_numbers<[1], [0], [0], [1], [0, 0, 1, 1], [], []>} : vector<16x32xbf16>, vector<32x32xbf16>, vector<16x32xf32> -> vector<16x32xf32>
    %736 = arith.addf %661, %735 : vector<16x32xf32>
    %737 = arith.truncf %736 : vector<16x32xf32> to vector<16x32xbf16>
    %c5_306 = arith.constant 5 : index
    %c0_307 = arith.constant 0 : index
    %c0_308 = arith.constant 0 : index
    %738 = vector.load %arg6[%c5_306, %c0_307, %c0_308] : memref<8x32x128xbf16, #tpu.memory_space<vmem>>, vector<1x32x128xbf16>
    %739 = vector.shape_cast %738 : vector<1x32x128xbf16> to vector<32x128xbf16>
    %cst_309 = arith.constant dense<0.000000e+00> : vector<16x128xf32>
    %740 = tpu.matmul %737, %739, %cst_309 {dimension_numbers = #tpu.dot_dimension_numbers<[1], [0], [0], [1], [0, 0, 1, 1], [], []>} : vector<16x32xbf16>, vector<32x128xbf16>, vector<16x128xf32> -> vector<16x128xf32>
    %741 = arith.mulf %740, %740 : vector<16x128xf32>
    %742 = arith.mulf %740, %741 : vector<16x128xf32>
    %cst_310 = arith.constant 4.471500e-02 : f32
    %743 = vector.broadcast %cst_310 : f32 to vector<16x128xf32>
    %744 = arith.mulf %743, %742 : vector<16x128xf32>
    %745 = arith.addf %740, %744 : vector<16x128xf32>
    %cst_311 = arith.constant 0.797884583 : f32
    %746 = vector.broadcast %cst_311 : f32 to vector<16x128xf32>
    %747 = arith.mulf %746, %745 : vector<16x128xf32>
    %748 = math.tanh %747 : vector<16x128xf32>
    %cst_312 = arith.constant 1.000000e+00 : f32
    %749 = vector.broadcast %cst_312 : f32 to vector<16x128xf32>
    %750 = arith.addf %749, %748 : vector<16x128xf32>
    %cst_313 = arith.constant 5.000000e-01 : f32
    %751 = vector.broadcast %cst_313 : f32 to vector<16x128xf32>
    %752 = arith.mulf %751, %750 : vector<16x128xf32>
    %753 = arith.mulf %740, %752 : vector<16x128xf32>
    %754 = arith.truncf %753 : vector<16x128xf32> to vector<16x128xbf16>
    %c5_314 = arith.constant 5 : index
    %c0_315 = arith.constant 0 : index
    %c0_316 = arith.constant 0 : index
    %755 = vector.load %arg7[%c5_314, %c0_315, %c0_316] : memref<8x128x32xbf16, #tpu.memory_space<vmem>>, vector<1x128x32xbf16>
    %756 = vector.shape_cast %755 : vector<1x128x32xbf16> to vector<128x32xbf16>
    %cst_317 = arith.constant dense<0.000000e+00> : vector<16x32xf32>
    %757 = tpu.matmul %754, %756, %cst_317 {dimension_numbers = #tpu.dot_dimension_numbers<[1], [0], [0], [1], [0, 0, 1, 1], [], []>} : vector<16x128xbf16>, vector<128x32xbf16>, vector<16x32xf32> -> vector<16x32xf32>
    %758 = arith.addf %736, %757 : vector<16x32xf32>
    %759 = arith.truncf %758 : vector<16x32xf32> to vector<16x32xbf16>
    %c5_318 = arith.constant 5 : index
    %c0_319 = arith.constant 0 : index
    %c0_320 = arith.constant 0 : index
    %760 = vector.load %arg8[%c5_318, %c0_319, %c0_320] : memref<8x32x128xbf16, #tpu.memory_space<vmem>>, vector<1x32x128xbf16>
    %761 = vector.shape_cast %760 : vector<1x32x128xbf16> to vector<32x128xbf16>
    %cst_321 = arith.constant dense<0.000000e+00> : vector<16x128xf32>
    %762 = tpu.matmul %759, %761, %cst_321 {dimension_numbers = #tpu.dot_dimension_numbers<[1], [0], [0], [1], [0, 0, 1, 1], [], []>} : vector<16x32xbf16>, vector<32x128xbf16>, vector<16x128xf32> -> vector<16x128xf32>
    %763 = arith.addf %657, %762 : vector<16x128xf32>
    %764 = arith.truncf %763 : vector<16x128xf32> to vector<16x128xbf16>
    %c4 = arith.constant 4 : index
    %c0_322 = arith.constant 0 : index
    %c0_323 = arith.constant 0 : index
    %765 = vector.load %arg3[%c4, %c0_322, %c0_323] : memref<8x128x32xbf16, #tpu.memory_space<vmem>>, vector<1x128x32xbf16>
    %766 = vector.shape_cast %765 : vector<1x128x32xbf16> to vector<128x32xbf16>
    %cst_324 = arith.constant dense<0.000000e+00> : vector<16x32xf32>
    %767 = tpu.matmul %764, %766, %cst_324 {dimension_numbers = #tpu.dot_dimension_numbers<[1], [0], [0], [1], [0, 0, 1, 1], [], []>} : vector<16x128xbf16>, vector<128x32xbf16>, vector<16x32xf32> -> vector<16x32xf32>
    %768 = arith.truncf %767 : vector<16x32xf32> to vector<16x32xbf16>
    %c4_325 = arith.constant 4 : index
    %c0_326 = arith.constant 0 : index
    %c0_327 = arith.constant 0 : index
    %769 = vector.load %arg4[%c4_325, %c0_326, %c0_327] : memref<8x32x96xbf16, #tpu.memory_space<vmem>>, vector<1x32x96xbf16>
    %770 = vector.shape_cast %769 : vector<1x32x96xbf16> to vector<32x96xbf16>
    %cst_328 = arith.constant dense<0.000000e+00> : vector<16x96xf32>
    %771 = tpu.matmul %768, %770, %cst_328 {dimension_numbers = #tpu.dot_dimension_numbers<[1], [0], [0], [1], [0, 0, 1, 1], [], []>} : vector<16x32xbf16>, vector<32x96xbf16>, vector<16x96xf32> -> vector<16x96xf32>
    %772 = arith.truncf %771 : vector<16x96xf32> to vector<16x96xbf16>
    %773 = vector.extract_strided_slice %772 {offsets = [0, 0], sizes = [16, 8], strides = [1, 1]} : vector<16x96xbf16> to vector<16x8xbf16>
    %774 = vector.extract_strided_slice %772 {offsets = [0, 32], sizes = [16, 8], strides = [1, 1]} : vector<16x96xbf16> to vector<16x8xbf16>
    %775 = vector.extract_strided_slice %772 {offsets = [0, 64], sizes = [16, 8], strides = [1, 1]} : vector<16x96xbf16> to vector<16x8xbf16>
    %cst_329 = arith.constant dense<0.000000e+00> : vector<16x16xf32>
    %776 = tpu.matmul %773, %774, %cst_329 {dimension_numbers = #tpu.dot_dimension_numbers<[1], [1], [0], [0], [0, 0, 1, 0], [], []>} : vector<16x8xbf16>, vector<16x8xbf16>, vector<16x16xf32> -> vector<16x16xf32>
    %cst_330 = arith.constant dense<0xFF800000> : vector<16xf32>
    %777 = vector.multi_reduction <maximumf>, %776, %cst_330 [1] : vector<16x16xf32> to vector<16xf32>
    %778 = vector.shape_cast %777 : vector<16xf32> to vector<16x1xf32>
    %779 = vector.broadcast %778 : vector<16x1xf32> to vector<16x16xf32>
    %780 = arith.subf %776, %779 : vector<16x16xf32>
    %781 = math.exp %780 : vector<16x16xf32>
    %cst_331 = arith.constant dense<0.000000e+00> : vector<16xf32>
    %782 = vector.multi_reduction <add>, %781, %cst_331 [1] : vector<16x16xf32> to vector<16xf32>
    %783 = vector.shape_cast %782 : vector<16xf32> to vector<16x1xf32>
    %784 = tpu.reciprocal %783 {approx = true} : vector<16x1xf32> -> vector<16x1xf32>
    %785 = vector.broadcast %784 : vector<16x1xf32> to vector<16x16xf32>
    %786 = arith.mulf %781, %785 : vector<16x16xf32>
    %787 = arith.truncf %786 : vector<16x16xf32> to vector<16x16xbf16>
    %cst_332 = arith.constant dense<0.000000e+00> : vector<16x8xf32>
    %788 = tpu.matmul %787, %775, %cst_332 {dimension_numbers = #tpu.dot_dimension_numbers<[1], [0], [0], [1], [0, 0, 1, 1], [], []>} : vector<16x16xbf16>, vector<16x8xbf16>, vector<16x8xf32> -> vector<16x8xf32>
    %789 = vector.extract_strided_slice %772 {offsets = [0, 8], sizes = [16, 8], strides = [1, 1]} : vector<16x96xbf16> to vector<16x8xbf16>
    %790 = vector.extract_strided_slice %772 {offsets = [0, 40], sizes = [16, 8], strides = [1, 1]} : vector<16x96xbf16> to vector<16x8xbf16>
    %791 = vector.extract_strided_slice %772 {offsets = [0, 72], sizes = [16, 8], strides = [1, 1]} : vector<16x96xbf16> to vector<16x8xbf16>
    %cst_333 = arith.constant dense<0.000000e+00> : vector<16x16xf32>
    %792 = tpu.matmul %789, %790, %cst_333 {dimension_numbers = #tpu.dot_dimension_numbers<[1], [1], [0], [0], [0, 0, 1, 0], [], []>} : vector<16x8xbf16>, vector<16x8xbf16>, vector<16x16xf32> -> vector<16x16xf32>
    %cst_334 = arith.constant dense<0xFF800000> : vector<16xf32>
    %793 = vector.multi_reduction <maximumf>, %792, %cst_334 [1] : vector<16x16xf32> to vector<16xf32>
    %794 = vector.shape_cast %793 : vector<16xf32> to vector<16x1xf32>
    %795 = vector.broadcast %794 : vector<16x1xf32> to vector<16x16xf32>
    %796 = arith.subf %792, %795 : vector<16x16xf32>
    %797 = math.exp %796 : vector<16x16xf32>
    %cst_335 = arith.constant dense<0.000000e+00> : vector<16xf32>
    %798 = vector.multi_reduction <add>, %797, %cst_335 [1] : vector<16x16xf32> to vector<16xf32>
    %799 = vector.shape_cast %798 : vector<16xf32> to vector<16x1xf32>
    %800 = tpu.reciprocal %799 {approx = true} : vector<16x1xf32> -> vector<16x1xf32>
    %801 = vector.broadcast %800 : vector<16x1xf32> to vector<16x16xf32>
    %802 = arith.mulf %797, %801 : vector<16x16xf32>
    %803 = arith.truncf %802 : vector<16x16xf32> to vector<16x16xbf16>
    %cst_336 = arith.constant dense<0.000000e+00> : vector<16x8xf32>
    %804 = tpu.matmul %803, %791, %cst_336 {dimension_numbers = #tpu.dot_dimension_numbers<[1], [0], [0], [1], [0, 0, 1, 1], [], []>} : vector<16x16xbf16>, vector<16x8xbf16>, vector<16x8xf32> -> vector<16x8xf32>
    %805 = vector.extract_strided_slice %772 {offsets = [0, 16], sizes = [16, 8], strides = [1, 1]} : vector<16x96xbf16> to vector<16x8xbf16>
    %806 = vector.extract_strided_slice %772 {offsets = [0, 48], sizes = [16, 8], strides = [1, 1]} : vector<16x96xbf16> to vector<16x8xbf16>
    %807 = vector.extract_strided_slice %772 {offsets = [0, 80], sizes = [16, 8], strides = [1, 1]} : vector<16x96xbf16> to vector<16x8xbf16>
    %cst_337 = arith.constant dense<0.000000e+00> : vector<16x16xf32>
    %808 = tpu.matmul %805, %806, %cst_337 {dimension_numbers = #tpu.dot_dimension_numbers<[1], [1], [0], [0], [0, 0, 1, 0], [], []>} : vector<16x8xbf16>, vector<16x8xbf16>, vector<16x16xf32> -> vector<16x16xf32>
    %cst_338 = arith.constant dense<0xFF800000> : vector<16xf32>
    %809 = vector.multi_reduction <maximumf>, %808, %cst_338 [1] : vector<16x16xf32> to vector<16xf32>
    %810 = vector.shape_cast %809 : vector<16xf32> to vector<16x1xf32>
    %811 = vector.broadcast %810 : vector<16x1xf32> to vector<16x16xf32>
    %812 = arith.subf %808, %811 : vector<16x16xf32>
    %813 = math.exp %812 : vector<16x16xf32>
    %cst_339 = arith.constant dense<0.000000e+00> : vector<16xf32>
    %814 = vector.multi_reduction <add>, %813, %cst_339 [1] : vector<16x16xf32> to vector<16xf32>
    %815 = vector.shape_cast %814 : vector<16xf32> to vector<16x1xf32>
    %816 = tpu.reciprocal %815 {approx = true} : vector<16x1xf32> -> vector<16x1xf32>
    %817 = vector.broadcast %816 : vector<16x1xf32> to vector<16x16xf32>
    %818 = arith.mulf %813, %817 : vector<16x16xf32>
    %819 = arith.truncf %818 : vector<16x16xf32> to vector<16x16xbf16>
    %cst_340 = arith.constant dense<0.000000e+00> : vector<16x8xf32>
    %820 = tpu.matmul %819, %807, %cst_340 {dimension_numbers = #tpu.dot_dimension_numbers<[1], [0], [0], [1], [0, 0, 1, 1], [], []>} : vector<16x16xbf16>, vector<16x8xbf16>, vector<16x8xf32> -> vector<16x8xf32>
    %821 = vector.extract_strided_slice %772 {offsets = [0, 24], sizes = [16, 8], strides = [1, 1]} : vector<16x96xbf16> to vector<16x8xbf16>
    %822 = vector.extract_strided_slice %772 {offsets = [0, 56], sizes = [16, 8], strides = [1, 1]} : vector<16x96xbf16> to vector<16x8xbf16>
    %823 = vector.extract_strided_slice %772 {offsets = [0, 88], sizes = [16, 8], strides = [1, 1]} : vector<16x96xbf16> to vector<16x8xbf16>
    %cst_341 = arith.constant dense<0.000000e+00> : vector<16x16xf32>
    %824 = tpu.matmul %821, %822, %cst_341 {dimension_numbers = #tpu.dot_dimension_numbers<[1], [1], [0], [0], [0, 0, 1, 0], [], []>} : vector<16x8xbf16>, vector<16x8xbf16>, vector<16x16xf32> -> vector<16x16xf32>
    %cst_342 = arith.constant dense<0xFF800000> : vector<16xf32>
    %825 = vector.multi_reduction <maximumf>, %824, %cst_342 [1] : vector<16x16xf32> to vector<16xf32>
    %826 = vector.shape_cast %825 : vector<16xf32> to vector<16x1xf32>
    %827 = vector.broadcast %826 : vector<16x1xf32> to vector<16x16xf32>
    %828 = arith.subf %824, %827 : vector<16x16xf32>
    %829 = math.exp %828 : vector<16x16xf32>
    %cst_343 = arith.constant dense<0.000000e+00> : vector<16xf32>
    %830 = vector.multi_reduction <add>, %829, %cst_343 [1] : vector<16x16xf32> to vector<16xf32>
    %831 = vector.shape_cast %830 : vector<16xf32> to vector<16x1xf32>
    %832 = tpu.reciprocal %831 {approx = true} : vector<16x1xf32> -> vector<16x1xf32>
    %833 = vector.broadcast %832 : vector<16x1xf32> to vector<16x16xf32>
    %834 = arith.mulf %829, %833 : vector<16x16xf32>
    %835 = arith.truncf %834 : vector<16x16xf32> to vector<16x16xbf16>
    %cst_344 = arith.constant dense<0.000000e+00> : vector<16x8xf32>
    %836 = tpu.matmul %835, %823, %cst_344 {dimension_numbers = #tpu.dot_dimension_numbers<[1], [0], [0], [1], [0, 0, 1, 1], [], []>} : vector<16x16xbf16>, vector<16x8xbf16>, vector<16x8xf32> -> vector<16x8xf32>
    %837 = tpu.concatenate %788, %804, %820, %836 in 1 : vector<16x8xf32>, vector<16x8xf32>, vector<16x8xf32>, vector<16x8xf32> -> vector<16x32xf32>
    %838 = arith.truncf %837 : vector<16x32xf32> to vector<16x32xbf16>
    %c4_345 = arith.constant 4 : index
    %c0_346 = arith.constant 0 : index
    %c0_347 = arith.constant 0 : index
    %839 = vector.load %arg5[%c4_345, %c0_346, %c0_347] : memref<8x32x32xbf16, #tpu.memory_space<vmem>>, vector<1x32x32xbf16>
    %840 = vector.shape_cast %839 : vector<1x32x32xbf16> to vector<32x32xbf16>
    %cst_348 = arith.constant dense<0.000000e+00> : vector<16x32xf32>
    %841 = tpu.matmul %838, %840, %cst_348 {dimension_numbers = #tpu.dot_dimension_numbers<[1], [0], [0], [1], [0, 0, 1, 1], [], []>} : vector<16x32xbf16>, vector<32x32xbf16>, vector<16x32xf32> -> vector<16x32xf32>
    %842 = arith.addf %767, %841 : vector<16x32xf32>
    %843 = arith.truncf %842 : vector<16x32xf32> to vector<16x32xbf16>
    %c4_349 = arith.constant 4 : index
    %c0_350 = arith.constant 0 : index
    %c0_351 = arith.constant 0 : index
    %844 = vector.load %arg6[%c4_349, %c0_350, %c0_351] : memref<8x32x128xbf16, #tpu.memory_space<vmem>>, vector<1x32x128xbf16>
    %845 = vector.shape_cast %844 : vector<1x32x128xbf16> to vector<32x128xbf16>
    %cst_352 = arith.constant dense<0.000000e+00> : vector<16x128xf32>
    %846 = tpu.matmul %843, %845, %cst_352 {dimension_numbers = #tpu.dot_dimension_numbers<[1], [0], [0], [1], [0, 0, 1, 1], [], []>} : vector<16x32xbf16>, vector<32x128xbf16>, vector<16x128xf32> -> vector<16x128xf32>
    %847 = arith.mulf %846, %846 : vector<16x128xf32>
    %848 = arith.mulf %846, %847 : vector<16x128xf32>
    %cst_353 = arith.constant 4.471500e-02 : f32
    %849 = vector.broadcast %cst_353 : f32 to vector<16x128xf32>
    %850 = arith.mulf %849, %848 : vector<16x128xf32>
    %851 = arith.addf %846, %850 : vector<16x128xf32>
    %cst_354 = arith.constant 0.797884583 : f32
    %852 = vector.broadcast %cst_354 : f32 to vector<16x128xf32>
    %853 = arith.mulf %852, %851 : vector<16x128xf32>
    %854 = math.tanh %853 : vector<16x128xf32>
    %cst_355 = arith.constant 1.000000e+00 : f32
    %855 = vector.broadcast %cst_355 : f32 to vector<16x128xf32>
    %856 = arith.addf %855, %854 : vector<16x128xf32>
    %cst_356 = arith.constant 5.000000e-01 : f32
    %857 = vector.broadcast %cst_356 : f32 to vector<16x128xf32>
    %858 = arith.mulf %857, %856 : vector<16x128xf32>
    %859 = arith.mulf %846, %858 : vector<16x128xf32>
    %860 = arith.truncf %859 : vector<16x128xf32> to vector<16x128xbf16>
    %c4_357 = arith.constant 4 : index
    %c0_358 = arith.constant 0 : index
    %c0_359 = arith.constant 0 : index
    %861 = vector.load %arg7[%c4_357, %c0_358, %c0_359] : memref<8x128x32xbf16, #tpu.memory_space<vmem>>, vector<1x128x32xbf16>
    %862 = vector.shape_cast %861 : vector<1x128x32xbf16> to vector<128x32xbf16>
    %cst_360 = arith.constant dense<0.000000e+00> : vector<16x32xf32>
    %863 = tpu.matmul %860, %862, %cst_360 {dimension_numbers = #tpu.dot_dimension_numbers<[1], [0], [0], [1], [0, 0, 1, 1], [], []>} : vector<16x128xbf16>, vector<128x32xbf16>, vector<16x32xf32> -> vector<16x32xf32>
    %864 = arith.addf %842, %863 : vector<16x32xf32>
    %865 = arith.truncf %864 : vector<16x32xf32> to vector<16x32xbf16>
    %c4_361 = arith.constant 4 : index
    %c0_362 = arith.constant 0 : index
    %c0_363 = arith.constant 0 : index
    %866 = vector.load %arg8[%c4_361, %c0_362, %c0_363] : memref<8x32x128xbf16, #tpu.memory_space<vmem>>, vector<1x32x128xbf16>
    %867 = vector.shape_cast %866 : vector<1x32x128xbf16> to vector<32x128xbf16>
    %cst_364 = arith.constant dense<0.000000e+00> : vector<16x128xf32>
    %868 = tpu.matmul %865, %867, %cst_364 {dimension_numbers = #tpu.dot_dimension_numbers<[1], [0], [0], [1], [0, 0, 1, 1], [], []>} : vector<16x32xbf16>, vector<32x128xbf16>, vector<16x128xf32> -> vector<16x128xf32>
    %869 = arith.addf %763, %868 : vector<16x128xf32>
    %870 = arith.truncf %869 : vector<16x128xf32> to vector<16x128xbf16>
    %c0_365 = arith.constant 0 : index
    %c0_366 = arith.constant 0 : index
    %c0_367 = arith.constant 0 : index
    %871 = vector.load %arg11[%c0_365, %c0_366, %c0_367] : memref<1x16x128xbf16, #tpu.memory_space<vmem>>, vector<1x16x128xbf16>
    %872 = vector.shape_cast %871 : vector<1x16x128xbf16> to vector<16x128xbf16>
    %873 = vector.shape_cast %870 : vector<16x128xbf16> to vector<1x16x128xbf16>
    tpu.vector_store %arg11[%c0_365, %c0_366, %c0_367], %873 {strides = array<i32>} : memref<1x16x128xbf16, #tpu.memory_space<vmem>>, vector<1x16x128xbf16>,
    return
  }
  func.func @transform_0(%arg0: i32) -> (i32, i32, i32) {
    %c0_i32 = arith.constant 0 : i32
    %c0_i32_0 = arith.constant 0 : i32
    %c0_i32_1 = arith.constant 0 : i32
    return %arg0, %c0_i32, %c0_i32_0 : i32, i32, i32
  }
  func.func @transform_1(%arg0: i32) -> (i32, i32) {
    %c0_i32 = arith.constant 0 : i32
    %c0_i32_0 = arith.constant 0 : i32
    %c0_i32_1 = arith.constant 0 : i32
    return %c0_i32, %c0_i32_0 : i32, i32
  }
  func.func @transform_2(%arg0: i32) -> (i32, i32, i32) {
    %c0_i32 = arith.constant 0 : i32
    %c0_i32_0 = arith.constant 0 : i32
    %c0_i32_1 = arith.constant 0 : i32
    %c0_i32_2 = arith.constant 0 : i32
    return %c0_i32, %c0_i32_0, %c0_i32_1 : i32, i32, i32
  }
  func.func @transform_3(%arg0: i32) -> (i32, i32, i32) {
    %c0_i32 = arith.constant 0 : i32
    %c0_i32_0 = arith.constant 0 : i32
    %c0_i32_1 = arith.constant 0 : i32
    %c0_i32_2 = arith.constant 0 : i32
    return %c0_i32, %c0_i32_0, %c0_i32_1 : i32, i32, i32
  }
  func.func @transform_4(%arg0: i32) -> (i32, i32, i32) {
    %c0_i32 = arith.constant 0 : i32
    %c0_i32_0 = arith.constant 0 : i32
    %c0_i32_1 = arith.constant 0 : i32
    %c0_i32_2 = arith.constant 0 : i32
    return %c0_i32, %c0_i32_0, %c0_i32_1 : i32, i32, i32
  }
  func.func @transform_5(%arg0: i32) -> (i32, i32, i32) {
    %c0_i32 = arith.constant 0 : i32
    %c0_i32_0 = arith.constant 0 : i32
    %c0_i32_1 = arith.constant 0 : i32
    %c0_i32_2 = arith.constant 0 : i32
    return %c0_i32, %c0_i32_0, %c0_i32_1 : i32, i32, i32
  }
  func.func @transform_6(%arg0: i32) -> (i32, i32, i32) {
    %c0_i32 = arith.constant 0 : i32
    %c0_i32_0 = arith.constant 0 : i32
    %c0_i32_1 = arith.constant 0 : i32
    %c0_i32_2 = arith.constant 0 : i32
    return %c0_i32, %c0_i32_0, %c0_i32_1 : i32, i32, i32
  }
  func.func @transform_7(%arg0: i32) -> (i32, i32, i32) {
    %c0_i32 = arith.constant 0 : i32
    %c0_i32_0 = arith.constant 0 : i32
    %c0_i32_1 = arith.constant 0 : i32
    %c0_i32_2 = arith.constant 0 : i32
    return %c0_i32, %c0_i32_0, %c0_i32_1 : i32, i32, i32
  }
  func.func @transform_8(%arg0: i32) -> (i32, i32, i32) {
    %c0_i32 = arith.constant 0 : i32
    %c0_i32_0 = arith.constant 0 : i32
    %c0_i32_1 = arith.constant 0 : i32
    %c0_i32_2 = arith.constant 0 : i32
    return %c0_i32, %c0_i32_0, %c0_i32_1 : i32, i32, i32
  }
  func.func @transform_9(%arg0: i32) -> (i32, i32, i32) {
    %c0_i32 = arith.constant 0 : i32
    %c0_i32_0 = arith.constant 0 : i32
    %c0_i32_1 = arith.constant 0 : i32
    %c0_i32_2 = arith.constant 0 : i32
    return %c0_i32, %c0_i32_0, %c0_i32_1 : i32, i32, i32
  }
  func.func @transform_10(%arg0: i32) -> (i32, i32, i32) {
    %c0_i32 = arith.constant 0 : i32
    %c0_i32_0 = arith.constant 0 : i32
    %c0_i32_1 = arith.constant 0 : i32
    return %arg0, %c0_i32, %c0_i32_0 : i32, i32, i32
  }
}

module attributes {stable_mosaic.version = 11 : i64} {
  func.func @_conv3x3_kernel(%arg0: i32, %arg1: memref<1x342x8xbf16, #tpu.memory_space<vmem>>, %arg2: memref<9x3x8xbf16, #tpu.memory_space<vmem>>, %arg3: memref<1x3x288xf32, #tpu.memory_space<vmem>>) attributes {dimension_semantics = [#tpu.dimension_semantics<parallel>], iteration_bounds = array<i64: 2>, scalar_prefetch = 0 : i64, scratch_operands = 0 : i64, tpu.core_type = #tpu.core_type<tc>, window_params = [{transform_indices = @transform_0, window_bounds = array<i64: 1, 342, 8>}, {pipeline_mode = #tpu.pipeline_mode<synchronous>, transform_indices = @transform_1, window_bounds = array<i64: 9, 3, 8>}, {transform_indices = @transform_2, window_bounds = array<i64: 1, 3, 288>}]} {
    %cst = arith.constant 0.000000e+00 : f32
    %0 = vector.broadcast %cst : f32 to vector<3x288xf32>
    %c0 = arith.constant 0 : index
    %c0_0 = arith.constant 0 : index
    %c0_1 = arith.constant 0 : index
    %1 = vector.load %arg1[%c0, %c0_0, %c0_1] : memref<1x342x8xbf16, #tpu.memory_space<vmem>>, vector<1x288x8xbf16>
    %2 = vector.shape_cast %1 : vector<1x288x8xbf16> to vector<288x8xbf16>
    %c0_2 = arith.constant 0 : index
    %c0_3 = arith.constant 0 : index
    %c0_4 = arith.constant 0 : index
    %3 = vector.load %arg2[%c0_2, %c0_3, %c0_4] : memref<9x3x8xbf16, #tpu.memory_space<vmem>>, vector<1x3x8xbf16>
    %4 = vector.shape_cast %3 : vector<1x3x8xbf16> to vector<3x8xbf16>
    %cst_5 = arith.constant dense<0.000000e+00> : vector<3x288xf32>
    %5 = tpu.matmul %4, %2, %cst_5 {dimension_numbers = #tpu.dot_dimension_numbers<[1], [1], [0], [0], [0, 0, 1, 0], [], []>} : vector<3x8xbf16>, vector<288x8xbf16>, vector<3x288xf32> -> vector<3x288xf32>
    %6 = arith.addf %0, %5 : vector<3x288xf32>
    %c0_6 = arith.constant 0 : index
    %c1 = arith.constant 1 : index
    %c0_7 = arith.constant 0 : index
    %7 = vector.load %arg1[%c0_6, %c1, %c0_7] : memref<1x342x8xbf16, #tpu.memory_space<vmem>>, vector<1x288x8xbf16>
    %8 = vector.shape_cast %7 : vector<1x288x8xbf16> to vector<288x8xbf16>
    %c1_8 = arith.constant 1 : index
    %c0_9 = arith.constant 0 : index
    %c0_10 = arith.constant 0 : index
    %9 = vector.load %arg2[%c1_8, %c0_9, %c0_10] : memref<9x3x8xbf16, #tpu.memory_space<vmem>>, vector<1x3x8xbf16>
    %10 = vector.shape_cast %9 : vector<1x3x8xbf16> to vector<3x8xbf16>
    %cst_11 = arith.constant dense<0.000000e+00> : vector<3x288xf32>
    %11 = tpu.matmul %10, %8, %cst_11 {dimension_numbers = #tpu.dot_dimension_numbers<[1], [1], [0], [0], [0, 0, 1, 0], [], []>} : vector<3x8xbf16>, vector<288x8xbf16>, vector<3x288xf32> -> vector<3x288xf32>
    %12 = arith.addf %6, %11 : vector<3x288xf32>
    %c0_12 = arith.constant 0 : index
    %c2 = arith.constant 2 : index
    %c0_13 = arith.constant 0 : index
    %13 = vector.load %arg1[%c0_12, %c2, %c0_13] : memref<1x342x8xbf16, #tpu.memory_space<vmem>>, vector<1x288x8xbf16>
    %14 = vector.shape_cast %13 : vector<1x288x8xbf16> to vector<288x8xbf16>
    %c2_14 = arith.constant 2 : index
    %c0_15 = arith.constant 0 : index
    %c0_16 = arith.constant 0 : index
    %15 = vector.load %arg2[%c2_14, %c0_15, %c0_16] : memref<9x3x8xbf16, #tpu.memory_space<vmem>>, vector<1x3x8xbf16>
    %16 = vector.shape_cast %15 : vector<1x3x8xbf16> to vector<3x8xbf16>
    %cst_17 = arith.constant dense<0.000000e+00> : vector<3x288xf32>
    %17 = tpu.matmul %16, %14, %cst_17 {dimension_numbers = #tpu.dot_dimension_numbers<[1], [1], [0], [0], [0, 0, 1, 0], [], []>} : vector<3x8xbf16>, vector<288x8xbf16>, vector<3x288xf32> -> vector<3x288xf32>
    %18 = arith.addf %12, %17 : vector<3x288xf32>
    %c0_18 = arith.constant 0 : index
    %c18 = arith.constant 18 : index
    %c0_19 = arith.constant 0 : index
    %19 = vector.load %arg1[%c0_18, %c18, %c0_19] : memref<1x342x8xbf16, #tpu.memory_space<vmem>>, vector<1x288x8xbf16>
    %20 = vector.shape_cast %19 : vector<1x288x8xbf16> to vector<288x8xbf16>
    %c3 = arith.constant 3 : index
    %c0_20 = arith.constant 0 : index
    %c0_21 = arith.constant 0 : index
    %21 = vector.load %arg2[%c3, %c0_20, %c0_21] : memref<9x3x8xbf16, #tpu.memory_space<vmem>>, vector<1x3x8xbf16>
    %22 = vector.shape_cast %21 : vector<1x3x8xbf16> to vector<3x8xbf16>
    %cst_22 = arith.constant dense<0.000000e+00> : vector<3x288xf32>
    %23 = tpu.matmul %22, %20, %cst_22 {dimension_numbers = #tpu.dot_dimension_numbers<[1], [1], [0], [0], [0, 0, 1, 0], [], []>} : vector<3x8xbf16>, vector<288x8xbf16>, vector<3x288xf32> -> vector<3x288xf32>
    %24 = arith.addf %18, %23 : vector<3x288xf32>
    %c0_23 = arith.constant 0 : index
    %c19 = arith.constant 19 : index
    %c0_24 = arith.constant 0 : index
    %25 = vector.load %arg1[%c0_23, %c19, %c0_24] : memref<1x342x8xbf16, #tpu.memory_space<vmem>>, vector<1x288x8xbf16>
    %26 = vector.shape_cast %25 : vector<1x288x8xbf16> to vector<288x8xbf16>
    %c4 = arith.constant 4 : index
    %c0_25 = arith.constant 0 : index
    %c0_26 = arith.constant 0 : index
    %27 = vector.load %arg2[%c4, %c0_25, %c0_26] : memref<9x3x8xbf16, #tpu.memory_space<vmem>>, vector<1x3x8xbf16>
    %28 = vector.shape_cast %27 : vector<1x3x8xbf16> to vector<3x8xbf16>
    %cst_27 = arith.constant dense<0.000000e+00> : vector<3x288xf32>
    %29 = tpu.matmul %28, %26, %cst_27 {dimension_numbers = #tpu.dot_dimension_numbers<[1], [1], [0], [0], [0, 0, 1, 0], [], []>} : vector<3x8xbf16>, vector<288x8xbf16>, vector<3x288xf32> -> vector<3x288xf32>
    %30 = arith.addf %24, %29 : vector<3x288xf32>
    %c0_28 = arith.constant 0 : index
    %c20 = arith.constant 20 : index
    %c0_29 = arith.constant 0 : index
    %31 = vector.load %arg1[%c0_28, %c20, %c0_29] : memref<1x342x8xbf16, #tpu.memory_space<vmem>>, vector<1x288x8xbf16>
    %32 = vector.shape_cast %31 : vector<1x288x8xbf16> to vector<288x8xbf16>
    %c5 = arith.constant 5 : index
    %c0_30 = arith.constant 0 : index
    %c0_31 = arith.constant 0 : index
    %33 = vector.load %arg2[%c5, %c0_30, %c0_31] : memref<9x3x8xbf16, #tpu.memory_space<vmem>>, vector<1x3x8xbf16>
    %34 = vector.shape_cast %33 : vector<1x3x8xbf16> to vector<3x8xbf16>
    %cst_32 = arith.constant dense<0.000000e+00> : vector<3x288xf32>
    %35 = tpu.matmul %34, %32, %cst_32 {dimension_numbers = #tpu.dot_dimension_numbers<[1], [1], [0], [0], [0, 0, 1, 0], [], []>} : vector<3x8xbf16>, vector<288x8xbf16>, vector<3x288xf32> -> vector<3x288xf32>
    %36 = arith.addf %30, %35 : vector<3x288xf32>
    %c0_33 = arith.constant 0 : index
    %c36 = arith.constant 36 : index
    %c0_34 = arith.constant 0 : index
    %37 = vector.load %arg1[%c0_33, %c36, %c0_34] : memref<1x342x8xbf16, #tpu.memory_space<vmem>>, vector<1x288x8xbf16>
    %38 = vector.shape_cast %37 : vector<1x288x8xbf16> to vector<288x8xbf16>
    %c6 = arith.constant 6 : index
    %c0_35 = arith.constant 0 : index
    %c0_36 = arith.constant 0 : index
    %39 = vector.load %arg2[%c6, %c0_35, %c0_36] : memref<9x3x8xbf16, #tpu.memory_space<vmem>>, vector<1x3x8xbf16>
    %40 = vector.shape_cast %39 : vector<1x3x8xbf16> to vector<3x8xbf16>
    %cst_37 = arith.constant dense<0.000000e+00> : vector<3x288xf32>
    %41 = tpu.matmul %40, %38, %cst_37 {dimension_numbers = #tpu.dot_dimension_numbers<[1], [1], [0], [0], [0, 0, 1, 0], [], []>} : vector<3x8xbf16>, vector<288x8xbf16>, vector<3x288xf32> -> vector<3x288xf32>
    %42 = arith.addf %36, %41 : vector<3x288xf32>
    %c0_38 = arith.constant 0 : index
    %c37 = arith.constant 37 : index
    %c0_39 = arith.constant 0 : index
    %43 = vector.load %arg1[%c0_38, %c37, %c0_39] : memref<1x342x8xbf16, #tpu.memory_space<vmem>>, vector<1x288x8xbf16>
    %44 = vector.shape_cast %43 : vector<1x288x8xbf16> to vector<288x8xbf16>
    %c7 = arith.constant 7 : index
    %c0_40 = arith.constant 0 : index
    %c0_41 = arith.constant 0 : index
    %45 = vector.load %arg2[%c7, %c0_40, %c0_41] : memref<9x3x8xbf16, #tpu.memory_space<vmem>>, vector<1x3x8xbf16>
    %46 = vector.shape_cast %45 : vector<1x3x8xbf16> to vector<3x8xbf16>
    %cst_42 = arith.constant dense<0.000000e+00> : vector<3x288xf32>
    %47 = tpu.matmul %46, %44, %cst_42 {dimension_numbers = #tpu.dot_dimension_numbers<[1], [1], [0], [0], [0, 0, 1, 0], [], []>} : vector<3x8xbf16>, vector<288x8xbf16>, vector<3x288xf32> -> vector<3x288xf32>
    %48 = arith.addf %42, %47 : vector<3x288xf32>
    %c0_43 = arith.constant 0 : index
    %c38 = arith.constant 38 : index
    %c0_44 = arith.constant 0 : index
    %49 = vector.load %arg1[%c0_43, %c38, %c0_44] : memref<1x342x8xbf16, #tpu.memory_space<vmem>>, vector<1x288x8xbf16>
    %50 = vector.shape_cast %49 : vector<1x288x8xbf16> to vector<288x8xbf16>
    %c8 = arith.constant 8 : index
    %c0_45 = arith.constant 0 : index
    %c0_46 = arith.constant 0 : index
    %51 = vector.load %arg2[%c8, %c0_45, %c0_46] : memref<9x3x8xbf16, #tpu.memory_space<vmem>>, vector<1x3x8xbf16>
    %52 = vector.shape_cast %51 : vector<1x3x8xbf16> to vector<3x8xbf16>
    %cst_47 = arith.constant dense<0.000000e+00> : vector<3x288xf32>
    %53 = tpu.matmul %52, %50, %cst_47 {dimension_numbers = #tpu.dot_dimension_numbers<[1], [1], [0], [0], [0, 0, 1, 0], [], []>} : vector<3x8xbf16>, vector<288x8xbf16>, vector<3x288xf32> -> vector<3x288xf32>
    %54 = arith.addf %48, %53 : vector<3x288xf32>
    %c0_48 = arith.constant 0 : index
    %c0_49 = arith.constant 0 : index
    %c0_50 = arith.constant 0 : index
    %55 = vector.load %arg3[%c0_48, %c0_49, %c0_50] : memref<1x3x288xf32, #tpu.memory_space<vmem>>, vector<1x3x288xf32>
    %56 = vector.shape_cast %55 : vector<1x3x288xf32> to vector<3x288xf32>
    %57 = vector.shape_cast %54 : vector<3x288xf32> to vector<1x3x288xf32>
    tpu.vector_store %arg3[%c0_48, %c0_49, %c0_50], %57 {strides = array<i32>} : memref<1x3x288xf32, #tpu.memory_space<vmem>>, vector<1x3x288xf32>,
    return
  }
  func.func @transform_0(%arg0: i32) -> (i32, i32, i32) {
    %c0_i32 = arith.constant 0 : i32
    %c0_i32_0 = arith.constant 0 : i32
    %c0_i32_1 = arith.constant 0 : i32
    return %arg0, %c0_i32, %c0_i32_0 : i32, i32, i32
  }
  func.func @transform_1(%arg0: i32) -> (i32, i32, i32) {
    %c0_i32 = arith.constant 0 : i32
    %c0_i32_0 = arith.constant 0 : i32
    %c0_i32_1 = arith.constant 0 : i32
    %c0_i32_2 = arith.constant 0 : i32
    return %c0_i32, %c0_i32_0, %c0_i32_1 : i32, i32, i32
  }
  func.func @transform_2(%arg0: i32) -> (i32, i32, i32) {
    %c0_i32 = arith.constant 0 : i32
    %c0_i32_0 = arith.constant 0 : i32
    %c0_i32_1 = arith.constant 0 : i32
    return %arg0, %c0_i32, %c0_i32_0 : i32, i32, i32
  }
}

</mosaic_0001>

<bundles_post_ra>
// kernel: vigunet_forward.3
= control target key start
LH: loop header
LB: loop body
LE: loop exit
PB: predicated region body
PF: predicated region fallthrough
CT: control target
= control target key end

     0   :  { %s2522_s9 = smov 0   ;;  %s3444_s0 = inlined_call_operand.vmem [shape: bf16[2,342,8], index: 0, kind: input, shape index: {}]   ;;  %s3445_s1 = inlined_call_operand.vmem [shape: bf16[9,3,8], index: 1, kind: input, shape index: {}]   ;;  %s3446_s2 = inlined_call_operand.vmem [shape: f32[2,3,288], index: 2, kind: output, shape index: {}]  }
   0x1 LB: > { %s2183_s10 = sadd.s32 4294967295, %s2505_s9   ;;  %p2187_p0 = scmp.ge.s32.totalorder %s2505_s9, 1  ;;  %s2505_s9 = sphi %s2522_s9, %s12_s9  }
   0x2   : > { %p112_p1 = scmp.lt.s32.totalorder %s2505_s9, 3 }
   0x4   : > { %p113_p2 = pnand %p2187_p0, %p112_p1 }
   0x5   : > { %p134_p3 = scmp.lt.s32.totalorder (!%p113_p2), %s2183_s10, 1 }
   0x6   : > { %116 = sbr.rel (%p113_p2) target bundleno = 492 (0x1ec), region = 28 }
   0xb   : > { %s3448_s10 = smov (!%p134_p3, %s2183_s10), 1  ;;  %vm427_vm0 = vcmask 64512   ;;  %vm278_vm1 = vsmask.f32 7424  ;;  %vm608_vm2 = vcmask 1046528   ;;  %vm1295_vm4 = vcmask 1045504  }
   0xc   : > { %s2489_s11 = smul.u32 172, %s3448_s10  ;;  %vm1019_vm3 = vsmask.f32 6400  ;;  %vm1706_vm5 = vsmask.f32 5376  ;;  %vm1982_vm6 = vcmask 1044480  }
   0xd   : > { %s2490_s5 = smul.u32 12, %s3448_s10  ;;  %vm2126_vm7 = vcmask 256000   ;;  %vm2122_vm8 = vcmask 1043456  }
   0xe   : > { %s2536_s14 = scalar_lea.vmem %s3444_s0, %s2489_s11 }
   0xf   : > { %v2539_v0 = vld [vmem:[%s2536_s14 + $0x38] sm:$0xff]  ;;  %v2542_v1 = vld [vmem:[%s2536_s14 + $0x40] sm:$0xff]  ;;  %v2551_v4 = vld [vmem:[%s2536_s14 + $0x88] sm:$0xff]  ;;  %s143_s8 = scalar_lea.vmem %s3446_s2, %s2490_s5 }
  0x10   : > { %v2545_v2 = vld [vmem:[%s2536_s14 + $0x78] sm:$0xff]  ;;  %v2548_v3 = vld [vmem:[%s2536_s14 + $0x80] sm:$0xff]  ;;  %v182_v5 = vld [vmem:[%s2536_s14 + $0x90] sm:$0x1]  ;;  %v541_v6 = vsel %vm427_vm0, %v2539_v0, 0  ;;  %v335_v7 = vshll.u32 %v2539_v0, 16 }
  0x11   : > { %v339_v8 = vshrl.u32 %v2539_v0, 16  ;;  %v343_v9 = vshll.u32 %v2542_v1, 16  ;;  %v2560_v10 = vld [vmem:[%s2536_s14 + $0x30] sm:$0xff]  ;;  %563 = vmatpush.bf16.xpose.msra.mxu3 %v541_v6  ;;  %v399_v11 = vshll.u32 %v2545_v2, 16  ;;  %v403_v12 = vshrl.u32 %v2545_v2, 16  ;;  %v2582_v32 = vld [vmem:[%s2536_s14 + $0x28] sm:$0xff] }
  0x12   : > { %v407_v13 = vshll.u32 %v2548_v3, 16  ;;  %v258_v14 = vunpack.c.l.b16 %v182_v5  ;;  %v2566_v15 = vld [vmem:[%s2536_s14 + $0x70] sm:$0xff]  ;;  %v337_v16 = vrot.slane %v335_v7, 1  ;;  %v415_v18 = vshll.u32 %v2551_v4, 16  ;;  %v2591_v43 = vld [vmem:[%s2536_s14 + $0x68] sm:$0xff]  ;;  %v2599_v51 = vld [vmem:[%s2536_s14 + $0x20] sm:$0xff] }
  0x13   : > { %v2568_v17 = vrot.slane %v343_v9, 1  ;;  %v419_v19 = vshrl.u32 %v2551_v4, 16  ;;  %v401_v20 = vrot.slane %v399_v11, 1  ;;  %v539_v23 = vsel %vm427_vm0, %v2560_v10, 0  ;;  %v2603_v54 = vld [vmem:[%s2536_s14 + $0x60] sm:$0xff] }
  0x14   : > { %v409_v21 = vrot.slane %v407_v13, 1  ;;  %v2572_v22 = vpack.c.b16 %v258_v14, %v258_v14  ;;  %v341_v24 = vor.u32 %v339_v8, %v337_v16  ;;  %v417_v25 = vrot.slane %v415_v18, 1  ;;  %v2620_v13 = vld [vmem:[%s2536_s14 + $0x18] sm:$0xff] }
  0x15   : > { %v327_v26 = vshll.u32 %v2560_v10, 16  ;;  %v331_v27 = vshrl.u32 %v2560_v10, 16  ;;  %v405_v28 = vor.u32 %v403_v12, %v401_v20  ;;  %v391_v30 = vshll.u32 %v2566_v15, 16 }
  0x16   : > { %v423_v29 = vshll.u32 %v2572_v22, 16  ;;  %v395_v31 = vshrl.u32 %v2566_v15, 16  ;;  %v346_v33 = vsel %vm278_vm1, %v341_v24, %v2568_v17  ;;  %v421_v34 = vor.u32 %v419_v19, %v417_v25  ;;  %v2625_v19 = vld [vmem:[%s2536_s14 + $0x58] sm:$0xff] }
  0x17   : > { %v329_v35 = vrot.slane %v327_v26, 1  ;;  %v411_v36 = vshrl.u32 %v2548_v3, 16  ;;  %v453_v37 = vsel %vm427_vm0, %v346_v33, 0  ;;  %v410_v38 = vsel %vm278_vm1, %v405_v28, %v409_v21  ;;  %v2638_v33 = vld [vmem:[%s2536_s14 + $0x10] sm:$0xff] }
  0x18   : > { %v425_v39 = vrot.slane %v423_v29, 1  ;;  %v393_v40 = vrot.slane %v391_v30, 1  ;;  %485 = vmatpush.bf16.xpose.msra.mxu0 %v453_v37  ;;  %v477_v41 = vsel %vm427_vm0, %v410_v38, 0  ;;  %v319_v47 = vshll.u32 %v2582_v32, 16  ;;  %v2643_v37 = vld [vmem:[%s2536_s14 + $0x50] sm:$0xff] }
  0x19   : > { %v333_v42 = vor.u32 %v331_v27, %v329_v35  ;;  %498 = vmatpush.bf16.xpose.msra.mxu1 %v477_v41  ;;  %564 = vmatpush.bf16.xpose.msra.mxu3 %v539_v23  ;;  %v413_v46 = vor.u32 %v411_v36, %v409_v21  ;;  %v323_v50 = vshrl.u32 %v2582_v32, 16  ;;  %v383_v55 = vshll.u32 %v2591_v43, 16 }
  0x1a   : > { %v426_v44 = vsel %vm278_vm1, %v421_v34, %v425_v39  ;;  %v397_v45 = vor.u32 %v395_v31, %v393_v40  ;;  %v321_v53 = vrot.slane %v319_v47, 1  ;;  %v387_v56 = vshrl.u32 %v2591_v43, 16 }
  0x1b   : > { %v483_v48 = vsel %vm427_vm0, %v426_v44, 0  ;;  %v338_v49 = vsel %vm278_vm1, %v333_v42, %v337_v16  ;;  %v418_v58 = vsel %vm278_vm1, %v413_v46, %v417_v25  ;;  %v537_v59 = vsel %vm427_vm0, %v2582_v32, 0 }
  0x1c   : > { %517 = vmatpush.bf16.xpose.msra.mxu2 %v483_v48  ;;  %v402_v52 = vsel %vm278_vm1, %v397_v45, %v401_v20  ;;  %v450_v57 = vsel %vm427_vm0, %v338_v49, 0  ;;  %v325_v61 = vor.u32 %v323_v50, %v321_v53  ;;  %v385_v62 = vrot.slane %v383_v55, 1  ;;  %v2656_v50 = vld [vmem:[%s2536_s14 + $0x8] sm:$0xff] }
  0x1d   : > { %v474_v60 = vsel %vm427_vm0, %v402_v52, 0  ;;  %v311_v63 = vshll.u32 %v2599_v51, 16  ;;  %v375_v5 = vshll.u32 %v2603_v54, 16  ;;  %v480_v6 = vsel %vm427_vm0, %v418_v58, 0 }
  0x1e   : > { %v389_v7 = vor.u32 %v387_v56, %v385_v62  ;;  %v557_v8 = vsel %vm427_vm0, %v2545_v2, 0  ;;  %v330_v9 = vsel %vm278_vm1, %v325_v61, %v329_v35  ;;  %v315_v12 = vshrl.u32 %v2599_v51, 16  ;;  %v2661_v56 = vld [vmem:[%s2536_s14 + $0x48] sm:$0xff] }
  0x1f   : > { %v313_v11 = vrot.slane %v311_v63, 1  ;;  %v377_v16 = vrot.slane %v375_v5, 1  ;;  %v379_v18 = vshrl.u32 %v2603_v54, 16  ;;  %v447_v20 = vsel %vm427_vm0, %v330_v9, 0 }
  0x20   : > { %486 = vmatpush.bf16.xpose.msra.mxu0 %v450_v57  ;;  %v394_v14 = vsel %vm278_vm1, %v389_v7, %v393_v40  ;;  %v535_v23 = vsel %vm427_vm0, %v2599_v51, 0  ;;  %v303_v25 = vshll.u32 %v2620_v13, 16  ;;  %v367_v27 = vshll.u32 %v2625_v19, 16  ;;  %v2666_v57 = vld [vmem:[%s3445_s1 + $0x2] sm:$0x3] }
  0x21   : > { %499 = vmatpush.bf16.xpose.msra.mxu1 %v474_v60  ;;  %565 = vmatpush.bf16.xpose.msra.mxu3 %v537_v59  ;;  %v471_v21 = vsel %vm427_vm0, %v394_v14, 0  ;;  %v317_v24 = vor.u32 %v315_v12, %v313_v11  ;;  %v381_v26 = vor.u32 %v379_v18, %v377_v16  ;;  %v555_v28 = vsel %vm427_vm0, %v2566_v15, 0 }
  0x22   : > { %v305_v30 = vrot.slane %v303_v25, 1  ;;  %v307_v31 = vshrl.u32 %v2620_v13, 16  ;;  %v369_v35 = vrot.slane %v367_v27, 1  ;;  %v371_v36 = vshrl.u32 %v2625_v19, 16 }
  0x23   : > { %v322_v29 = vsel %vm278_vm1, %v317_v24, %v321_v53  ;;  %v386_v34 = vsel %vm278_vm1, %v381_v26, %v385_v62  ;;  %v533_v40 = vsel %vm427_vm0, %v2620_v13, 0  ;;  %v295_v42 = vshll.u32 %v2638_v33, 16 }
  0x24   : > { %518 = vmatpush.bf16.xpose.msra.mxu2 %v480_v6  ;;  %v444_v38 = vsel %vm427_vm0, %v322_v29, 0  ;;  %v468_v39 = vsel %vm427_vm0, %v386_v34, 0  ;;  %v309_v41 = vor.u32 %v307_v31, %v305_v30  ;;  %v373_v44 = vor.u32 %v371_v36, %v369_v35 }
  0x25   : > { %v359_v45 = vshll.u32 %v2643_v37, 16  ;;  %v553_v46 = vsel %vm427_vm0, %v2591_v43, 0  ;;  %v297_v48 = vrot.slane %v295_v42, 1  ;;  %v299_v49 = vshrl.u32 %v2638_v33, 16 }
  0x26   : > { %v314_v47 = vsel %vm278_vm1, %v309_v41, %v313_v11  ;;  %v378_v52 = vsel %vm278_vm1, %v373_v44, %v377_v16  ;;  %v363_v55 = vshrl.u32 %v2643_v37, 16  ;;  %v531_v60 = vsel %vm427_vm0, %v2638_v33, 0  ;;  %v2483_v16 = vld [vmem:[%s2536_s14] sm:$0xff]  }
  0x27   : > { %v361_v53 = vrot.slane %v359_v45, 1  ;;  %v441_v58 = vsel %vm427_vm0, %v314_v47, 0  ;;  %v465_v59 = vsel %vm427_vm0, %v378_v52, 0  ;;  %v301_v61 = vor.u32 %v299_v49, %v297_v48 }
  0x28   : > { %487 = vmatpush.bf16.xpose.msra.mxu0 %v447_v20  ;;  %v287_v62 = vshll.u32 %v2656_v50, 16  ;;  %v351_v5 = vshll.u32 %v2661_v56, 16  ;;  %v551_v6 = vsel %vm427_vm0, %v2603_v54, 0  ;;  %v291_v9 = vshrl.u32 %v2656_v50, 16 }
  0x29   : > { %500 = vmatpush.bf16.xpose.msra.mxu1 %v471_v21  ;;  %566 = vmatpush.bf16.xpose.msra.mxu3 %v535_v23  ;;  %v365_v63 = vor.u32 %v363_v55, %v361_v53  ;;  %v306_v7 = vsel %vm278_vm1, %v301_v61, %v305_v30  ;;  %v355_v14 = vshrl.u32 %v2661_v56, 16  ;;  %v642_v18 = vrot.slane %v2551_v4, 1  ;;  %v2725_v61 = vld [vmem:[%s2536_s14 + $0x40] sm:$0xff] }
  0x2a   : > { %v353_v12 = vrot.slane %v351_v5, 1  ;;  %v644_v20 = vrot.slane %v2572_v22, 1  ;;  %v438_v21 = vsel %vm427_vm0, %v306_v7, 0  ;;  %v529_v23 = vsel %vm427_vm0, %v2656_v50, 0 }
  0x2b   : > { %2261 = vmatmul.msk.bf16.vlgmr.msra.gmra.mxu2 %vm427_vm0, %v2666_v57  ;;  %v370_v11 = vsel %vm278_vm1, %v365_v63, %v369_v35  ;;  %v282_v26 = vshll.u32 %v2483_v16, 16  ;;  %v638_v29 = vrot.slane %v2545_v2, 1  ;;  %v640_v22 = vrot.slane %v2548_v3, 1  ;;  %v181_v63 = vld [vmem:[%s3445_s1] sm:$0x3] }
  0x2c   : > { %576 = vmatpush.bf16.xpose.msrb.mxu2 %v557_v8  ;;  %v289_v8 = vrot.slane %v287_v62, 1  ;;  %v462_v24 = vsel %vm427_vm0, %v370_v11, 0  ;;  %v645_v27 = vsel %vm608_vm2, %v642_v18, %v644_v20  ;;  %v549_v30 = vsel %vm427_vm0, %v2625_v19, 0  ;;  %v2728_v62 = vld [vmem:[%s2536_s14 + $0x48] sm:$0xff]  ;;  %v2752_v20 = vld [vmem:[%s2536_s14 + $0x38] sm:$0xff] }
  0x2d   : > { %v280_v34 = vshrl.u32 %v2483_v16, 16  ;;  %v284_v35 = vrot.slane %v282_v26, 1  ;;  %v641_v2 = vsel %vm608_vm2, %v638_v29, %v640_v22  ;;  %v527_v41 = vsel %vm427_vm0, %v2483_v16, 0 }
  0x2e   : > { %v293_v25 = vor.u32 %v291_v9, %v289_v8  ;;  %v695_v44 = vsel %vm427_vm0, %v641_v2, 0  ;;  %v624_v47 = vrot.slane %v2542_v1, 1  ;;  %v547_v49 = vsel %vm427_vm0, %v2643_v37, 0 }
  0x2f   : > { %v285_v42 = vor.u32 %v284_v35, %v280_v34  ;;  %v620_v5 = vrot.slane %v2560_v10, 1  ;;  %v545_v7 = vsel %vm427_vm0, %v2661_v56, 0  ;;  %v892_v9 = vrot.slane %v2728_v62, 1 }
  0x30   : > { %488 = vmatpush.bf16.xpose.msra.mxu0 %v444_v38  ;;  %v298_v31 = vsel %vm278_vm1, %v293_v25, %v297_v48  ;;  %v347_v38 = vshrl.u32 %v2542_v1, 16  ;;  %v636_v48 = vrot.slane %v2566_v15, 1  ;;  %v543_v25 = vsel %vm427_vm0, %v2542_v1, 0 }
  0x31   : > { %501 = vmatpush.bf16.xpose.msra.mxu1 %v468_v39  ;;  %567 = vmatpush.bf16.xpose.msra.mxu3 %v533_v40  ;;  %v435_v39 = vsel %vm427_vm0, %v298_v31, 0  ;;  %v290_v52 = vsel %vm278_vm1, %v285_v42, %v289_v8  ;;  %v890_v8 = vrot.slane %v2725_v61, 1  ;;  %v2800_v42 = vld [vmem:[%s2536_s14 + $0x28] sm:$0xff]  ;;  %v1077_v1 = vshll.u32 %v2752_v20, 16 }
  0x32   : > { %v349_v45 = vor.u32 %v347_v38, %v2568_v17  ;;  %v639_v17 = vsel %vm608_vm2, %v636_v48, %v638_v29  ;;  %v432_v15 = vsel %vm427_vm0, %v290_v52, 0  ;;  %v2766_v29 = vld [vmem:[%s2536_s14 + $0x88] sm:$0xff]  ;;  %v2782_v38 = vld [vmem:[%s2536_s14 + $0x30] sm:$0xff]  ;;  %v628_v52 = vrot.slane %v2643_v37, 1 }
  0x33   : > { %v893_v16 = vsel %vm608_vm2, %v890_v8, %v892_v9  ;;  %v908_v31 = vrot.slane %v2766_v29, 1 }
  0x34   : > { %577 = vmatpush.bf16.xpose.msrb.mxu2 %v555_v28  ;;  %v357_v28 = vor.u32 %v355_v14, %v353_v12  ;;  %v939_v26 = vsel %vm427_vm0, %v893_v16, 0 }
  0x36   : > { %v362_v36 = vsel %vm278_vm1, %v357_v28, %v361_v53  ;;  %v354_v53 = vsel %vm278_vm1, %v349_v45, %v353_v12  ;;  %v2763_v28 = vld [vmem:[%s2536_s14 + $0x80] sm:$0xff] }
  0x37   : > { %v459_v40 = vsel %vm427_vm0, %v362_v36, 0  ;;  %v456_v55 = vsel %vm427_vm0, %v354_v53, 0  ;;  %v2810_v53 = vld [vmem:[%s2536_s14 + $0x70] sm:$0xff] }
  0x38   : > { %489 = vmatpush.bf16.xpose.msra.mxu0 %v441_v58  ;;  %v561_v58 = vsel %vm427_vm0, %v2551_v4, 0  ;;  %v616_v4 = vrot.slane %v2599_v51, 1 }
  0x39   : > { %502 = vmatpush.bf16.xpose.msra.mxu1 %v465_v59  ;;  %568 = vmatpush.bf16.xpose.msra.mxu3 %v531_v60  ;;  %v692_v60 = vsel %vm427_vm0, %v639_v17, 0 }
  0x3c   : > { %578 = vmatpush.bf16.xpose.msrb.mxu2 %v553_v46  ;;  %v622_v46 = vrot.slane %v2539_v0, 1 }
  0x3e   : > { %v625_v0 = vsel %vm608_vm2, %v622_v46, %v624_v47  ;;  %v623_v11 = vsel %vm608_vm2, %v620_v5, %v622_v46 }
  0x3f   : > { %v671_v59 = vsel %vm427_vm0, %v625_v0, 0  ;;  %v668_v12 = vsel %vm427_vm0, %v623_v11, 0  ;;  %v884_v0 = vrot.slane %v2800_v42, 1  ;;  %v1092_v11 = vshrl.u32 %v2728_v62, 16 }
  0x40   : > { %490 = vmatpush.bf16.xpose.msra.mxu0 %v438_v21  ;;  %v701_v21 = vsel %vm427_vm0, %v645_v27, 0  ;;  %v643_v27 = vsel %vm608_vm2, %v640_v22, %v642_v18 }
  0x41   : > { %503 = vmatpush.bf16.xpose.msra.mxu1 %v462_v24  ;;  %569 = vmatpush.bf16.xpose.msra.mxu3 %v529_v23  ;;  %v618_v23 = vrot.slane %v2582_v32, 1  ;;  %v632_v24 = vrot.slane %v2603_v54, 1  ;;  %v888_v32 = vrot.slane %v2752_v20, 1  ;;  %v698_v2 = vsel %vm427_vm0, %v643_v27, 0  ;;  %v2847_v27 = vld [vmem:[%s3445_s1 + $0x4] sm:$0x3] }
  0x43   : > { %v621_v54 = vsel %vm608_vm2, %v618_v23, %v620_v5  ;;  %v891_v36 = vsel %vm608_vm2, %v888_v32, %v890_v8  ;;  %v619_v51 = vsel %vm608_vm2, %v616_v4, %v618_v23  ;;  %v2823_v5 = vld [vmem:[%s2536_s14 + $0x20] sm:$0xff]  ;;  %v1086_v8 = vshll.u32 %v2725_v61, 16 }
  0x44   : > { %579 = vmatpush.bf16.xpose.msrb.mxu2 %v551_v6  ;;  %v634_v6 = vrot.slane %v2591_v43, 1  ;;  %v559_v43 = vsel %vm427_vm0, %v2548_v3, 0  ;;  %v665_v34 = vsel %vm427_vm0, %v621_v54, 0  ;;  %v630_v3 = vrot.slane %v2625_v19, 1 }
  0x45   : > { %v936_v18 = vsel %vm427_vm0, %v891_v36, 0  ;;  %v662_v45 = vsel %vm427_vm0, %v619_v51, 0  ;;  %v1094_v54 = vrot.slane %v1092_v11, 1  ;;  %v2487_v36 = vld [vmem:[%s2536_s14] sm:$0xe] }
  0x46   : > { %v637_v10 = vsel %vm608_vm2, %v634_v6, %v636_v48  ;;  %v633_v19 = vsel %vm608_vm2, %v630_v3, %v632_v24 }
  0x47   : > { %v689_v14 = vsel %vm427_vm0, %v637_v10, 0  ;;  %v683_v46 = vsel %vm427_vm0, %v633_v19, 0 }
  0x48   : > { %491 = vmatpush.bf16.xpose.msra.mxu0 %v435_v39  ;;  %v2792_v39 = vld [vmem:[%s2536_s14 + $0x78] sm:$0xff] }
  0x49   : > { %504 = vmatpush.bf16.xpose.msra.mxu1 %v459_v40  ;;  %570 = vmatpush.bf16.xpose.msra.mxu3 %v527_v41  ;;  %v886_v40 = vrot.slane %v2782_v38, 1 }
  0x4b   : > { %v889_v48 = vsel %vm608_vm2, %v886_v40, %v888_v32  ;;  %v1088_v32 = vrot.slane %v1086_v8, 2 }
  0x4c   : > { %580 = vmatpush.bf16.xpose.msrb.mxu2 %v549_v30  ;;  %v906_v30 = vrot.slane %v2763_v28, 1  ;;  %v933_v17 = vsel %vm427_vm0, %v889_v48, 0  ;;  %v1013_v48 = vld [vmem:[%s2536_s14 + $0x98] sm:$0x3] }
  0x4e   : > { %v909_v22 = vsel %vm608_vm2, %v906_v30, %v908_v31 }
  0x4f   : > { %v963_v41 = vsel %vm427_vm0, %v909_v22, 0 }
  0x50   : > { %492 = vmatpush.bf16.xpose.msra.mxu0 %v432_v15  ;;  %2262 = vmatmul.msk.bf16.vlgmr.msra.gmra.mxu3 %vm427_vm0, %v181_v63 }
  0x51   : > { %716 = vmatpush.bf16.xpose.msrb.mxu3 %v695_v44  ;;  %505 = vmatpush.bf16.xpose.msra.mxu1 %v456_v55  ;;  %v904_v44 = vrot.slane %v2792_v39, 1 }
  0x53   : > { %v907_v15 = vsel %vm608_vm2, %v904_v44, %v906_v30 }
  0x54   : > { %581 = vmatpush.bf16.xpose.msrb.mxu2 %v547_v49  ;;  %v614_v49 = vrot.slane %v2620_v13, 1  ;;  %v902_v13 = vrot.slane %v2810_v53, 1  ;;  %v960_v37 = vsel %vm427_vm0, %v907_v15, 0 }
  0x56   : > { %v617_v55 = vsel %vm608_vm2, %v614_v49, %v616_v4 }
  0x57   : > { %2259 = vmatmul.msk.bf16.vlgmr.msra.gmra.mxu0 %vm427_vm0, %v2666_v57  ;;  %v659_v10 = vsel %vm427_vm0, %v617_v55, 0 }
  0x58   : > { %595 = vmatpush.bf16.xpose.msrb.mxu0 %v561_v58  ;;  %2260 = vmatmul.msk.bf16.vlgmr.msra.gmra.mxu1 %vm427_vm0, %v2666_v57  ;;  %v635_v57 = vsel %vm608_vm2, %v632_v24, %v634_v6  ;;  %v631_v58 = vsel %vm608_vm2, %v628_v52, %v630_v3  ;;  %v2826_v6 = vld [vmem:[%s2536_s14 + $0x68] sm:$0xff]  ;;  %v610_v24 = vrot.slane %v2656_v50, 1 }
  0x59   : > { %703 = vmatpush.bf16.xpose.msrb.mxu1 %v671_v59  ;;  %717 = vmatpush.bf16.xpose.msrb.mxu3 %v692_v60  ;;  %v686_v35 = vsel %vm427_vm0, %v635_v57, 0  ;;  %v612_v59 = vrot.slane %v2638_v33, 1  ;;  %v887_v60 = vsel %vm608_vm2, %v884_v0, %v886_v40  ;;  %v1095_v33 = vshll.u32 %v2728_v62, 16 }
  0x5a   : > { %v900_v23 = vrot.slane %v2826_v6, 1 }
  0x5b   : > { %v1097_v57 = vrot.slane %v1095_v33, 2 }
  0x5c   : > { %582 = vmatpush.bf16.xpose.msrb.mxu2 %v545_v7  ;;  %v1083_v7 = vshrl.u32 %v2725_v61, 16  ;;  %v903_v3 = vsel %vm608_vm2, %v900_v23, %v902_v13 }
  0x5d   : > { %v2864_v51 = vor.u32 %v1097_v57, %v1094_v54  ;;  %v1065_v54 = vshrl.u32 %v2782_v38, 16  ;;  %v1068_v57 = vshll.u32 %v2782_v38, 16 }
  0x60   : > { %596 = vmatpush.bf16.xpose.msrb.mxu0 %v559_v43  ;;  %v680_v43 = vsel %vm427_vm0, %v631_v58, 0 }
  0x61   : > { %704 = vmatpush.bf16.xpose.msrb.mxu1 %v668_v12  ;;  %718 = vmatpush.bf16.xpose.msrb.mxu3 %v689_v14  ;;  %v905_v12 = vsel %vm608_vm2, %v902_v13, %v904_v44  ;;  %v615_v14 = vsel %vm608_vm2, %v612_v59, %v614_v49  ;;  %v1164_v49 = vshrl.u32 %v2766_v29, 16 }
  0x62   : > { %v957_v30 = vsel %vm427_vm0, %v905_v12, 0 }
  0x63   : > { %v1166_v11 = vrot.slane %v1164_v49, 1 }
  0x64   : > { %583 = vmatpush.bf16.xpose.msrb.mxu2 %v543_v25  ;;  %v2842_v25 = vld [vmem:[%s2536_s14 + $0x18] sm:$0xff] }
  0x65   : > { %v880_v22 = vrot.slane %v2842_v25, 1 }
  0x67   : > { %2264 = vmatmul.msk.bf16.vlgmr.msrb.gmra.mxu0 %vm427_vm0, %v181_v63 }
  0x68   : > { %735 = vmatpush.bf16.xpose.msra.mxu0 %v701_v21  ;;  %v882_v21 = vrot.slane %v2823_v5, 1 }
  0x69   : > { %705 = vmatpush.bf16.xpose.msrb.mxu1 %v665_v34  ;;  %719 = vmatpush.bf16.xpose.msrb.mxu3 %v686_v35  ;;  %v656_v34 = vsel %vm427_vm0, %v615_v14, 0  ;;  %v2486_v35 = vld [vmem:[%s2536_s14] sm:$0xf0]  ;;  %v2898_v14 = vld [vmem:[%s2536_s14 + $0xc] sm:$0xf] }
  0x6a   : > { %v885_v4 = vsel %vm608_vm2, %v882_v21, %v884_v0  ;;  %v2488_v44 = vor.u32 %v2487_v36, %v2486_v35  ;;  %v1074_v0 = vshrl.u32 %v2752_v20, 16  ;;  %v883_v58 = vsel %vm608_vm2, %v880_v22, %v882_v21 }
  0x6b   : > { %2263 = vmatmul.msk.bf16.vlgmr.msrb.gmra.mxu2 %vm427_vm0, %v181_v63  ;;  %v626_v63 = vrot.slane %v2661_v56, 1  ;;  %v930_v56 = vsel %vm427_vm0, %v887_v60, 0  ;;  %v924_v12 = vsel %vm427_vm0, %v883_v58, 0  ;;  %v1149_v21 = vshll.u32 %v2792_v39, 16 }
  0x6c   : > { %971 = vmatpush.bf16.xpose.msra.mxu2 %v939_v26  ;;  %v1085_v26 = vrot.slane %v1083_v7, 1  ;;  %v609_v60 = vrot.slane %v2488_v44, 1  ;;  %v2923_v44 = vld [vmem:[%s2536_s14 + $0x58] sm:$0xff] }
  0x6d   : > { %v629_v16 = vsel %vm608_vm2, %v626_v63, %v628_v52  ;;  %v627_v19 = vsel %vm608_vm2, %v624_v47, %v626_v63  ;;  %v1167_v52 = vshll.u32 %v2766_v29, 16  ;;  %v927_v47 = vsel %vm427_vm0, %v885_v4, 0  ;;  %v2893_v63 = vld [vmem:[%s2536_s14 + $0x10] sm:$0xff] }
  0x6e   : > { %v2862_v40 = vor.u32 %v1088_v32, %v1085_v26  ;;  %v674_v55 = vsel %vm427_vm0, %v627_v19, 0  ;;  %v2903_v26 = vld [vmem:[%s2536_s14 + $0x90] sm:$0xff]  ;;  %v611_v35 = vsel %vm608_vm2, %v609_v60, %v610_v24  ;;  %v878_v36 = vrot.slane %v2893_v63, 1 }
  0x6f   : > { %v1169_v33 = vrot.slane %v1167_v52, 2  ;;  %v822_v19 = vunpack.c.l.b16 %v2898_v14  ;;  %v1176_v50 = vshll.u32 %v2903_v26, 16 }
  0x70   : > { %736 = vmatpush.bf16.xpose.msra.mxu0 %v698_v2  ;;  %v677_v2 = vsel %vm427_vm0, %v629_v16, 0  ;;  %v1099_v13 = vsel %vm1019_vm3, %v2862_v40, %v2864_v51  ;;  %v1146_v16 = vshrl.u32 %v2792_v39, 16 }
  0x71   : > { %706 = vmatpush.bf16.xpose.msrb.mxu1 %v662_v45  ;;  %720 = vmatpush.bf16.xpose.msrb.mxu3 %v683_v46  ;;  %v1155_v45 = vshrl.u32 %v2763_v28, 16  ;;  %v1158_v46 = vshll.u32 %v2763_v28, 16  ;;  %v1215_v32 = vsel %vm427_vm0, %v1099_v13, 0  ;;  %v2919_v4 = vor.u32 %v1169_v33, %v1166_v11 }
  0x72   : > { %v1140_v33 = vshll.u32 %v2810_v53, 16 }
  0x73   : > { %v1157_v7 = vrot.slane %v1155_v45, 1  ;;  %v1160_v8 = vrot.slane %v1158_v46, 2  ;;  %v1148_v45 = vrot.slane %v1146_v16, 1  ;;  %v1151_v46 = vrot.slane %v1149_v21, 2 }
  0x74   : > { %972 = vmatpush.bf16.xpose.msra.mxu2 %v936_v18  ;;  %v613_v18 = vsel %vm608_vm2, %v610_v24, %v612_v59  ;;  %v1017_v59 = vunpack.c.l.b16 %v1013_v48  ;;  %v1067_v24 = vrot.slane %v1065_v54, 1  ;;  %v1070_v48 = vrot.slane %v1068_v57, 2 }
  0x75   : > { %v653_v15 = vsel %vm427_vm0, %v613_v18, 0  ;;  %v1152_v13 = vor.u32 %v1151_v46, %v1148_v45  ;;  %v1142_v45 = vrot.slane %v1140_v33, 2 }
  0x76   : > { %v1071_v60 = vor.u32 %v1070_v48, %v1067_v24 }
  0x77   : > { %2268 = vmatmul.msk.bf16.vlgmr.msra.gmra.mxu0 %vm427_vm0, %v2847_v27 }
  0x78   : > { %984 = vmatpush.bf16.xpose.msrb.mxu0 %v963_v41  ;;  %v2872_v41 = vld [vmem:[%s2536_s14 + $0x60] sm:$0xff] }
  0x79   : > { %707 = vmatpush.bf16.xpose.msrb.mxu1 %v659_v10  ;;  %721 = vmatpush.bf16.xpose.msrb.mxu3 %v680_v43  ;;  %v1076_v10 = vrot.slane %v1074_v0, 1  ;;  %v1079_v43 = vrot.slane %v1077_v1, 2  ;;  %v650_v1 = vsel %vm427_vm0, %v611_v35, 0  ;;  %v2959_v35 = vld [vmem:[%s2536_s14 + $0x50] sm:$0xff] }
  0x7a   : > { %v894_v48 = vrot.slane %v2959_v35, 1 }
  0x7c   : > { %973 = vmatpush.bf16.xpose.msra.mxu2 %v933_v17  ;;  %v954_v17 = vsel %vm427_vm0, %v903_v3, 0  ;;  %v1080_v3 = vor.u32 %v1079_v43, %v1076_v10  ;;  %v1059_v10 = vshll.u32 %v2800_v42, 16 }
  0x7e   : > { %v1081_v54 = vsel %vm1019_vm3, %v1071_v60, %v1080_v3 }
  0x80   : > { %985 = vmatpush.bf16.xpose.msrb.mxu0 %v960_v37  ;;  %v898_v37 = vrot.slane %v2872_v41, 1 }
  0x81   : > { %708 = vmatpush.bf16.xpose.msrb.mxu1 %v656_v34  ;;  %722 = vmatpush.bf16.xpose.msrb.mxu3 %v677_v2  ;;  %v1161_v2 = vor.u32 %v1160_v8, %v1157_v7  ;;  %v1178_v7 = vrot.slane %v1176_v50, 2  ;;  %v781_v50 = vld [vmem:[%s2536_s14 + $0x98] sm:$0x1] }
  0x82   : > { %v901_v34 = vsel %vm608_vm2, %v898_v37, %v900_v23  ;;  %v1173_v23 = vshrl.u32 %v2903_v26, 16 }
  0x83   : > { %v951_v0 = vsel %vm427_vm0, %v901_v34, 0 }
  0x84   : > { %974 = vmatpush.bf16.xpose.msra.mxu2 %v930_v56  ;;  %v745_v56 = vld [vmem:[%s2536_s14 + $0x8] sm:$0xe] }
  0x85   : > { %v821_v18 = vunpack.c.l.b16 %v745_v56 }
  0x87   : > { %v2941_v58 = vpack.c.b16 %v822_v19, %v821_v18 }
  0x88   : > { %986 = vmatpush.bf16.xpose.msrb.mxu0 %v957_v30  ;;  %v2908_v30 = vpack.c.b16 %v1017_v59, %v1017_v59  ;;  %v1175_v59 = vrot.slane %v1173_v23, 1  ;;  %v1061_v23 = vrot.slane %v1059_v10, 2 }
  0x89   : > { %709 = vmatpush.bf16.xpose.msrb.mxu1 %v653_v15  ;;  %723 = vmatpush.bf16.xpose.msrb.mxu3 %v674_v55  ;;  %v1090_v15 = vsel %vm1019_vm3, %v1080_v3, %v2862_v40  ;;  %v896_v55 = vrot.slane %v2923_v44, 1  ;;  %v1056_v40 = vshrl.u32 %v2800_v42, 16  ;;  %v877_v21 = vrot.slane %v2941_v58, 1 }
  0x8a   : > { %v1182_v49 = vshrl.u32 %v2908_v30, 16  ;;  %v1185_v52 = vshll.u32 %v2908_v30, 16  ;;  %v1212_v56 = vsel %vm427_vm0, %v1090_v15, 0  ;;  %v1179_v57 = vor.u32 %v1178_v7, %v1175_v59 }
  0x8b   : > { %v899_v16 = vsel %vm608_vm2, %v896_v55, %v898_v37  ;;  %v1058_v46 = vrot.slane %v1056_v40, 1  ;;  %v879_v24 = vsel %vm608_vm2, %v877_v21, %v878_v36  ;;  %v1209_v3 = vsel %vm427_vm0, %v1081_v54, 0 }
  0x8c   : > { %975 = vmatpush.bf16.xpose.msra.mxu2 %v927_v47  ;;  %v881_v47 = vsel %vm608_vm2, %v878_v36, %v880_v22  ;;  %v1184_v8 = vrot.slane %v1182_v49, 1  ;;  %v1187_v11 = vrot.slane %v1185_v52, 2  ;;  %v1137_v22 = vshrl.u32 %v2810_v53, 16 }
  0x8d   : > { %v948_v37 = vsel %vm427_vm0, %v899_v16, 0  ;;  %v1047_v15 = vshrl.u32 %v2823_v5, 16  ;;  %v1050_v36 = vshll.u32 %v2823_v5, 16  ;;  %v918_v59 = vsel %vm427_vm0, %v879_v24, 0 }
  0x8e   : > { %v1188_v34 = vor.u32 %v1187_v11, %v1184_v8  ;;  %v1139_v18 = vrot.slane %v1137_v22, 1  ;;  %v897_v8 = vsel %vm608_vm2, %v894_v48, %v896_v55  ;;  %v1325_v11 = vrot.slane %v2763_v28, 2 }
  0x8f   : > { %v1327_v22 = vrot.slane %v2766_v29, 2  ;;  %v945_v16 = vsel %vm427_vm0, %v897_v8, 0  ;;  %v1180_v55 = vsel %vm1019_vm3, %v2919_v4, %v1179_v57  ;;  %v895_v21 = vsel %vm608_vm2, %v892_v9, %v894_v48 }
  0x90   : > { %987 = vmatpush.bf16.xpose.msrb.mxu0 %v954_v17  ;;  %v1171_v17 = vsel %vm1019_vm3, %v1161_v2, %v2919_v4  ;;  %2267 = vmatmul.msk.bf16.vlgmr.msrb.gmra.mxu3 %vm427_vm0, %v2847_v27  ;;  %v1189_v49 = vsel %vm1019_vm3, %v1179_v57, %v1188_v34  ;;  %v1143_v52 = vor.u32 %v1142_v45, %v1139_v18  ;;  %v1101_v45 = vshrl.u32 %v2959_v35, 16  ;;  %v2998_v57 = vld [vmem:[%s3445_s1 + $0x6] sm:$0x3] }
  0x91   : > { %1247 = vmatpush.bf16.xpose.msra.mxu3 %v1215_v32  ;;  %v1239_v43 = vsel %vm427_vm0, %v1171_v17, 0  ;;  %710 = vmatpush.bf16.xpose.msrb.mxu1 %v650_v1  ;;  %v1162_v32 = vsel %vm1019_vm3, %v1152_v13, %v1161_v2  ;;  %v857_v1 = vunpack.c.l.b16 %v781_v50  ;;  %v1131_v17 = vshll.u32 %v2826_v6, 16 }
  0x92   : > { %v1236_v2 = vsel %vm427_vm0, %v1162_v32, 0  ;;  %v1245_v7 = vsel %vm427_vm0, %v1189_v49, 0  ;;  %v1153_v33 = vsel %vm1019_vm3, %v1143_v52, %v1152_v13  ;;  %v1328_v13 = vsel %vm1295_vm4, %v1325_v11, %v1327_v22 }
  0x93   : > { %v876_v10 = vpack.c.b16 %v857_v1, %v857_v1  ;;  %v1233_v28 = vsel %vm427_vm0, %v1153_v33, 0  ;;  %v910_v32 = vrot.slane %v2903_v26, 1  ;;  %v1104_v4 = vshll.u32 %v2959_v35, 16 }
  0x94   : > { %976 = vmatpush.bf16.xpose.msra.mxu2 %v924_v12  ;;  %v921_v12 = vsel %vm427_vm0, %v881_v47, 0  ;;  %v1128_v47 = vshrl.u32 %v2826_v6, 16  ;;  %v1038_v9 = vshrl.u32 %v2842_v25, 16  ;;  %v1041_v50 = vshll.u32 %v2842_v25, 16 }
  0x95   : > { %v912_v54 = vrot.slane %v876_v10, 1  ;;  %v1382_v24 = vsel %vm427_vm0, %v1328_v13, 0  ;;  %v1323_v48 = vrot.slane %v2792_v39, 2  ;;  %v1110_v10 = vshrl.u32 %v2923_v44, 16 }
  0x98   : > { %988 = vmatpush.bf16.xpose.msrb.mxu0 %v951_v0  ;;  %v1062_v0 = vor.u32 %v1061_v23, %v1058_v46  ;;  %2266 = vmatmul.msk.bf16.vlgmr.msrb.gmra.mxu1 %vm427_vm0, %v2847_v27  ;;  %v1133_v27 = vrot.slane %v1131_v17, 2  ;;  %v1119_v46 = vshrl.u32 %v2872_v41, 16  ;;  %v1122_v23 = vshll.u32 %v2872_v41, 16 }
  0x99   : > { %1260 = vmatpush.bf16.xpose.msra.mxu1 %v1239_v43  ;;  %1248 = vmatpush.bf16.xpose.msra.mxu3 %v1212_v56  ;;  %v1130_v43 = vrot.slane %v1128_v47, 1  ;;  %v1049_v56 = vrot.slane %v1047_v15, 1  ;;  %v1103_v47 = vrot.slane %v1101_v45, 1  ;;  %v1106_v17 = vrot.slane %v1104_v4, 2 }
  0x9a   : > { %v1072_v40 = vsel %vm1019_vm3, %v1062_v0, %v1071_v60  ;;  %v1121_v15 = vrot.slane %v1119_v46, 1 }
  0x9b   : > { %v1206_v60 = vsel %vm427_vm0, %v1072_v40, 0  ;;  %v1134_v34 = vor.u32 %v1133_v27, %v1130_v43  ;;  %v1326_v40 = vsel %vm1295_vm4, %v1323_v48, %v1325_v11  ;;  %v1113_v43 = vshll.u32 %v2923_v44, 16 }
  0x9c   : > { %977 = vmatpush.bf16.xpose.msra.mxu2 %v921_v12  ;;  %v1052_v12 = vrot.slane %v1050_v36, 2  ;;  %v1124_v36 = vrot.slane %v1122_v23, 2  ;;  %v1107_v27 = vor.u32 %v1106_v17, %v1103_v47 }
  0x9d   : > { %v1144_v49 = vsel %vm1019_vm3, %v1134_v34, %v1143_v52  ;;  %v1309_v52 = vrot.slane %v2725_v61, 2  ;;  %v1379_v61 = vsel %vm427_vm0, %v1326_v40, 0 }
  0x9e   : > { %v1053_v18 = vor.u32 %v1052_v12, %v1049_v56  ;;  %v1230_v33 = vsel %vm427_vm0, %v1144_v49, 0  ;;  %v1125_v56 = vor.u32 %v1124_v36, %v1121_v15  ;;  %v3025_v11 = vsel %vm1019_vm3, %v2864_v51, %v1107_v27 }
  0xa0   : > { %989 = vmatpush.bf16.xpose.msrb.mxu0 %v948_v37  ;;  %v1242_v37 = vsel %vm427_vm0, %v1180_v55, 0  ;;  %v1063_v1 = vsel %vm1019_vm3, %v1053_v18, %v1062_v0  ;;  %v1311_v0 = vrot.slane %v2728_v62, 2  ;;  %v911_v55 = vsel %vm608_vm2, %v908_v31, %v910_v32 }
  0xa1   : > { %1261 = vmatpush.bf16.xpose.msra.mxu1 %v1236_v2  ;;  %1249 = vmatpush.bf16.xpose.msra.mxu3 %v1209_v3  ;;  %v942_v2 = vsel %vm427_vm0, %v895_v21, 0  ;;  %v913_v3 = vsel %vm608_vm2, %v910_v32, %v912_v54  ;;  %v1203_v39 = vsel %vm427_vm0, %v1063_v1, 0  ;;  %v1112_v21 = vrot.slane %v1110_v10, 1 }
  0xa2   : > { %v969_v8 = vsel %vm427_vm0, %v913_v3, 0  ;;  %v1312_v13 = vsel %vm1295_vm4, %v1309_v52, %v1311_v0  ;;  %v1115_v54 = vrot.slane %v1113_v43, 2  ;;  %v1135_v45 = vsel %vm1019_vm3, %v1125_v56, %v1134_v34 }
  0xa3   : > { %v966_v23 = vsel %vm427_vm0, %v911_v55, 0  ;;  %v1358_v31 = vsel %vm427_vm0, %v1312_v13, 0  ;;  %v1227_v32 = vsel %vm427_vm0, %v1135_v45, 0  ;;  %v1319_v1 = vrot.slane %v2826_v6, 2 }
  0xa4   : > { %978 = vmatpush.bf16.xpose.msra.mxu2 %v918_v59  ;;  %v1040_v59 = vrot.slane %v1038_v9, 1  ;;  %v1307_v9 = vrot.slane %v2752_v20, 2  ;;  %v1329_v6 = vrot.slane %v2903_v26, 2  ;;  %v1317_v10 = vrot.slane %v2872_v41, 2  ;;  %v3076_v26 = vld [vmem:[%s2536_s14 + $0x50] sm:$0xff] }
  0xa5   : > { %v1579_v13 = vrot.slane %v3076_v26, 2  ;;  %v1315_v45 = vrot.slane %v2923_v44, 2  ;;  %v1218_v44 = vsel %vm427_vm0, %v3025_v11, 0 }
  0xa6   : > { %v1310_v20 = vsel %vm1295_vm4, %v1307_v9, %v1309_v52 }
  0xa8   : > { %990 = vmatpush.bf16.xpose.msrb.mxu0 %v945_v16  ;;  %v1029_v16 = vshrl.u32 %v2893_v63, 16 }
  0xa9   : > { %1262 = vmatpush.bf16.xpose.msra.mxu1 %v1233_v28  ;;  %1250 = vmatpush.bf16.xpose.msra.mxu3 %v1206_v60  ;;  %v1032_v28 = vshll.u32 %v2893_v63, 16  ;;  %v1321_v60 = vrot.slane %v2810_v53, 2 }
  0xaa   : > { %v1031_v4 = vrot.slane %v1029_v16, 1  ;;  %v3085_v16 = vld [vmem:[%s2536_s14 + $0x90] sm:$0xff] }
  0xab   : > { %2338 = vmatmul.msk.bf16.vlgmr.msra.gmra.mxu2 %vm427_vm0, %v2998_v57  ;;  %v1034_v46 = vrot.slane %v1032_v28, 2  ;;  %v1324_v34 = vsel %vm1295_vm4, %v1321_v60, %v1323_v48  ;;  %v1303_v28 = vrot.slane %v2800_v42, 2 }
  0xac   : > { %1279 = vmatpush.bf16.xpose.msrb.mxu2 %v1245_v7  ;;  %v1043_v7 = vrot.slane %v1041_v50, 2  ;;  %v1116_v50 = vor.u32 %v1115_v54, %v1112_v21  ;;  %v1376_v3 = vsel %vm427_vm0, %v1324_v34, 0  ;;  %v1595_v21 = vrot.slane %v3085_v16, 2 }
  0xae   : > { %v1044_v12 = vor.u32 %v1043_v7, %v1040_v59  ;;  %v1126_v49 = vsel %vm1019_vm3, %v1116_v50, %v1125_v56  ;;  %v1305_v59 = vrot.slane %v2782_v38, 2  ;;  %v1322_v7 = vsel %vm1295_vm4, %v1319_v1, %v1321_v60  ;;  %v3073_v56 = vld [vmem:[%s2536_s14 + $0x48] sm:$0xff]  ;;  %v3120_v34 = vpop.f32.mrf.mxu2 }
  0xaf   : > { %v1224_v15 = vsel %vm427_vm0, %v1126_v49, 0  ;;  %v1117_v52 = vsel %vm1019_vm3, %v1107_v27, %v1116_v50 }
  0xb0   : > { %991 = vmatpush.bf16.xpose.msrb.mxu0 %v942_v2  ;;  %v1054_v51 = vsel %vm1019_vm3, %v1044_v12, %v1053_v18  ;;  %v3048_v18 = vld [vmem:[%s3445_s1 + $0x8] sm:$0x3]  ;;  %v1024_v2 = vshll.u32 %v2941_v58, 16  ;;  %v1308_v40 = vsel %vm1295_vm4, %v1305_v59, %v1307_v9  ;;  %v1221_v27 = vsel %vm427_vm0, %v1117_v52, 0 }
  0xb1   : > { %1263 = vmatpush.bf16.xpose.msra.mxu1 %v1230_v33  ;;  %1251 = vmatpush.bf16.xpose.msra.mxu3 %v1203_v39  ;;  %v1200_v53 = vsel %vm427_vm0, %v1054_v51, 0  ;;  %v1331_v33 = vrot.slane %v2908_v30, 2  ;;  %v1373_v39 = vsel %vm427_vm0, %v1322_v7, 0  ;;  %v1352_v30 = vsel %vm427_vm0, %v1308_v40, 0  ;;  %v3100_v51 = vld [vmem:[%s2536_s14 + $0x40] sm:$0xff] }
  0xb2   : > { %v1026_v17 = vrot.slane %v1024_v2, 2  ;;  %v1306_v42 = vsel %vm1295_vm4, %v1303_v28, %v1305_v59  ;;  %v1301_v9 = vrot.slane %v2823_v5, 2  ;;  %v1575_v50 = vrot.slane %v3100_v51, 2 }
  0xb3   : > { %v1332_v43 = vsel %vm1295_vm4, %v1329_v6, %v1331_v33 }
  0xb4   : > { %1280 = vmatpush.bf16.xpose.msrb.mxu2 %v1242_v37  ;;  %v1035_v37 = vor.u32 %v1034_v46, %v1031_v4  ;;  %v1388_v55 = vsel %vm427_vm0, %v1332_v43, 0  ;;  %v3103_v4 = vld [vmem:[%s2536_s14 + $0x80] sm:$0xff]  ;;  %v1764_v43 = vshll.u32 %v3100_v51, 16 }
  0xb6   : > { %v1045_v48 = vsel %vm1019_vm3, %v1035_v37, %v1044_v12  ;;  %v3082_v12 = vld [vmem:[%s2536_s14 + $0x88] sm:$0xff] }
  0xb7   : > { %2339 = vmatmul.msk.bf16.vlgmr.msrb.gmra.mxu0 %vm427_vm0, %v2998_v57  ;;  %v1197_v36 = vsel %vm427_vm0, %v1045_v48, 0  ;;  %v1593_v60 = vrot.slane %v3082_v12, 2  ;;  %v3135_v48 = vld [vmem:[%s2536_s14 + $0x38] sm:$0xff] }
  0xb8   : > { %1003 = vmatpush.bf16.xpose.msra.mxu0 %v969_v8 }
  0xb9   : > { %1264 = vmatpush.bf16.xpose.msra.mxu1 %v1227_v32  ;;  %1252 = vmatpush.bf16.xpose.msra.mxu3 %v1200_v53  ;;  %v1596_v32 = vsel %vm1295_vm4, %v1593_v60, %v1595_v21  ;;  %v1318_v53 = vsel %vm1295_vm4, %v1315_v45, %v1317_v10 }
  0xba   : > { %v1650_v11 = vsel %vm427_vm0, %v1596_v32, 0  ;;  %v1367_v5 = vsel %vm427_vm0, %v1318_v53, 0 }
  0xbb   : > { %2344 = vmatmul.msk.bf16.vlgmr.msrb.gmra.mxu2 %vm427_vm0, %v3048_v18 }
  0xbc   : > { %1403 = vmatpush.bf16.xpose.msra.mxu2 %v1382_v24  ;;  %v1021_v24 = vshrl.u32 %v2941_v58, 16  ;;  %v1355_v58 = vsel %vm427_vm0, %v1310_v20, 0  ;;  %v1299_v20 = vrot.slane %v2842_v25, 2 }
  0xbe   : > { %v1023_v47 = vrot.slane %v1021_v24, 1  ;;  %v1304_v24 = vsel %vm1295_vm4, %v1301_v9, %v1303_v28  ;;  %v1302_v7 = vsel %vm1295_vm4, %v1299_v20, %v1301_v9 }
  0xbf   : > { %v1343_v28 = vsel %vm427_vm0, %v1302_v7, 0  ;;  %v3208_v7 = vld [vmem:[%s2536_s14 + $0x68] sm:$0xff] }
  0xc0   : > { %1004 = vmatpush.bf16.xpose.msra.mxu0 %v966_v23  ;;  %v1027_v8 = vor.u32 %v1026_v17, %v1023_v47  ;;  %v1330_v23 = vsel %vm1295_vm4, %v1327_v22, %v1329_v6  ;;  %v1773_v47 = vshll.u32 %v3073_v56, 16  ;;  %v1779_v17 = vshrl.u32 %v3076_v26, 16 }
  0xc1   : > { %1265 = vmatpush.bf16.xpose.msra.mxu1 %v1224_v15  ;;  %1253 = vmatpush.bf16.xpose.msra.mxu3 %v1197_v36  ;;  %v1385_v22 = vsel %vm427_vm0, %v1330_v23, 0  ;;  %v1782_v15 = vshll.u32 %v3076_v26, 16  ;;  %v1573_v6 = vrot.slane %v3135_v48, 2  ;;  %v1297_v23 = vrot.slane %v2893_v63, 2 }
  0xc2   : > { %v1036_v38 = vsel %vm1019_vm3, %v1027_v8, %v1035_v37  ;;  %v1591_v37 = vrot.slane %v3103_v4, 2  ;;  %v522_v8 = vpop.f32.mrf.mxu2  ;;  %v1781_v40 = vrot.slane %v1779_v17, 2 }
  0xc3   : > { %v1194_v41 = vsel %vm427_vm0, %v1036_v38, 0  ;;  %v1784_v38 = vrot.slane %v1782_v15, 3 }
  0xc4   : > { %1404 = vmatpush.bf16.xpose.msra.mxu2 %v1379_v61  ;;  %v1320_v61 = vsel %vm1295_vm4, %v1317_v10, %v1319_v1  ;;  %v1594_v49 = vsel %vm1295_vm4, %v1591_v37, %v1593_v60  ;;  %v1770_v1 = vshrl.u32 %v3073_v56, 16  ;;  %v1761_v10 = vshrl.u32 %v3100_v51, 16  ;;  %v3164_v60 = vld [vmem:[%s2536_s14 + $0x30] sm:$0xff] }
  0xc5   : > { %v1370_v54 = vsel %vm427_vm0, %v1320_v61, 0  ;;  %v1647_v59 = vsel %vm427_vm0, %v1594_v49, 0  ;;  %v1571_v63 = vrot.slane %v3164_v60, 2  ;;  %v1752_v49 = vshrl.u32 %v3135_v48, 16 }
  0xc6   : > { %v1772_v33 = vrot.slane %v1770_v1, 2  ;;  %v1755_v1 = vshll.u32 %v3135_v48, 16 }
  0xc7   : > { %2340 = vmatmul.msk.bf16.vlgmr.msra.gmra.mxu0 %vm427_vm0, %v2998_v57  ;;  %v1577_v57 = vrot.slane %v3073_v56, 2  ;;  %v1754_v8 = vrot.slane %v1752_v49, 2 }
  0xc8   : > { %1390 = vmatpush.bf16.xpose.msrb.mxu0 %v1358_v31  ;;  %v1349_v31 = vsel %vm427_vm0, %v1306_v42, 0  ;;  %v1763_v42 = vrot.slane %v1761_v10, 2 }
  0xc9   : > { %1266 = vmatpush.bf16.xpose.msra.mxu1 %v1221_v27  ;;  %1254 = vmatpush.bf16.xpose.msra.mxu3 %v1194_v41  ;;  %v1580_v46 = vsel %vm1295_vm4, %v1577_v57, %v1579_v13  ;;  %v1578_v2 = vsel %vm1295_vm4, %v1575_v50, %v1577_v57  ;;  %v1289_v27 = vld [vmem:[%s2536_s14 + $0x8] sm:$0xc]  ;;  %v1468_v41 = vld [vmem:[%s2536_s14 + $0xa0] sm:$0x3]  ;;  %v3161_v57 = vor.u32 %v1784_v38, %v1781_v40  ;;  %v1854_v38 = vshll.u32 %v3085_v16, 16 }
  0xca   : > { %v1626_v29 = vsel %vm427_vm0, %v1580_v46, 0  ;;  %v1623_v25 = vsel %vm427_vm0, %v1578_v2, 0  ;;  %v3172_v46 = vld [vmem:[%s3445_s1 + $0xa] sm:$0x3]  ;;  %v1544_v32 = vunpack.c.l.b16 %v1468_v41  ;;  %v1585_v41 = vrot.slane %v3208_v7, 2 }
  0xcc   : > { %1405 = vmatpush.bf16.xpose.msra.mxu2 %v1376_v3  ;;  %v1313_v3 = vrot.slane %v2959_v35, 2  ;;  %v1346_v35 = vsel %vm427_vm0, %v1304_v24, 0 }
  0xce   : > { %v1316_v36 = vsel %vm1295_vm4, %v1313_v3, %v1315_v45  ;;  %v1766_v45 = vrot.slane %v1764_v43, 3  ;;  %v1314_v53 = vsel %vm1295_vm4, %v1311_v0, %v1313_v3  ;;  %v3190_v0 = vld [vmem:[%s2536_s14 + $0x98] sm:$0xff] }
  0xcf   : > { %v1361_v3 = vsel %vm427_vm0, %v1314_v53, 0  ;;  %v3225_v53 = vld [vmem:[%s2536_s14 + $0x60] sm:$0xff] }
  0xd0   : > { %1391 = vmatpush.bf16.xpose.msrb.mxu0 %v1355_v58  ;;  %2342 = vmatmul.msk.bf16.vlgmr.msra.gmra.mxu3 %vm427_vm0, %v3048_v18  ;;  %v3141_v58 = vld [vmem:[%s2536_s14 + $0x78] sm:$0xff] }
  0xd1   : > { %1422 = vmatpush.bf16.xpose.msrb.mxu3 %v1388_v55  ;;  %1267 = vmatpush.bf16.xpose.msra.mxu1 %v1218_v44  ;;  %v1589_v52 = vrot.slane %v3141_v58, 2 }
  0xd3   : > { %v1592_v55 = vsel %vm1295_vm4, %v1589_v52, %v1591_v37  ;;  %v1300_v37 = vsel %vm1295_vm4, %v1297_v23, %v1299_v20  ;;  %v572_v24 = vpop.f32.mrf.mxu3 }
  0xd4   : > { %1406 = vmatpush.bf16.xpose.msra.mxu2 %v1373_v39  ;;  %v1775_v39 = vrot.slane %v1773_v47, 3  ;;  %v1644_v9 = vsel %vm427_vm0, %v1592_v55, 0  ;;  %v494_v2 = vpop.f32.mrf.mxu0  ;;  %v1574_v47 = vsel %vm1295_vm4, %v1571_v63, %v1573_v6 }
  0xd5   : > { %v3199_v14 = vadd.f32 %v572_v24, %v494_v2  ;;  %v1617_v40 = vsel %vm427_vm0, %v1574_v47, 0 }
  0xd6   : > { %v1776_v61 = vor.u32 %v1775_v39, %v1772_v33  ;;  %v1757_v33 = vrot.slane %v1755_v1, 3  ;;  %v1842_v39 = vshrl.u32 %v3082_v12, 16  ;;  %v1583_v1 = vrot.slane %v3225_v53, 2 }
  0xd8   : > { %1392 = vmatpush.bf16.xpose.msrb.mxu0 %v1352_v30  ;;  %2343 = vmatmul.msk.bf16.vlgmr.msra.gmra.mxu1 %vm427_vm0, %v3048_v18  ;;  %v1364_v30 = vsel %vm427_vm0, %v1316_v36, 0  ;;  %v1576_v18 = vsel %vm1295_vm4, %v1573_v6, %v1575_v50  ;;  %v1786_v50 = vsel %vm1706_vm5, %v1776_v61, %v3161_v57  ;;  %v1845_v6 = vshll.u32 %v3082_v12, 16 }
  0xd9   : > { %1658 = vmatpush.bf16.xpose.msrb.mxu1 %v1626_v29  ;;  %1423 = vmatpush.bf16.xpose.msrb.mxu3 %v1385_v22  ;;  %v1620_v44 = vsel %vm427_vm0, %v1576_v18, 0  ;;  %v1767_v22 = vor.u32 %v1766_v45, %v1763_v42  ;;  %v1902_v20 = vsel %vm427_vm0, %v1786_v50, 0  ;;  %v1758_v55 = vor.u32 %v1757_v33, %v1754_v8  ;;  %v3222_v42 = vld [vmem:[%s2536_s14 + $0x20] sm:$0xff]  ;;  %v3229_v50 = vpop.f32.mrf.mxu1  ;;  %v1432_v8 = vld [vmem:[%s2536_s14 + $0x10] sm:$0xc] }
  0xda   : > { %v1844_v45 = vrot.slane %v1842_v39, 2  ;;  %v1567_v2 = vrot.slane %v3222_v42, 2  ;;  %v3252_v33 = vld [vmem:[%s2536_s14 + $0x14] sm:$0xf] }
  0xdb   : > { %v1777_v15 = vsel %vm1706_vm5, %v1767_v22, %v1776_v61  ;;  %v1768_v24 = vsel %vm1706_vm5, %v1758_v55, %v1767_v22 }
  0xdc   : > { %1407 = vmatpush.bf16.xpose.msra.mxu2 %v1370_v54  ;;  %v3167_v54 = vld [vmem:[%s2536_s14 + $0x70] sm:$0xff]  ;;  %v1899_v43 = vsel %vm427_vm0, %v1777_v15, 0  ;;  %v496_v18 = vpop.f32.mrf.mxu0  ;;  %v1896_v15 = vsel %vm427_vm0, %v1768_v24, 0 }
  0xdd   : > { %v1587_v29 = vrot.slane %v3167_v54, 2  ;;  %v1827_v18 = vshll.u32 %v3141_v58, 16 }
  0xdf   : > { %v1590_v17 = vsel %vm1295_vm4, %v1587_v29, %v1589_v52  ;;  %v1851_v52 = vshrl.u32 %v3085_v16, 16 }
  0xe0   : > { %1393 = vmatpush.bf16.xpose.msrb.mxu0 %v1349_v31  ;;  %v1293_v31 = vunpack.c.l.b16 %v1289_v27  ;;  %2348 = vmatmul.msk.bf16.vlgmr.msrb.gmra.mxu3 %vm427_vm0, %v3172_v46  ;;  %v1641_v10 = vsel %vm427_vm0, %v1590_v17, 0  ;;  %v1836_v17 = vshll.u32 %v3103_v4, 16 }
  0xe1   : > { %1671 = vmatpush.bf16.xpose.msra.mxu3 %v1650_v11  ;;  %1659 = vmatpush.bf16.xpose.msrb.mxu1 %v1623_v25  ;;  %v1563_v11 = vpack.c.b16 %v1544_v32, %v1544_v32  ;;  %v1597_v25 = vrot.slane %v3190_v0, 2  ;;  %v1853_v32 = vrot.slane %v1851_v52, 2 }
  0xe2   : > { %v1294_v62 = vpack.c.b16 %v822_v19, %v1293_v31  ;;  %v1340_v19 = vsel %vm427_vm0, %v1300_v37, 0  ;;  %v1847_v31 = vrot.slane %v1845_v6, 3 }
  0xe3   : > { %v1599_v36 = vrot.slane %v1563_v11, 2 }
  0xe4   : > { %1408 = vmatpush.bf16.xpose.msra.mxu2 %v1367_v5  ;;  %v3193_v5 = vld [vmem:[%s2536_s14 + $0x28] sm:$0xff]  ;;  %v598_v22 = vpop.f32.mrf.mxu0 }
  0xe5   : > { %v1600_v27 = vsel %vm1295_vm4, %v1597_v25, %v1599_v36  ;;  %v3255_v39 = vadd.f32 %v598_v22, %v3120_v34  ;;  %v1508_v34 = vunpack.c.l.b16 %v1432_v8 }
  0xe6   : > { %v1656_v37 = vsel %vm427_vm0, %v1600_v27, 0  ;;  %v1509_v27 = vunpack.c.l.b16 %v3252_v33 }
  0xe8   : > { %1394 = vmatpush.bf16.xpose.msrb.mxu0 %v1346_v35  ;;  %v1296_v35 = vrot.slane %v1294_v62, 2  ;;  %v1588_v62 = vsel %vm1295_vm4, %v1585_v41, %v1587_v29  ;;  %v1833_v29 = vshrl.u32 %v3103_v4, 16 }
  0xe9   : > { %1672 = vmatpush.bf16.xpose.msra.mxu3 %v1647_v59  ;;  %1660 = vmatpush.bf16.xpose.msrb.mxu1 %v1620_v44  ;;  %v1569_v59 = vrot.slane %v3193_v5, 2  ;;  %v1856_v44 = vrot.slane %v1854_v38, 3  ;;  %v1638_v47 = vsel %vm427_vm0, %v1588_v62, 0  ;;  %v509_v38 = vpop.f32.mrf.mxu1  ;;  %v3282_v62 = vpack.c.b16 %v1509_v27, %v1508_v34 }
  0xea   : > { %v1815_v38 = vshrl.u32 %v3167_v54, 16 }
  0xeb   : > { %v1572_v61 = vsel %vm1295_vm4, %v1569_v59, %v1571_v63  ;;  %v3239_v49 = vor.u32 %v1856_v44, %v1853_v32  ;;  %v1570_v36 = vsel %vm1295_vm4, %v1567_v2, %v1569_v59  ;;  %v1737_v59 = vshll.u32 %v3193_v5, 16 }
  0xec   : > { %1409 = vmatpush.bf16.xpose.msra.mxu2 %v1364_v30  ;;  %v1298_v30 = vsel %vm1295_vm4, %v1296_v35, %v1297_v23  ;;  %v1743_v23 = vshrl.u32 %v3164_v60, 16  ;;  %v1614_v11 = vsel %vm427_vm0, %v1572_v61, 0  ;;  %v1598_v35 = vsel %vm1295_vm4, %v1595_v21, %v1597_v25  ;;  %v600_v24 = vpop.f32.mrf.mxu0 }
  0xed   : > { %v1337_v63 = vsel %vm427_vm0, %v1298_v30, 0  ;;  %v1838_v21 = vrot.slane %v1836_v17, 3  ;;  %v1734_v25 = vshrl.u32 %v3193_v5, 16  ;;  %v3266_v30 = vld [vmem:[%s2536_s14 + $0x58] sm:$0xff]  ;;  %v1611_v61 = vsel %vm427_vm0, %v1570_v36, 0 }
  0xee   : > { %v1564_v36 = vrot.slane %v3282_v62, 2 }
  0xf0   : > { %1395 = vmatpush.bf16.xpose.msrb.mxu0 %v1343_v28  ;;  %v574_v28 = vpop.f32.mrf.mxu3 }
  0xf1   : > { %1673 = vmatpush.bf16.xpose.msra.mxu3 %v1644_v9  ;;  %1661 = vmatpush.bf16.xpose.msrb.mxu1 %v1617_v40  ;;  %v1746_v9 = vshll.u32 %v3164_v60, 16  ;;  %v1586_v40 = vsel %vm1295_vm4, %v1583_v1, %v1585_v41  ;;  %v1824_v28 = vshrl.u32 %v3141_v58, 16  ;;  %v1653_v41 = vsel %vm427_vm0, %v1598_v35, 0 }
  0xf4   : > { %1410 = vmatpush.bf16.xpose.msra.mxu2 %v1361_v3  ;;  %v1848_v3 = vor.u32 %v1847_v31, %v1844_v45  ;;  %v1635_v31 = vsel %vm427_vm0, %v1586_v40, 0 }
  0xf6   : > { %v1858_v6 = vsel %vm1706_vm5, %v1848_v3, %v3239_v49 }
  0xf7   : > { %v1926_v45 = vsel %vm427_vm0, %v1858_v6, 0 }
  0xf8   : > { %1396 = vmatpush.bf16.xpose.msrb.mxu0 %v1340_v19  ;;  %v1748_v19 = vrot.slane %v1746_v9, 3  ;;  %v1736_v9 = vrot.slane %v1734_v25, 2  ;;  %v2014_v25 = vrot.slane %v3085_v16, 3 }
  0xf9   : > { %1674 = vmatpush.bf16.xpose.msra.mxu3 %v1641_v10  ;;  %1662 = vmatpush.bf16.xpose.msrb.mxu1 %v1614_v11  ;;  %v3261_v10 = vld [vmem:[%s2536_s14 + $0x18] sm:$0xff]  ;;  %v1829_v11 = vrot.slane %v1827_v18, 3  ;;  %v738_v18 = vpop.f32.mrf.mxu0 }
  0xfa   : > { %v1565_v44 = vrot.slane %v3261_v10, 2 }
  0xfb   : > { %2347 = vmatmul.msk.bf16.vlgmr.msra.gmra.mxu2 %vm427_vm0, %v3172_v46 }
  0xfc   : > { %1934 = vmatpush.bf16.xpose.msrb.mxu2 %v1902_v20  ;;  %v1745_v20 = vrot.slane %v1743_v23, 2  ;;  %v1568_v17 = vsel %vm1295_vm4, %v1565_v44, %v1567_v2 }
  0xfe   : > { %v1749_v52 = vor.u32 %v1748_v19, %v1745_v20  ;;  %v1725_v20 = vshrl.u32 %v3222_v42, 16  ;;  %v585_v19 = vpop.f32.mrf.mxu2 }
 0x100   : > { %1397 = vmatpush.bf16.xpose.msrb.mxu0 %v1337_v63  ;;  %v1759_v32 = vsel %vm1706_vm5, %v1749_v52, %v1758_v55  ;;  %v1739_v63 = vrot.slane %v1737_v59, 3  ;;  %v1728_v55 = vshll.u32 %v3222_v42, 16  ;;  %v1727_v6 = vrot.slane %v1725_v20, 2 }
 0x101   : > { %1675 = vmatpush.bf16.xpose.msra.mxu3 %v1638_v47  ;;  %1663 = vmatpush.bf16.xpose.msrb.mxu1 %v1611_v61  ;;  %v1893_v47 = vsel %vm427_vm0, %v1759_v32, 0  ;;  %v1566_v59 = vsel %vm1295_vm4, %v1564_v36, %v1565_v44  ;;  %v1998_v61 = vrot.slane %v3076_v26, 3  ;;  %v1700_v32 = vld [vmem:[%s2536_s14 + $0xa0] sm:$0x7]  ;;  %v1809_v36 = vshll.u32 %v3208_v7, 16 }
 0x102   : > { %v1730_v40 = vrot.slane %v1728_v55, 3  ;;  %v1704_v24 = vunpack.c.l.b16 %v1700_v32 }
 0x104   : > { %1935 = vmatpush.bf16.xpose.msrb.mxu2 %v1899_v43  ;;  %v1835_v43 = vrot.slane %v1833_v29, 2  ;;  %v3288_v29 = vadd.f32 %v585_v19, %v3229_v50  ;;  %v1608_v50 = vsel %vm427_vm0, %v1568_v17, 0 }
 0x106   : > { %v1839_v23 = vor.u32 %v1838_v21, %v1835_v43  ;;  %v1818_v43 = vshll.u32 %v3167_v54, 16 }
 0x107   : > { %2346 = vmatmul.msk.bf16.vlgmr.msrb.gmra.mxu0 %vm427_vm0, %v3172_v46  ;;  %v1826_v46 = vrot.slane %v1824_v28, 2  ;;  %v1996_v28 = vrot.slane %v3073_v56, 3  ;;  %v1719_v56 = vshll.u32 %v3261_v10, 16 }
 0x108   : > { %1690 = vmatpush.bf16.xpose.msra.mxu0 %v1656_v37  ;;  %v1581_v37 = vrot.slane %v3266_v30, 2  ;;  %v1849_v22 = vsel %vm1706_vm5, %v1839_v23, %v1848_v3 }
 0x109   : > { %1676 = vmatpush.bf16.xpose.msra.mxu3 %v1635_v31  ;;  %v1830_v8 = vor.u32 %v1829_v11, %v1826_v46  ;;  %v1923_v21 = vsel %vm427_vm0, %v1849_v22, 0  ;;  %1664 = vmatpush.bf16.xpose.msrb.mxu1 %v1608_v50  ;;  %v1820_v31 = vrot.slane %v1818_v43, 3  ;;  %v1999_v55 = vsel %vm1982_vm6, %v1996_v28, %v1998_v61  ;;  %v740_v43 = vpop.f32.mrf.mxu0 }
 0x10a   : > { %v1584_v35 = vsel %vm1295_vm4, %v1581_v37, %v1583_v1  ;;  %v2012_v1 = vrot.slane %v3082_v12, 3  ;;  %v3308_v12 = vadd.f32 %v738_v18, %v3255_v39  ;;  %v1582_v11 = vsel %vm1295_vm4, %v1579_v13, %v1581_v37 }
 0x10b   : > { %v1632_v2 = vsel %vm427_vm0, %v1584_v35, 0  ;;  %v1840_v34 = vsel %vm1706_vm5, %v1830_v8, %v1839_v23  ;;  %v1716_v23 = vshrl.u32 %v3261_v10, 16  ;;  %v1721_v22 = vrot.slane %v1719_v56, 3 }
 0x10c   : > { %1936 = vmatpush.bf16.xpose.msrb.mxu2 %v1896_v15  ;;  %v1740_v15 = vor.u32 %v1739_v63, %v1736_v9  ;;  %v2349_v9 = vld [vmem:[%s3445_s1 + $0xc] sm:$0x3]  ;;  %v1605_v63 = vsel %vm427_vm0, %v1566_v59, 0  ;;  %v1920_v46 = vsel %vm427_vm0, %v1840_v34, 0  ;;  %v2015_v39 = vsel %vm1982_vm6, %v2012_v1, %v2014_v25 }
 0x10d   : > { %v1718_v17 = vrot.slane %v1716_v23, 2  ;;  %v1806_v35 = vshrl.u32 %v3208_v7, 16  ;;  %v2069_v13 = vsel %vm427_vm0, %v2015_v39, 0  ;;  %v1629_v37 = vsel %vm427_vm0, %v1582_v11, 0 }
 0x10e   : > { %v1750_v3 = vsel %vm1706_vm5, %v1740_v15, %v1749_v52  ;;  %v587_v52 = vpop.f32.mrf.mxu2  ;;  %v1708_v59 = vshrl.u32 %v3282_v62, 16  ;;  %v1711_v34 = vshll.u32 %v3282_v62, 16  ;;  %v1860_v18 = vshrl.u32 %v3190_v0, 16 }
 0x10f   : > { %v1890_v44 = vsel %vm427_vm0, %v1750_v3, 0  ;;  %v1811_v3 = vrot.slane %v1809_v36, 3  ;;  %v2008_v62 = vrot.slane %v3141_v58, 3  ;;  %v1791_v43 = vshll.u32 %v3266_v30, 16 }
 0x110   : > { %1691 = vmatpush.bf16.xpose.msra.mxu0 %v1653_v41  ;;  %v1731_v41 = vor.u32 %v1730_v40, %v1727_v6  ;;  %v2045_v6 = vsel %vm427_vm0, %v1999_v55, 0  ;;  %v3336_v40 = vpack.c.b16 %v1704_v24, %v1704_v24  ;;  %v1710_v23 = vrot.slane %v1708_v59, 2 }
 0x111   : > { %1677 = vmatpush.bf16.xpose.msra.mxu3 %v1632_v2  ;;  %1665 = vmatpush.bf16.xpose.msrb.mxu1 %v1605_v63  ;;  %v1808_v2 = vrot.slane %v1806_v35, 2  ;;  %v1713_v56 = vrot.slane %v1711_v34, 3  ;;  %v1797_v63 = vshrl.u32 %v3225_v53, 16  ;;  %v1862_v39 = vrot.slane %v1860_v18, 2 }
 0x112   : > { %v1741_v20 = vsel %vm1706_vm5, %v1731_v41, %v1740_v15  ;;  %v1994_v15 = vrot.slane %v3100_v51, 3 }
 0x113   : > { %v1799_v35 = vrot.slane %v1797_v63, 2 }
 0x114   : > { %1937 = vmatpush.bf16.xpose.msrb.mxu2 %v1893_v47  ;;  %v2010_v47 = vrot.slane %v3103_v4, 3  ;;  %v1887_v4 = vsel %vm427_vm0, %v1741_v20, 0  ;;  %v1997_v51 = vsel %vm1982_vm6, %v1994_v15, %v1996_v28 }
 0x115   : > { %v2042_v28 = vsel %vm427_vm0, %v1997_v51, 0  ;;  %v712_v59 = vpop.f32.mrf.mxu1 }
 0x116   : > { %v2013_v50 = vsel %vm1982_vm6, %v2010_v47, %v2012_v1 }
 0x117   : > { %2420 = vmatmul.msk.bf16.vlgmr.msra.gmra.mxu0 %vm427_vm0, %v2349_v9  ;;  %v2066_v52 = vsel %vm427_vm0, %v2013_v50, 0  ;;  %v2006_v50 = vrot.slane %v3167_v54, 3  ;;  %v742_v54 = vadd.f32 %v712_v59, %v3199_v14  ;;  %v2425_v59 = vld [vmem:[%s3445_s1 + $0x10] sm:$0x3] }
 0x118   : > { %1947 = vmatpush.bf16.xpose.msrb.mxu0 %v1926_v45  ;;  %v1817_v45 = vrot.slane %v1815_v38, 2  ;;  %2418 = vmatmul.msk.bf16.vlgmr.msrb.gmra.mxu1 %vm427_vm0, %v2349_v9 }
 0x119   : > { %2090 = vmatpush.bf16.xpose.msra.mxu1 %v2069_v13  ;;  %1678 = vmatpush.bf16.xpose.msra.mxu3 %v1629_v37 }
 0x11a   : > { %v1821_v19 = vor.u32 %v1820_v31, %v1817_v45  ;;  %v1863_v45 = vshll.u32 %v3190_v0, 16  ;;  %v1872_v31 = vshll.u32 %v3336_v40, 16 }
 0x11c   : > { %1938 = vmatpush.bf16.xpose.msrb.mxu2 %v1890_v44  ;;  %v1831_v38 = vsel %vm1706_vm5, %v1821_v19, %v1830_v8  ;;  %v1869_v8 = vshrl.u32 %v3336_v40, 16  ;;  %v1812_v44 = vor.u32 %v1811_v3, %v1808_v2  ;;  %v1865_v11 = vrot.slane %v1863_v45, 3  ;;  %v725_v3 = vpop.f32.mrf.mxu3 }
 0x11d   : > { %v1917_v1 = vsel %vm427_vm0, %v1831_v38, 0  ;;  %v1874_v20 = vrot.slane %v1872_v31, 3  ;;  %v2009_v31 = vsel %vm1982_vm6, %v2006_v50, %v2008_v62 }
 0x11e   : > { %v1871_v24 = vrot.slane %v1869_v8, 2  ;;  %v1822_v55 = vsel %vm1706_vm5, %v1812_v44, %v1821_v19  ;;  %v1866_v13 = vor.u32 %v1865_v11, %v1862_v39  ;;  %v1788_v19 = vshrl.u32 %v3266_v30, 16 }
 0x11f   : > { %v1793_v8 = vrot.slane %v1791_v43, 3 }
 0x120   : > { %1948 = vmatpush.bf16.xpose.msrb.mxu0 %v1923_v21  ;;  %v1722_v21 = vor.u32 %v1721_v22, %v1718_v17  ;;  %2419 = vmatmul.msk.bf16.vlgmr.msra.gmra.mxu3 %vm427_vm0, %v2349_v9  ;;  %v2011_v17 = vsel %vm1982_vm6, %v2008_v62, %v2010_v47  ;;  %v1714_v22 = vor.u32 %v1713_v56, %v1710_v23  ;;  %v1914_v9 = vsel %vm427_vm0, %v1822_v55, 0 }
 0x121   : > { %2077 = vmatpush.bf16.xpose.msrb.mxu3 %v2045_v6  ;;  %2091 = vmatpush.bf16.xpose.msra.mxu1 %v2066_v52  ;;  %v1875_v37 = vor.u32 %v1874_v20, %v1871_v24  ;;  %v1790_v45 = vrot.slane %v1788_v19, 2  ;;  %v2018_v52 = vrot.slane %v3336_v40, 3  ;;  %v2004_v23 = vrot.slane %v3208_v7, 3  ;;  %v714_v7 = vpop.f32.mrf.mxu1 }
 0x122   : > { %v1732_v32 = vsel %vm1706_vm5, %v1722_v21, %v1731_v41  ;;  %v1992_v41 = vrot.slane %v3135_v48, 3  ;;  %v2063_v48 = vsel %vm427_vm0, %v2011_v17, 0  ;;  %v1867_v14 = vsel %vm1706_vm5, %v3239_v49, %v1866_v13 }
 0x123   : > { %v1884_v58 = vsel %vm427_vm0, %v1732_v32, 0  ;;  %v1876_v2 = vsel %vm1706_vm5, %v1866_v13, %v1875_v37  ;;  %v2060_v32 = vsel %vm427_vm0, %v2009_v31, 0  ;;  %v1988_v40 = vrot.slane %v3193_v5, 3 }
 0x124   : > { %1939 = vmatpush.bf16.xpose.msrb.mxu2 %v1887_v4  ;;  %v1995_v6 = vsel %vm1982_vm6, %v1992_v41, %v1994_v15  ;;  %v1723_v4 = vsel %vm1706_vm5, %v1714_v22, %v1722_v21  ;;  %v1990_v15 = vrot.slane %v3164_v60, 3  ;;  %v743_v21 = vadd.f32 %v725_v3, %v3288_v29  ;;  %v727_v56 = vpop.f32.mrf.mxu3 }
 0x125   : > { %v2039_v47 = vsel %vm427_vm0, %v1995_v6, 0  ;;  %v1881_v51 = vsel %vm427_vm0, %v1723_v4, 0  ;;  %v1932_v18 = vsel %vm427_vm0, %v1876_v2, 0  ;;  %v2007_v49 = vsel %vm1982_vm6, %v2004_v23, %v2006_v50 }
 0x126   : > { %v1993_v60 = vsel %vm1982_vm6, %v1990_v15, %v1992_v41  ;;  %v1991_v11 = vsel %vm1982_vm6, %v1988_v40, %v1990_v15  ;;  %v2057_v24 = vsel %vm427_vm0, %v2007_v49, 0  ;;  %v2002_v41 = vrot.slane %v3225_v53, 3 }
 0x127   : > { %v2033_v20 = vsel %vm427_vm0, %v1991_v11, 0  ;;  %v2000_v6 = vrot.slane %v3266_v30, 3 }
 0x128   : > { %1949 = vmatpush.bf16.xpose.msrb.mxu0 %v1920_v46  ;;  %v1800_v46 = vshll.u32 %v3225_v53, 16 }
 0x129   : > { %2078 = vmatpush.bf16.xpose.msrb.mxu3 %v2042_v28  ;;  %2092 = vmatpush.bf16.xpose.msra.mxu1 %v2063_v48  ;;  %v1794_v28 = vor.u32 %v1793_v8, %v1790_v45  ;;  %v2003_v19 = vsel %vm1982_vm6, %v2000_v6, %v2002_v41  ;;  %v2001_v3 = vsel %vm1982_vm6, %v1998_v61, %v2000_v6 }
 0x12a   : > { %v1802_v36 = vrot.slane %v1800_v46, 3  ;;  %v1929_v46 = vsel %vm427_vm0, %v1867_v14, 0  ;;  %v2051_v30 = vsel %vm427_vm0, %v2003_v19, 0  ;;  %v2048_v33 = vsel %vm427_vm0, %v2001_v3, 0 }
 0x12b   : > { %v1795_v17 = vsel %vm1706_vm5, %v3161_v57, %v1794_v28  ;;  %v1984_v57 = vrot.slane %v3261_v10, 3 }
 0x12c   : > { %1940 = vmatpush.bf16.xpose.msrb.mxu2 %v1884_v58  ;;  %v1803_v38 = vor.u32 %v1802_v36, %v1799_v35  ;;  %v1986_v58 = vrot.slane %v3222_v42, 3  ;;  %v2005_v35 = vsel %vm1982_vm6, %v2002_v41, %v2004_v23  ;;  %v1905_v37 = vsel %vm427_vm0, %v1795_v17, 0  ;;  %v1976_v42 = vld [vmem:[%s2536_s14 + $0x10] sm:$0x8] }
 0x12d   : > { %v2054_v16 = vsel %vm427_vm0, %v2005_v35, 0  ;;  %v1980_v48 = vunpack.c.l.b16 %v1976_v42 }
 0x12e   : > { %v1813_v34 = vsel %vm1706_vm5, %v1803_v38, %v1812_v44  ;;  %v2036_v44 = vsel %vm427_vm0, %v1993_v60, 0  ;;  %v1804_v63 = vsel %vm1706_vm5, %v1794_v28, %v1803_v38  ;;  %v980_v22 = vpop.f32.mrf.mxu2  ;;  %v1989_v53 = vsel %vm1982_vm6, %v1986_v58, %v1988_v40 }
 0x12f   : > { %v1911_v29 = vsel %vm427_vm0, %v1813_v34, 0  ;;  %v1908_v5 = vsel %vm427_vm0, %v1804_v63, 0  ;;  %v1010_v13 = vadd.f32 %v980_v22, %v742_v54  ;;  %v1987_v43 = vsel %vm1982_vm6, %v1984_v57, %v1986_v58 }
 0x130   : > { %1950 = vmatpush.bf16.xpose.msrb.mxu0 %v1917_v1  ;;  %v2016_v1 = vrot.slane %v3190_v0, 3  ;;  %v2421_v0 = vld [vmem:[%s3445_s1 + $0xe] sm:$0x3]  ;;  %v2027_v10 = vsel %vm427_vm0, %v1987_v43, 0 }
 0x131   : > { %2079 = vmatpush.bf16.xpose.msrb.mxu3 %v2039_v47  ;;  %2093 = vmatpush.bf16.xpose.msra.mxu1 %v2060_v32  ;;  %v1981_v47 = vpack.c.b16 %v1509_v27, %v1980_v48 }
 0x132   : > { %v2019_v62 = vsel %vm1982_vm6, %v2016_v1, %v2018_v52  ;;  %v2017_v55 = vsel %vm1982_vm6, %v2014_v25, %v2016_v1  ;;  %v2030_v25 = vsel %vm427_vm0, %v1989_v53, 0 }
 0x133   : > { %v2075_v39 = vsel %vm427_vm0, %v2019_v62, 0  ;;  %v2072_v36 = vsel %vm427_vm0, %v2017_v55, 0  ;;  %v1983_v2 = vrot.slane %v1981_v47, 3 }
 0x134   : > { %1941 = vmatpush.bf16.xpose.msrb.mxu2 %v1881_v51 }
 0x135   : > { %v1985_v51 = vsel %vm1982_vm6, %v1983_v2, %v1984_v57 }
 0x136   : > { %v982_v38 = vpop.f32.mrf.mxu2  ;;  %v2024_v27 = vsel %vm427_vm0, %v1985_v51, 0 }
 0x138   : > { %1951 = vmatpush.bf16.xpose.msrb.mxu0 %v1914_v9  ;;  %v993_v9 = vpop.f32.mrf.mxu0 }
 0x139   : > { %2080 = vmatpush.bf16.xpose.msrb.mxu3 %v2036_v44  ;;  %2094 = vmatpush.bf16.xpose.msra.mxu1 %v2057_v24  ;;  %v1011_v4 = vadd.f32 %v993_v9, %v743_v21 }
 0x13b   : > { %2422 = vmatmul.msk.bf16.vlgmr.msrb.gmra.mxu2 %vm427_vm0, %v2421_v0 }
 0x13c   : > { %1966 = vmatpush.bf16.xpose.msra.mxu2 %v1932_v18 }
 0x13e   : > { %v1282_v15 = vpop.f32.mrf.mxu2 }
 0x140   : > { %1952 = vmatpush.bf16.xpose.msrb.mxu0 %v1911_v29  ;;  %v995_v50 = vpop.f32.mrf.mxu0 }
 0x141   : > { %2081 = vmatpush.bf16.xpose.msrb.mxu3 %v2033_v20  ;;  %2095 = vmatpush.bf16.xpose.msra.mxu1 %v2054_v16 }
 0x144   : > { %1967 = vmatpush.bf16.xpose.msra.mxu2 %v1929_v46 }
 0x146   : > { %v1284_v61 = vpop.f32.mrf.mxu2 }
 0x148   : > { %1953 = vmatpush.bf16.xpose.msrb.mxu0 %v1908_v5  ;;  %v1006_v21 = vpop.f32.mrf.mxu0 }
 0x149   : > { %2082 = vmatpush.bf16.xpose.msrb.mxu3 %v2030_v25  ;;  %2096 = vmatpush.bf16.xpose.msra.mxu1 %v2051_v30  ;;  %v1012_v34 = vadd.f32 %v1006_v21, %v3308_v12 }
 0x14b   : > { %2424 = vmatmul.msk.bf16.vlgmr.msra.gmra.mxu2 %vm427_vm0, %v2421_v0  ;;  %v1288_v26 = vadd.f32 %v1282_v15, %v1012_v34 }
 0x14c   : > { %2109 = vmatpush.bf16.xpose.msrb.mxu2 %v2075_v39 }
 0x150   : > { %1954 = vmatpush.bf16.xpose.msrb.mxu0 %v1905_v37  ;;  %v1008_v18 = vpop.f32.mrf.mxu0 }
 0x151   : > { %2083 = vmatpush.bf16.xpose.msrb.mxu3 %v2027_v10  ;;  %2097 = vmatpush.bf16.xpose.msra.mxu1 %v2048_v33 }
 0x153   : > { %v1256_v45 = vpop.f32.mrf.mxu3 }
 0x154   : > { %2110 = vmatpush.bf16.xpose.msrb.mxu2 %v2072_v36  ;;  %v1286_v8 = vadd.f32 %v1256_v45, %v1010_v13 }
 0x155   : > { %v1269_v54 = vpop.f32.mrf.mxu1 }
 0x156   : > { %v1287_v31 = vadd.f32 %v1269_v54, %v1011_v4 }
 0x157   : > { %2423 = vmatmul.msk.bf16.vlgmr.msrb.gmra.mxu0 %vm427_vm0, %v2421_v0 }
 0x158   : > { %2427 = vmatmul.msk.bf16.vlgmr.msra.gmra.mxu1 %vm427_vm0, %v2425_v59 }
 0x159   : > { %2084 = vmatpush.bf16.xpose.msrb.mxu3 %v2024_v27 }
 0x15b   : > { %2428 = vmatmul.msk.bf16.vlgmr.msrb.gmra.mxu2 %vm427_vm0, %v2425_v59  ;;  %v1258_v60 = vpop.f32.mrf.mxu3 }
 0x15d   : > { %v1271_v1 = vpop.f32.mrf.mxu1 }
 0x160   : > { %2426 = vmatmul.msk.bf16.vlgmr.msrb.gmra.mxu3 %vm427_vm0, %v2425_v59 }
 0x163   : > { %v1425_v52 = vpop.f32.mrf.mxu3 }
 0x164   : > { %v1431_v29 = vadd.f32 %v1425_v52, %v1288_v26 }
 0x16b   : > { %v1427_v12 = vpop.f32.mrf.mxu3 }
 0x17e   : > { %v1412_v32 = vpop.f32.mrf.mxu2 }
 0x17f   : > { %v1430_v28 = vadd.f32 %v1412_v32, %v1287_v31 }
 0x184   : > { %v1399_v44 = vpop.f32.mrf.mxu0 }
 0x185   : > { %v1429_v23 = vadd.f32 %v1399_v44, %v1286_v8 }
 0x186   : > { %v1414_v14 = vpop.f32.mrf.mxu2 }
 0x18c   : > { %v1401_v0 = vpop.f32.mrf.mxu0 }
 0x194   : > { %v1693_v40 = vpop.f32.mrf.mxu0 }
 0x195   : > { %v1699_v62 = vadd.f32 %v1693_v40, %v1431_v29  ;;  %v1667_v63 = vpop.f32.mrf.mxu1 }
 0x196   : > { %v1697_v13 = vadd.f32 %v1667_v63, %v1429_v23 }
 0x19c   : > { %v1695_v56 = vpop.f32.mrf.mxu0 }
 0x19d   : > { %v1669_v7 = vpop.f32.mrf.mxu1 }
 0x1a3   : > { %v1680_v46 = vpop.f32.mrf.mxu3 }
 0x1a4   : > { %v1698_v58 = vadd.f32 %v1680_v46, %v1430_v28 }
 0x1ab   : > { %v1682_v49 = vpop.f32.mrf.mxu3 }
 0x1be   : > { %v1943_v39 = vpop.f32.mrf.mxu2 }
 0x1bf   : > { %v1973_v37 = vadd.f32 %v1943_v39, %v1697_v13 }
 0x1c6   : > { %v1945_v11 = vpop.f32.mrf.mxu2 }
 0x1ce   : > { %v1969_v24 = vpop.f32.mrf.mxu2 }
 0x1cf   : > { %v1975_v55 = vadd.f32 %v1969_v24, %v1699_v62 }
 0x1d4   : > { %v1956_v5 = vpop.f32.mrf.mxu0 }
 0x1d5   : > { %v2099_v17 = vpop.f32.mrf.mxu1  ;;  %v1974_v35 = vadd.f32 %v1956_v5, %v1698_v58 }
 0x1d6   : > { %v1971_v41 = vpop.f32.mrf.mxu2 }
 0x1d7   : > { %v2117_v53 = vadd.f32 %v2099_v17, %v1974_v35 }
 0x1d9   : > { %v2121_v16 = vrot.slane %v2117_v53, 4 }
 0x1dc   : > { %v1958_v20 = vpop.f32.mrf.mxu0 }
 0x1dd   : > { %v2101_v6 = vpop.f32.mrf.mxu1 }
 0x1de   : > { %v2112_v22 = vpop.f32.mrf.mxu2 }
 0x1df   : > { %v2118_v36 = vadd.f32 %v2112_v22, %v1975_v55 }
 0x1e1   : > { %2127 = vst.msk [vmem:[%s143_s8 + $0x8] sm:$0x7] %vm2126_vm7, %v2118_v36 }
 0x1e3   : > { %v2086_v42 = vpop.f32.mrf.mxu3 }
 0x1e4   : > { %v2116_v25 = vadd.f32 %v2086_v42, %v1973_v37 }
 0x1e6   : > { %v2114_v9 = vpop.f32.mrf.mxu2  ;;  %v2123_v57 = vsel %vm2122_vm8, %v2116_v25, %v2121_v16 }
 0x1e7   : > { %2125 = vst [vmem:[%s143_s8] sm:$0x77] %v2123_v57 }
 0x1eb   : > { %v2088_v48 = vpop.f32.mrf.mxu3 }
 0x1ec PF: > { %s12_s9 = sadd.s32 1, %s2505_s9  }
 0x1ed   : > { %p9_p4 = scmp.ge.s32.totalorder %s12_s9, 4  }
 0x1ef   :  { %11 = sbr.rel (!%p9_p4) target bundleno = 1 (0x1), region = 66 }

// kernel: vigunet_forward.2
= control target key start
LH: loop header
LB: loop body
LE: loop exit
PB: predicated region body
PF: predicated region fallthrough
CT: control target
= control target key end

     0   :  { %s7942_s13 = smov 0   ;;  %s9384_s0 = inlined_call_operand.vmem [shape: bf16[2,16,64], index: 0, kind: input, shape index: {}]   ;;  %s9385_s1 = inlined_call_operand.vmem [shape: bf16[64,128], index: 1, kind: input, shape index: {}]   ;;  %s9386_s2 = inlined_call_operand.vmem [shape: bf16[8,128,32], index: 2, kind: input, shape index: {}]   ;;  %s9387_s3 = inlined_call_operand.vmem [shape: bf16[8,32,96], index: 3, kind: input, shape index: {}]   ;;  %s9388_s4 = inlined_call_operand.vmem [shape: bf16[8,32,32], index: 4, kind: input, shape index: {}]   ;;  %s9389_s5 = inlined_call_operand.vmem [shape: bf16[8,32,128], index: 5, kind: input, shape index: {}]   ;;  %s9390_s6 = inlined_call_operand.vmem [shape: bf16[8,128,32], index: 6, kind: input, shape index: {}]   ;;  %s9391_s7 = inlined_call_operand.vmem [shape: bf16[8,32,128], index: 7, kind: input, shape index: {}]   ;;  %s9392_s8 = inlined_call_operand.vmem [shape: bf16[2,128,128], index: 8, kind: input, shape index: {}]   ;;  %s9393_s9 = inlined_call_operand.vmem [shape: bf16[2,128,128], index: 9, kind: input, shape index: {}]   ;;  %s9394_s10 = inlined_call_operand.vmem [shape: bf16[2,16,128], index: 10, kind: output, shape index: {}]  }
   0x1   :  { %9428 = sst [smem:[#allocation4_spill]] %s9384_s0 }
   0x2   :  { %9429 = sst [smem:[#allocation5_spill]] %s9385_s1 }
   0x3   :  { %9430 = sst [smem:[#allocation6_spill]] %s9390_s6 }
   0x4   :  { %9431 = sst [smem:[#allocation7_spill]] %s9392_s8 }
   0x5   :  { %9432 = sst [smem:[#allocation8_spill]] %s9393_s9 }
   0x6   :  { %9433 = sst [smem:[#allocation9_spill]] %s9394_s10 }
   0x7 LB: > { %9434 = sst [smem:[#allocation2_spill]] %s7871_s13  ;;  %s5807_s14 = sadd.s32 4294967295, %s7871_s13   ;;  %s7871_s13 = sphi %s7942_s13, %s20_s13  }
   0x8   : > { %p5811_p0 = scmp.ge.s32.totalorder %s7871_s13, 1  ;;  %p312_p1 = scmp.lt.s32.totalorder %s7871_s13, 3 }
   0xa   : > { %p313_p2 = pnand %p5811_p0, %p312_p1 }
   0xc   : > { %316 = sbr.rel (%p313_p2) target bundleno = 14399 (0x383f), region = 60 }
  0x11   : > { %s9435_s1 = sld [smem:[#allocation5_spill]]  ;;  %p350_p3 = scmp.lt.s32.totalorder %s5807_s14, 1  ;;  %v7213_v1 = vld [vmem:[%s9386_s2 + $0x38] sm:$0xff]  ;;  %v7212_v3 = vld [vmem:[%s9386_s2 + $0x30] sm:$0xff]  ;;  %v7211_v5 = vld [vmem:[%s9386_s2 + $0x28] sm:$0xff]  ;;  %vm400_vm0 = vcmask 523264  }
  0x12   : > { %483 = vmatpush.bf16.msra.mxu1 %v7213_v1  ;;  %s9437_s0 = sld [smem:[#allocation4_spill]]  ;;  %v7210_v7 = vld [vmem:[%s9386_s2 + $0x20] sm:$0xff]  ;;  %v7209_v9 = vld [vmem:[%s9386_s2 + $0x18] sm:$0xff]  ;;  %v7208_v10 = vld [vmem:[%s9386_s2 + $0x10] sm:$0xff]  ;;  %vm514_vm1 = vcmask 261120   ;;  %s9416_s30 = smov 120  }
  0x13   : > { %s9461_s14 = smov (!%p350_p3, %s5807_s14), 1  ;;  %v7207_v11 = vld [vmem:[%s9386_s2 + $0x8] sm:$0xff]  ;;  %v7206_v12 = vld [vmem:[%s9386_s2] sm:$0xff]  ;;  %s9418_s11 = smov 96   ;;  %vm541_vm2 = vcmask 64512   ;;  %vm562_vm3 = vcmask 130048  }
  0x14   : > { %9436 = sst [smem:[#allocation3_spill]] %s9461_s14  ;;  %s9395_s25 = sshll.u32 %s9461_s14, 3  ;;  %v7215_v16 = vld [vmem:[%s9387_s3 + $0x8] sm:$0xff]  ;;  %v7214_v17 = vld [vmem:[%s9387_s3] sm:$0xff]  ;;  %vm835_vm4 = vcmask 195584  }
  0x15   : > { %524 = vmatpush.bf16.msra.mxu2 %v7215_v16  ;;  %s9408_s15 = smov 56   ;;  %s9410_s16 = smov 112  }
  0x16   : > { %484 = vmatpush.bf16.msra.mxu1 %v7212_v3  ;;  %s9412_s17 = smov 104   ;;  %s9404_s18 = smov 64  }
  0x17   : > { %v7205_v0 = vld [vmem:[%s9435_s1 + $0x18] sm:$0xff]  ;;  %v7204_v2 = vld [vmem:[%s9435_s1 + $0x10] sm:$0xff]  ;;  %v7203_v4 = vld [vmem:[%s9435_s1 + $0x8] sm:$0xff]  ;;  %s9414_s19 = smov 80   ;;  %s9420_s20 = smov 72  }
  0x18   : > { %408 = vmatpush.bf16.msra.mxu0 %v7205_v0  ;;  %v7202_v6 = vld [vmem:[%s9435_s1] sm:$0xff]  ;;  %s354_s12 = scalar_lea.vmem %s9437_s0, %s9395_s25  ;;  %s9406_s21 = smov 48  }
  0x19   : > { %v7201_v8 = vld [vmem:[%s354_s12] sm:$0xff]  ;;  %525 = vmatpush.bf16.msra.mxu2 %v7214_v17  ;;  %s9422_s12 = smov 88   ;;  %s9400_s22 = smov 8  }
  0x1a   : > { %485 = vmatpush.bf16.msra.mxu1 %v7211_v5  ;;  %s9402_s23 = smov 40   ;;  %s9396_s24 = smov 24  }
  0x1b   : > { %s9398_s26 = smov 16   ;;  %s9438_s6 = sld [smem:[#allocation6_spill]] }
  0x1c   : > { %409 = vmatpush.bf16.msra.mxu0 %v7204_v2  ;;  %s9441_s25 = smov 40   ;;  %s9442_s27 = smov 8  }
  0x1d   : > { %s9443_s28 = smov 16   ;;  %s9444_s29 = smov 24  }
  0x1e   : > { %486 = vmatpush.bf16.msra.mxu1 %v7210_v7  ;;  %s9453_s8 = sld [smem:[#allocation7_spill]] }
  0x1f   : > { %s9454_s9 = sld [smem:[#allocation8_spill]] }
  0x20   : > { %410 = vmatpush.bf16.msra.mxu0 %v7203_v4  ;;  %s9455_s1 = sld [smem:[#allocation6_spill]] }
  0x22   : > { %487 = vmatpush.bf16.msra.mxu1 %v7209_v9 }
  0x24   : > { %411 = vmatpush.bf16.msra.mxu0 %v7202_v6 }
  0x26   : > { %488 = vmatpush.bf16.msra.mxu1 %v7208_v10 }
  0x27   : > { %5836 = vmatmul.msk.bf16.vlgmr.msra.gmra.mxu0 %vm400_vm0, %v7201_v8 }
  0x2a   : > { %489 = vmatpush.bf16.msra.mxu1 %v7207_v11 }
  0x2e   : > { %490 = vmatpush.bf16.msra.mxu1 %v7206_v12 }
  0xa4   : > { %v7994_v13 = vpop.f32.mrf.mxu0 }
  0xac   : > { %v7996_v14 = vpop.f32.mrf.mxu0 }
  0xad   : > { %v418_v15 = vpack.c.bf16 %v7996_v14, %v7994_v13 }
  0xaf   : > { %491 = vmatmul.bf16.vlgmr.msra.gmra.mxu1 %v418_v15 }
 0x12c   : > { %v8006_v18 = vpop.f32.mrf.mxu1 }
 0x134   : > { %v8008_v19 = vpop.f32.mrf.mxu1 }
 0x135   : > { %v497_v20 = vpack.c.bf16 %v8008_v19, %v8006_v18 }
 0x137   : > { %5877 = vmatmul.msk.bf16.vlgmr.msra.gmra.mxu2 %vm514_vm1, %v497_v20 }
 0x1ba   : > { %v527_v21 = vpop.f32.mrf.mxu2 }
 0x1bb   : > { %v532_v22 = vpack.c.bf16 %v527_v21, %v527_v21 }
 0x1bd   : > { %v536_v25 = vunpack.c.l.b16 %v532_v22 }
 0x1c2   : > { %v529_v23 = vpop.f32.mrf.mxu2 }
 0x1c3   : > { %v533_v24 = vpack.c.bf16 %v529_v23, %v529_v23 }
 0x1c5   : > { %v537_v26 = vunpack.c.l.b16 %v533_v24 }
 0x1c7   : > { %v8013_v27 = vpack.c.b16 %v537_v26, %v536_v25 }
 0x1c9   : > { %606 = vrot.lane.b32.xlu1 %v8013_v27, %s9416_s30  ;;  %539 = vrot.lane.b32.xlu0 %v8013_v27, %s9418_s11 }
 0x1d1   : > { %608 = vrot.lane.b32.xlu0 %v8013_v27, %s9422_s12 }
 0x23b   : > { %v540_v28 = vpop.permute.xlu0 %539  ;;  %v607_v32 = vpop.permute.xlu1 %606 }
 0x23c   : > { %v546_v29 = vsel %vm541_vm2, %v540_v28, 0 }
 0x23d   : > { %555 = vmatpush.bf16.xpose.msra.mxu3 %v546_v29 }
 0x243   : > { %v609_v30 = vpop.permute.xlu0 %608 }
 0x244   : > { %5878 = vmatmul.msk.bf16.vlgmr.msra.gmra.mxu3 %vm541_vm2, %v8013_v27  ;;  %v614_v31 = vsel %vm541_vm2, %v609_v30, 0 }
 0x245   : > { %623 = vmatpush.bf16.xpose.msrb.mxu3 %v614_v31 }
 0x254   : > { %5880 = vmatmul.msk.bf16.vlgmr.msrb.gmra.mxu3 %vm541_vm2, %v607_v32 }
 0x2c7   : > { %v557_v33 = vpop.f32.mrf.mxu3 }
 0x2c8   : > { %v563_v34 = vsel %vm562_vm3, %v557_v33, -inf }
 0x2c9   : > { %564 = vmax.xlane.f32.xlu1 %v563_v34 }
 0x2cf   : > { %v559_v35 = vpop.f32.mrf.mxu3 }
 0x2d0   : > { %v566_v36 = vsel %vm562_vm3, %v559_v35, -inf }
 0x2d1   : > { %567 = vmax.xlane.f32.xlu2 %v566_v36 }
 0x2d7   : > { %v625_v37 = vpop.f32.mrf.mxu3 }
 0x2d8   : > { %v630_v38 = vsel %vm562_vm3, %v625_v37, -inf }
 0x2d9   : > { %631 = vmax.xlane.f32.xlu2 %v630_v38 }
 0x2df   : > { %v627_v39 = vpop.f32.mrf.mxu3 }
 0x2e0   : > { %v633_v40 = vsel %vm562_vm3, %v627_v39, -inf }
 0x2e1   : > { %634 = vmax.xlane.f32.xlu0 %v633_v40 }
 0x2f5   : > { %653 = vrot.lane.b32.xlu0 %v8013_v27, %s9408_s15 }
 0x2fd   : > { %673 = vrot.lane.b32.xlu0 %v8013_v27, %s9410_s16 }
 0x305   : > { %740 = vrot.lane.b32.xlu0 %v8013_v27, %s9412_s17 }
 0x33c   : > { %v565_v41 = vpop.xlane.xlu1 %564 }
 0x33d   : > { %v569_v42 = vsub.f32 %v557_v33, %v565_v41 }
 0x33f   : > { %v571_v43 = vmul.f32 1.442695, %v569_v42 }
 0x341   : > { %7577 = vpow2.f32 %v571_v43 }
 0x344   : > { %v568_v44 = vpop.xlane.xlu2 %567 }
 0x345   : > { %v570_v45 = vsub.f32 %v559_v35, %v568_v44 }
 0x347   : > { %v7578_v46 = vpop.eup %7577  ;;  %v573_v47 = vmul.f32 1.442695, %v570_v45 }
 0x348   : > { %v575_v48 = vsel %vm562_vm3, %v7578_v46, 0.0 }
 0x349   : > { %7579 = vpow2.f32 %v573_v47  ;;  %576 = vadd.xlane.f32.xlu2 %v575_v48 }
 0x34c   : > { %v632_v49 = vpop.xlane.xlu2 %631 }
 0x34d   : > { %v636_v50 = vsub.f32 %v625_v37, %v632_v49 }
 0x34f   : > { %v7580_v51 = vpop.eup %7579  ;;  %v638_v52 = vmul.f32 1.442695, %v636_v50 }
 0x350   : > { %v578_v53 = vsel %vm562_vm3, %v7580_v51, 0.0 }
 0x351   : > { %7581 = vpow2.f32 %v638_v52  ;;  %579 = vadd.xlane.f32.xlu2 %v578_v53 }
 0x354   : > { %v635_v56 = vpop.xlane.xlu0 %634 }
 0x355   : > { %v637_v57 = vsub.f32 %v627_v39, %v635_v56 }
 0x357   : > { %v7582_v54 = vpop.eup %7581  ;;  %v640_v58 = vmul.f32 1.442695, %v637_v57 }
 0x358   : > { %v642_v55 = vsel %vm562_vm3, %v7582_v54, 0.0 }
 0x359   : > { %643 = vadd.xlane.f32.xlu1 %v642_v55  ;;  %7583 = vpow2.f32 %v640_v58 }
 0x35f   : > { %v7584_v59 = vpop.eup %7583 }
 0x360   : > { %v645_v60 = vsel %vm562_vm3, %v7584_v59, 0.0 }
 0x367   : > { %v654_v4 = vpop.permute.xlu0 %653 }
 0x369   : > { %586 = vrot.lane.b32.xlu2 %v8013_v27, %s9404_s18  ;;  %s9447_s18 = smov 80  }
 0x36f   : > { %v674_v9 = vpop.permute.xlu0 %673 }
 0x372   : > { %675 = vrot.lane.b32.xlu1 %v8013_v27, %s9414_s19 }
 0x377   : > { %v741_v12 = vpop.permute.xlu0 %740 }
 0x37a   : > { %742 = vrot.lane.b32.xlu1 %v8013_v27, %s9420_s20 }
 0x392   : > { %646 = vadd.xlane.f32.xlu2 %v645_v60 }
 0x3bc   : > { %v577_v61 = vpop.xlane.xlu2 %576 }
 0x3bd   : > { %7585 = vrcp.f32 %v577_v61 }
 0x3c3   : > { %v7586_v63 = vpop.eup %7585 }
 0x3c4   : > { %v580_v62 = vpop.xlane.xlu2 %579  ;;  %v583_v1 = vmul.f32 %v7586_v63, %v7578_v46 }
 0x3c5   : > { %7587 = vrcp.f32 %v580_v62 }
 0x3cb   : > { %v7588_v0 = vpop.eup %7587 }
 0x3cc   : > { %v584_v2 = vmul.f32 %v7588_v0, %v7580_v51  ;;  %v587_v3 = vpop.permute.xlu2 %586  ;;  %v644_v6 = vpop.xlane.xlu1 %643 }
 0x3cd   : > { %599 = vmatpush.bf16.msrb.mxu2 %v587_v3  ;;  %7589 = vrcp.f32 %v644_v6 }
 0x3ce   : > { %v585_v5 = vpack.c.bf16 %v584_v2, %v583_v1 }
 0x3d0   : > { %5879 = vmatmul.msk.bf16.vlgmr.msrb.gmra.mxu2 %vm562_vm3, %v585_v5 }
 0x3d1   : > { %666 = vmatpush.bf16.msra.mxu2 %v654_v4 }
 0x3d3   : > { %v7590_v16 = vpop.eup %7589 }
 0x3d4   : > { %v650_v20 = vmul.f32 %v7590_v16, %v7582_v54  ;;  %v7217_v16 = vld [vmem:[%s9388_s4 + $0x8] sm:$0xff] }
 0x3e4   : > { %v676_v7 = vpop.permute.xlu1 %675 }
 0x3e5   : > { %v681_v8 = vsel %vm541_vm2, %v676_v7, 0 }
 0x3e6   : > { %690 = vmatpush.bf16.xpose.msrb.mxu2 %v681_v8 }
 0x3ec   : > { %v743_v10 = vpop.permute.xlu1 %742 }
 0x3ed   : > { %v748_v11 = vsel %vm541_vm2, %v743_v10, 0 }
 0x3ee   : > { %757 = vmatpush.bf16.xpose.msrb.mxu0 %v748_v11 }
 0x3f5   : > { %5884 = vmatmul.msk.bf16.vlgmr.msrb.gmra.mxu0 %vm541_vm2, %v741_v12 }
 0x405   : > { %v647_v15 = vpop.xlane.xlu2 %646 }
 0x406   : > { %7591 = vrcp.f32 %v647_v15 }
 0x40c   : > { %v7592_v17 = vpop.eup %7591 }
 0x40d   : > { %v651_v21 = vmul.f32 %v7592_v17, %v7584_v59  ;;  %v7216_v17 = vld [vmem:[%s9388_s4] sm:$0xff] }
 0x40f   : > { %v652_v22 = vpack.c.bf16 %v651_v21, %v650_v20 }
 0x411   : > { %5881 = vmatmul.msk.bf16.vlgmr.msra.gmra.mxu2 %vm562_vm3, %v652_v22 }
 0x412   : > { %864 = vmatpush.bf16.msra.mxu2 %v7217_v16 }
 0x416   : > { %865 = vmatpush.bf16.msra.mxu2 %v7216_v17 }
 0x421   : > { %5882 = vmatmul.msk.bf16.vlgmr.msrb.gmra.mxu2 %vm541_vm2, %v674_v9 }
 0x453   : > { %v8054_v28 = vpop.f32.mrf.mxu2 }
 0x45b   : > { %v8056_v29 = vpop.f32.mrf.mxu2 }
 0x472   : > { %v759_v23 = vpop.f32.mrf.mxu0 }
 0x473   : > { %v764_v24 = vsel %vm562_vm3, %v759_v23, -inf }
 0x474   : > { %765 = vmax.xlane.f32.xlu2 %v764_v24 }
 0x47a   : > { %v761_v25 = vpop.f32.mrf.mxu0 }
 0x47b   : > { %v767_v26 = vsel %vm562_vm3, %v761_v25, -inf }
 0x47c   : > { %768 = vmax.xlane.f32.xlu2 %v767_v26 }
 0x494   : > { %v668_v30 = vpop.f32.mrf.mxu2 }
 0x49c   : > { %v670_v31 = vpop.f32.mrf.mxu2 }
 0x49d   : > { %v7457_v46 = vpack.i.bf16 %v670_v31, %v668_v30 }
 0x4a4   : > { %v692_v32 = vpop.f32.mrf.mxu2 }
 0x4a5   : > { %v697_v33 = vsel %vm562_vm3, %v692_v32, -inf }
 0x4a6   : > { %698 = vmax.xlane.f32.xlu1 %v697_v33 }
 0x4ac   : > { %v694_v34 = vpop.f32.mrf.mxu2 }
 0x4ad   : > { %v700_v35 = vsel %vm562_vm3, %v694_v34, -inf }
 0x4ae   : > { %701 = vmax.xlane.f32.xlu0 %v700_v35 }
 0x4c2   : > { %720 = vrot.lane.b32.xlu0 %v8013_v27, %s9406_s21  ;;  %s9448_s21 = smov 104  }
 0x4e7   : > { %v766_v36 = vpop.xlane.xlu2 %765 }
 0x4e8   : > { %v770_v37 = vsub.f32 %v759_v23, %v766_v36 }
 0x4ea   : > { %v772_v38 = vmul.f32 1.442695, %v770_v37 }
 0x4ec   : > { %7593 = vpow2.f32 %v772_v38 }
 0x4ef   : > { %v769_v39 = vpop.xlane.xlu2 %768 }
 0x4f0   : > { %v771_v40 = vsub.f32 %v761_v25, %v769_v39 }
 0x4f2   : > { %v7594_v41 = vpop.eup %7593  ;;  %v774_v42 = vmul.f32 1.442695, %v771_v40 }
 0x4f3   : > { %v776_v43 = vsel %vm562_vm3, %v7594_v41, 0.0 }
 0x4f4   : > { %7595 = vpow2.f32 %v774_v42  ;;  %777 = vadd.xlane.f32.xlu2 %v776_v43 }
 0x4fa   : > { %v7596_v44 = vpop.eup %7595 }
 0x4fb   : > { %v779_v45 = vsel %vm562_vm3, %v7596_v44, 0.0 }
 0x4fc   : > { %780 = vadd.xlane.f32.xlu1 %v779_v45  ;;  %v7226_v45 = vld [vmem:[%s9438_s6 + $0x30] sm:$0xff] }
 0x515   : > { %7458 = vrot.lane.b32.xlu1 %v7457_v46, %s9400_s22  ;;  %v7225_v46 = vld [vmem:[%s9438_s6 + $0x28] sm:$0xff]  ;;  %s9449_s22 = smov 112  }
 0x519   : > { %v699_v47 = vpop.xlane.xlu1 %698 }
 0x51a   : > { %v703_v48 = vsub.f32 %v692_v32, %v699_v47  ;;  %v7222_v47 = vld [vmem:[%s9438_s6 + $0x10] sm:$0xff] }
 0x51c   : > { %v705_v49 = vmul.f32 1.442695, %v703_v48  ;;  %v7221_v48 = vld [vmem:[%s9438_s6 + $0x8] sm:$0xff] }
 0x51e   : > { %7597 = vpow2.f32 %v705_v49  ;;  %v7220_v49 = vld [vmem:[%s9438_s6] sm:$0xff] }
 0x521   : > { %v702_v50 = vpop.xlane.xlu0 %701 }
 0x522   : > { %v704_v51 = vsub.f32 %v694_v34, %v702_v50 }
 0x524   : > { %v7598_v52 = vpop.eup %7597  ;;  %v707_v53 = vmul.f32 1.442695, %v704_v51 }
 0x525   : > { %v709_v54 = vsel %vm562_vm3, %v7598_v52, 0.0 }
 0x526   : > { %7599 = vpow2.f32 %v707_v53  ;;  %710 = vadd.xlane.f32.xlu2 %v709_v54 }
 0x52c   : > { %v7600_v55 = vpop.eup %7599 }
 0x52d   : > { %v712_v56 = vsel %vm562_vm3, %v7600_v55, 0.0 }
 0x52e   : > { %713 = vadd.xlane.f32.xlu2 %v712_v56 }
 0x534   : > { %v721_v57 = vpop.permute.xlu0 %720 }
 0x535   : > { %733 = vmatpush.bf16.msra.mxu3 %v721_v57 }
 0x546   : > { %787 = vrot.lane.b32.xlu2 %v8013_v27, %s9402_s23  ;;  %s9450_s23 = smov 56  }
 0x567   : > { %v778_v58 = vpop.xlane.xlu2 %777 }
 0x56f   : > { %v781_v60 = vpop.xlane.xlu1 %780 }
 0x570   : > { %7601 = vrcp.f32 %v781_v60 }
 0x571   : > { %7603 = vrcp.f32 %v778_v58 }
 0x576   : > { %v7602_v62 = vpop.eup %7601 }
 0x577   : > { %v7604_v63 = vpop.eup %7603  ;;  %v785_v1 = vmul.f32 %v7602_v62, %v7596_v44  ;;  %v7227_v44 = vld [vmem:[%s9438_s6 + $0x38] sm:$0xff] }
 0x578   : > { %v784_v3 = vmul.f32 %v7604_v63, %v7594_v41  ;;  %991 = vmatpush.bf16.msra.mxu0 %v7227_v44 }
 0x57a   : > { %v786_v27 = vpack.c.bf16 %v785_v1, %v784_v3 }
 0x57c   : > { %992 = vmatpush.bf16.msra.mxu0 %v7226_v45 }
 0x580   : > { %993 = vmatpush.bf16.msra.mxu0 %v7225_v46 }
 0x587   : > { %v7459_v20 = vpop.permute.xlu1 %7458 }
 0x588   : > { %v7461_v21 = vunpack.i.h.bf16 %v7459_v20  ;;  %v7460_v22 = vunpack.i.l.bf16 %v7459_v20 }
 0x58a   : > { %v832_v30 = vsel %vm541_vm2, %v8056_v29, %v7461_v21  ;;  %v831_v31 = vsel %vm541_vm2, %v8054_v28, %v7460_v22  ;;  %v7219_v29 = vld [vmem:[%s9389_s5 + $0x8] sm:$0xff]  ;;  %v7218_v28 = vld [vmem:[%s9389_s5] sm:$0xff]  ;;  %v7232_v22 = vld [vmem:[%s9386_s2 + $0x50] sm:$0xff] }
 0x58b   : > { %900 = vmatpush.bf16.msrb.mxu3 %v7219_v29 }
 0x58f   : > { %901 = vmatpush.bf16.msrb.mxu3 %v7218_v28 }
 0x599   : > { %v711_v59 = vpop.xlane.xlu2 %710 }
 0x59a   : > { %7605 = vrcp.f32 %v711_v59 }
 0x5a0   : > { %v7606_v0 = vpop.eup %7605 }
 0x5a1   : > { %v714_v61 = vpop.xlane.xlu2 %713  ;;  %v717_v4 = vmul.f32 %v7606_v0, %v7598_v52 }
 0x5a2   : > { %7607 = vrcp.f32 %v714_v61 }
 0x5a8   : > { %v7608_v2 = vpop.eup %7607 }
 0x5a9   : > { %v718_v5 = vmul.f32 %v7608_v2, %v7600_v55  ;;  %v788_v6 = vpop.permute.xlu2 %787 }
 0x5aa   : > { %800 = vmatpush.bf16.msrb.mxu1 %v788_v6 }
 0x5ab   : > { %v719_v7 = vpack.c.bf16 %v718_v5, %v717_v4 }
 0x5ad   : > { %5883 = vmatmul.msk.bf16.vlgmr.msra.gmra.mxu3 %vm562_vm3, %v719_v7  ;;  %5885 = vmatmul.msk.bf16.vlgmr.msrb.gmra.mxu1 %vm562_vm3, %v786_v27  ;;  %v7229_v7 = vld [vmem:[%s9391_s7 + $0x8] sm:$0xff]  ;;  %v7228_v27 = vld [vmem:[%s9391_s7] sm:$0xff] }
 0x5ae   : > { %1033 = vmatpush.bf16.msra.mxu1 %v7229_v7 }
 0x5b2   : > { %1034 = vmatpush.bf16.msra.mxu1 %v7228_v27 }
 0x62a   : > { %v802_v8 = vpop.f32.mrf.mxu1 }
 0x630   : > { %v735_v9 = vpop.f32.mrf.mxu3 }
 0x632   : > { %v804_v10 = vpop.f32.mrf.mxu1 }
 0x633   : > { %v7467_v11 = vpack.i.bf16 %v804_v10, %v802_v8  ;;  %v7237_v8 = vld [vmem:[%s9386_s2 + $0x78] sm:$0xff]  ;;  %v7235_v10 = vld [vmem:[%s9386_s2 + $0x68] sm:$0xff] }
 0x634   : > { %1109 = vmatpush.bf16.msrb.mxu2 %v7237_v8 }
 0x635   : > { %7468 = vrot.lane.b32.xlu2 %v7467_v11, %s9396_s24  ;;  %v7234_v11 = vld [vmem:[%s9386_s2 + $0x60] sm:$0xff]  ;;  %s9439_s24 = smov 48  }
 0x638   : > { %v737_v12 = vpop.f32.mrf.mxu3 }
 0x639   : > { %v7462_v15 = vpack.i.bf16 %v737_v12, %v735_v9  ;;  %v7236_v9 = vld [vmem:[%s9386_s2 + $0x70] sm:$0xff]  ;;  %v7233_v12 = vld [vmem:[%s9386_s2 + $0x58] sm:$0xff] }
 0x63a   : > { %1110 = vmatpush.bf16.msrb.mxu2 %v7236_v9 }
 0x63b   : > { %7463 = vrot.lane.b32.xlu0 %v7462_v15, %s9398_s26  ;;  %s9440_s26 = smov 64  }
 0x63e   : > { %1111 = vmatpush.bf16.msrb.mxu2 %v7235_v10 }
 0x642   : > { %1112 = vmatpush.bf16.msrb.mxu2 %v7234_v11 }
 0x646   : > { %1113 = vmatpush.bf16.msrb.mxu2 %v7233_v12 }
 0x64a   : > { %1114 = vmatpush.bf16.msrb.mxu2 %v7232_v22 }
 0x68f   : > { %v7469_v23 = vpop.permute.xlu2 %7468 }
 0x690   : > { %v7471_v32 = vunpack.i.h.bf16 %v7469_v23  ;;  %v7470_v33 = vunpack.i.l.bf16 %v7469_v23  ;;  %v7231_v23 = vld [vmem:[%s9386_s2 + $0x48] sm:$0xff] }
 0x691   : > { %1115 = vmatpush.bf16.msrb.mxu2 %v7231_v23 }
 0x6ad   : > { %v7464_v24 = vpop.permute.xlu0 %7463 }
 0x6ae   : > { %v7466_v25 = vunpack.i.h.bf16 %v7464_v24  ;;  %v7465_v26 = vunpack.i.l.bf16 %v7464_v24  ;;  %v7230_v24 = vld [vmem:[%s9386_s2 + $0x40] sm:$0xff] }
 0x6af   : > { %1116 = vmatpush.bf16.msrb.mxu2 %v7230_v24 }
 0x6b0   : > { %v834_v34 = vsel %vm562_vm3, %v832_v30, %v7466_v25  ;;  %v833_v35 = vsel %vm562_vm3, %v831_v31, %v7465_v26 }
 0x6b1   : > { %v837_v36 = vsel %vm835_vm4, %v834_v34, %v7471_v32  ;;  %v836_v37 = vsel %vm835_vm4, %v833_v35, %v7470_v33  ;;  %v7239_v33 = vld [vmem:[%s9387_s3 + $0x18] sm:$0xff]  ;;  %v7238_v34 = vld [vmem:[%s9387_s3 + $0x10] sm:$0xff] }
 0x6b2   : > { %v838_v38 = vpack.c.bf16 %v837_v36, %v836_v37  ;;  %1150 = vmatpush.bf16.msra.mxu3 %v7239_v33 }
 0x6b4   : > { %5894 = vmatmul.msk.bf16.vlgmr.msra.gmra.mxu2 %vm514_vm1, %v838_v38 }
 0x6b6   : > { %1151 = vmatpush.bf16.msra.mxu3 %v7238_v34 }
 0x737   : > { %v867_v39 = vpop.f32.mrf.mxu2 }
 0x738   : > { %v872_v41 = vadd.f32 %v867_v39, %v8006_v18  ;;  %v7224_v18 = vld [vmem:[%s9438_s6 + $0x20] sm:$0xff] }
 0x739   : > { %994 = vmatpush.bf16.msra.mxu0 %v7224_v18 }
 0x73f   : > { %v869_v40 = vpop.f32.mrf.mxu2 }
 0x740   : > { %v873_v42 = vadd.f32 %v869_v40, %v8008_v19  ;;  %v7223_v19 = vld [vmem:[%s9438_s6 + $0x18] sm:$0xff] }
 0x741   : > { %995 = vmatpush.bf16.msra.mxu0 %v7223_v19 }
 0x742   : > { %v874_v43 = vpack.c.bf16 %v873_v42, %v872_v41 }
 0x744   : > { %5903 = vmatmul.msk.bf16.vlgmr.msrb.gmra.mxu3 %vm514_vm1, %v874_v43 }
 0x745   : > { %996 = vmatpush.bf16.msra.mxu0 %v7222_v47 }
 0x749   : > { %997 = vmatpush.bf16.msra.mxu0 %v7221_v48 }
 0x74d   : > { %998 = vmatpush.bf16.msra.mxu0 %v7220_v49 }
 0x7c7   : > { %v903_v50 = vpop.f32.mrf.mxu3 }
 0x7c8   : > { %v908_v51 = vmul.f32 %v903_v50, %v903_v50 }
 0x7ca   : > { %v910_v52 = vmul.f32 %v908_v51, %v903_v50 }
 0x7cc   : > { %v912_v53 = vmul.f32 0.044715, %v910_v52 }
 0x7ce   : > { %v914_v54 = vadd.f32 %v912_v53, %v903_v50 }
 0x7cf   : > { %v905_v55 = vpop.f32.mrf.mxu3 }
 0x7d0   : > { %v916_v56 = vmul.f32 0.7978846, %v914_v54  ;;  %v909_v57 = vmul.f32 %v905_v55, %v905_v55 }
 0x7d2   : > { %v911_v58 = vmul.f32 %v909_v57, %v905_v55  ;;  %7609 = vtanh.f32 %v916_v56 }
 0x7d4   : > { %v913_v59 = vmul.f32 0.044715, %v911_v58 }
 0x7d6   : > { %v915_v60 = vadd.f32 %v913_v59, %v905_v55 }
 0x7d8   : > { %v917_v61 = vmul.f32 0.7978846, %v915_v60  ;;  %v7610_v62 = vpop.eup %7609 }
 0x7d9   : > { %v920_v63 = vadd.f32 1.0, %v7610_v62 }
 0x7da   : > { %7611 = vtanh.f32 %v917_v61 }
 0x7db   : > { %v922_v1 = vmul.f32 0.5, %v920_v63 }
 0x7dd   : > { %v924_v4 = vmul.f32 %v922_v1, %v903_v50 }
 0x7e0   : > { %v7612_v0 = vpop.eup %7611 }
 0x7e1   : > { %v921_v2 = vadd.f32 1.0, %v7612_v0 }
 0x7e3   : > { %v923_v3 = vmul.f32 0.5, %v921_v2 }
 0x7e5   : > { %v925_v5 = vmul.f32 %v923_v3, %v905_v55 }
 0x7e7   : > { %v926_v6 = vpack.c.bf16 %v925_v5, %v924_v4 }
 0x7e9   : > { %999 = vmatmul.bf16.vlgmr.msra.gmra.mxu0 %v926_v6 }
 0x866   : > { %v1000_v15 = vpop.f32.mrf.mxu0 }
 0x867   : > { %v1005_v17 = vadd.f32 %v1000_v15, %v872_v41 }
 0x86e   : > { %v1002_v16 = vpop.f32.mrf.mxu0 }
 0x86f   : > { %v1006_v20 = vadd.f32 %v1002_v16, %v873_v42 }
 0x871   : > { %v1007_v21 = vpack.c.bf16 %v1006_v20, %v1005_v17 }
 0x873   : > { %5944 = vmatmul.msk.bf16.vlgmr.msra.gmra.mxu1 %vm514_vm1, %v1007_v21 }
 0x8f0   : > { %v1036_v25 = vpop.f32.mrf.mxu1 }
 0x8f1   : > { %v8153_v30 = vadd.f32 %v1036_v25, %v7994_v13 }
 0x8f8   : > { %v1038_v26 = vpop.f32.mrf.mxu1 }
 0x8f9   : > { %v8156_v31 = vadd.f32 %v1038_v26, %v7996_v14 }
 0x8fb   : > { %v1043_v32 = vpack.c.bf16 %v8156_v31, %v8153_v30 }
 0x8fd   : > { %1117 = vmatmul.bf16.vlgmr.msrb.gmra.mxu2 %v1043_v32 }
 0x980   : > { %v8166_v35 = vpop.f32.mrf.mxu2 }
 0x988   : > { %v8168_v13 = vpop.f32.mrf.mxu2 }
 0x989   : > { %v1123_v14 = vpack.c.bf16 %v8168_v13, %v8166_v35 }
 0x98b   : > { %6005 = vmatmul.msk.bf16.vlgmr.msra.gmra.mxu3 %vm514_vm1, %v1123_v14 }
 0xa0e   : > { %v1153_v36 = vpop.f32.mrf.mxu3 }
 0xa0f   : > { %v1158_v37 = vpack.c.bf16 %v1153_v36, %v1153_v36 }
 0xa11   : > { %v1162_v28 = vunpack.c.l.b16 %v1158_v37 }
 0xa16   : > { %v1155_v38 = vpop.f32.mrf.mxu3 }
 0xa17   : > { %v1159_v29 = vpack.c.bf16 %v1155_v38, %v1155_v38 }
 0xa19   : > { %v1163_v39 = vunpack.c.l.b16 %v1159_v29 }
 0xa1b   : > { %v8173_v40 = vpack.c.b16 %v1163_v39, %v1162_v28 }
 0xa1d   : > { %1299 = vrot.lane.b32.xlu2 %v8173_v40, %s9414_s19  ;;  %1232 = vrot.lane.b32.xlu1 %v8173_v40, %s9422_s12 }
 0xa1e   : > { %1165 = vrot.lane.b32.xlu0 %v8173_v40, %s9418_s11 }
 0xa25   : > { %1366 = vrot.lane.b32.xlu2 %v8173_v40, %s9420_s20  ;;  %1297 = vrot.lane.b32.xlu1 %v8173_v40, %s9410_s16  ;;  %s9446_s16 = smov 120  }
 0xa26   : > { %1230 = vrot.lane.b32.xlu0 %v8173_v40, %s9416_s30 }
 0xa2e   : > { %1364 = vrot.lane.b32.xlu0 %v8173_v40, %s9412_s17 }
 0xa77   : > { %v1300_v41 = vpop.permute.xlu2 %1299 }
 0xa78   : > { %v1305_v42 = vsel %vm541_vm2, %v1300_v41, 0 }
 0xa79   : > { %1314 = vmatpush.bf16.xpose.msra.mxu2 %v1305_v42 }
 0xa7f   : > { %v1367_v43 = vpop.permute.xlu2 %1366 }
 0xa80   : > { %v1372_v18 = vsel %vm541_vm2, %v1367_v43, 0 }
 0xa8f   : > { %v1233_v44 = vpop.permute.xlu1 %1232 }
 0xa90   : > { %v1238_v45 = vsel %vm541_vm2, %v1233_v44, 0  ;;  %v1166_v46 = vpop.permute.xlu0 %1165 }
 0xa91   : > { %v1171_v19 = vsel %vm541_vm2, %v1166_v46, 0  ;;  %1247 = vmatpush.bf16.xpose.msrb.mxu0 %v1238_v45 }
 0xa92   : > { %1180 = vmatpush.bf16.xpose.msrb.mxu1 %v1171_v19 }
 0xa97   : > { %v1298_v47 = vpop.permute.xlu1 %1297 }
 0xa98   : > { %v1231_v48 = vpop.permute.xlu0 %1230  ;;  %6010 = vmatmul.msk.bf16.vlgmr.msra.gmra.mxu2 %vm541_vm2, %v1298_v47 }
 0xa99   : > { %1381 = vmatpush.bf16.xpose.msra.mxu0 %v1372_v18  ;;  %6006 = vmatmul.msk.bf16.vlgmr.msrb.gmra.mxu1 %vm541_vm2, %v8173_v40 }
 0xa9a   : > { %6008 = vmatmul.msk.bf16.vlgmr.msrb.gmra.mxu0 %vm541_vm2, %v1231_v48 }
 0xaa0   : > { %v1365_v49 = vpop.permute.xlu0 %1364 }
 0xaaa   : > { %6012 = vmatmul.msk.bf16.vlgmr.msra.gmra.mxu0 %vm541_vm2, %v1365_v49 }
 0xb16   : > { %v1182_v50 = vpop.f32.mrf.mxu1 }
 0xb17   : > { %v1249_v51 = vpop.f32.mrf.mxu0  ;;  %v1187_v52 = vsel %vm562_vm3, %v1182_v50, -inf }
 0xb18   : > { %v1254_v53 = vsel %vm562_vm3, %v1249_v51, -inf  ;;  %1188 = vmax.xlane.f32.xlu1 %v1187_v52 }
 0xb19   : > { %1255 = vmax.xlane.f32.xlu0 %v1254_v53 }
 0xb1b   : > { %v1316_v54 = vpop.f32.mrf.mxu2 }
 0xb1c   : > { %v1321_v62 = vsel %vm562_vm3, %v1316_v54, -inf }
 0xb1e   : > { %v1184_v55 = vpop.f32.mrf.mxu1 }
 0xb1f   : > { %v1251_v56 = vpop.f32.mrf.mxu0  ;;  %v1190_v57 = vsel %vm562_vm3, %v1184_v55, -inf }
 0xb20   : > { %v1257_v58 = vsel %vm562_vm3, %v1251_v56, -inf  ;;  %1191 = vmax.xlane.f32.xlu2 %v1190_v57 }
 0xb21   : > { %1258 = vmax.xlane.f32.xlu1 %v1257_v58 }
 0xb23   : > { %v1318_v59 = vpop.f32.mrf.mxu2 }
 0xb24   : > { %v1324_v60 = vsel %vm562_vm3, %v1318_v59, -inf }
 0xb25   : > { %1325 = vmax.xlane.f32.xlu0 %v1324_v60 }
 0xb27   : > { %v1383_v61 = vpop.f32.mrf.mxu0 }
 0xb28   : > { %v1388_v63 = vsel %vm562_vm3, %v1383_v61, -inf  ;;  %1322 = vmax.xlane.f32.xlu2 %v1321_v62 }
 0xb29   : > { %1389 = vmax.xlane.f32.xlu1 %v1388_v63 }
 0xb2f   : > { %v1385_v0 = vpop.f32.mrf.mxu0 }
 0xb30   : > { %v1391_v1 = vsel %vm562_vm3, %v1385_v0, -inf }
 0xb31   : > { %1392 = vmax.xlane.f32.xlu2 %v1391_v1 }
 0xb8b   : > { %v1189_v2 = vpop.xlane.xlu1 %1188 }
 0xb8c   : > { %v1256_v3 = vpop.xlane.xlu0 %1255  ;;  %v1193_v4 = vsub.f32 %v1182_v50, %v1189_v2 }
 0xb8d   : > { %v1260_v5 = vsub.f32 %v1249_v51, %v1256_v3 }
 0xb8e   : > { %v1195_v6 = vmul.f32 1.442695, %v1193_v4 }
 0xb8f   : > { %v1262_v7 = vmul.f32 1.442695, %v1260_v5 }
 0xb90   : > { %7613 = vpow2.f32 %v1195_v6 }
 0xb91   : > { %7615 = vpow2.f32 %v1262_v7 }
 0xb93   : > { %v1192_v27 = vpop.xlane.xlu2 %1191 }
 0xb94   : > { %v1194_v8 = vsub.f32 %v1184_v55, %v1192_v27  ;;  %v1259_v16 = vpop.xlane.xlu1 %1258 }
 0xb95   : > { %v1261_v22 = vsub.f32 %v1251_v56, %v1259_v16 }
 0xb96   : > { %v8206_v9 = vpop.eup %7613  ;;  %v1197_v10 = vmul.f32 1.442695, %v1194_v8 }
 0xb97   : > { %v8208_v11 = vpop.eup %7615  ;;  %v1199_v12 = vsel %vm562_vm3, %v8206_v9, 0.0  ;;  %v1264_v25 = vmul.f32 1.442695, %v1261_v22 }
 0xb98   : > { %7617 = vpow2.f32 %v1197_v10  ;;  %1200 = vadd.xlane.f32.xlu0 %v1199_v12  ;;  %v1266_v15 = vsel %vm562_vm3, %v8208_v11, 0.0  ;;  %v1326_v26 = vpop.xlane.xlu0 %1325 }
 0xb99   : > { %1267 = vadd.xlane.f32.xlu2 %v1266_v15  ;;  %v1328_v33 = vsub.f32 %v1318_v59, %v1326_v26 }
 0xb9b   : > { %v1323_v17 = vpop.xlane.xlu2 %1322  ;;  %v1331_v14 = vmul.f32 1.442695, %v1328_v33  ;;  %v7241_v33 = vld [vmem:[%s9388_s4 + $0x18] sm:$0xff] }
 0xb9c   : > { %v1327_v20 = vsub.f32 %v1316_v54, %v1323_v17  ;;  %v1390_v36 = vpop.xlane.xlu1 %1389  ;;  %1488 = vmatpush.bf16.msrb.mxu2 %v7241_v33 }
 0xb9d   : > { %v1394_v38 = vsub.f32 %v1383_v61, %v1390_v36 }
 0xb9e   : > { %v7618_v21 = vpop.eup %7617  ;;  %v1329_v23 = vmul.f32 1.442695, %v1327_v20 }
 0xb9f   : > { %v1202_v24 = vsel %vm562_vm3, %v7618_v21, 0.0  ;;  %v1396_v28 = vmul.f32 1.442695, %v1394_v38 }
 0xba0   : > { %7619 = vpow2.f32 %v1329_v23  ;;  %1203 = vadd.xlane.f32.xlu1 %v1202_v24 }
 0xba1   : > { %7621 = vpow2.f32 %v1264_v25 }
 0xba2   : > { %7623 = vpow2.f32 %v1331_v14 }
 0xba3   : > { %7625 = vpow2.f32 %v1396_v28 }
 0xba4   : > { %v1393_v44 = vpop.xlane.xlu2 %1392 }
 0xba5   : > { %v1395_v45 = vsub.f32 %v1385_v0, %v1393_v44 }
 0xba6   : > { %v8215_v32 = vpop.eup %7619 }
 0xba7   : > { %v1333_v34 = vsel %vm562_vm3, %v8215_v32, 0.0  ;;  %v7622_v37 = vpop.eup %7621  ;;  %v1398_v46 = vmul.f32 1.442695, %v1395_v45 }
 0xba8   : > { %1334 = vadd.xlane.f32.xlu0 %v1333_v34  ;;  %v1269_v29 = vsel %vm562_vm3, %v7622_v37, 0.0  ;;  %v7624_v39 = vpop.eup %7623  ;;  %v7240_v34 = vld [vmem:[%s9388_s4 + $0x10] sm:$0xff] }
 0xba9   : > { %v1336_v41 = vsel %vm562_vm3, %v7624_v39, 0.0  ;;  %v7626_v42 = vpop.eup %7625  ;;  %7627 = vpow2.f32 %v1398_v46  ;;  %1489 = vmatpush.bf16.msrb.mxu2 %v7240_v34 }
 0xbaa   : > { %v1400_v43 = vsel %vm562_vm3, %v7626_v42, 0.0 }
 0xbaf   : > { %v7628_v18 = vpop.eup %7627 }
 0xbb0   : > { %1270 = vadd.xlane.f32.xlu0 %v1269_v29  ;;  %v1403_v19 = vsel %vm562_vm3, %v7628_v18, 0.0 }
 0xbb1   : > { %1277 = vrot.lane.b32.xlu2 %v8173_v40, %s9408_s15  ;;  %s9445_s15 = smov 96  }
 0xbb8   : > { %1337 = vadd.xlane.f32.xlu0 %v1336_v41 }
 0xbb9   : > { %1344 = vrot.lane.b32.xlu2 %v8173_v40, %s9439_s24  ;;  %1210 = vrot.lane.b32.xlu1 %v8173_v40, %s9440_s26 }
 0xbc0   : > { %1401 = vadd.xlane.f32.xlu0 %v1400_v43 }
 0xbd4   : > { %1411 = vrot.lane.b32.xlu0 %v8173_v40, %s9441_s25 }
 0xbe3   : > { %1404 = vadd.xlane.f32.xlu1 %v1403_v19 }
 0xc0b   : > { %v1201_v48 = vpop.xlane.xlu0 %1200 }
 0xc0c   : > { %v1268_v47 = vpop.xlane.xlu2 %1267 }
 0xc13   : > { %v1204_v51 = vpop.xlane.xlu1 %1203 }
 0xc14   : > { %v1278_v49 = vpop.permute.xlu2 %1277  ;;  %7629 = vrcp.f32 %v1204_v51 }
 0xc15   : > { %1290 = vmatpush.bf16.msra.mxu1 %v1278_v49  ;;  %7631 = vrcp.f32 %v1201_v48  ;;  %v7243_v48 = vld [vmem:[%s9389_s5 + $0x18] sm:$0xff]  ;;  %v7242_v49 = vld [vmem:[%s9389_s5 + $0x10] sm:$0xff] }
 0xc16   : > { %7633 = vrcp.f32 %v1268_v47 }
 0xc1a   : > { %v7630_v53 = vpop.eup %7629 }
 0xc1b   : > { %v1335_v50 = vpop.xlane.xlu0 %1334  ;;  %v7632_v54 = vpop.eup %7631  ;;  %v1208_v55 = vmul.f32 %v7630_v53, %v7618_v21 }
 0xc1c   : > { %v7634_v40 = vpop.eup %7633  ;;  %v1207_v58 = vmul.f32 %v7632_v54, %v8206_v9  ;;  %v1345_v61 = vpop.permute.xlu2 %1344 }
 0xc1d   : > { %v1274_v57 = vmul.f32 %v7634_v40, %v8208_v11  ;;  %v7251_v40 = vld [vmem:[%s9438_s6 + $0x78] sm:$0xff] }
 0xc1e   : > { %v1209_v62 = vpack.c.bf16 %v1208_v55, %v1207_v58  ;;  %1617 = vmatpush.bf16.msrb.mxu0 %v7251_v40  ;;  %v7250_v55 = vld [vmem:[%s9438_s6 + $0x70] sm:$0xff]  ;;  %v7245_v58 = vld [vmem:[%s9438_s6 + $0x48] sm:$0xff] }
 0xc22   : > { %1618 = vmatpush.bf16.msrb.mxu0 %v7250_v55 }
 0xc23   : > { %v1271_v52 = vpop.xlane.xlu0 %1270 }
 0xc24   : > { %7635 = vrcp.f32 %v1271_v52 }
 0xc2a   : > { %v7636_v56 = vpop.eup %7635 }
 0xc2b   : > { %v1275_v59 = vmul.f32 %v7636_v56, %v7622_v37  ;;  %v1211_v60 = vpop.permute.xlu1 %1210  ;;  %v1338_v0 = vpop.xlane.xlu0 %1337  ;;  %v7249_v56 = vld [vmem:[%s9438_s6 + $0x68] sm:$0xff] }
 0xc2c   : > { %1223 = vmatpush.bf16.msrb.mxu3 %v1211_v60  ;;  %7637 = vrcp.f32 %v1338_v0  ;;  %1619 = vmatpush.bf16.msrb.mxu0 %v7249_v56 }
 0xc2d   : > { %v1276_v63 = vpack.c.bf16 %v1275_v59, %v1274_v57  ;;  %7639 = vrcp.f32 %v1335_v50  ;;  %v7246_v57 = vld [vmem:[%s9438_s6 + $0x50] sm:$0xff]  ;;  %v7244_v59 = vld [vmem:[%s9438_s6 + $0x40] sm:$0xff] }
 0xc2f   : > { %6007 = vmatmul.msk.bf16.vlgmr.msrb.gmra.mxu3 %vm562_vm3, %v1209_v62  ;;  %6009 = vmatmul.msk.bf16.vlgmr.msra.gmra.mxu1 %vm562_vm3, %v1276_v63 }
 0xc30   : > { %1357 = vmatpush.bf16.msra.mxu3 %v1345_v61 }
 0xc32   : > { %v7638_v1 = vpop.eup %7637 }
 0xc33   : > { %v7640_v2 = vpop.eup %7639  ;;  %v1342_v3 = vmul.f32 %v7638_v1, %v7624_v39  ;;  %v1402_v6 = vpop.xlane.xlu0 %1401 }
 0xc34   : > { %v1341_v4 = vmul.f32 %v7640_v2, %v8215_v32  ;;  %7641 = vrcp.f32 %v1402_v6  ;;  %1525 = vmatpush.bf16.msrb.mxu3 %v7243_v48 }
 0xc36   : > { %v1343_v5 = vpack.c.bf16 %v1342_v3, %v1341_v4 }
 0xc38   : > { %1526 = vmatpush.bf16.msrb.mxu3 %v7242_v49 }
 0xc3a   : > { %v7642_v8 = vpop.eup %7641 }
 0xc3b   : > { %v1408_v10 = vmul.f32 %v7642_v8, %v7626_v42 }
 0xc3f   : > { %6011 = vmatmul.msk.bf16.vlgmr.msra.gmra.mxu3 %vm562_vm3, %v1343_v5 }
 0xc46   : > { %v1412_v7 = vpop.permute.xlu0 %1411 }
 0xc47   : > { %1424 = vmatpush.bf16.msrb.mxu1 %v1412_v7 }
 0xc56   : > { %v1405_v27 = vpop.xlane.xlu1 %1404 }
 0xc57   : > { %7643 = vrcp.f32 %v1405_v27 }
 0xc5d   : > { %v7644_v9 = vpop.eup %7643 }
 0xc5e   : > { %v1409_v11 = vmul.f32 %v7644_v9, %v7628_v18 }
 0xc60   : > { %v1410_v12 = vpack.c.bf16 %v1409_v11, %v1408_v10 }
 0xc62   : > { %6013 = vmatmul.msk.bf16.vlgmr.msrb.gmra.mxu1 %vm562_vm3, %v1410_v12 }
 0xcac   : > { %v1292_v15 = vpop.f32.mrf.mxu1 }
 0xcb2   : > { %v1225_v16 = vpop.f32.mrf.mxu3 }
 0xcb4   : > { %v1294_v17 = vpop.f32.mrf.mxu1 }
 0xcb5   : > { %v7472_v20 = vpack.i.bf16 %v1294_v17, %v1292_v15 }
 0xcb7   : > { %7473 = vrot.lane.b32.xlu2 %v7472_v20, %s9442_s27  ;;  %v7253_v20 = vld [vmem:[%s9391_s7 + $0x18] sm:$0xff] }
 0xcb8   : > { %1660 = vmatpush.bf16.msra.mxu1 %v7253_v20 }
 0xcba   : > { %v1227_v21 = vpop.f32.mrf.mxu3 }
 0xcc2   : > { %v1359_v22 = vpop.f32.mrf.mxu3 }
 0xcca   : > { %v1361_v23 = vpop.f32.mrf.mxu3 }
 0xccb   : > { %v7477_v24 = vpack.i.bf16 %v1361_v23, %v1359_v22  ;;  %v7261_v22 = vld [vmem:[%s9386_s2 + $0xb8] sm:$0xff]  ;;  %v7260_v23 = vld [vmem:[%s9386_s2 + $0xb0] sm:$0xff] }
 0xccc   : > { %1736 = vmatpush.bf16.msra.mxu2 %v7261_v22 }
 0xccd   : > { %7478 = vrot.lane.b32.xlu2 %v7477_v24, %s9443_s28  ;;  %v7259_v24 = vld [vmem:[%s9386_s2 + $0xa8] sm:$0xff] }
 0xcd0   : > { %1737 = vmatpush.bf16.msra.mxu2 %v7260_v23 }
 0xcd4   : > { %1738 = vmatpush.bf16.msra.mxu2 %v7259_v24 }
 0xcdf   : > { %v1426_v25 = vpop.f32.mrf.mxu1 }
 0xce7   : > { %v1428_v26 = vpop.f32.mrf.mxu1 }
 0xce8   : > { %v7482_v32 = vpack.i.bf16 %v1428_v26, %v1426_v25  ;;  %v7258_v25 = vld [vmem:[%s9386_s2 + $0xa0] sm:$0xff]  ;;  %v7257_v26 = vld [vmem:[%s9386_s2 + $0x98] sm:$0xff] }
 0xce9   : > { %1739 = vmatpush.bf16.msra.mxu2 %v7258_v25 }
 0xcea   : > { %7483 = vrot.lane.b32.xlu0 %v7482_v32, %s9444_s29 }
 0xced   : > { %1740 = vmatpush.bf16.msra.mxu2 %v7257_v26 }
 0xd11   : > { %v7474_v14 = vpop.permute.xlu2 %7473 }
 0xd12   : > { %v7476_v37 = vunpack.i.h.bf16 %v7474_v14  ;;  %v7475_v38 = vunpack.i.l.bf16 %v7474_v14 }
 0xd14   : > { %v1456_v41 = vsel %vm541_vm2, %v1227_v21, %v7476_v37  ;;  %v1455_v42 = vsel %vm541_vm2, %v1225_v16, %v7475_v38  ;;  %v7252_v21 = vld [vmem:[%s9391_s7 + $0x10] sm:$0xff]  ;;  %v7255_v38 = vld [vmem:[%s9386_s2 + $0x88] sm:$0xff] }
 0xd15   : > { %1661 = vmatpush.bf16.msra.mxu1 %v7252_v21  ;;  %v7256_v37 = vld [vmem:[%s9386_s2 + $0x90] sm:$0xff] }
 0xd16   : > { %1741 = vmatpush.bf16.msra.mxu2 %v7256_v37 }
 0xd1a   : > { %1742 = vmatpush.bf16.msra.mxu2 %v7255_v38 }
 0xd27   : > { %v7479_v36 = vpop.permute.xlu2 %7478 }
 0xd28   : > { %v7481_v29 = vunpack.i.h.bf16 %v7479_v36  ;;  %v7480_v28 = vunpack.i.l.bf16 %v7479_v36 }
 0xd2a   : > { %v1458_v45 = vsel %vm562_vm3, %v1456_v41, %v7481_v29  ;;  %v1457_v46 = vsel %vm562_vm3, %v1455_v42, %v7480_v28  ;;  %v7254_v29 = vld [vmem:[%s9386_s2 + $0x80] sm:$0xff] }
 0xd2b   : > { %1743 = vmatpush.bf16.msra.mxu2 %v7254_v29 }
 0xd5c   : > { %v7484_v39 = vpop.permute.xlu0 %7483 }
 0xd5d   : > { %v7486_v43 = vunpack.i.h.bf16 %v7484_v39  ;;  %v7485_v44 = vunpack.i.l.bf16 %v7484_v39 }
 0xd5f   : > { %v1460_v18 = vsel %vm835_vm4, %v1458_v45, %v7486_v43  ;;  %v1459_v19 = vsel %vm835_vm4, %v1457_v46, %v7485_v44  ;;  %v7263_v44 = vld [vmem:[%s9387_s3 + $0x28] sm:$0xff]  ;;  %v7262_v45 = vld [vmem:[%s9387_s3 + $0x20] sm:$0xff] }
 0xd60   : > { %v1461_v47 = vpack.c.bf16 %v1460_v18, %v1459_v19  ;;  %1777 = vmatpush.bf16.msra.mxu3 %v7263_v44 }
 0xd62   : > { %6026 = vmatmul.msk.bf16.vlgmr.msrb.gmra.mxu2 %vm514_vm1, %v1461_v47 }
 0xd64   : > { %1778 = vmatpush.bf16.msra.mxu3 %v7262_v45 }
 0xde5   : > { %v1491_v50 = vpop.f32.mrf.mxu2 }
 0xde6   : > { %v1496_v52 = vadd.f32 %v1491_v50, %v8166_v35  ;;  %v7248_v35 = vld [vmem:[%s9438_s6 + $0x60] sm:$0xff] }
 0xde7   : > { %1620 = vmatpush.bf16.msrb.mxu0 %v7248_v35 }
 0xded   : > { %v1493_v51 = vpop.f32.mrf.mxu2 }
 0xdee   : > { %v1497_v53 = vadd.f32 %v1493_v51, %v8168_v13  ;;  %v7247_v13 = vld [vmem:[%s9438_s6 + $0x58] sm:$0xff] }
 0xdef   : > { %1621 = vmatpush.bf16.msrb.mxu0 %v7247_v13 }
 0xdf0   : > { %v1498_v54 = vpack.c.bf16 %v1497_v53, %v1496_v52 }
 0xdf2   : > { %6039 = vmatmul.msk.bf16.vlgmr.msrb.gmra.mxu3 %vm514_vm1, %v1498_v54 }
 0xdf3   : > { %1622 = vmatpush.bf16.msrb.mxu0 %v7246_v57 }
 0xdf7   : > { %1623 = vmatpush.bf16.msrb.mxu0 %v7245_v58 }
 0xdfb   : > { %1624 = vmatpush.bf16.msrb.mxu0 %v7244_v59 }
 0xe75   : > { %v1528_v60 = vpop.f32.mrf.mxu3 }
 0xe76   : > { %v1533_v61 = vmul.f32 %v1528_v60, %v1528_v60 }
 0xe78   : > { %v1535_v62 = vmul.f32 %v1533_v61, %v1528_v60 }
 0xe7a   : > { %v1537_v63 = vmul.f32 0.044715, %v1535_v62 }
 0xe7c   : > { %v1539_v0 = vadd.f32 %v1537_v63, %v1528_v60 }
 0xe7d   : > { %v1530_v1 = vpop.f32.mrf.mxu3 }
 0xe7e   : > { %v1541_v2 = vmul.f32 0.7978846, %v1539_v0  ;;  %v1534_v3 = vmul.f32 %v1530_v1, %v1530_v1 }
 0xe80   : > { %v1536_v4 = vmul.f32 %v1534_v3, %v1530_v1  ;;  %7645 = vtanh.f32 %v1541_v2 }
 0xe82   : > { %v1538_v5 = vmul.f32 0.044715, %v1536_v4 }
 0xe84   : > { %v1540_v6 = vadd.f32 %v1538_v5, %v1530_v1 }
 0xe86   : > { %v1542_v7 = vmul.f32 0.7978846, %v1540_v6  ;;  %v7646_v27 = vpop.eup %7645 }
 0xe87   : > { %v1545_v8 = vadd.f32 1.0, %v7646_v27 }
 0xe88   : > { %7647 = vtanh.f32 %v1542_v7 }
 0xe89   : > { %v1547_v10 = vmul.f32 0.5, %v1545_v8 }
 0xe8b   : > { %v1549_v15 = vmul.f32 %v1547_v10, %v1528_v60 }
 0xe8e   : > { %v7648_v9 = vpop.eup %7647 }
 0xe8f   : > { %v1546_v11 = vadd.f32 1.0, %v7648_v9 }
 0xe91   : > { %v1548_v12 = vmul.f32 0.5, %v1546_v11 }
 0xe93   : > { %v1550_v16 = vmul.f32 %v1548_v12, %v1530_v1 }
 0xe95   : > { %v1551_v17 = vpack.c.bf16 %v1550_v16, %v1549_v15 }
 0xe97   : > { %1625 = vmatmul.bf16.vlgmr.msrb.gmra.mxu0 %v1551_v17 }
 0xf14   : > { %v1626_v32 = vpop.f32.mrf.mxu0 }
 0xf15   : > { %v1631_v34 = vadd.f32 %v1626_v32, %v1496_v52 }
 0xf1c   : > { %v1628_v33 = vpop.f32.mrf.mxu0 }
 0xf1d   : > { %v1632_v14 = vadd.f32 %v1628_v33, %v1497_v53 }
 0xf1f   : > { %v1633_v36 = vpack.c.bf16 %v1632_v14, %v1631_v34 }
 0xf21   : > { %6100 = vmatmul.msk.bf16.vlgmr.msra.gmra.mxu1 %vm514_vm1, %v1633_v36 }
 0xf9e   : > { %v1663_v28 = vpop.f32.mrf.mxu1 }
 0xf9f   : > { %v8319_v41 = vadd.f32 %v1663_v28, %v8153_v30 }
 0xfa6   : > { %v1665_v39 = vpop.f32.mrf.mxu1 }
 0xfa7   : > { %v8322_v42 = vadd.f32 %v1665_v39, %v8156_v31 }
 0xfa9   : > { %v8326_v43 = vpack.c.bf16 %v8322_v42, %v8319_v41 }
 0xfab   : > { %1744 = vmatmul.bf16.vlgmr.msra.gmra.mxu2 %v8326_v43 }
0x102e   : > { %v8335_v30 = vpop.f32.mrf.mxu2 }
0x1036   : > { %v8337_v31 = vpop.f32.mrf.mxu2 }
0x1037   : > { %v1750_v46 = vpack.c.bf16 %v8337_v31, %v8335_v30 }
0x1039   : > { %6161 = vmatmul.msk.bf16.vlgmr.msra.gmra.mxu3 %vm514_vm1, %v1750_v46 }
0x10bc   : > { %v1780_v18 = vpop.f32.mrf.mxu3 }
0x10bd   : > { %v1785_v19 = vpack.c.bf16 %v1780_v18, %v1780_v18 }
0x10bf   : > { %v1789_v49 = vunpack.c.l.b16 %v1785_v19 }
0x10c4   : > { %v1782_v47 = vpop.f32.mrf.mxu3 }
0x10c5   : > { %v1786_v48 = vpack.c.bf16 %v1782_v47, %v1782_v47 }
0x10c7   : > { %v1790_v50 = vunpack.c.l.b16 %v1786_v48 }
0x10c9   : > { %v8342_v51 = vpack.c.b16 %v1790_v50, %v1789_v49 }
0x10cb   : > { %1993 = vrot.lane.b32.xlu1 %v8342_v51, %s9420_s20  ;;  %1859 = vrot.lane.b32.xlu0 %v8342_v51, %s9422_s12  ;;  %s9451_s12 = smov 88   ;;  %s9452_s20 = smov 72  }
0x10cc   : > { %1792 = vrot.lane.b32.xlu2 %v8342_v51, %s9445_s15 }
0x10d3   : > { %1857 = vrot.lane.b32.xlu0 %v8342_v51, %s9446_s16 }
0x10d4   : > { %1926 = vrot.lane.b32.xlu2 %v8342_v51, %s9447_s18 }
0x10db   : > { %1991 = vrot.lane.b32.xlu0 %v8342_v51, %s9448_s21 }
0x10dc   : > { %1924 = vrot.lane.b32.xlu2 %v8342_v51, %s9449_s22 }
0x1126   : > { %v1793_v52 = vpop.permute.xlu2 %1792 }
0x1127   : > { %v1798_v53 = vsel %vm541_vm2, %v1793_v52, 0 }
0x1128   : > { %1807 = vmatpush.bf16.xpose.msrb.mxu1 %v1798_v53 }
0x112e   : > { %v1927_v54 = vpop.permute.xlu2 %1926 }
0x112f   : > { %v1932_v40 = vsel %vm541_vm2, %v1927_v54, 0  ;;  %6162 = vmatmul.msk.bf16.vlgmr.msrb.gmra.mxu1 %vm541_vm2, %v8342_v51 }
0x1130   : > { %1941 = vmatpush.bf16.xpose.msrb.mxu2 %v1932_v40 }
0x1136   : > { %v1925_v55 = vpop.permute.xlu2 %1924 }
0x1137   : > { %6166 = vmatmul.msk.bf16.vlgmr.msrb.gmra.mxu2 %vm541_vm2, %v1925_v55 }
0x113d   : > { %v1994_v56 = vpop.permute.xlu1 %1993  ;;  %v1860_v35 = vpop.permute.xlu0 %1859 }
0x113e   : > { %v1999_v13 = vsel %vm541_vm2, %v1994_v56, 0  ;;  %v1865_v57 = vsel %vm541_vm2, %v1860_v35, 0 }
0x113f   : > { %1874 = vmatpush.bf16.xpose.msra.mxu0 %v1865_v57 }
0x1145   : > { %v1858_v58 = vpop.permute.xlu0 %1857 }
0x1146   : > { %6164 = vmatmul.msk.bf16.vlgmr.msra.gmra.mxu0 %vm541_vm2, %v1858_v58 }
0x1147   : > { %2008 = vmatpush.bf16.xpose.msrb.mxu0 %v1999_v13 }
0x114d   : > { %v1992_v59 = vpop.permute.xlu0 %1991 }
0x1156   : > { %6168 = vmatmul.msk.bf16.vlgmr.msrb.gmra.mxu0 %vm541_vm2, %v1992_v59 }
0x11ac   : > { %v1809_v60 = vpop.f32.mrf.mxu1 }
0x11ad   : > { %v1814_v61 = vsel %vm562_vm3, %v1809_v60, -inf }
0x11ae   : > { %1815 = vmax.xlane.f32.xlu2 %v1814_v61 }
0x11b4   : > { %v1811_v62 = vpop.f32.mrf.mxu1 }
0x11b5   : > { %v1817_v63 = vsel %vm562_vm3, %v1811_v62, -inf }
0x11b6   : > { %1818 = vmax.xlane.f32.xlu0 %v1817_v63 }
0x11ba   : > { %v1943_v0 = vpop.f32.mrf.mxu2 }
0x11bb   : > { %v1948_v1 = vsel %vm562_vm3, %v1943_v0, -inf }
0x11bc   : > { %1949 = vmax.xlane.f32.xlu2 %v1948_v1 }
0x11c2   : > { %v1945_v2 = vpop.f32.mrf.mxu2 }
0x11c3   : > { %v1876_v3 = vpop.f32.mrf.mxu0  ;;  %v1951_v4 = vsel %vm562_vm3, %v1945_v2, -inf }
0x11c4   : > { %1952 = vmax.xlane.f32.xlu0 %v1951_v4  ;;  %v1881_v5 = vsel %vm562_vm3, %v1876_v3, -inf }
0x11c5   : > { %1882 = vmax.xlane.f32.xlu1 %v1881_v5 }
0x11cb   : > { %v1878_v6 = vpop.f32.mrf.mxu0 }
0x11cc   : > { %v1884_v7 = vsel %vm562_vm3, %v1878_v6, -inf }
0x11cd   : > { %1885 = vmax.xlane.f32.xlu2 %v1884_v7 }
0x11d3   : > { %v2010_v27 = vpop.f32.mrf.mxu0 }
0x11d4   : > { %v2015_v8 = vsel %vm562_vm3, %v2010_v27, -inf }
0x11d5   : > { %2016 = vmax.xlane.f32.xlu2 %v2015_v8 }
0x11db   : > { %v2012_v9 = vpop.f32.mrf.mxu0 }
0x11dc   : > { %v2018_v10 = vsel %vm562_vm3, %v2012_v9, -inf }
0x11dd   : > { %2019 = vmax.xlane.f32.xlu0 %v2018_v10 }
0x11ed   : > { %1837 = vrot.lane.b32.xlu2 %v8342_v51, %s9440_s26 }
0x1221   : > { %v1816_v11 = vpop.xlane.xlu2 %1815 }
0x1222   : > { %v1820_v12 = vsub.f32 %v1809_v60, %v1816_v11 }
0x1224   : > { %v1822_v15 = vmul.f32 1.442695, %v1820_v12 }
0x1226   : > { %7649 = vpow2.f32 %v1822_v15 }
0x1229   : > { %v1819_v16 = vpop.xlane.xlu0 %1818 }
0x122a   : > { %v1821_v17 = vsub.f32 %v1811_v62, %v1819_v16 }
0x122c   : > { %v7650_v20 = vpop.eup %7649  ;;  %v1824_v21 = vmul.f32 1.442695, %v1821_v17 }
0x122d   : > { %v1826_v22 = vsel %vm562_vm3, %v7650_v20, 0.0 }
0x122e   : > { %7651 = vpow2.f32 %v1824_v21  ;;  %1827 = vadd.xlane.f32.xlu1 %v1826_v22 }
0x122f   : > { %v1950_v23 = vpop.xlane.xlu2 %1949 }
0x1230   : > { %v1954_v24 = vsub.f32 %v1943_v0, %v1950_v23 }
0x1232   : > { %v1956_v25 = vmul.f32 1.442695, %v1954_v24 }
0x1234   : > { %v7652_v26 = vpop.eup %7651  ;;  %7653 = vpow2.f32 %v1956_v25 }
0x1235   : > { %v1829_v32 = vsel %vm562_vm3, %v7652_v26, 0.0 }
0x1236   : > { %1830 = vadd.xlane.f32.xlu2 %v1829_v32 }
0x1237   : > { %v1953_v38 = vpop.xlane.xlu0 %1952 }
0x1238   : > { %v1883_v33 = vpop.xlane.xlu1 %1882  ;;  %v1955_v44 = vsub.f32 %v1945_v2, %v1953_v38 }
0x1239   : > { %v1887_v34 = vsub.f32 %v1876_v3, %v1883_v33 }
0x123a   : > { %v8379_v14 = vpop.eup %7653  ;;  %v1958_v18 = vmul.f32 1.442695, %v1955_v44 }
0x123b   : > { %v1889_v36 = vmul.f32 1.442695, %v1887_v34  ;;  %v1960_v37 = vsel %vm562_vm3, %v8379_v14, 0.0 }
0x123c   : > { %1961 = vadd.xlane.f32.xlu1 %v1960_v37 }
0x123d   : > { %7655 = vpow2.f32 %v1889_v36 }
0x1240   : > { %v1886_v29 = vpop.xlane.xlu2 %1885 }
0x1241   : > { %v1888_v28 = vsub.f32 %v1878_v6, %v1886_v29 }
0x1243   : > { %v7656_v39 = vpop.eup %7655  ;;  %v1891_v45 = vmul.f32 1.442695, %v1888_v28 }
0x1244   : > { %v1893_v46 = vsel %vm562_vm3, %v7656_v39, 0.0 }
0x1245   : > { %7657 = vpow2.f32 %v1891_v45  ;;  %1894 = vadd.xlane.f32.xlu0 %v1893_v46  ;;  %v7265_v46 = vld [vmem:[%s9388_s4 + $0x28] sm:$0xff] }
0x1246   : > { %7659 = vpow2.f32 %v1958_v18  ;;  %2115 = vmatpush.bf16.msra.mxu2 %v7265_v46  ;;  %v7264_v18 = vld [vmem:[%s9388_s4 + $0x20] sm:$0xff] }
0x1248   : > { %v2017_v19 = vpop.xlane.xlu2 %2016 }
0x1249   : > { %v2021_v48 = vsub.f32 %v2010_v27, %v2017_v19 }
0x124a   : > { %2116 = vmatpush.bf16.msra.mxu2 %v7264_v18 }
0x124b   : > { %v7658_v47 = vpop.eup %7657  ;;  %v2023_v50 = vmul.f32 1.442695, %v2021_v48 }
0x124c   : > { %v1896_v49 = vsel %vm562_vm3, %v7658_v47, 0.0  ;;  %v7660_v53 = vpop.eup %7659 }
0x124d   : > { %1897 = vadd.xlane.f32.xlu1 %v1896_v49  ;;  %7661 = vpow2.f32 %v2023_v50  ;;  %v1963_v54 = vsel %vm562_vm3, %v7660_v53, 0.0 }
0x124e   : > { %1971 = vrot.lane.b32.xlu2 %v8342_v51, %s9439_s24 }
0x1250   : > { %v1838_v52 = vpop.permute.xlu2 %1837  ;;  %v2020_v56 = vpop.xlane.xlu0 %2019 }
0x1251   : > { %1850 = vmatpush.bf16.msrb.mxu3 %v1838_v52  ;;  %v2022_v35 = vsub.f32 %v2012_v9, %v2020_v56 }
0x1253   : > { %v7662_v40 = vpop.eup %7661  ;;  %v2025_v13 = vmul.f32 1.442695, %v2022_v35 }
0x1254   : > { %v2027_v55 = vsel %vm562_vm3, %v7662_v40, 0.0 }
0x1255   : > { %1964 = vadd.xlane.f32.xlu1 %v1963_v54  ;;  %7663 = vpow2.f32 %v2025_v13 }
0x1259   : > { %1904 = vrot.lane.b32.xlu0 %v8342_v51, %s9450_s23 }
0x125b   : > { %v7664_v57 = vpop.eup %7663 }
0x125c   : > { %v2030_v58 = vsel %vm562_vm3, %v7664_v57, 0.0 }
0x125d   : > { %2028 = vadd.xlane.f32.xlu1 %v2027_v55 }
0x1276   : > { %2038 = vrot.lane.b32.xlu1 %v8342_v51, %s9441_s25 }
0x1283   : > { %2031 = vadd.xlane.f32.xlu0 %v2030_v58 }
0x12a1   : > { %v1828_v59 = vpop.xlane.xlu1 %1827 }
0x12a2   : > { %7665 = vrcp.f32 %v1828_v59 }
0x12a8   : > { %v7666_v61 = vpop.eup %7665 }
0x12a9   : > { %v1831_v60 = vpop.xlane.xlu2 %1830  ;;  %v1834_v63 = vmul.f32 %v7666_v61, %v7650_v20  ;;  %v7266_v61 = vld [vmem:[%s9389_s5 + $0x20] sm:$0xff] }
0x12aa   : > { %7667 = vrcp.f32 %v1831_v60  ;;  %v7267_v60 = vld [vmem:[%s9389_s5 + $0x28] sm:$0xff] }
0x12af   : > { %v1962_v3 = vpop.xlane.xlu1 %1961 }
0x12b0   : > { %v7668_v62 = vpop.eup %7667 }
0x12b1   : > { %v1835_v0 = vmul.f32 %v7668_v62, %v7652_v26  ;;  %v1972_v1 = vpop.permute.xlu2 %1971 }
0x12b2   : > { %1984 = vmatpush.bf16.msra.mxu3 %v1972_v1 }
0x12b3   : > { %v1836_v2 = vpack.c.bf16 %v1835_v0, %v1834_v63 }
0x12b5   : > { %6163 = vmatmul.msk.bf16.vlgmr.msrb.gmra.mxu3 %vm562_vm3, %v1836_v2 }
0x12b6   : > { %2152 = vmatpush.bf16.msrb.mxu3 %v7267_v60 }
0x12b8   : > { %v1895_v51 = vpop.xlane.xlu0 %1894 }
0x12ba   : > { %2153 = vmatpush.bf16.msrb.mxu3 %v7266_v61 }
0x12c0   : > { %v1898_v4 = vpop.xlane.xlu1 %1897 }
0x12c1   : > { %7669 = vrcp.f32 %v1898_v4  ;;  %v7273_v4 = vld [vmem:[%s9438_s6 + $0xa8] sm:$0xff] }
0x12c2   : > { %7671 = vrcp.f32 %v1895_v51  ;;  %v7274_v51 = vld [vmem:[%s9438_s6 + $0xb0] sm:$0xff] }
0x12c3   : > { %7673 = vrcp.f32 %v1962_v3  ;;  %v7275_v3 = vld [vmem:[%s9438_s6 + $0xb8] sm:$0xff] }
0x12c4   : > { %2244 = vmatpush.bf16.msra.mxu0 %v7275_v3 }
0x12c7   : > { %v7670_v5 = vpop.eup %7669 }
0x12c8   : > { %v7672_v6 = vpop.eup %7671  ;;  %v1965_v7 = vpop.xlane.xlu1 %1964  ;;  %v1902_v27 = vmul.f32 %v7670_v5, %v7658_v47  ;;  %2245 = vmatpush.bf16.msra.mxu0 %v7274_v51  ;;  %v7270_v5 = vld [vmem:[%s9438_s6 + $0x90] sm:$0xff] }
0x12c9   : > { %7675 = vrcp.f32 %v1965_v7  ;;  %v1901_v8 = vmul.f32 %v7672_v6, %v7656_v39  ;;  %v7674_v10 = vpop.eup %7673  ;;  %v7269_v6 = vld [vmem:[%s9438_s6 + $0x88] sm:$0xff]  ;;  %v7268_v7 = vld [vmem:[%s9438_s6 + $0x80] sm:$0xff] }
0x12ca   : > { %v1968_v15 = vmul.f32 %v7674_v10, %v8379_v14 }
0x12cb   : > { %v1905_v9 = vpop.permute.xlu0 %1904  ;;  %v1903_v11 = vpack.c.bf16 %v1902_v27, %v1901_v8 }
0x12cc   : > { %1917 = vmatpush.bf16.msra.mxu1 %v1905_v9  ;;  %2246 = vmatpush.bf16.msra.mxu0 %v7273_v4 }
0x12cf   : > { %v7676_v12 = vpop.eup %7675  ;;  %6165 = vmatmul.msk.bf16.vlgmr.msra.gmra.mxu1 %vm562_vm3, %v1903_v11 }
0x12d0   : > { %v1969_v16 = vmul.f32 %v7676_v12, %v7660_v53  ;;  %v2029_v20 = vpop.xlane.xlu1 %2028 }
0x12d1   : > { %7677 = vrcp.f32 %v2029_v20 }
0x12d2   : > { %v1970_v17 = vpack.c.bf16 %v1969_v16, %v1968_v15 }
0x12d4   : > { %6167 = vmatmul.msk.bf16.vlgmr.msra.gmra.mxu3 %vm562_vm3, %v1970_v17 }
0x12d7   : > { %v7678_v23 = vpop.eup %7677 }
0x12d8   : > { %v2035_v25 = vmul.f32 %v7678_v23, %v7662_v40 }
0x12e8   : > { %v2039_v21 = vpop.permute.xlu1 %2038 }
0x12e9   : > { %2051 = vmatpush.bf16.msrb.mxu1 %v2039_v21 }
0x12f6   : > { %v2032_v22 = vpop.xlane.xlu0 %2031 }
0x12f7   : > { %7679 = vrcp.f32 %v2032_v22 }
0x12fd   : > { %v7680_v24 = vpop.eup %7679 }
0x12fe   : > { %v2036_v26 = vmul.f32 %v7680_v24, %v7664_v57 }
0x1300   : > { %v2037_v32 = vpack.c.bf16 %v2036_v26, %v2035_v25 }
0x1302   : > { %6169 = vmatmul.msk.bf16.vlgmr.msrb.gmra.mxu1 %vm562_vm3, %v2037_v32 }
0x1338   : > { %v1852_v33 = vpop.f32.mrf.mxu3 }
0x1340   : > { %v1854_v14 = vpop.f32.mrf.mxu3 }
0x134c   : > { %v1919_v34 = vpop.f32.mrf.mxu1 }
0x1354   : > { %v1921_v36 = vpop.f32.mrf.mxu1 }
0x1355   : > { %v7487_v37 = vpack.i.bf16 %v1921_v36, %v1919_v34 }
0x1357   : > { %7488 = vrot.lane.b32.xlu2 %v7487_v37, %s9442_s27  ;;  %v1986_v38 = vpop.f32.mrf.mxu3  ;;  %v7277_v37 = vld [vmem:[%s9391_s7 + $0x28] sm:$0xff] }
0x1358   : > { %2287 = vmatpush.bf16.msra.mxu1 %v7277_v37 }
0x135f   : > { %v1988_v29 = vpop.f32.mrf.mxu3 }
0x1360   : > { %v7492_v28 = vpack.i.bf16 %v1988_v29, %v1986_v38  ;;  %v7276_v38 = vld [vmem:[%s9391_s7 + $0x20] sm:$0xff]  ;;  %v7285_v29 = vld [vmem:[%s9386_s2 + $0xf8] sm:$0xff] }
0x1361   : > { %2288 = vmatpush.bf16.msra.mxu1 %v7276_v38  ;;  %2363 = vmatpush.bf16.msrb.mxu2 %v7285_v29 }
0x1362   : > { %7493 = vrot.lane.b32.xlu2 %v7492_v28, %s9443_s28  ;;  %v7284_v28 = vld [vmem:[%s9386_s2 + $0xf0] sm:$0xff] }
0x1365   : > { %2364 = vmatpush.bf16.msrb.mxu2 %v7284_v28 }
0x137f   : > { %v2053_v39 = vpop.f32.mrf.mxu1 }
0x1387   : > { %v2055_v44 = vpop.f32.mrf.mxu1 }
0x1388   : > { %v7497_v45 = vpack.i.bf16 %v2055_v44, %v2053_v39  ;;  %v7283_v39 = vld [vmem:[%s9386_s2 + $0xe8] sm:$0xff]  ;;  %v7282_v44 = vld [vmem:[%s9386_s2 + $0xe0] sm:$0xff] }
0x1389   : > { %2365 = vmatpush.bf16.msrb.mxu2 %v7283_v39 }
0x138a   : > { %7498 = vrot.lane.b32.xlu2 %v7497_v45, %s9444_s29  ;;  %v7281_v45 = vld [vmem:[%s9386_s2 + $0xd8] sm:$0xff] }
0x138d   : > { %2366 = vmatpush.bf16.msrb.mxu2 %v7282_v44 }
0x1391   : > { %2367 = vmatpush.bf16.msrb.mxu2 %v7281_v45 }
0x13b1   : > { %v7489_v19 = vpop.permute.xlu2 %7488 }
0x13b2   : > { %v7491_v48 = vunpack.i.h.bf16 %v7489_v19  ;;  %v7490_v49 = vunpack.i.l.bf16 %v7489_v19 }
0x13b4   : > { %v2083_v54 = vsel %vm541_vm2, %v1854_v14, %v7491_v48  ;;  %v2082_v40 = vsel %vm541_vm2, %v1852_v33, %v7490_v49  ;;  %v7280_v49 = vld [vmem:[%s9386_s2 + $0xd0] sm:$0xff] }
0x13b5   : > { %2368 = vmatpush.bf16.msrb.mxu2 %v7280_v49 }
0x13bc   : > { %v7494_v47 = vpop.permute.xlu2 %7493 }
0x13bd   : > { %v7496_v50 = vunpack.i.h.bf16 %v7494_v47  ;;  %v7495_v52 = vunpack.i.l.bf16 %v7494_v47 }
0x13bf   : > { %v2084_v35 = vsel %vm562_vm3, %v2082_v40, %v7495_v52  ;;  %v2085_v13 = vsel %vm562_vm3, %v2083_v54, %v7496_v50  ;;  %v7279_v50 = vld [vmem:[%s9386_s2 + $0xc8] sm:$0xff]  ;;  %v7278_v52 = vld [vmem:[%s9386_s2 + $0xc0] sm:$0xff] }
0x13c0   : > { %2369 = vmatpush.bf16.msrb.mxu2 %v7279_v50 }
0x13c4   : > { %2370 = vmatpush.bf16.msrb.mxu2 %v7278_v52 }
0x13e4   : > { %v7499_v53 = vpop.permute.xlu2 %7498 }
0x13e5   : > { %v7501_v55 = vunpack.i.h.bf16 %v7499_v53  ;;  %v7500_v56 = vunpack.i.l.bf16 %v7499_v53 }
0x13e7   : > { %v2086_v57 = vsel %vm835_vm4, %v2084_v35, %v7500_v56  ;;  %v2087_v58 = vsel %vm835_vm4, %v2085_v13, %v7501_v55  ;;  %v7287_v35 = vld [vmem:[%s9387_s3 + $0x38] sm:$0xff]  ;;  %v7286_v13 = vld [vmem:[%s9387_s3 + $0x30] sm:$0xff] }
0x13e8   : > { %v2088_v59 = vpack.c.bf16 %v2087_v58, %v2086_v57  ;;  %2404 = vmatpush.bf16.msra.mxu3 %v7287_v35 }
0x13ea   : > { %6182 = vmatmul.msk.bf16.vlgmr.msra.gmra.mxu2 %vm514_vm1, %v2088_v59 }
0x13ec   : > { %2405 = vmatpush.bf16.msra.mxu3 %v7286_v13 }
0x146d   : > { %v2118_v62 = vpop.f32.mrf.mxu2 }
0x146e   : > { %v2123_v0 = vadd.f32 %v2118_v62, %v8335_v30  ;;  %v7272_v30 = vld [vmem:[%s9438_s6 + $0xa0] sm:$0xff] }
0x146f   : > { %2247 = vmatpush.bf16.msra.mxu0 %v7272_v30 }
0x1475   : > { %v2120_v63 = vpop.f32.mrf.mxu2 }
0x1476   : > { %v2124_v1 = vadd.f32 %v2120_v63, %v8337_v31  ;;  %v7271_v31 = vld [vmem:[%s9438_s6 + $0x98] sm:$0xff] }
0x1477   : > { %2248 = vmatpush.bf16.msra.mxu0 %v7271_v31 }
0x1478   : > { %v2125_v2 = vpack.c.bf16 %v2124_v1, %v2123_v0 }
0x147a   : > { %6195 = vmatmul.msk.bf16.vlgmr.msrb.gmra.mxu3 %vm514_vm1, %v2125_v2 }
0x147b   : > { %2249 = vmatpush.bf16.msra.mxu0 %v7270_v5 }
0x147f   : > { %2250 = vmatpush.bf16.msra.mxu0 %v7269_v6 }
0x1483   : > { %2251 = vmatpush.bf16.msra.mxu0 %v7268_v7 }
0x14fd   : > { %v2155_v27 = vpop.f32.mrf.mxu3 }
0x14fe   : > { %v2160_v8 = vmul.f32 %v2155_v27, %v2155_v27 }
0x1500   : > { %v2162_v9 = vmul.f32 %v2160_v8, %v2155_v27 }
0x1502   : > { %v2164_v10 = vmul.f32 0.044715, %v2162_v9 }
0x1504   : > { %v2166_v11 = vadd.f32 %v2164_v10, %v2155_v27 }
0x1505   : > { %v2157_v12 = vpop.f32.mrf.mxu3 }
0x1506   : > { %v2168_v15 = vmul.f32 0.7978846, %v2166_v11  ;;  %v2161_v16 = vmul.f32 %v2157_v12, %v2157_v12 }
0x1508   : > { %v2163_v17 = vmul.f32 %v2161_v16, %v2157_v12  ;;  %7681 = vtanh.f32 %v2168_v15 }
0x150a   : > { %v2165_v20 = vmul.f32 0.044715, %v2163_v17 }
0x150c   : > { %v2167_v21 = vadd.f32 %v2165_v20, %v2157_v12 }
0x150e   : > { %v2169_v22 = vmul.f32 0.7978846, %v2167_v21  ;;  %v7682_v23 = vpop.eup %7681 }
0x150f   : > { %v2172_v24 = vadd.f32 1.0, %v7682_v23 }
0x1510   : > { %7683 = vtanh.f32 %v2169_v22 }
0x1511   : > { %v2174_v26 = vmul.f32 0.5, %v2172_v24 }
0x1513   : > { %v2176_v34 = vmul.f32 %v2174_v26, %v2155_v27 }
0x1516   : > { %v7684_v25 = vpop.eup %7683 }
0x1517   : > { %v2173_v32 = vadd.f32 1.0, %v7684_v25 }
0x1519   : > { %v2175_v33 = vmul.f32 0.5, %v2173_v32 }
0x151b   : > { %v2177_v14 = vmul.f32 %v2175_v33, %v2157_v12 }
0x151d   : > { %v2178_v36 = vpack.c.bf16 %v2177_v14, %v2176_v34 }
0x151f   : > { %2252 = vmatmul.bf16.vlgmr.msra.gmra.mxu0 %v2178_v36 }
0x159c   : > { %v2253_v46 = vpop.f32.mrf.mxu0 }
0x159d   : > { %v2258_v19 = vadd.f32 %v2253_v46, %v2123_v0 }
0x15a4   : > { %v2255_v18 = vpop.f32.mrf.mxu0 }
0x15a5   : > { %v2259_v47 = vadd.f32 %v2255_v18, %v2124_v1 }
0x15a7   : > { %v2260_v48 = vpack.c.bf16 %v2259_v47, %v2258_v19 }
0x15a9   : > { %6256 = vmatmul.msk.bf16.vlgmr.msra.gmra.mxu1 %vm514_vm1, %v2260_v48 }
0x1626   : > { %v2290_v53 = vpop.f32.mrf.mxu1 }
0x1627   : > { %v8480_v40 = vadd.f32 %v2290_v53, %v8319_v41 }
0x162e   : > { %v2292_v54 = vpop.f32.mrf.mxu1 }
0x162f   : > { %v8483_v55 = vadd.f32 %v2292_v54, %v8322_v42 }
0x1631   : > { %v8487_v56 = vpack.c.bf16 %v8483_v55, %v8480_v40 }
0x1633   : > { %2371 = vmatmul.bf16.vlgmr.msrb.gmra.mxu2 %v8487_v56 }
0x16b6   : > { %v8496_v41 = vpop.f32.mrf.mxu2 }
0x16be   : > { %v8498_v42 = vpop.f32.mrf.mxu2 }
0x16bf   : > { %v2377_v57 = vpack.c.bf16 %v8498_v42, %v8496_v41 }
0x16c1   : > { %6317 = vmatmul.msk.bf16.vlgmr.msra.gmra.mxu3 %vm514_vm1, %v2377_v57 }
0x1744   : > { %v2407_v58 = vpop.f32.mrf.mxu3 }
0x1745   : > { %v2412_v59 = vpack.c.bf16 %v2407_v58, %v2407_v58 }
0x1747   : > { %v2416_v62 = vunpack.c.l.b16 %v2412_v59 }
0x174c   : > { %v2409_v60 = vpop.f32.mrf.mxu3 }
0x174d   : > { %v2413_v61 = vpack.c.bf16 %v2409_v60, %v2409_v60 }
0x174f   : > { %v2417_v63 = vunpack.c.l.b16 %v2413_v61 }
0x1751   : > { %v8503_v0 = vpack.c.b16 %v2417_v63, %v2416_v62 }
0x1753   : > { %2484 = vrot.lane.b32.xlu0 %v8503_v0, %s9446_s16  ;;  %2486 = vrot.lane.b32.xlu2 %v8503_v0, %s9451_s12 }
0x1754   : > { %2419 = vrot.lane.b32.xlu1 %v8503_v0, %s9445_s15 }
0x175b   : > { %2551 = vrot.lane.b32.xlu2 %v8503_v0, %s9449_s22 }
0x175c   : > { %2553 = vrot.lane.b32.xlu1 %v8503_v0, %s9447_s18 }
0x1763   : > { %2618 = vrot.lane.b32.xlu2 %v8503_v0, %s9448_s21 }
0x1764   : > { %2620 = vrot.lane.b32.xlu1 %v8503_v0, %s9452_s20 }
0x17ad   : > { %v2487_v1 = vpop.permute.xlu2 %2486 }
0x17ae   : > { %v2492_v2 = vsel %vm541_vm2, %v2487_v1, 0 }
0x17af   : > { %2501 = vmatpush.bf16.xpose.msrb.mxu0 %v2492_v2 }
0x17b5   : > { %v2552_v5 = vpop.permute.xlu2 %2551 }
0x17bd   : > { %v2619_v27 = vpop.permute.xlu2 %2618 }
0x17c5   : > { %v2485_v3 = vpop.permute.xlu0 %2484 }
0x17c6   : > { %v2420_v51 = vpop.permute.xlu1 %2419  ;;  %6320 = vmatmul.msk.bf16.vlgmr.msrb.gmra.mxu0 %vm541_vm2, %v2485_v3 }
0x17c7   : > { %v2425_v4 = vsel %vm541_vm2, %v2420_v51, 0 }
0x17c8   : > { %2434 = vmatpush.bf16.xpose.msrb.mxu1 %v2425_v4 }
0x17ce   : > { %v2554_v30 = vpop.permute.xlu1 %2553 }
0x17cf   : > { %v2559_v31 = vsel %vm541_vm2, %v2554_v30, 0  ;;  %6318 = vmatmul.msk.bf16.vlgmr.msrb.gmra.mxu1 %vm541_vm2, %v8503_v0 }
0x17d0   : > { %2568 = vmatpush.bf16.xpose.msra.mxu2 %v2559_v31 }
0x17d6   : > { %v2621_v6 = vpop.permute.xlu1 %2620 }
0x17d7   : > { %v2626_v7 = vsel %vm541_vm2, %v2621_v6, 0  ;;  %6322 = vmatmul.msk.bf16.vlgmr.msra.gmra.mxu2 %vm541_vm2, %v2552_v5 }
0x17d8   : > { %2635 = vmatpush.bf16.xpose.msra.mxu0 %v2626_v7 }
0x17df   : > { %6324 = vmatmul.msk.bf16.vlgmr.msra.gmra.mxu0 %vm541_vm2, %v2619_v27 }
0x1843   : > { %v2503_v8 = vpop.f32.mrf.mxu0 }
0x1844   : > { %v2508_v9 = vsel %vm562_vm3, %v2503_v8, -inf }
0x1845   : > { %2509 = vmax.xlane.f32.xlu0 %v2508_v9 }
0x184b   : > { %v2505_v12 = vpop.f32.mrf.mxu0 }
0x184c   : > { %v2436_v10 = vpop.f32.mrf.mxu1  ;;  %v2511_v16 = vsel %vm562_vm3, %v2505_v12, -inf }
0x184d   : > { %v2441_v11 = vsel %vm562_vm3, %v2436_v10, -inf }
0x184e   : > { %2442 = vmax.xlane.f32.xlu1 %v2441_v11 }
0x1854   : > { %v2438_v15 = vpop.f32.mrf.mxu1 }
0x1855   : > { %v2444_v17 = vsel %vm562_vm3, %v2438_v15, -inf }
0x1856   : > { %2512 = vmax.xlane.f32.xlu1 %v2511_v16  ;;  %2445 = vmax.xlane.f32.xlu2 %v2444_v17 }
0x185a   : > { %v2570_v20 = vpop.f32.mrf.mxu2 }
0x185b   : > { %v2575_v22 = vsel %vm562_vm3, %v2570_v20, -inf }
0x185c   : > { %v2637_v21 = vpop.f32.mrf.mxu0 }
0x185d   : > { %v2642_v23 = vsel %vm562_vm3, %v2637_v21, -inf }
0x185e   : > { %2576 = vmax.xlane.f32.xlu2 %v2575_v22  ;;  %2643 = vmax.xlane.f32.xlu1 %v2642_v23 }
0x1862   : > { %v2572_v24 = vpop.f32.mrf.mxu2 }
0x1863   : > { %v2578_v25 = vsel %vm562_vm3, %v2572_v24, -inf }
0x1864   : > { %2579 = vmax.xlane.f32.xlu0 %v2578_v25  ;;  %v2639_v26 = vpop.f32.mrf.mxu0 }
0x1865   : > { %v2645_v32 = vsel %vm562_vm3, %v2639_v26, -inf }
0x1866   : > { %2646 = vmax.xlane.f32.xlu2 %v2645_v32 }
0x18b8   : > { %v2510_v33 = vpop.xlane.xlu0 %2509 }
0x18b9   : > { %v2514_v34 = vsub.f32 %v2503_v8, %v2510_v33 }
0x18bb   : > { %v2516_v14 = vmul.f32 1.442695, %v2514_v34 }
0x18bd   : > { %7685 = vpow2.f32 %v2516_v14 }
0x18c1   : > { %v2443_v36 = vpop.xlane.xlu1 %2442 }
0x18c2   : > { %v2447_v37 = vsub.f32 %v2436_v10, %v2443_v36 }
0x18c3   : > { %v8536_v38 = vpop.eup %7685 }
0x18c4   : > { %v2449_v29 = vmul.f32 1.442695, %v2447_v37  ;;  %v2520_v28 = vsel %vm562_vm3, %v8536_v38, 0.0 }
0x18c5   : > { %2521 = vadd.xlane.f32.xlu2 %v2520_v28 }
0x18c6   : > { %7687 = vpow2.f32 %v2449_v29 }
0x18c9   : > { %v2446_v39 = vpop.xlane.xlu2 %2445  ;;  %v2513_v19 = vpop.xlane.xlu1 %2512 }
0x18ca   : > { %v2448_v44 = vsub.f32 %v2438_v15, %v2446_v39  ;;  %v2515_v50 = vsub.f32 %v2505_v12, %v2513_v19 }
0x18cc   : > { %v8540_v45 = vpop.eup %7687  ;;  %v2451_v46 = vmul.f32 1.442695, %v2448_v44  ;;  %v2518_v54 = vmul.f32 1.442695, %v2515_v50 }
0x18cd   : > { %v2453_v18 = vsel %vm562_vm3, %v8540_v45, 0.0 }
0x18ce   : > { %7689 = vpow2.f32 %v2451_v46  ;;  %2454 = vadd.xlane.f32.xlu0 %v2453_v18 }
0x18d1   : > { %v2577_v47 = vpop.xlane.xlu2 %2576  ;;  %v2644_v60 = vpop.xlane.xlu1 %2643 }
0x18d2   : > { %v2581_v48 = vsub.f32 %v2570_v20, %v2577_v47  ;;  %v2648_v62 = vsub.f32 %v2637_v21, %v2644_v60  ;;  %v7288_v60 = vld [vmem:[%s9388_s4 + $0x30] sm:$0xff] }
0x18d4   : > { %v7690_v49 = vpop.eup %7689  ;;  %v2583_v52 = vmul.f32 1.442695, %v2581_v48  ;;  %v2650_v1 = vmul.f32 1.442695, %v2648_v62 }
0x18d5   : > { %v2456_v53 = vsel %vm562_vm3, %v7690_v49, 0.0 }
0x18d6   : > { %7691 = vpow2.f32 %v2583_v52  ;;  %2457 = vadd.xlane.f32.xlu1 %v2456_v53 }
0x18d7   : > { %v2580_v35 = vpop.xlane.xlu0 %2579  ;;  %7693 = vpow2.f32 %v2518_v54 }
0x18d8   : > { %v2582_v57 = vsub.f32 %v2572_v24, %v2580_v35 }
0x18d9   : > { %v2647_v30 = vpop.xlane.xlu2 %2646 }
0x18da   : > { %v2585_v59 = vmul.f32 1.442695, %v2582_v57  ;;  %v2649_v31 = vsub.f32 %v2639_v26, %v2647_v30 }
0x18dc   : > { %v8545_v13 = vpop.eup %7691  ;;  %7695 = vpow2.f32 %v2585_v59  ;;  %v2652_v5 = vmul.f32 1.442695, %v2649_v31  ;;  %v7289_v59 = vld [vmem:[%s9388_s4 + $0x38] sm:$0xff] }
0x18dd   : > { %2531 = vrot.lane.b32.xlu2 %v8503_v0, %s9450_s23  ;;  %v2587_v58 = vsel %vm562_vm3, %v8545_v13, 0.0  ;;  %v7694_v61 = vpop.eup %7693  ;;  %7697 = vpow2.f32 %v2650_v1  ;;  %2742 = vmatpush.bf16.msrb.mxu2 %v7289_v59  ;;  %v7305_v59 = vld [vmem:[%s9386_s2 + $0x1d8] sm:$0xff] }
0x18de   : > { %2588 = vadd.xlane.f32.xlu0 %v2587_v58  ;;  %v2523_v63 = vsel %vm562_vm3, %v7694_v61, 0.0  ;;  %7699 = vpow2.f32 %v2652_v5 }
0x18e1   : > { %2743 = vmatpush.bf16.msrb.mxu2 %v7288_v60 }
0x18e2   : > { %v7696_v2 = vpop.eup %7695 }
0x18e3   : > { %v2590_v3 = vsel %vm562_vm3, %v7696_v2, 0.0  ;;  %v7698_v51 = vpop.eup %7697 }
0x18e4   : > { %v2654_v4 = vsel %vm562_vm3, %v7698_v51, 0.0  ;;  %v7700_v6 = vpop.eup %7699 }
0x18e5   : > { %2598 = vrot.lane.b32.xlu2 %v8503_v0, %s9439_s24  ;;  %v2657_v7 = vsel %vm562_vm3, %v7700_v6, 0.0 }
0x18e6   : > { %2524 = vadd.xlane.f32.xlu0 %v2523_v63 }
0x18ee   : > { %2591 = vadd.xlane.f32.xlu0 %v2590_v3 }
0x18ef   : > { %2464 = vrot.lane.b32.xlu1 %v8503_v0, %s9440_s26 }
0x18f6   : > { %2655 = vadd.xlane.f32.xlu0 %v2654_v4 }
0x190a   : > { %2665 = vrot.lane.b32.xlu0 %v8503_v0, %s9441_s25 }
0x1919   : > { %2658 = vadd.xlane.f32.xlu1 %v2657_v7 }
0x1938   : > { %v2522_v27 = vpop.xlane.xlu2 %2521 }
0x1940   : > { %v2532_v8 = vpop.permute.xlu2 %2531 }
0x1941   : > { %2544 = vmatpush.bf16.msra.mxu1 %v2532_v8  ;;  %v2455_v9 = vpop.xlane.xlu0 %2454 }
0x1948   : > { %v2599_v25 = vpop.permute.xlu2 %2598 }
0x1949   : > { %v2458_v11 = vpop.xlane.xlu1 %2457 }
0x194a   : > { %7701 = vrcp.f32 %v2458_v11  ;;  %v7290_v11 = vld [vmem:[%s9389_s5 + $0x30] sm:$0xff] }
0x194b   : > { %7703 = vrcp.f32 %v2522_v27 }
0x194c   : > { %7705 = vrcp.f32 %v2455_v9 }
0x1950   : > { %v7702_v15 = vpop.eup %7701 }
0x1951   : > { %v2589_v10 = vpop.xlane.xlu0 %2588  ;;  %v7704_v16 = vpop.eup %7703  ;;  %v2462_v17 = vmul.f32 %v7702_v15, %v7690_v49 }
0x1952   : > { %v7706_v0 = vpop.eup %7705  ;;  %v2528_v21 = vmul.f32 %v7704_v16, %v8536_v38 }
0x1953   : > { %v2461_v22 = vmul.f32 %v7706_v0, %v8540_v45 }
0x1955   : > { %v2463_v26 = vpack.c.bf16 %v2462_v17, %v2461_v22  ;;  %v7297_v22 = vld [vmem:[%s9438_s6 + $0xe8] sm:$0xff] }
0x1959   : > { %v2525_v12 = vpop.xlane.xlu0 %2524 }
0x195a   : > { %7707 = vrcp.f32 %v2525_v12 }
0x1960   : > { %v7708_v20 = vpop.eup %7707 }
0x1961   : > { %v2529_v23 = vmul.f32 %v7708_v20, %v7694_v61  ;;  %v2465_v24 = vpop.permute.xlu1 %2464  ;;  %v2592_v33 = vpop.xlane.xlu0 %2591  ;;  %v7299_v20 = vld [vmem:[%s9438_s6 + $0xf8] sm:$0xff] }
0x1962   : > { %2477 = vmatpush.bf16.msrb.mxu3 %v2465_v24  ;;  %7709 = vrcp.f32 %v2592_v33  ;;  %2871 = vmatpush.bf16.msrb.mxu0 %v7299_v20  ;;  %v7293_v24 = vld [vmem:[%s9438_s6 + $0xc8] sm:$0xff] }
0x1963   : > { %v2530_v32 = vpack.c.bf16 %v2529_v23, %v2528_v21  ;;  %7711 = vrcp.f32 %v2589_v10  ;;  %v7291_v10 = vld [vmem:[%s9389_s5 + $0x38] sm:$0xff]  ;;  %v7298_v21 = vld [vmem:[%s9438_s6 + $0xf0] sm:$0xff] }
0x1964   : > { %v7294_v23 = vld [vmem:[%s9438_s6 + $0xd0] sm:$0xff] }
0x1965   : > { %6319 = vmatmul.msk.bf16.vlgmr.msrb.gmra.mxu3 %vm562_vm3, %v2463_v26  ;;  %6321 = vmatmul.msk.bf16.vlgmr.msra.gmra.mxu1 %vm562_vm3, %v2530_v32 }
0x1966   : > { %2611 = vmatpush.bf16.msra.mxu3 %v2599_v25  ;;  %2872 = vmatpush.bf16.msrb.mxu0 %v7298_v21  ;;  %v7292_v25 = vld [vmem:[%s9438_s6 + $0xc0] sm:$0xff] }
0x1968   : > { %v7710_v34 = vpop.eup %7709 }
0x1969   : > { %v7712_v14 = vpop.eup %7711  ;;  %v2596_v36 = vmul.f32 %v7710_v34, %v7696_v2  ;;  %v2656_v29 = vpop.xlane.xlu0 %2655 }
0x196a   : > { %v2595_v37 = vmul.f32 %v7712_v14, %v8545_v13  ;;  %7713 = vrcp.f32 %v2656_v29  ;;  %2779 = vmatpush.bf16.msrb.mxu3 %v7291_v10  ;;  %2873 = vmatpush.bf16.msrb.mxu0 %v7297_v22 }
0x196c   : > { %v2597_v38 = vpack.c.bf16 %v2596_v36, %v2595_v37 }
0x196e   : > { %2780 = vmatpush.bf16.msrb.mxu3 %v7290_v11 }
0x1970   : > { %v7714_v44 = vpop.eup %7713 }
0x1971   : > { %v2662_v46 = vmul.f32 %v7714_v44, %v7698_v51 }
0x1975   : > { %6323 = vmatmul.msk.bf16.vlgmr.msra.gmra.mxu3 %vm562_vm3, %v2597_v38 }
0x197c   : > { %v2666_v28 = vpop.permute.xlu0 %2665 }
0x197d   : > { %2678 = vmatpush.bf16.msrb.mxu1 %v2666_v28 }
0x198c   : > { %v2659_v39 = vpop.xlane.xlu1 %2658 }
0x198d   : > { %7715 = vrcp.f32 %v2659_v39 }
0x1993   : > { %v7716_v45 = vpop.eup %7715 }
0x1994   : > { %v2663_v18 = vmul.f32 %v7716_v45, %v7700_v6 }
0x1996   : > { %v2664_v19 = vpack.c.bf16 %v2663_v18, %v2662_v46 }
0x1998   : > { %6325 = vmatmul.msk.bf16.vlgmr.msrb.gmra.mxu1 %vm562_vm3, %v2664_v19 }
0x19e2   : > { %v2546_v47 = vpop.f32.mrf.mxu1 }
0x19e8   : > { %v2479_v48 = vpop.f32.mrf.mxu3 }
0x19ea   : > { %v2548_v49 = vpop.f32.mrf.mxu1 }
0x19eb   : > { %v7502_v50 = vpack.i.bf16 %v2548_v49, %v2546_v47 }
0x19ed   : > { %7503 = vrot.lane.b32.xlu2 %v7502_v50, %s9442_s27 }
0x19f0   : > { %v2481_v52 = vpop.f32.mrf.mxu3 }
0x19f8   : > { %v2613_v53 = vpop.f32.mrf.mxu3 }
0x1a00   : > { %v2615_v54 = vpop.f32.mrf.mxu3 }
0x1a01   : > { %v7507_v35 = vpack.i.bf16 %v2615_v54, %v2613_v53  ;;  %v7301_v53 = vld [vmem:[%s9391_s7 + $0x38] sm:$0xff]  ;;  %v7300_v54 = vld [vmem:[%s9391_s7 + $0x30] sm:$0xff] }
0x1a02   : > { %2914 = vmatpush.bf16.msra.mxu1 %v7301_v53 }
0x1a03   : > { %7508 = vrot.lane.b32.xlu2 %v7507_v35, %s9443_s28  ;;  %v7309_v35 = vld [vmem:[%s9386_s2 + $0x1f8] sm:$0xff] }
0x1a04   : > { %2990 = vmatpush.bf16.msra.mxu2 %v7309_v35 }
0x1a06   : > { %2915 = vmatpush.bf16.msra.mxu1 %v7300_v54 }
0x1a15   : > { %v2680_v13 = vpop.f32.mrf.mxu1 }
0x1a1d   : > { %v2682_v57 = vpop.f32.mrf.mxu1 }
0x1a1e   : > { %v7512_v58 = vpack.i.bf16 %v2682_v57, %v2680_v13  ;;  %v7308_v13 = vld [vmem:[%s9386_s2 + $0x1f0] sm:$0xff]  ;;  %v7307_v57 = vld [vmem:[%s9386_s2 + $0x1e8] sm:$0xff] }
0x1a1f   : > { %2991 = vmatpush.bf16.msra.mxu2 %v7308_v13 }
0x1a20   : > { %7513 = vrot.lane.b32.xlu0 %v7512_v58, %s9444_s29  ;;  %v7306_v58 = vld [vmem:[%s9386_s2 + $0x1e0] sm:$0xff] }
0x1a23   : > { %2992 = vmatpush.bf16.msra.mxu2 %v7307_v57 }
0x1a27   : > { %2993 = vmatpush.bf16.msra.mxu2 %v7306_v58 }
0x1a2b   : > { %2994 = vmatpush.bf16.msra.mxu2 %v7305_v59 }
0x1a47   : > { %v7504_v61 = vpop.permute.xlu2 %7503 }
0x1a48   : > { %v7506_v63 = vunpack.i.h.bf16 %v7504_v61  ;;  %v7505_v1 = vunpack.i.l.bf16 %v7504_v61 }
0x1a4a   : > { %v2709_v4 = vsel %vm541_vm2, %v2479_v48, %v7505_v1  ;;  %v2710_v30 = vsel %vm541_vm2, %v2481_v52, %v7506_v63 }
0x1a5d   : > { %v7509_v62 = vpop.permute.xlu2 %7508 }
0x1a5e   : > { %v7511_v2 = vunpack.i.h.bf16 %v7509_v62  ;;  %v7510_v3 = vunpack.i.l.bf16 %v7509_v62 }
0x1a60   : > { %v2712_v6 = vsel %vm562_vm3, %v2710_v30, %v7511_v2  ;;  %v2711_v7 = vsel %vm562_vm3, %v2709_v4, %v7510_v3  ;;  %v7304_v2 = vld [vmem:[%s9386_s2 + $0x1d0] sm:$0xff]  ;;  %v7303_v3 = vld [vmem:[%s9386_s2 + $0x1c8] sm:$0xff] }
0x1a61   : > { %2995 = vmatpush.bf16.msra.mxu2 %v7304_v2 }
0x1a65   : > { %2996 = vmatpush.bf16.msra.mxu2 %v7303_v3 }
0x1a92   : > { %v7514_v51 = vpop.permute.xlu0 %7513 }
0x1a93   : > { %v7516_v31 = vunpack.i.h.bf16 %v7514_v51  ;;  %v7515_v5 = vunpack.i.l.bf16 %v7514_v51  ;;  %v7302_v51 = vld [vmem:[%s9386_s2 + $0x1c0] sm:$0xff] }
0x1a94   : > { %2997 = vmatpush.bf16.msra.mxu2 %v7302_v51 }
0x1a95   : > { %v2714_v27 = vsel %vm835_vm4, %v2712_v6, %v7516_v31  ;;  %v2713_v8 = vsel %vm835_vm4, %v2711_v7, %v7515_v5  ;;  %v7311_v7 = vld [vmem:[%s9387_s3 + $0x78] sm:$0xff] }
0x1a96   : > { %v2715_v9 = vpack.c.bf16 %v2714_v27, %v2713_v8  ;;  %3031 = vmatpush.bf16.msra.mxu3 %v7311_v7  ;;  %v7310_v27 = vld [vmem:[%s9387_s3 + $0x70] sm:$0xff] }
0x1a98   : > { %6338 = vmatmul.msk.bf16.vlgmr.msrb.gmra.mxu2 %vm514_vm1, %v2715_v9 }
0x1a9a   : > { %3032 = vmatpush.bf16.msra.mxu3 %v7310_v27 }
0x1b1b   : > { %v2745_v12 = vpop.f32.mrf.mxu2 }
0x1b1c   : > { %v2750_v16 = vadd.f32 %v2745_v12, %v8496_v41  ;;  %v7296_v41 = vld [vmem:[%s9438_s6 + $0xe0] sm:$0xff] }
0x1b1d   : > { %2874 = vmatpush.bf16.msrb.mxu0 %v7296_v41 }
0x1b23   : > { %v2747_v15 = vpop.f32.mrf.mxu2 }
0x1b24   : > { %v2751_v0 = vadd.f32 %v2747_v15, %v8498_v42  ;;  %v7295_v42 = vld [vmem:[%s9438_s6 + $0xd8] sm:$0xff] }
0x1b25   : > { %2875 = vmatpush.bf16.msrb.mxu0 %v7295_v42 }
0x1b26   : > { %v2752_v17 = vpack.c.bf16 %v2751_v0, %v2750_v16 }
0x1b28   : > { %6351 = vmatmul.msk.bf16.vlgmr.msrb.gmra.mxu3 %vm514_vm1, %v2752_v17 }
0x1b29   : > { %2876 = vmatpush.bf16.msrb.mxu0 %v7294_v23 }
0x1b2d   : > { %2877 = vmatpush.bf16.msrb.mxu0 %v7293_v24 }
0x1b31   : > { %2878 = vmatpush.bf16.msrb.mxu0 %v7292_v25 }
0x1bab   : > { %v2782_v26 = vpop.f32.mrf.mxu3 }
0x1bac   : > { %v2787_v32 = vmul.f32 %v2782_v26, %v2782_v26 }
0x1bae   : > { %v2789_v33 = vmul.f32 %v2787_v32, %v2782_v26 }
0x1bb0   : > { %v2791_v34 = vmul.f32 0.044715, %v2789_v33 }
0x1bb2   : > { %v2793_v14 = vadd.f32 %v2791_v34, %v2782_v26 }
0x1bb3   : > { %v2784_v36 = vpop.f32.mrf.mxu3 }
0x1bb4   : > { %v2795_v37 = vmul.f32 0.7978846, %v2793_v14  ;;  %v2788_v38 = vmul.f32 %v2784_v36, %v2784_v36 }
0x1bb6   : > { %v2790_v29 = vmul.f32 %v2788_v38, %v2784_v36  ;;  %7717 = vtanh.f32 %v2795_v37 }
0x1bb8   : > { %v2792_v28 = vmul.f32 0.044715, %v2790_v29 }
0x1bba   : > { %v2794_v39 = vadd.f32 %v2792_v28, %v2784_v36 }
0x1bbc   : > { %v2796_v44 = vmul.f32 0.7978846, %v2794_v39  ;;  %v7718_v45 = vpop.eup %7717 }
0x1bbd   : > { %v2799_v46 = vadd.f32 1.0, %v7718_v45 }
0x1bbe   : > { %7719 = vtanh.f32 %v2796_v44 }
0x1bbf   : > { %v2801_v19 = vmul.f32 0.5, %v2799_v46 }
0x1bc1   : > { %v2803_v49 = vmul.f32 %v2801_v19, %v2782_v26 }
0x1bc4   : > { %v7720_v18 = vpop.eup %7719 }
0x1bc5   : > { %v2800_v47 = vadd.f32 1.0, %v7720_v18 }
0x1bc7   : > { %v2802_v48 = vmul.f32 0.5, %v2800_v47 }
0x1bc9   : > { %v2804_v50 = vmul.f32 %v2802_v48, %v2784_v36 }
0x1bcb   : > { %v2805_v52 = vpack.c.bf16 %v2804_v50, %v2803_v49 }
0x1bcd   : > { %2879 = vmatmul.bf16.vlgmr.msrb.gmra.mxu0 %v2805_v52 }
0x1c4a   : > { %v2880_v60 = vpop.f32.mrf.mxu0 }
0x1c4b   : > { %v2885_v62 = vadd.f32 %v2880_v60, %v2750_v16 }
0x1c52   : > { %v2882_v61 = vpop.f32.mrf.mxu0 }
0x1c53   : > { %v2886_v63 = vadd.f32 %v2882_v61, %v2751_v0 }
0x1c55   : > { %v2887_v1 = vpack.c.bf16 %v2886_v63, %v2885_v62 }
0x1c57   : > { %6412 = vmatmul.msk.bf16.vlgmr.msra.gmra.mxu1 %vm514_vm1, %v2887_v1 }
0x1cd4   : > { %v2917_v4 = vpop.f32.mrf.mxu1 }
0x1cd5   : > { %v8649_v31 = vadd.f32 %v2917_v4, %v8480_v40 }
0x1cdc   : > { %v2919_v30 = vpop.f32.mrf.mxu1 }
0x1cdd   : > { %v8652_v5 = vadd.f32 %v2919_v30, %v8483_v55 }
0x1cdf   : > { %v2924_v6 = vpack.c.bf16 %v8652_v5, %v8649_v31 }
0x1ce1   : > { %2998 = vmatmul.bf16.vlgmr.msra.gmra.mxu2 %v2924_v6 }
0x1d64   : > { %v8662_v8 = vpop.f32.mrf.mxu2 }
0x1d6c   : > { %v8664_v40 = vpop.f32.mrf.mxu2 }
0x1d6d   : > { %v3004_v55 = vpack.c.bf16 %v8664_v40, %v8662_v8 }
0x1d6f   : > { %6473 = vmatmul.msk.bf16.vlgmr.msra.gmra.mxu3 %vm514_vm1, %v3004_v55 }
0x1df2   : > { %v3034_v9 = vpop.f32.mrf.mxu3 }
0x1df3   : > { %v3039_v10 = vpack.c.bf16 %v3034_v9, %v3034_v9 }
0x1df5   : > { %v3043_v15 = vunpack.c.l.b16 %v3039_v10 }
0x1dfa   : > { %v3036_v11 = vpop.f32.mrf.mxu3 }
0x1dfb   : > { %v3040_v12 = vpack.c.bf16 %v3036_v11, %v3036_v11 }
0x1dfd   : > { %v3044_v16 = vunpack.c.l.b16 %v3040_v12 }
0x1dff   : > { %v8669_v0 = vpack.c.b16 %v3044_v16, %v3043_v15 }
0x1e01   : > { %3178 = vrot.lane.b32.xlu1 %v8669_v0, %s9449_s22  ;;  %3113 = vrot.lane.b32.xlu0 %v8669_v0, %s9451_s12 }
0x1e02   : > { %3046 = vrot.lane.b32.xlu2 %v8669_v0, %s9445_s15 }
0x1e09   : > { %3111 = vrot.lane.b32.xlu0 %v8669_v0, %s9446_s16 }
0x1e0a   : > { %3180 = vrot.lane.b32.xlu2 %v8669_v0, %s9447_s18 }
0x1e11   : > { %3245 = vrot.lane.b32.xlu0 %v8669_v0, %s9448_s21 }
0x1e12   : > { %3247 = vrot.lane.b32.xlu2 %v8669_v0, %s9452_s20 }
0x1e5c   : > { %v3047_v17 = vpop.permute.xlu2 %3046 }
0x1e5d   : > { %v3052_v20 = vsel %vm541_vm2, %v3047_v17, 0 }
0x1e5e   : > { %3061 = vmatpush.bf16.xpose.msrb.mxu1 %v3052_v20 }
0x1e64   : > { %v3181_v21 = vpop.permute.xlu2 %3180 }
0x1e65   : > { %v3186_v22 = vsel %vm541_vm2, %v3181_v21, 0  ;;  %6474 = vmatmul.msk.bf16.vlgmr.msrb.gmra.mxu1 %vm541_vm2, %v8669_v0 }
0x1e66   : > { %3195 = vmatpush.bf16.xpose.msrb.mxu2 %v3186_v22 }
0x1e6c   : > { %v3248_v41 = vpop.permute.xlu2 %3247 }
0x1e6d   : > { %v3253_v25 = vsel %vm541_vm2, %v3248_v41, 0 }
0x1e73   : > { %v3179_v42 = vpop.permute.xlu1 %3178  ;;  %v3114_v23 = vpop.permute.xlu0 %3113 }
0x1e74   : > { %v3119_v24 = vsel %vm541_vm2, %v3114_v23, 0  ;;  %6478 = vmatmul.msk.bf16.vlgmr.msrb.gmra.mxu2 %vm541_vm2, %v3179_v42 }
0x1e75   : > { %3128 = vmatpush.bf16.xpose.msra.mxu0 %v3119_v24 }
0x1e7b   : > { %v3112_v26 = vpop.permute.xlu0 %3111 }
0x1e7c   : > { %6476 = vmatmul.msk.bf16.vlgmr.msra.gmra.mxu0 %vm541_vm2, %v3112_v26 }
0x1e7d   : > { %3262 = vmatpush.bf16.xpose.msrb.mxu0 %v3253_v25 }
0x1e83   : > { %v3246_v32 = vpop.permute.xlu0 %3245 }
0x1e8c   : > { %6480 = vmatmul.msk.bf16.vlgmr.msrb.gmra.mxu0 %vm541_vm2, %v3246_v32 }
0x1ee2   : > { %v3063_v33 = vpop.f32.mrf.mxu1 }
0x1ee3   : > { %v3068_v34 = vsel %vm562_vm3, %v3063_v33, -inf }
0x1ee4   : > { %3069 = vmax.xlane.f32.xlu2 %v3068_v34 }
0x1eea   : > { %v3065_v14 = vpop.f32.mrf.mxu1 }
0x1eeb   : > { %v3071_v36 = vsel %vm562_vm3, %v3065_v14, -inf }
0x1eec   : > { %3072 = vmax.xlane.f32.xlu0 %v3071_v36 }
0x1ef7   : > { %v3197_v37 = vpop.f32.mrf.mxu2 }
0x1ef8   : > { %v3202_v38 = vsel %vm562_vm3, %v3197_v37, -inf }
0x1ef9   : > { %v3130_v29 = vpop.f32.mrf.mxu0  ;;  %3203 = vmax.xlane.f32.xlu2 %v3202_v38 }
0x1efa   : > { %v3135_v28 = vsel %vm562_vm3, %v3130_v29, -inf }
0x1efb   : > { %3136 = vmax.xlane.f32.xlu1 %v3135_v28 }
0x1eff   : > { %v3199_v39 = vpop.f32.mrf.mxu2 }
0x1f00   : > { %v3205_v44 = vsel %vm562_vm3, %v3199_v39, -inf }
0x1f01   : > { %v3132_v45 = vpop.f32.mrf.mxu0  ;;  %3206 = vmax.xlane.f32.xlu0 %v3205_v44 }
0x1f02   : > { %v3138_v46 = vsel %vm562_vm3, %v3132_v45, -inf }
0x1f03   : > { %3139 = vmax.xlane.f32.xlu2 %v3138_v46 }
0x1f09   : > { %v3264_v18 = vpop.f32.mrf.mxu0 }
0x1f0a   : > { %v3269_v19 = vsel %vm562_vm3, %v3264_v18, -inf }
0x1f0b   : > { %3270 = vmax.xlane.f32.xlu2 %v3269_v19 }
0x1f11   : > { %v3266_v47 = vpop.f32.mrf.mxu0 }
0x1f12   : > { %v3272_v48 = vsel %vm562_vm3, %v3266_v47, -inf }
0x1f13   : > { %3273 = vmax.xlane.f32.xlu0 %v3272_v48 }
0x1f23   : > { %3091 = vrot.lane.b32.xlu2 %v8669_v0, %s9440_s26 }
0x1f57   : > { %v3070_v49 = vpop.xlane.xlu2 %3069 }
0x1f58   : > { %v3074_v50 = vsub.f32 %v3063_v33, %v3070_v49 }
0x1f5a   : > { %v3076_v52 = vmul.f32 1.442695, %v3074_v50 }
0x1f5c   : > { %7721 = vpow2.f32 %v3076_v52 }
0x1f5f   : > { %v3073_v53 = vpop.xlane.xlu0 %3072 }
0x1f60   : > { %v3075_v54 = vsub.f32 %v3065_v14, %v3073_v53 }
0x1f62   : > { %v7722_v35 = vpop.eup %7721  ;;  %v3078_v13 = vmul.f32 1.442695, %v3075_v54 }
0x1f63   : > { %v3080_v57 = vsel %vm562_vm3, %v7722_v35, 0.0 }
0x1f64   : > { %7723 = vpow2.f32 %v3078_v13  ;;  %3081 = vadd.xlane.f32.xlu1 %v3080_v57 }
0x1f6a   : > { %v7724_v58 = vpop.eup %7723 }
0x1f6b   : > { %v3083_v59 = vsel %vm562_vm3, %v7724_v58, 0.0 }
0x1f6c   : > { %3084 = vadd.xlane.f32.xlu2 %v3083_v59  ;;  %v3204_v60 = vpop.xlane.xlu2 %3203 }
0x1f6d   : > { %v3208_v61 = vsub.f32 %v3197_v37, %v3204_v60 }
0x1f6e   : > { %v3137_v62 = vpop.xlane.xlu1 %3136 }
0x1f6f   : > { %v3210_v63 = vmul.f32 1.442695, %v3208_v61  ;;  %v3141_v1 = vsub.f32 %v3130_v29, %v3137_v62 }
0x1f71   : > { %7725 = vpow2.f32 %v3210_v63  ;;  %v3143_v2 = vmul.f32 1.442695, %v3141_v1 }
0x1f73   : > { %7727 = vpow2.f32 %v3143_v2 }
0x1f74   : > { %v3207_v3 = vpop.xlane.xlu0 %3206 }
0x1f75   : > { %v3209_v27 = vsub.f32 %v3199_v39, %v3207_v3 }
0x1f76   : > { %v3140_v51 = vpop.xlane.xlu2 %3139 }
0x1f77   : > { %v8706_v4 = vpop.eup %7725  ;;  %v3142_v30 = vsub.f32 %v3132_v45, %v3140_v51  ;;  %v3212_v10 = vmul.f32 1.442695, %v3209_v27 }
0x1f78   : > { %v3214_v6 = vsel %vm562_vm3, %v8706_v4, 0.0 }
0x1f79   : > { %v7728_v7 = vpop.eup %7727  ;;  %v3145_v55 = vmul.f32 1.442695, %v3142_v30  ;;  %3215 = vadd.xlane.f32.xlu1 %v3214_v6 }
0x1f7a   : > { %v3147_v9 = vsel %vm562_vm3, %v7728_v7, 0.0 }
0x1f7b   : > { %7729 = vpow2.f32 %v3145_v55  ;;  %3148 = vadd.xlane.f32.xlu0 %v3147_v9 }
0x1f7c   : > { %7731 = vpow2.f32 %v3212_v10  ;;  %v7313_v10 = vld [vmem:[%s9388_s4 + $0x78] sm:$0xff] }
0x1f7d   : > { %3369 = vmatpush.bf16.msra.mxu2 %v7313_v10 }
0x1f7e   : > { %v3271_v11 = vpop.xlane.xlu2 %3270 }
0x1f7f   : > { %v3275_v15 = vsub.f32 %v3264_v18, %v3271_v11  ;;  %v7312_v11 = vld [vmem:[%s9388_s4 + $0x70] sm:$0xff] }
0x1f81   : > { %v7730_v12 = vpop.eup %7729  ;;  %v3277_v17 = vmul.f32 1.442695, %v3275_v15  ;;  %3370 = vmatpush.bf16.msra.mxu2 %v7312_v11  ;;  %v7314_v15 = vld [vmem:[%s9389_s5 + $0x70] sm:$0xff]  ;;  %v7325_v11 = vld [vmem:[%s9391_s7 + $0x78] sm:$0xff] }
0x1f82   : > { %v3150_v16 = vsel %vm562_vm3, %v7730_v12, 0.0  ;;  %v7732_v21 = vpop.eup %7731 }
0x1f83   : > { %3151 = vadd.xlane.f32.xlu1 %v3150_v16  ;;  %7733 = vpow2.f32 %v3277_v17  ;;  %v3217_v22 = vsel %vm562_vm3, %v7732_v21, 0.0  ;;  %v7333_v16 = vld [vmem:[%s9453_s8 + $0x78] sm:$0xff] }
0x1f84   : > { %3225 = vrot.lane.b32.xlu2 %v8669_v0, %s9439_s24 }
0x1f86   : > { %v3092_v20 = vpop.permute.xlu2 %3091  ;;  %v3274_v23 = vpop.xlane.xlu0 %3273 }
0x1f87   : > { %3104 = vmatpush.bf16.msrb.mxu3 %v3092_v20  ;;  %v3276_v24 = vsub.f32 %v3266_v47, %v3274_v23 }
0x1f89   : > { %v7734_v41 = vpop.eup %7733  ;;  %v3279_v25 = vmul.f32 1.442695, %v3276_v24 }
0x1f8a   : > { %v3281_v42 = vsel %vm562_vm3, %v7734_v41, 0.0 }
0x1f8b   : > { %3218 = vadd.xlane.f32.xlu1 %v3217_v22  ;;  %7735 = vpow2.f32 %v3279_v25 }
0x1f8f   : > { %3158 = vrot.lane.b32.xlu0 %v8669_v0, %s9450_s23 }
0x1f91   : > { %v7736_v26 = vpop.eup %7735 }
0x1f92   : > { %v3284_v32 = vsel %vm562_vm3, %v7736_v26, 0.0 }
0x1f93   : > { %3282 = vadd.xlane.f32.xlu1 %v3281_v42 }
0x1fac   : > { %3292 = vrot.lane.b32.xlu1 %v8669_v0, %s9441_s25 }
0x1fb9   : > { %3285 = vadd.xlane.f32.xlu0 %v3284_v32 }
0x1fd7   : > { %v3082_v33 = vpop.xlane.xlu1 %3081 }
0x1fd8   : > { %7737 = vrcp.f32 %v3082_v33 }
0x1fde   : > { %v7738_v14 = vpop.eup %7737 }
0x1fdf   : > { %v3085_v34 = vpop.xlane.xlu2 %3084  ;;  %v3088_v37 = vmul.f32 %v7738_v14, %v7722_v35 }
0x1fe0   : > { %7739 = vrcp.f32 %v3085_v34 }
0x1fe6   : > { %v7740_v36 = vpop.eup %7739 }
0x1fe7   : > { %v3089_v38 = vmul.f32 %v7740_v36, %v7724_v58  ;;  %v3226_v29 = vpop.permute.xlu2 %3225 }
0x1fe8   : > { %3238 = vmatpush.bf16.msra.mxu3 %v3226_v29  ;;  %v7331_v29 = vld [vmem:[%s9453_s8 + $0x68] sm:$0xff] }
0x1fe9   : > { %v3090_v28 = vpack.c.bf16 %v3089_v38, %v3088_v37  ;;  %v7332_v38 = vld [vmem:[%s9453_s8 + $0x70] sm:$0xff] }
0x1feb   : > { %6475 = vmatmul.msk.bf16.vlgmr.msrb.gmra.mxu3 %vm562_vm3, %v3090_v28  ;;  %v7330_v28 = vld [vmem:[%s9453_s8 + $0x60] sm:$0xff] }
0x1fec   : > { %v3216_v39 = vpop.xlane.xlu1 %3215 }
0x1fee   : > { %v3149_v0 = vpop.xlane.xlu0 %3148 }
0x1ff6   : > { %v3152_v44 = vpop.xlane.xlu1 %3151 }
0x1ff7   : > { %7741 = vrcp.f32 %v3152_v44  ;;  %v7327_v44 = vld [vmem:[%s9453_s8 + $0x48] sm:$0xff] }
0x1ff8   : > { %7743 = vrcp.f32 %v3149_v0  ;;  %v7328_v0 = vld [vmem:[%s9453_s8 + $0x50] sm:$0xff] }
0x1ff9   : > { %7745 = vrcp.f32 %v3216_v39  ;;  %v7329_v39 = vld [vmem:[%s9453_s8 + $0x58] sm:$0xff] }
0x1ffd   : > { %v7742_v45 = vpop.eup %7741 }
0x1ffe   : > { %v7744_v46 = vpop.eup %7743  ;;  %v3219_v18 = vpop.xlane.xlu1 %3218  ;;  %v3156_v19 = vmul.f32 %v7742_v45, %v7730_v12  ;;  %v7315_v12 = vld [vmem:[%s9389_s5 + $0x78] sm:$0xff]  ;;  %v7326_v45 = vld [vmem:[%s9453_s8 + $0x40] sm:$0xff] }
0x1fff   : > { %7747 = vrcp.f32 %v3219_v18  ;;  %v3155_v47 = vmul.f32 %v7744_v46, %v7728_v7  ;;  %v7746_v49 = vpop.eup %7745  ;;  %3406 = vmatpush.bf16.msrb.mxu3 %v7315_v12  ;;  %v7324_v12 = vld [vmem:[%s9391_s7 + $0x70] sm:$0xff] }
0x2000   : > { %v3222_v53 = vmul.f32 %v7746_v49, %v8706_v4  ;;  %v7323_v49 = vld [vmem:[%s9438_s6 + $0x1f8] sm:$0xff] }
0x2001   : > { %v3159_v48 = vpop.permute.xlu0 %3158  ;;  %v3157_v50 = vpack.c.bf16 %v3156_v19, %v3155_v47  ;;  %3498 = vmatpush.bf16.msra.mxu0 %v7323_v49 }
0x2002   : > { %3171 = vmatpush.bf16.msra.mxu1 %v3159_v48 }
0x2003   : > { %3407 = vmatpush.bf16.msrb.mxu3 %v7314_v15  ;;  %v7341_v15 = vld [vmem:[%s9454_s9 + $0x78] sm:$0xff] }
0x2004   : > { %3634 = vmatpush.bf16.msrb.mxu2 %v7341_v15 }
0x2005   : > { %v7748_v52 = vpop.eup %7747  ;;  %6477 = vmatmul.msk.bf16.vlgmr.msra.gmra.mxu1 %vm562_vm3, %v3157_v50  ;;  %v7322_v50 = vld [vmem:[%s9438_s6 + $0x1f0] sm:$0xff] }
0x2006   : > { %v3223_v54 = vmul.f32 %v7748_v52, %v7732_v21  ;;  %v3283_v13 = vpop.xlane.xlu1 %3282  ;;  %3499 = vmatpush.bf16.msra.mxu0 %v7322_v50  ;;  %v7318_v52 = vld [vmem:[%s9438_s6 + $0x1d0] sm:$0xff]  ;;  %v7351_v50 = vld [vmem:[%s9387_s3 + $0x68] sm:$0xff] }
0x2007   : > { %7749 = vrcp.f32 %v3283_v13 }
0x2008   : > { %v3224_v35 = vpack.c.bf16 %v3223_v54, %v3222_v53  ;;  %v7317_v53 = vld [vmem:[%s9438_s6 + $0x1c8] sm:$0xff]  ;;  %v7316_v54 = vld [vmem:[%s9438_s6 + $0x1c0] sm:$0xff] }
0x200a   : > { %6479 = vmatmul.msk.bf16.vlgmr.msra.gmra.mxu3 %vm562_vm3, %v3224_v35 }
0x200b   : > { %3696 = vmatpush.bf16.msra.mxu3 %v7333_v16  ;;  %v7340_v16 = vld [vmem:[%s9454_s9 + $0x70] sm:$0xff] }
0x200c   : > { %3635 = vmatpush.bf16.msrb.mxu2 %v7340_v16 }
0x200d   : > { %v7750_v59 = vpop.eup %7749 }
0x200e   : > { %v3289_v61 = vmul.f32 %v7750_v59, %v7734_v41 }
0x200f   : > { %3697 = vmatpush.bf16.msra.mxu3 %v7332_v38 }
0x2013   : > { %3698 = vmatpush.bf16.msra.mxu3 %v7331_v29 }
0x2017   : > { %3699 = vmatpush.bf16.msra.mxu3 %v7330_v28 }
0x201b   : > { %3700 = vmatpush.bf16.msra.mxu3 %v7329_v39 }
0x201e   : > { %v3293_v57 = vpop.permute.xlu1 %3292 }
0x201f   : > { %3305 = vmatpush.bf16.msrb.mxu1 %v3293_v57  ;;  %3701 = vmatpush.bf16.msra.mxu3 %v7328_v0 }
0x2023   : > { %3702 = vmatpush.bf16.msra.mxu3 %v7327_v44  ;;  %3541 = vmatpush.bf16.msra.mxu1 %v7325_v11  ;;  %v7344_v44 = vld [vmem:[%s9386_s2 + $0x190] sm:$0xff] }
0x2027   : > { %3703 = vmatpush.bf16.msra.mxu3 %v7326_v45  ;;  %3542 = vmatpush.bf16.msra.mxu1 %v7324_v12  ;;  %v7343_v45 = vld [vmem:[%s9386_s2 + $0x188] sm:$0xff] }
0x202c   : > { %v3286_v58 = vpop.xlane.xlu0 %3285 }
0x202d   : > { %7751 = vrcp.f32 %v3286_v58 }
0x2033   : > { %v7752_v60 = vpop.eup %7751 }
0x2034   : > { %v3290_v62 = vmul.f32 %v7752_v60, %v7736_v26 }
0x2036   : > { %v3291_v63 = vpack.c.bf16 %v3290_v62, %v3289_v61 }
0x2038   : > { %6481 = vmatmul.msk.bf16.vlgmr.msrb.gmra.mxu1 %vm562_vm3, %v3291_v63 }
0x206e   : > { %v3106_v1 = vpop.f32.mrf.mxu3 }
0x2076   : > { %v3108_v3 = vpop.f32.mrf.mxu3 }
0x2082   : > { %v3173_v2 = vpop.f32.mrf.mxu1 }
0x208a   : > { %v3175_v51 = vpop.f32.mrf.mxu1 }
0x208b   : > { %v7517_v4 = vpack.i.bf16 %v3175_v51, %v3173_v2 }
0x208d   : > { %7518 = vrot.lane.b32.xlu2 %v7517_v4, %s9442_s27  ;;  %v3240_v30 = vpop.f32.mrf.mxu3 }
0x2095   : > { %v3242_v6 = vpop.f32.mrf.mxu3 }
0x2096   : > { %v7522_v7 = vpack.i.bf16 %v3242_v6, %v3240_v30 }
0x2098   : > { %7523 = vrot.lane.b32.xlu2 %v7522_v7, %s9443_s28 }
0x20b5   : > { %v3307_v27 = vpop.f32.mrf.mxu1 }
0x20bd   : > { %v3309_v55 = vpop.f32.mrf.mxu1 }
0x20be   : > { %v7527_v9 = vpack.i.bf16 %v3309_v55, %v3307_v27 }
0x20c0   : > { %7528 = vrot.lane.b32.xlu2 %v7527_v9, %s9444_s29 }
0x20e7   : > { %v7519_v17 = vpop.permute.xlu2 %7518 }
0x20e8   : > { %v7521_v21 = vunpack.i.h.bf16 %v7519_v17  ;;  %v7520_v22 = vunpack.i.l.bf16 %v7519_v17  ;;  %v7339_v17 = vld [vmem:[%s9454_s9 + $0x68] sm:$0xff] }
0x20e9   : > { %3636 = vmatpush.bf16.msrb.mxu2 %v7339_v17 }
0x20ea   : > { %v3337_v24 = vsel %vm541_vm2, %v3108_v3, %v7521_v21  ;;  %v3336_v25 = vsel %vm541_vm2, %v3106_v1, %v7520_v22  ;;  %v7337_v21 = vld [vmem:[%s9454_s9 + $0x58] sm:$0xff] }
0x20f2   : > { %v7524_v20 = vpop.permute.xlu2 %7523 }
0x20f3   : > { %v7526_v41 = vunpack.i.h.bf16 %v7524_v20  ;;  %v7525_v42 = vunpack.i.l.bf16 %v7524_v20  ;;  %v7338_v20 = vld [vmem:[%s9454_s9 + $0x60] sm:$0xff] }
0x20f4   : > { %3637 = vmatpush.bf16.msrb.mxu2 %v7338_v20 }
0x20f5   : > { %v3338_v33 = vsel %vm562_vm3, %v3336_v25, %v7525_v42  ;;  %v3339_v34 = vsel %vm562_vm3, %v3337_v24, %v7526_v41  ;;  %v7336_v25 = vld [vmem:[%s9454_s9 + $0x50] sm:$0xff] }
0x20f8   : > { %3638 = vmatpush.bf16.msrb.mxu2 %v7337_v21 }
0x20fc   : > { %3639 = vmatpush.bf16.msrb.mxu2 %v7336_v25 }
0x211a   : > { %v7529_v23 = vpop.permute.xlu2 %7528 }
0x211b   : > { %v7531_v26 = vunpack.i.h.bf16 %v7529_v23  ;;  %v7530_v32 = vunpack.i.l.bf16 %v7529_v23 }
0x211d   : > { %v3340_v14 = vsel %vm835_vm4, %v3338_v33, %v7530_v32  ;;  %v3341_v36 = vsel %vm835_vm4, %v3339_v34, %v7531_v26  ;;  %v7335_v26 = vld [vmem:[%s9454_s9 + $0x48] sm:$0xff]  ;;  %v7334_v32 = vld [vmem:[%s9454_s9 + $0x40] sm:$0xff]  ;;  %v7349_v33 = vld [vmem:[%s9386_s2 + $0x1b8] sm:$0xff] }
0x211e   : > { %v3342_v37 = vpack.c.bf16 %v3341_v36, %v3340_v14  ;;  %3640 = vmatpush.bf16.msrb.mxu2 %v7335_v26  ;;  %3776 = vmatpush.bf16.msrb.mxu1 %v7349_v33  ;;  %v7348_v34 = vld [vmem:[%s9386_s2 + $0x1b0] sm:$0xff]  ;;  %v7347_v14 = vld [vmem:[%s9386_s2 + $0x1a8] sm:$0xff]  ;;  %v7346_v36 = vld [vmem:[%s9386_s2 + $0x1a0] sm:$0xff] }
0x2120   : > { %6494 = vmatmul.msk.bf16.vlgmr.msra.gmra.mxu2 %vm514_vm1, %v3342_v37  ;;  %v7345_v37 = vld [vmem:[%s9386_s2 + $0x198] sm:$0xff] }
0x2122   : > { %3641 = vmatpush.bf16.msrb.mxu2 %v7334_v32  ;;  %3777 = vmatpush.bf16.msrb.mxu1 %v7348_v34 }
0x2126   : > { %3778 = vmatpush.bf16.msrb.mxu1 %v7347_v14 }
0x212a   : > { %3779 = vmatpush.bf16.msrb.mxu1 %v7346_v36 }
0x212e   : > { %3780 = vmatpush.bf16.msrb.mxu1 %v7345_v37 }
0x2132   : > { %3781 = vmatpush.bf16.msrb.mxu1 %v7344_v44 }
0x2136   : > { %3782 = vmatpush.bf16.msrb.mxu1 %v7343_v45 }
0x21a3   : > { %v3372_v46 = vpop.f32.mrf.mxu2 }
0x21a4   : > { %v3377_v19 = vadd.f32 %v3372_v46, %v8662_v8  ;;  %v7321_v8 = vld [vmem:[%s9438_s6 + $0x1e8] sm:$0xff]  ;;  %v7342_v46 = vld [vmem:[%s9386_s2 + $0x180] sm:$0xff] }
0x21a5   : > { %3500 = vmatpush.bf16.msra.mxu0 %v7321_v8  ;;  %3783 = vmatpush.bf16.msrb.mxu1 %v7342_v46  ;;  %v7350_v8 = vld [vmem:[%s9387_s3 + $0x60] sm:$0xff] }
0x21ab   : > { %v3374_v18 = vpop.f32.mrf.mxu2 }
0x21ac   : > { %v3378_v47 = vadd.f32 %v3374_v18, %v8664_v40  ;;  %v7320_v40 = vld [vmem:[%s9438_s6 + $0x1e0] sm:$0xff] }
0x21ad   : > { %3501 = vmatpush.bf16.msra.mxu0 %v7320_v40 }
0x21ae   : > { %v3379_v48 = vpack.c.bf16 %v3378_v47, %v3377_v19 }
0x21b0   : > { %6507 = vmatmul.msk.bf16.vlgmr.msrb.gmra.mxu3 %vm514_vm1, %v3379_v48 }
0x21c0   : > { %3704 = vmatmul.bf16.vlgmr.msra.gmra.mxu3 %v8487_v56  ;;  %v7319_v56 = vld [vmem:[%s9438_s6 + $0x1d8] sm:$0xff] }
0x21c1   : > { %3502 = vmatpush.bf16.msra.mxu0 %v7319_v56 }
0x21c5   : > { %3503 = vmatpush.bf16.msra.mxu0 %v7318_v52 }
0x21c9   : > { %3504 = vmatpush.bf16.msra.mxu0 %v7317_v53 }
0x21cd   : > { %3505 = vmatpush.bf16.msra.mxu0 %v7316_v54 }
0x21d1   : > { %3817 = vmatpush.bf16.msrb.mxu0 %v7351_v50 }
0x21d5   : > { %3818 = vmatpush.bf16.msrb.mxu0 %v7350_v8 }
0x2233   : > { %v3409_v35 = vpop.f32.mrf.mxu3 }
0x2234   : > { %v3414_v13 = vmul.f32 %v3409_v35, %v3409_v35 }
0x2236   : > { %v3416_v57 = vmul.f32 %v3414_v13, %v3409_v35 }
0x2238   : > { %v3418_v58 = vmul.f32 0.044715, %v3416_v57 }
0x223a   : > { %v3420_v59 = vadd.f32 %v3418_v58, %v3409_v35 }
0x223b   : > { %v3411_v60 = vpop.f32.mrf.mxu3 }
0x223c   : > { %v3422_v61 = vmul.f32 0.7978846, %v3420_v59  ;;  %v3415_v62 = vmul.f32 %v3411_v60, %v3411_v60 }
0x223e   : > { %v3417_v63 = vmul.f32 %v3415_v62, %v3411_v60  ;;  %7753 = vtanh.f32 %v3422_v61 }
0x2240   : > { %v3419_v1 = vmul.f32 0.044715, %v3417_v63 }
0x2242   : > { %v3421_v2 = vadd.f32 %v3419_v1, %v3411_v60 }
0x2244   : > { %v3423_v3 = vmul.f32 0.7978846, %v3421_v2  ;;  %v7754_v51 = vpop.eup %7753 }
0x2245   : > { %v3426_v4 = vadd.f32 1.0, %v7754_v51 }
0x2246   : > { %7755 = vtanh.f32 %v3423_v3 }
0x2247   : > { %v3428_v6 = vmul.f32 0.5, %v3426_v4 }
0x2249   : > { %v3430_v55 = vmul.f32 %v3428_v6, %v3409_v35 }
0x224c   : > { %v7756_v30 = vpop.eup %7755 }
0x224d   : > { %v3427_v7 = vadd.f32 1.0, %v7756_v30 }
0x224f   : > { %v3429_v27 = vmul.f32 0.5, %v3427_v7 }
0x2251   : > { %v3431_v9 = vmul.f32 %v3429_v27, %v3411_v60 }
0x2253   : > { %v3432_v10 = vpack.c.bf16 %v3431_v9, %v3430_v55 }
0x2255   : > { %3506 = vmatmul.bf16.vlgmr.msra.gmra.mxu0 %v3432_v10 }
0x22d2   : > { %v3507_v22 = vpop.f32.mrf.mxu0 }
0x22d3   : > { %v3512_v42 = vadd.f32 %v3507_v22, %v3377_v19 }
0x22da   : > { %v3509_v41 = vpop.f32.mrf.mxu0 }
0x22db   : > { %v3513_v23 = vadd.f32 %v3509_v41, %v3378_v47 }
0x22dd   : > { %v3514_v24 = vpack.c.bf16 %v3513_v23, %v3512_v42 }
0x22df   : > { %6568 = vmatmul.msk.bf16.vlgmr.msra.gmra.mxu1 %vm514_vm1, %v3514_v24 }
0x235c   : > { %v3544_v38 = vpop.f32.mrf.mxu1 }
0x235d   : > { %v3549_v28 = vadd.f32 %v3544_v38, %v8649_v31  ;;  %v3705_v31 = vpop.f32.mrf.mxu3 }
0x2364   : > { %v3546_v29 = vpop.f32.mrf.mxu1 }
0x2365   : > { %v3550_v39 = vadd.f32 %v3546_v29, %v8652_v5  ;;  %v3707_v5 = vpop.f32.mrf.mxu3 }
0x2367   : > { %v3568_v0 = vpack.c.bf16 %v3550_v39, %v3549_v28 }
0x2369   : > { %3642 = vmatmul.bf16.vlgmr.msrb.gmra.mxu2 %v3568_v0 }
0x23ec   : > { %v3643_v18 = vpop.f32.mrf.mxu2 }
0x23ed   : > { %v8857_v47 = vadd.f32 %v3705_v31, %v3643_v18 }
0x23f4   : > { %v3645_v19 = vpop.f32.mrf.mxu2 }
0x23f5   : > { %v8859_v48 = vadd.f32 %v3707_v5, %v3645_v19 }
0x23f7   : > { %v3710_v49 = vpack.c.bf16 %v8859_v48, %v8857_v47 }
0x23f9   : > { %3784 = vmatmul.bf16.vlgmr.msrb.gmra.mxu1 %v3710_v49 }
0x2476   : > { %v8869_v40 = vpop.f32.mrf.mxu1 }
0x247e   : > { %v8871_v56 = vpop.f32.mrf.mxu1 }
0x247f   : > { %v3790_v52 = vpack.c.bf16 %v8871_v56, %v8869_v40 }
0x2481   : > { %6725 = vmatmul.msk.bf16.vlgmr.msrb.gmra.mxu0 %vm514_vm1, %v3790_v52 }
0x24fe   : > { %v3820_v53 = vpop.f32.mrf.mxu0 }
0x24ff   : > { %v3825_v54 = vpack.c.bf16 %v3820_v53, %v3820_v53 }
0x2501   : > { %v3829_v57 = vunpack.c.l.b16 %v3825_v54 }
0x2506   : > { %v3822_v35 = vpop.f32.mrf.mxu0 }
0x2507   : > { %v3826_v13 = vpack.c.bf16 %v3822_v35, %v3822_v35 }
0x2509   : > { %v3830_v58 = vunpack.c.l.b16 %v3826_v13 }
0x250b   : > { %v8876_v59 = vpack.c.b16 %v3830_v58, %v3829_v57 }
0x250d   : > { %3897 = vrot.lane.b32.xlu0 %v8876_v59, %s9446_s16  ;;  %3899 = vrot.lane.b32.xlu2 %v8876_v59, %s9451_s12 }
0x250e   : > { %3832 = vrot.lane.b32.xlu1 %v8876_v59, %s9445_s15 }
0x2515   : > { %3964 = vrot.lane.b32.xlu2 %v8876_v59, %s9449_s22 }
0x2516   : > { %3966 = vrot.lane.b32.xlu1 %v8876_v59, %s9447_s18 }
0x251d   : > { %4031 = vrot.lane.b32.xlu2 %v8876_v59, %s9448_s21 }
0x251e   : > { %4033 = vrot.lane.b32.xlu1 %v8876_v59, %s9452_s20 }
0x2567   : > { %v3900_v60 = vpop.permute.xlu2 %3899 }
0x2568   : > { %v3905_v61 = vsel %vm541_vm2, %v3900_v60, 0 }
0x2569   : > { %3914 = vmatpush.bf16.xpose.msra.mxu0 %v3905_v61 }
0x256f   : > { %v3965_v51 = vpop.permute.xlu2 %3964 }
0x2577   : > { %v4032_v6 = vpop.permute.xlu2 %4031 }
0x257f   : > { %v3898_v62 = vpop.permute.xlu0 %3897 }
0x2580   : > { %v3833_v63 = vpop.permute.xlu1 %3832  ;;  %6728 = vmatmul.msk.bf16.vlgmr.msra.gmra.mxu0 %vm541_vm2, %v3898_v62 }
0x2581   : > { %v3838_v1 = vsel %vm541_vm2, %v3833_v63, 0 }
0x2582   : > { %3847 = vmatpush.bf16.xpose.msra.mxu2 %v3838_v1 }
0x2588   : > { %v3967_v2 = vpop.permute.xlu1 %3966 }
0x2589   : > { %v3972_v3 = vsel %vm541_vm2, %v3967_v2, 0  ;;  %6726 = vmatmul.msk.bf16.vlgmr.msra.gmra.mxu2 %vm541_vm2, %v8876_v59 }
0x258a   : > { %3981 = vmatpush.bf16.xpose.msrb.mxu2 %v3972_v3 }
0x2590   : > { %v4034_v4 = vpop.permute.xlu1 %4033 }
0x2591   : > { %v4039_v30 = vsel %vm541_vm2, %v4034_v4, 0 }
0x2592   : > { %4048 = vmatpush.bf16.xpose.msrb.mxu0 %v4039_v30 }
0x2599   : > { %6730 = vmatmul.msk.bf16.vlgmr.msrb.gmra.mxu2 %vm541_vm2, %v3965_v51  ;;  %6732 = vmatmul.msk.bf16.vlgmr.msrb.gmra.mxu0 %vm541_vm2, %v4032_v6 }
0x25fd   : > { %v3916_v7 = vpop.f32.mrf.mxu0 }
0x25fe   : > { %v3921_v27 = vsel %vm562_vm3, %v3916_v7, -inf }
0x25ff   : > { %3922 = vmax.xlane.f32.xlu0 %v3921_v27 }
0x2605   : > { %v3918_v10 = vpop.f32.mrf.mxu0 }
0x2606   : > { %v3924_v12 = vsel %vm562_vm3, %v3918_v10, -inf }
0x260c   : > { %v3849_v55 = vpop.f32.mrf.mxu2 }
0x260d   : > { %v3854_v9 = vsel %vm562_vm3, %v3849_v55, -inf }
0x260e   : > { %3855 = vmax.xlane.f32.xlu1 %v3854_v9 }
0x2614   : > { %v3851_v11 = vpop.f32.mrf.mxu2 }
0x2615   : > { %v3857_v15 = vsel %vm562_vm3, %v3851_v11, -inf }
0x2616   : > { %3925 = vmax.xlane.f32.xlu1 %v3924_v12  ;;  %3858 = vmax.xlane.f32.xlu2 %v3857_v15  ;;  %v4050_v16 = vpop.f32.mrf.mxu0 }
0x2617   : > { %v4055_v21 = vsel %vm562_vm3, %v4050_v16, -inf }
0x261c   : > { %v3983_v17 = vpop.f32.mrf.mxu2 }
0x261d   : > { %v3988_v20 = vsel %vm562_vm3, %v3983_v17, -inf }
0x261e   : > { %3989 = vmax.xlane.f32.xlu2 %v3988_v20  ;;  %4056 = vmax.xlane.f32.xlu1 %v4055_v21  ;;  %v4052_v22 = vpop.f32.mrf.mxu0 }
0x261f   : > { %v4058_v23 = vsel %vm562_vm3, %v4052_v22, -inf }
0x2624   : > { %v3985_v41 = vpop.f32.mrf.mxu2 }
0x2625   : > { %v3991_v42 = vsel %vm562_vm3, %v3985_v41, -inf }
0x2626   : > { %3992 = vmax.xlane.f32.xlu0 %v3991_v42  ;;  %4059 = vmax.xlane.f32.xlu2 %v4058_v23 }
0x2672   : > { %v3923_v24 = vpop.xlane.xlu0 %3922 }
0x2673   : > { %v3927_v25 = vsub.f32 %v3916_v7, %v3923_v24 }
0x2675   : > { %v3929_v26 = vmul.f32 1.442695, %v3927_v25 }
0x2677   : > { %7757 = vpow2.f32 %v3929_v26 }
0x267d   : > { %v8909_v32 = vpop.eup %7757 }
0x267e   : > { %v3933_v33 = vsel %vm562_vm3, %v8909_v32, 0.0 }
0x267f   : > { %3934 = vadd.xlane.f32.xlu2 %v3933_v33 }
0x2681   : > { %v3856_v34 = vpop.xlane.xlu1 %3855 }
0x2682   : > { %v3860_v14 = vsub.f32 %v3849_v55, %v3856_v34 }
0x2684   : > { %v3862_v36 = vmul.f32 1.442695, %v3860_v14 }
0x2686   : > { %7759 = vpow2.f32 %v3862_v36 }
0x2689   : > { %v3859_v37 = vpop.xlane.xlu2 %3858  ;;  %v3926_v38 = vpop.xlane.xlu1 %3925 }
0x268a   : > { %v3861_v29 = vsub.f32 %v3851_v11, %v3859_v37  ;;  %v3928_v28 = vsub.f32 %v3918_v10, %v3926_v38 }
0x268c   : > { %v8913_v39 = vpop.eup %7759  ;;  %v3864_v0 = vmul.f32 1.442695, %v3861_v29  ;;  %v3931_v44 = vmul.f32 1.442695, %v3928_v28 }
0x268d   : > { %v3866_v45 = vsel %vm562_vm3, %v8913_v39, 0.0 }
0x268e   : > { %7761 = vpow2.f32 %v3864_v0  ;;  %3867 = vadd.xlane.f32.xlu0 %v3866_v45 }
0x268f   : > { %7763 = vpow2.f32 %v3931_v44 }
0x2691   : > { %v4057_v46 = vpop.xlane.xlu1 %4056  ;;  %v3990_v31 = vpop.xlane.xlu2 %3989 }
0x2692   : > { %v4061_v18 = vsub.f32 %v4050_v16, %v4057_v46  ;;  %v3994_v50 = vsub.f32 %v3983_v17, %v3990_v31 }
0x2694   : > { %v7762_v5 = vpop.eup %7761  ;;  %v4063_v19 = vmul.f32 1.442695, %v4061_v18  ;;  %v3996_v53 = vmul.f32 1.442695, %v3994_v50 }
0x2695   : > { %v7764_v49 = vpop.eup %7763  ;;  %v3869_v8 = vsel %vm562_vm3, %v7762_v5, 0.0 }
0x2696   : > { %3870 = vadd.xlane.f32.xlu1 %v3869_v8  ;;  %v3936_v52 = vsel %vm562_vm3, %v7764_v49, 0.0  ;;  %7765 = vpow2.f32 %v4063_v19 }
0x2697   : > { %3937 = vadd.xlane.f32.xlu0 %v3936_v52  ;;  %3944 = vrot.lane.b32.xlu2 %v8876_v59, %s9450_s23  ;;  %7767 = vpow2.f32 %v3996_v53  ;;  %v7353_v52 = vld [vmem:[%s9388_s4 + $0x68] sm:$0xff]  ;;  %v7352_v53 = vld [vmem:[%s9388_s4 + $0x60] sm:$0xff] }
0x2698   : > { %4155 = vmatpush.bf16.msra.mxu2 %v7353_v52  ;;  %v7365_v52 = vld [vmem:[%s9391_s7 + $0x68] sm:$0xff] }
0x2699   : > { %v3993_v54 = vpop.xlane.xlu0 %3992  ;;  %v4060_v1 = vpop.xlane.xlu2 %4059 }
0x269a   : > { %v3995_v13 = vsub.f32 %v3985_v41, %v3993_v54  ;;  %v4062_v2 = vsub.f32 %v4052_v22, %v4060_v1  ;;  %v7355_v54 = vld [vmem:[%s9389_s5 + $0x68] sm:$0xff] }
0x269c   : > { %v8921_v35 = vpop.eup %7765  ;;  %v3998_v58 = vmul.f32 1.442695, %v3995_v13  ;;  %v4065_v3 = vmul.f32 1.442695, %v4062_v2  ;;  %4156 = vmatpush.bf16.msra.mxu2 %v7352_v53  ;;  %v7373_v13 = vld [vmem:[%s9453_s8 + $0x38] sm:$0xff]  ;;  %v7364_v53 = vld [vmem:[%s9391_s7 + $0x60] sm:$0xff] }
0x269d   : > { %v4067_v57 = vsel %vm562_vm3, %v8921_v35, 0.0  ;;  %v7768_v60 = vpop.eup %7767 }
0x269e   : > { %7769 = vpow2.f32 %v3998_v58  ;;  %v4000_v61 = vsel %vm562_vm3, %v7768_v60, 0.0 }
0x269f   : > { %4068 = vadd.xlane.f32.xlu0 %v4067_v57  ;;  %4011 = vrot.lane.b32.xlu2 %v8876_v59, %s9439_s24  ;;  %7771 = vpow2.f32 %v4065_v3 }
0x26a4   : > { %v7770_v62 = vpop.eup %7769 }
0x26a5   : > { %v4003_v63 = vsel %vm562_vm3, %v7770_v62, 0.0  ;;  %v7772_v51 = vpop.eup %7771 }
0x26a6   : > { %v4070_v4 = vsel %vm562_vm3, %v7772_v51, 0.0 }
0x26a7   : > { %4001 = vadd.xlane.f32.xlu0 %v4000_v61 }
0x26af   : > { %4004 = vadd.xlane.f32.xlu0 %v4003_v63  ;;  %3877 = vrot.lane.b32.xlu1 %v8876_v59, %s9440_s26 }
0x26c3   : > { %4078 = vrot.lane.b32.xlu0 %v8876_v59, %s9441_s25 }
0x26d9   : > { %4071 = vadd.xlane.f32.xlu1 %v4070_v4 }
0x26f2   : > { %v3935_v30 = vpop.xlane.xlu2 %3934 }
0x26f3   : > { %7773 = vrcp.f32 %v3935_v30 }
0x26f9   : > { %v7774_v55 = vpop.eup %7773 }
0x26fa   : > { %v3945_v6 = vpop.permute.xlu2 %3944  ;;  %v3941_v10 = vmul.f32 %v7774_v55, %v8909_v32 }
0x26fb   : > { %3957 = vmatpush.bf16.msra.mxu1 %v3945_v6 }
0x2701   : > { %v3868_v7 = vpop.xlane.xlu0 %3867 }
0x2702   : > { %v4012_v42 = vpop.permute.xlu2 %4011 }
0x2709   : > { %v3871_v12 = vpop.xlane.xlu1 %3870 }
0x270a   : > { %v3938_v27 = vpop.xlane.xlu0 %3937 }
0x270b   : > { %7775 = vrcp.f32 %v3938_v27 }
0x270c   : > { %7777 = vrcp.f32 %v3871_v12  ;;  %v7368_v12 = vld [vmem:[%s9453_s8 + $0x10] sm:$0xff] }
0x270d   : > { %7779 = vrcp.f32 %v3868_v7 }
0x2711   : > { %v7776_v9 = vpop.eup %7775 }
0x2712   : > { %v3942_v59 = vmul.f32 %v7776_v9, %v7764_v49  ;;  %v4069_v11 = vpop.xlane.xlu0 %4068  ;;  %v7778_v17 = vpop.eup %7777  ;;  %v7372_v9 = vld [vmem:[%s9453_s8 + $0x30] sm:$0xff] }
0x2713   : > { %v7780_v20 = vpop.eup %7779  ;;  %v3875_v21 = vmul.f32 %v7778_v17, %v7762_v5 }
0x2714   : > { %v3943_v15 = vpack.c.bf16 %v3942_v59, %v3941_v10  ;;  %v3874_v22 = vmul.f32 %v7780_v20, %v8913_v39  ;;  %v7371_v10 = vld [vmem:[%s9453_s8 + $0x28] sm:$0xff]  ;;  %v7370_v59 = vld [vmem:[%s9453_s8 + $0x20] sm:$0xff] }
0x2716   : > { %6729 = vmatmul.msk.bf16.vlgmr.msra.gmra.mxu1 %vm562_vm3, %v3943_v15  ;;  %v3876_v23 = vpack.c.bf16 %v3875_v21, %v3874_v22  ;;  %v7367_v15 = vld [vmem:[%s9453_s8 + $0x8] sm:$0xff] }
0x271a   : > { %v4002_v16 = vpop.xlane.xlu0 %4001 }
0x2721   : > { %v3878_v41 = vpop.permute.xlu1 %3877 }
0x2722   : > { %3890 = vmatpush.bf16.msrb.mxu3 %v3878_v41  ;;  %v4005_v24 = vpop.xlane.xlu0 %4004 }
0x2723   : > { %7781 = vrcp.f32 %v4005_v24  ;;  %v7358_v24 = vld [vmem:[%s9455_s1 + $0x190] sm:$0xff] }
0x2724   : > { %7783 = vrcp.f32 %v4002_v16  ;;  %v7366_v16 = vld [vmem:[%s9453_s8] sm:$0xff] }
0x2725   : > { %6727 = vmatmul.msk.bf16.vlgmr.msrb.gmra.mxu3 %vm562_vm3, %v3876_v23  ;;  %7785 = vrcp.f32 %v4069_v11  ;;  %v7369_v11 = vld [vmem:[%s9453_s8 + $0x18] sm:$0xff]  ;;  %v7362_v23 = vld [vmem:[%s9455_s1 + $0x1b0] sm:$0xff] }
0x2726   : > { %4024 = vmatpush.bf16.msra.mxu3 %v4012_v42  ;;  %v7363_v42 = vld [vmem:[%s9455_s1 + $0x1b8] sm:$0xff] }
0x2727   : > { %4284 = vmatpush.bf16.msra.mxu0 %v7363_v42  ;;  %v7391_v42 = vld [vmem:[%s9387_s3 + $0x58] sm:$0xff] }
0x2729   : > { %v7782_v25 = vpop.eup %7781 }
0x272a   : > { %v7784_v26 = vpop.eup %7783  ;;  %v4009_v32 = vmul.f32 %v7782_v25, %v7770_v62  ;;  %4192 = vmatpush.bf16.msrb.mxu3 %v7355_v54  ;;  %v7357_v25 = vld [vmem:[%s9455_s1 + $0x188] sm:$0xff]  ;;  %v7381_v54 = vld [vmem:[%s9454_s9 + $0x38] sm:$0xff] }
0x272b   : > { %v4008_v33 = vmul.f32 %v7784_v26, %v7768_v60  ;;  %v7786_v37 = vpop.eup %7785  ;;  %4285 = vmatpush.bf16.msra.mxu0 %v7362_v23  ;;  %v7356_v26 = vld [vmem:[%s9455_s1 + $0x180] sm:$0xff]  ;;  %4418 = vmatpush.bf16.msrb.mxu2 %v7381_v54  ;;  %v7390_v23 = vld [vmem:[%s9387_s3 + $0x50] sm:$0xff] }
0x272c   : > { %v4075_v29 = vmul.f32 %v7786_v37, %v8921_v35  ;;  %v7354_v35 = vld [vmem:[%s9389_s5 + $0x60] sm:$0xff] }
0x272d   : > { %v4010_v34 = vpack.c.bf16 %v4009_v32, %v4008_v33 }
0x272e   : > { %4193 = vmatpush.bf16.msrb.mxu3 %v7354_v35  ;;  %v7380_v35 = vld [vmem:[%s9454_s9 + $0x30] sm:$0xff] }
0x272f   : > { %4419 = vmatpush.bf16.msrb.mxu2 %v7380_v35 }
0x2735   : > { %v4079_v14 = vpop.permute.xlu0 %4078  ;;  %6731 = vmatmul.msk.bf16.vlgmr.msra.gmra.mxu3 %vm562_vm3, %v4010_v34 }
0x2736   : > { %4091 = vmatpush.bf16.msrb.mxu1 %v4079_v14  ;;  %4480 = vmatpush.bf16.msra.mxu3 %v7373_v13  ;;  %v7379_v13 = vld [vmem:[%s9454_s9 + $0x28] sm:$0xff] }
0x2737   : > { %4420 = vmatpush.bf16.msrb.mxu2 %v7379_v13 }
0x273a   : > { %4481 = vmatpush.bf16.msra.mxu3 %v7372_v9  ;;  %4327 = vmatpush.bf16.msra.mxu1 %v7365_v52 }
0x273e   : > { %4482 = vmatpush.bf16.msra.mxu3 %v7371_v10  ;;  %4328 = vmatpush.bf16.msra.mxu1 %v7364_v53 }
0x2742   : > { %4483 = vmatpush.bf16.msra.mxu3 %v7370_v59 }
0x2746   : > { %4484 = vmatpush.bf16.msra.mxu3 %v7369_v11 }
0x274a   : > { %4485 = vmatpush.bf16.msra.mxu3 %v7368_v12  ;;  %v7384_v12 = vld [vmem:[%s9386_s2 + $0x150] sm:$0xff] }
0x274c   : > { %v4072_v36 = vpop.xlane.xlu1 %4071 }
0x274d   : > { %7787 = vrcp.f32 %v4072_v36 }
0x274e   : > { %4486 = vmatpush.bf16.msra.mxu3 %v7367_v15  ;;  %v7383_v15 = vld [vmem:[%s9386_s2 + $0x148] sm:$0xff] }
0x2752   : > { %4487 = vmatpush.bf16.msra.mxu3 %v7366_v16  ;;  %v7382_v16 = vld [vmem:[%s9386_s2 + $0x140] sm:$0xff] }
0x2753   : > { %v7788_v38 = vpop.eup %7787 }
0x2754   : > { %v4076_v28 = vmul.f32 %v7788_v38, %v7772_v51 }
0x2756   : > { %v4077_v39 = vpack.c.bf16 %v4076_v28, %v4075_v29 }
0x2758   : > { %6733 = vmatmul.msk.bf16.vlgmr.msrb.gmra.mxu1 %vm562_vm3, %v4077_v39 }
0x2793   : > { %v3959_v0 = vpop.f32.mrf.mxu1 }
0x279b   : > { %v3961_v44 = vpop.f32.mrf.mxu1 }
0x279c   : > { %v7532_v45 = vpack.i.bf16 %v3961_v44, %v3959_v0 }
0x279e   : > { %7533 = vrot.lane.b32.xlu2 %v7532_v45, %s9442_s27 }
0x27a8   : > { %v3892_v46 = vpop.f32.mrf.mxu3 }
0x27b0   : > { %v3894_v31 = vpop.f32.mrf.mxu3 }
0x27b8   : > { %v4026_v18 = vpop.f32.mrf.mxu3 }
0x27c0   : > { %v4028_v5 = vpop.f32.mrf.mxu3 }
0x27c1   : > { %v7537_v19 = vpack.i.bf16 %v4028_v5, %v4026_v18 }
0x27c3   : > { %7538 = vrot.lane.b32.xlu2 %v7537_v19, %s9443_s28 }
0x27d5   : > { %v4093_v49 = vpop.f32.mrf.mxu1 }
0x27dd   : > { %v4095_v50 = vpop.f32.mrf.mxu1 }
0x27de   : > { %v7542_v8 = vpack.i.bf16 %v4095_v50, %v4093_v49 }
0x27e0   : > { %7543 = vrot.lane.b32.xlu0 %v7542_v8, %s9444_s29 }
0x27f8   : > { %v7534_v57 = vpop.permute.xlu2 %7533 }
0x27f9   : > { %v7536_v60 = vunpack.i.h.bf16 %v7534_v57  ;;  %v7535_v61 = vunpack.i.l.bf16 %v7534_v57  ;;  %v7378_v57 = vld [vmem:[%s9454_s9 + $0x20] sm:$0xff] }
0x27fa   : > { %4421 = vmatpush.bf16.msrb.mxu2 %v7378_v57 }
0x27fb   : > { %v4122_v2 = vsel %vm541_vm2, %v3892_v46, %v7535_v61  ;;  %v4123_v3 = vsel %vm541_vm2, %v3894_v31, %v7536_v60 }
0x281d   : > { %v7539_v58 = vpop.permute.xlu2 %7538 }
0x281e   : > { %v7541_v62 = vunpack.i.h.bf16 %v7539_v58  ;;  %v7540_v63 = vunpack.i.l.bf16 %v7539_v58  ;;  %v7377_v58 = vld [vmem:[%s9454_s9 + $0x18] sm:$0xff] }
0x281f   : > { %4422 = vmatpush.bf16.msrb.mxu2 %v7377_v58 }
0x2820   : > { %v4125_v30 = vsel %vm562_vm3, %v4123_v3, %v7541_v62  ;;  %v4124_v6 = vsel %vm562_vm3, %v4122_v2, %v7540_v63  ;;  %v7376_v2 = vld [vmem:[%s9454_s9 + $0x10] sm:$0xff]  ;;  %v7375_v3 = vld [vmem:[%s9454_s9 + $0x8] sm:$0xff] }
0x2823   : > { %4423 = vmatpush.bf16.msrb.mxu2 %v7376_v2 }
0x2827   : > { %4424 = vmatpush.bf16.msrb.mxu2 %v7375_v3 }
0x2852   : > { %v7544_v1 = vpop.permute.xlu0 %7543 }
0x2853   : > { %v7546_v51 = vunpack.i.h.bf16 %v7544_v1  ;;  %v7545_v4 = vunpack.i.l.bf16 %v7544_v1 }
0x2855   : > { %v4127_v7 = vsel %vm835_vm4, %v4125_v30, %v7546_v51  ;;  %v4126_v27 = vsel %vm835_vm4, %v4124_v6, %v7545_v4  ;;  %v7374_v51 = vld [vmem:[%s9454_s9] sm:$0xff]  ;;  %v7389_v4 = vld [vmem:[%s9386_s2 + $0x178] sm:$0xff]  ;;  %v7388_v30 = vld [vmem:[%s9386_s2 + $0x170] sm:$0xff] }
0x2856   : > { %v4128_v55 = vpack.c.bf16 %v4127_v7, %v4126_v27  ;;  %4425 = vmatpush.bf16.msrb.mxu2 %v7374_v51  ;;  %4560 = vmatpush.bf16.msrb.mxu1 %v7389_v4  ;;  %v7387_v6 = vld [vmem:[%s9386_s2 + $0x168] sm:$0xff]  ;;  %v7386_v7 = vld [vmem:[%s9386_s2 + $0x160] sm:$0xff]  ;;  %v7385_v27 = vld [vmem:[%s9386_s2 + $0x158] sm:$0xff] }
0x2858   : > { %6746 = vmatmul.msk.bf16.vlgmr.msra.gmra.mxu2 %vm514_vm1, %v4128_v55 }
0x285a   : > { %4561 = vmatpush.bf16.msrb.mxu1 %v7388_v30 }
0x285e   : > { %4562 = vmatpush.bf16.msrb.mxu1 %v7387_v6 }
0x2862   : > { %4563 = vmatpush.bf16.msrb.mxu1 %v7386_v7 }
0x2866   : > { %4564 = vmatpush.bf16.msrb.mxu1 %v7385_v27 }
0x286a   : > { %4565 = vmatpush.bf16.msrb.mxu1 %v7384_v12 }
0x286e   : > { %4566 = vmatpush.bf16.msrb.mxu1 %v7383_v15 }
0x2872   : > { %4567 = vmatpush.bf16.msrb.mxu1 %v7382_v16 }
0x28db   : > { %v4158_v17 = vpop.f32.mrf.mxu2 }
0x28dc   : > { %v4163_v21 = vadd.f32 %v4158_v17, %v8869_v40  ;;  %v7361_v40 = vld [vmem:[%s9455_s1 + $0x1a8] sm:$0xff] }
0x28dd   : > { %4286 = vmatpush.bf16.msra.mxu0 %v7361_v40 }
0x28e3   : > { %v4160_v20 = vpop.f32.mrf.mxu2 }
0x28e4   : > { %v4164_v22 = vadd.f32 %v4160_v20, %v8871_v56  ;;  %v7360_v56 = vld [vmem:[%s9455_s1 + $0x1a0] sm:$0xff] }
0x28e5   : > { %4287 = vmatpush.bf16.msra.mxu0 %v7360_v56 }
0x28e6   : > { %v4165_v41 = vpack.c.bf16 %v4164_v22, %v4163_v21 }
0x28e8   : > { %6759 = vmatmul.msk.bf16.vlgmr.msrb.gmra.mxu3 %vm514_vm1, %v4165_v41 }
0x28f8   : > { %4488 = vmatmul.bf16.vlgmr.msra.gmra.mxu3 %v8326_v43  ;;  %v7359_v43 = vld [vmem:[%s9455_s1 + $0x198] sm:$0xff] }
0x28f9   : > { %4288 = vmatpush.bf16.msra.mxu0 %v7359_v43 }
0x28fd   : > { %4289 = vmatpush.bf16.msra.mxu0 %v7358_v24 }
0x2901   : > { %4290 = vmatpush.bf16.msra.mxu0 %v7357_v25 }
0x2905   : > { %4291 = vmatpush.bf16.msra.mxu0 %v7356_v26 }
0x2909   : > { %4601 = vmatpush.bf16.msrb.mxu0 %v7391_v42 }
0x290d   : > { %4602 = vmatpush.bf16.msrb.mxu0 %v7390_v23 }
0x296b   : > { %v4195_v32 = vpop.f32.mrf.mxu3 }
0x296c   : > { %v4200_v33 = vmul.f32 %v4195_v32, %v4195_v32 }
0x296e   : > { %v4202_v34 = vmul.f32 %v4200_v33, %v4195_v32 }
0x2970   : > { %v4204_v14 = vmul.f32 0.044715, %v4202_v34 }
0x2972   : > { %v4206_v36 = vadd.f32 %v4204_v14, %v4195_v32 }
0x2973   : > { %v4197_v37 = vpop.f32.mrf.mxu3 }
0x2974   : > { %v4208_v38 = vmul.f32 0.7978846, %v4206_v36  ;;  %v4201_v29 = vmul.f32 %v4197_v37, %v4197_v37 }
0x2976   : > { %v4203_v28 = vmul.f32 %v4201_v29, %v4197_v37  ;;  %7789 = vtanh.f32 %v4208_v38 }
0x2978   : > { %v4205_v39 = vmul.f32 0.044715, %v4203_v28 }
0x297a   : > { %v4207_v0 = vadd.f32 %v4205_v39, %v4197_v37 }
0x297c   : > { %v4209_v44 = vmul.f32 0.7978846, %v4207_v0  ;;  %v7790_v45 = vpop.eup %7789 }
0x297d   : > { %v4212_v46 = vadd.f32 1.0, %v7790_v45 }
0x297e   : > { %7791 = vtanh.f32 %v4209_v44 }
0x297f   : > { %v4214_v18 = vmul.f32 0.5, %v4212_v46 }
0x2981   : > { %v4216_v49 = vmul.f32 %v4214_v18, %v4195_v32 }
0x2984   : > { %v7792_v31 = vpop.eup %7791 }
0x2985   : > { %v4213_v5 = vadd.f32 1.0, %v7792_v31 }
0x2987   : > { %v4215_v19 = vmul.f32 0.5, %v4213_v5 }
0x2989   : > { %v4217_v50 = vmul.f32 %v4215_v19, %v4197_v37 }
0x298b   : > { %v4218_v8 = vpack.c.bf16 %v4217_v50, %v4216_v49 }
0x298d   : > { %4292 = vmatmul.bf16.vlgmr.msra.gmra.mxu0 %v4218_v8 }
0x2a0a   : > { %v4293_v60 = vpop.f32.mrf.mxu0 }
0x2a0b   : > { %v4298_v62 = vadd.f32 %v4293_v60, %v4163_v21 }
0x2a12   : > { %v4295_v61 = vpop.f32.mrf.mxu0 }
0x2a13   : > { %v4299_v63 = vadd.f32 %v4295_v61, %v4164_v22 }
0x2a15   : > { %v4300_v1 = vpack.c.bf16 %v4299_v63, %v4298_v62 }
0x2a17   : > { %6820 = vmatmul.msk.bf16.vlgmr.msra.gmra.mxu1 %vm514_vm1, %v4300_v1 }
0x2a94   : > { %v4330_v55 = vpop.f32.mrf.mxu1 }
0x2a95   : > { %v4335_v10 = vadd.f32 %v4330_v55, %v8857_v47  ;;  %v4489_v47 = vpop.f32.mrf.mxu3 }
0x2a9c   : > { %v4332_v9 = vpop.f32.mrf.mxu1 }
0x2a9d   : > { %v4336_v59 = vadd.f32 %v4332_v9, %v8859_v48  ;;  %v4491_v48 = vpop.f32.mrf.mxu3 }
0x2a9f   : > { %v4353_v11 = vpack.c.bf16 %v4336_v59, %v4335_v10 }
0x2aa1   : > { %4426 = vmatmul.bf16.vlgmr.msrb.gmra.mxu2 %v4353_v11 }
0x2b24   : > { %v4427_v17 = vpop.f32.mrf.mxu2 }
0x2b25   : > { %v9072_v21 = vadd.f32 %v4489_v47, %v4427_v17 }
0x2b2c   : > { %v4429_v20 = vpop.f32.mrf.mxu2 }
0x2b2d   : > { %v9074_v22 = vadd.f32 %v4491_v48, %v4429_v20 }
0x2b2f   : > { %v4494_v41 = vpack.c.bf16 %v9074_v22, %v9072_v21 }
0x2b31   : > { %4568 = vmatmul.bf16.vlgmr.msrb.gmra.mxu1 %v4494_v41 }
0x2bae   : > { %v9084_v40 = vpop.f32.mrf.mxu1 }
0x2bb6   : > { %v9086_v56 = vpop.f32.mrf.mxu1 }
0x2bb7   : > { %v4574_v43 = vpack.c.bf16 %v9086_v56, %v9084_v40 }
0x2bb9   : > { %6945 = vmatmul.msk.bf16.vlgmr.msrb.gmra.mxu0 %vm514_vm1, %v4574_v43 }
0x2c36   : > { %v4604_v24 = vpop.f32.mrf.mxu0 }
0x2c37   : > { %v4609_v25 = vpack.c.bf16 %v4604_v24, %v4604_v24 }
0x2c39   : > { %v4613_v33 = vunpack.c.l.b16 %v4609_v25 }
0x2c3e   : > { %v4606_v26 = vpop.f32.mrf.mxu0 }
0x2c3f   : > { %v4610_v32 = vpack.c.bf16 %v4606_v26, %v4606_v26 }
0x2c41   : > { %v4614_v34 = vunpack.c.l.b16 %v4610_v32 }
0x2c43   : > { %v9091_v14 = vpack.c.b16 %v4614_v34, %v4613_v33 }
0x2c45   : > { %4681 = vrot.lane.b32.xlu1 %v9091_v14, %s9446_s16  ;;  %4683 = vrot.lane.b32.xlu0 %v9091_v14, %s9451_s12 }
0x2c46   : > { %4616 = vrot.lane.b32.xlu2 %v9091_v14, %s9445_s15 }
0x2c4d   : > { %4748 = vrot.lane.b32.xlu0 %v9091_v14, %s9449_s22 }
0x2c4e   : > { %4750 = vrot.lane.b32.xlu2 %v9091_v14, %s9447_s18 }
0x2c55   : > { %4815 = vrot.lane.b32.xlu0 %v9091_v14, %s9448_s21 }
0x2c56   : > { %4817 = vrot.lane.b32.xlu2 %v9091_v14, %s9452_s20 }
0x2ca0   : > { %v4617_v36 = vpop.permute.xlu2 %4616 }
0x2ca1   : > { %v4622_v37 = vsel %vm541_vm2, %v4617_v36, 0 }
0x2ca2   : > { %4631 = vmatpush.bf16.xpose.msra.mxu2 %v4622_v37 }
0x2ca8   : > { %v4751_v38 = vpop.permute.xlu2 %4750 }
0x2ca9   : > { %v4756_v29 = vsel %vm541_vm2, %v4751_v38, 0  ;;  %6946 = vmatmul.msk.bf16.vlgmr.msra.gmra.mxu2 %vm541_vm2, %v9091_v14 }
0x2caa   : > { %4765 = vmatpush.bf16.xpose.msrb.mxu2 %v4756_v29 }
0x2cb0   : > { %v4818_v28 = vpop.permute.xlu2 %4817 }
0x2cb1   : > { %v4823_v44 = vsel %vm541_vm2, %v4818_v28, 0 }
0x2cb7   : > { %v4684_v39 = vpop.permute.xlu0 %4683  ;;  %v4682_v45 = vpop.permute.xlu1 %4681 }
0x2cb8   : > { %v4689_v0 = vsel %vm541_vm2, %v4684_v39, 0 }
0x2cb9   : > { %4698 = vmatpush.bf16.xpose.msra.mxu0 %v4689_v0 }
0x2cbf   : > { %v4749_v46 = vpop.permute.xlu0 %4748 }
0x2cc0   : > { %6948 = vmatmul.msk.bf16.vlgmr.msra.gmra.mxu0 %vm541_vm2, %v4682_v45  ;;  %6950 = vmatmul.msk.bf16.vlgmr.msrb.gmra.mxu2 %vm541_vm2, %v4749_v46 }
0x2cc1   : > { %4832 = vmatpush.bf16.xpose.msrb.mxu0 %v4823_v44 }
0x2cc7   : > { %v4816_v31 = vpop.permute.xlu0 %4815 }
0x2cd0   : > { %6952 = vmatmul.msk.bf16.vlgmr.msrb.gmra.mxu0 %vm541_vm2, %v4816_v31 }
0x2d2c   : > { %v4633_v18 = vpop.f32.mrf.mxu2 }
0x2d2d   : > { %v4638_v5 = vsel %vm562_vm3, %v4633_v18, -inf }
0x2d2e   : > { %4639 = vmax.xlane.f32.xlu2 %v4638_v5 }
0x2d34   : > { %v4635_v19 = vpop.f32.mrf.mxu2 }
0x2d35   : > { %v4641_v49 = vsel %vm562_vm3, %v4635_v19, -inf }
0x2d36   : > { %4642 = vmax.xlane.f32.xlu0 %v4641_v49 }
0x2d3d   : > { %v4700_v50 = vpop.f32.mrf.mxu0 }
0x2d3e   : > { %v4705_v8 = vsel %vm562_vm3, %v4700_v50, -inf }
0x2d3f   : > { %4706 = vmax.xlane.f32.xlu1 %v4705_v8 }
0x2d43   : > { %v4767_v13 = vpop.f32.mrf.mxu2 }
0x2d44   : > { %v4772_v58 = vsel %vm562_vm3, %v4767_v13, -inf }
0x2d45   : > { %v4702_v52 = vpop.f32.mrf.mxu0 }
0x2d46   : > { %v4708_v53 = vsel %vm562_vm3, %v4702_v52, -inf }
0x2d47   : > { %4709 = vmax.xlane.f32.xlu2 %v4708_v53 }
0x2d4b   : > { %v4769_v61 = vpop.f32.mrf.mxu2 }
0x2d4c   : > { %v4775_v62 = vsel %vm562_vm3, %v4769_v61, -inf }
0x2d4d   : > { %v4834_v54 = vpop.f32.mrf.mxu0 }
0x2d4e   : > { %v4839_v35 = vsel %vm562_vm3, %v4834_v54, -inf }
0x2d4f   : > { %4840 = vmax.xlane.f32.xlu2 %v4839_v35 }
0x2d55   : > { %v9121_v57 = vpop.f32.mrf.mxu0 }
0x2d56   : > { %v4842_v60 = vsel %vm562_vm3, %v9121_v57, -inf }
0x2d57   : > { %4773 = vmax.xlane.f32.xlu2 %v4772_v58  ;;  %4843 = vmax.xlane.f32.xlu0 %v4842_v60 }
0x2d5f   : > { %4776 = vmax.xlane.f32.xlu0 %v4775_v62 }
0x2d6f   : > { %4661 = vrot.lane.b32.xlu2 %v9091_v14, %s9440_s26 }
0x2da1   : > { %v4640_v63 = vpop.xlane.xlu2 %4639 }
0x2da2   : > { %v4644_v1 = vsub.f32 %v4633_v18, %v4640_v63 }
0x2da4   : > { %v4646_v2 = vmul.f32 1.442695, %v4644_v1 }
0x2da6   : > { %7793 = vpow2.f32 %v4646_v2 }
0x2da9   : > { %v4643_v3 = vpop.xlane.xlu0 %4642 }
0x2daa   : > { %v4645_v51 = vsub.f32 %v4635_v19, %v4643_v3 }
0x2dac   : > { %v7794_v4 = vpop.eup %7793  ;;  %v4648_v30 = vmul.f32 1.442695, %v4645_v51 }
0x2dad   : > { %v4650_v6 = vsel %vm562_vm3, %v7794_v4, 0.0 }
0x2dae   : > { %7795 = vpow2.f32 %v4648_v30  ;;  %4651 = vadd.xlane.f32.xlu1 %v4650_v6 }
0x2db2   : > { %v4707_v7 = vpop.xlane.xlu1 %4706 }
0x2db3   : > { %v4711_v27 = vsub.f32 %v4700_v50, %v4707_v7 }
0x2db4   : > { %v7796_v55 = vpop.eup %7795 }
0x2db5   : > { %v4713_v9 = vmul.f32 1.442695, %v4711_v27  ;;  %v4653_v10 = vsel %vm562_vm3, %v7796_v55, 0.0 }
0x2db6   : > { %4654 = vadd.xlane.f32.xlu2 %v4653_v10 }
0x2db7   : > { %7797 = vpow2.f32 %v4713_v9 }
0x2dba   : > { %v4710_v59 = vpop.xlane.xlu2 %4709 }
0x2dbb   : > { %v4712_v11 = vsub.f32 %v4702_v52, %v4710_v59 }
0x2dbd   : > { %v7798_v12 = vpop.eup %7797  ;;  %v4715_v15 = vmul.f32 1.442695, %v4712_v11 }
0x2dbe   : > { %v4717_v16 = vsel %vm562_vm3, %v7798_v12, 0.0 }
0x2dbf   : > { %7799 = vpow2.f32 %v4715_v15  ;;  %4718 = vadd.xlane.f32.xlu0 %v4717_v16 }
0x2dc2   : > { %v4841_v47 = vpop.xlane.xlu2 %4840 }
0x2dc3   : > { %v4845_v17 = vsub.f32 %v4834_v54, %v4841_v47 }
0x2dc5   : > { %v7800_v48 = vpop.eup %7799  ;;  %v4847_v20 = vmul.f32 1.442695, %v4845_v17 }
0x2dc6   : > { %v4720_v41 = vsel %vm562_vm3, %v7800_v48, 0.0 }
0x2dc7   : > { %7801 = vpow2.f32 %v4847_v20  ;;  %4721 = vadd.xlane.f32.xlu1 %v4720_v41 }
0x2dca   : > { %v4844_v42 = vpop.xlane.xlu0 %4843  ;;  %v4774_v23 = vpop.xlane.xlu2 %4773 }
0x2dcb   : > { %v4778_v43 = vsub.f32 %v4767_v13, %v4774_v23  ;;  %v4846_v39 = vsub.f32 %v9121_v57, %v4844_v42  ;;  %v7393_v42 = vld [vmem:[%s9388_s4 + $0x58] sm:$0xff]  ;;  %v7392_v23 = vld [vmem:[%s9388_s4 + $0x50] sm:$0xff] }
0x2dcc   : > { %4939 = vmatpush.bf16.msra.mxu2 %v7393_v42 }
0x2dcd   : > { %v9133_v24 = vpop.eup %7801  ;;  %v4780_v25 = vmul.f32 1.442695, %v4778_v43  ;;  %v4849_v0 = vmul.f32 1.442695, %v4846_v39 }
0x2dce   : > { %4795 = vrot.lane.b32.xlu2 %v9091_v14, %s9439_s24  ;;  %v4851_v26 = vsel %vm562_vm3, %v9133_v24, 0.0 }
0x2dcf   : > { %4852 = vadd.xlane.f32.xlu1 %v4851_v26  ;;  %7803 = vpow2.f32 %v4780_v25 }
0x2dd0   : > { %4940 = vmatpush.bf16.msra.mxu2 %v7392_v23 }
0x2dd2   : > { %v4777_v32 = vpop.xlane.xlu0 %4776  ;;  %v4662_v33 = vpop.permute.xlu2 %4661 }
0x2dd3   : > { %v4779_v34 = vsub.f32 %v4769_v61, %v4777_v32  ;;  %4728 = vrot.lane.b32.xlu0 %v9091_v14, %s9450_s23  ;;  %4674 = vmatpush.bf16.msrb.mxu3 %v4662_v33 }
0x2dd5   : > { %v4782_v36 = vmul.f32 1.442695, %v4779_v34  ;;  %v7804_v37 = vpop.eup %7803 }
0x2dd6   : > { %v4784_v38 = vsel %vm562_vm3, %v7804_v37, 0.0 }
0x2dd7   : > { %7805 = vpow2.f32 %v4782_v36  ;;  %4785 = vadd.xlane.f32.xlu1 %v4784_v38 }
0x2dd8   : > { %7807 = vpow2.f32 %v4849_v0 }
0x2ddd   : > { %v7806_v29 = vpop.eup %7805 }
0x2dde   : > { %v4787_v28 = vsel %vm562_vm3, %v7806_v29, 0.0  ;;  %v7808_v44 = vpop.eup %7807 }
0x2ddf   : > { %4788 = vadd.xlane.f32.xlu1 %v4787_v28  ;;  %v4854_v45 = vsel %vm562_vm3, %v7808_v44, 0.0 }
0x2df8   : > { %4862 = vrot.lane.b32.xlu1 %v9091_v14, %s9441_s25 }
0x2dfd   : > { %4855 = vadd.xlane.f32.xlu0 %v4854_v45 }
0x2e21   : > { %v4652_v46 = vpop.xlane.xlu1 %4651 }
0x2e22   : > { %7809 = vrcp.f32 %v4652_v46  ;;  %v7395_v46 = vld [vmem:[%s9389_s5 + $0x58] sm:$0xff] }
0x2e28   : > { %v7810_v18 = vpop.eup %7809 }
0x2e29   : > { %v4655_v31 = vpop.xlane.xlu2 %4654  ;;  %v4658_v19 = vmul.f32 %v7810_v18, %v7794_v4 }
0x2e2a   : > { %7811 = vrcp.f32 %v4655_v31  ;;  %v7394_v31 = vld [vmem:[%s9389_s5 + $0x50] sm:$0xff] }
0x2e30   : > { %v7812_v5 = vpop.eup %7811 }
0x2e31   : > { %v4659_v49 = vmul.f32 %v7812_v5, %v7796_v55  ;;  %v4796_v50 = vpop.permute.xlu2 %4795 }
0x2e32   : > { %4808 = vmatpush.bf16.msra.mxu3 %v4796_v50  ;;  %v4719_v52 = vpop.xlane.xlu0 %4718 }
0x2e33   : > { %v4660_v8 = vpack.c.bf16 %v4659_v49, %v4658_v19 }
0x2e35   : > { %6947 = vmatmul.msk.bf16.vlgmr.msrb.gmra.mxu3 %vm562_vm3, %v4660_v8  ;;  %v7403_v8 = vld [vmem:[%s9455_s1 + $0x178] sm:$0xff] }
0x2e36   : > { %4976 = vmatpush.bf16.msrb.mxu3 %v7395_v46  ;;  %5068 = vmatpush.bf16.msra.mxu0 %v7403_v8 }
0x2e3a   : > { %v4722_v53 = vpop.xlane.xlu1 %4721  ;;  %4977 = vmatpush.bf16.msrb.mxu3 %v7394_v31 }
0x2e3b   : > { %7813 = vrcp.f32 %v4722_v53  ;;  %v7401_v53 = vld [vmem:[%s9455_s1 + $0x168] sm:$0xff] }
0x2e3c   : > { %7815 = vrcp.f32 %v4719_v52  ;;  %v7402_v52 = vld [vmem:[%s9455_s1 + $0x170] sm:$0xff] }
0x2e3d   : > { %5069 = vmatpush.bf16.msra.mxu0 %v7402_v52 }
0x2e41   : > { %v7814_v14 = vpop.eup %7813  ;;  %5070 = vmatpush.bf16.msra.mxu0 %v7401_v53 }
0x2e42   : > { %v7816_v54 = vpop.eup %7815  ;;  %v4853_v35 = vpop.xlane.xlu1 %4852  ;;  %v4726_v13 = vmul.f32 %v7814_v14, %v7800_v48  ;;  %v7398_v14 = vld [vmem:[%s9455_s1 + $0x150] sm:$0xff] }
0x2e43   : > { %v4725_v57 = vmul.f32 %v7816_v54, %v7798_v12  ;;  %v7397_v54 = vld [vmem:[%s9455_s1 + $0x148] sm:$0xff] }
0x2e45   : > { %v4729_v58 = vpop.permute.xlu0 %4728  ;;  %v4727_v60 = vpack.c.bf16 %v4726_v13, %v4725_v57 }
0x2e46   : > { %4741 = vmatpush.bf16.msra.mxu1 %v4729_v58 }
0x2e49   : > { %6949 = vmatmul.msk.bf16.vlgmr.msra.gmra.mxu1 %vm562_vm3, %v4727_v60 }
0x2e4a   : > { %v4786_v61 = vpop.xlane.xlu1 %4785 }
0x2e4b   : > { %7817 = vrcp.f32 %v4786_v61 }
0x2e51   : > { %v7818_v63 = vpop.eup %7817 }
0x2e52   : > { %v4789_v62 = vpop.xlane.xlu1 %4788  ;;  %v4792_v2 = vmul.f32 %v7818_v63, %v7804_v37 }
0x2e53   : > { %7819 = vrcp.f32 %v4789_v62 }
0x2e54   : > { %7821 = vrcp.f32 %v4853_v35  ;;  %v7396_v35 = vld [vmem:[%s9455_s1 + $0x140] sm:$0xff] }
0x2e59   : > { %v7820_v1 = vpop.eup %7819 }
0x2e5a   : > { %v4793_v3 = vmul.f32 %v7820_v1, %v7806_v29  ;;  %v7822_v6 = vpop.eup %7821 }
0x2e5b   : > { %v4859_v27 = vmul.f32 %v7822_v6, %v9133_v24 }
0x2e5c   : > { %v4794_v51 = vpack.c.bf16 %v4793_v3, %v4792_v2 }
0x2e5e   : > { %6951 = vmatmul.msk.bf16.vlgmr.msra.gmra.mxu3 %vm562_vm3, %v4794_v51 }
0x2e6a   : > { %v4863_v4 = vpop.permute.xlu1 %4862 }
0x2e6b   : > { %4875 = vmatpush.bf16.msrb.mxu1 %v4863_v4 }
0x2e70   : > { %v4856_v30 = vpop.xlane.xlu0 %4855 }
0x2e71   : > { %7823 = vrcp.f32 %v4856_v30 }
0x2e77   : > { %v7824_v7 = vpop.eup %7823 }
0x2e78   : > { %v4860_v55 = vmul.f32 %v7824_v7, %v7808_v44 }
0x2e7a   : > { %v4861_v9 = vpack.c.bf16 %v4860_v55, %v4859_v27 }
0x2e7c   : > { %6953 = vmatmul.msk.bf16.vlgmr.msrb.gmra.mxu1 %vm562_vm3, %v4861_v9 }
0x2eb8   : > { %v4676_v12 = vpop.f32.mrf.mxu3 }
0x2ec0   : > { %v4678_v15 = vpop.f32.mrf.mxu3 }
0x2ec6   : > { %v4743_v10 = vpop.f32.mrf.mxu1 }
0x2ece   : > { %v4745_v59 = vpop.f32.mrf.mxu1 }
0x2ecf   : > { %v7547_v11 = vpack.i.bf16 %v4745_v59, %v4743_v10 }
0x2ed1   : > { %7548 = vrot.lane.b32.xlu2 %v7547_v11, %s9442_s27 }
0x2ee1   : > { %v4810_v16 = vpop.f32.mrf.mxu3 }
0x2ee9   : > { %v4812_v47 = vpop.f32.mrf.mxu3 }
0x2eea   : > { %v7552_v17 = vpack.i.bf16 %v4812_v47, %v4810_v16  ;;  %v7413_v16 = vld [vmem:[%s9386_s2 + $0x138] sm:$0xff]  ;;  %v7412_v47 = vld [vmem:[%s9386_s2 + $0x130] sm:$0xff] }
0x2eeb   : > { %5187 = vmatpush.bf16.msrb.mxu2 %v7413_v16 }
0x2eec   : > { %7553 = vrot.lane.b32.xlu2 %v7552_v17, %s9443_s28  ;;  %v7411_v17 = vld [vmem:[%s9386_s2 + $0x128] sm:$0xff] }
0x2eef   : > { %5188 = vmatpush.bf16.msrb.mxu2 %v7412_v47 }
0x2ef3   : > { %5189 = vmatpush.bf16.msrb.mxu2 %v7411_v17 }
0x2ef9   : > { %v4877_v48 = vpop.f32.mrf.mxu1 }
0x2f01   : > { %v4879_v20 = vpop.f32.mrf.mxu1 }
0x2f02   : > { %v7557_v41 = vpack.i.bf16 %v4879_v20, %v4877_v48  ;;  %v7410_v48 = vld [vmem:[%s9386_s2 + $0x120] sm:$0xff]  ;;  %v7409_v20 = vld [vmem:[%s9386_s2 + $0x118] sm:$0xff] }
0x2f03   : > { %5190 = vmatpush.bf16.msrb.mxu2 %v7410_v48 }
0x2f04   : > { %7558 = vrot.lane.b32.xlu2 %v7557_v41, %s9444_s29 }
0x2f07   : > { %5191 = vmatpush.bf16.msrb.mxu2 %v7409_v20 }
0x2f2b   : > { %v7549_v43 = vpop.permute.xlu2 %7548 }
0x2f2c   : > { %v7551_v25 = vunpack.i.h.bf16 %v7549_v43  ;;  %v7550_v26 = vunpack.i.l.bf16 %v7549_v43 }
0x2f2e   : > { %v4907_v36 = vsel %vm541_vm2, %v4678_v15, %v7551_v25  ;;  %v4906_v37 = vsel %vm541_vm2, %v4676_v12, %v7550_v26  ;;  %v7405_v12 = vld [vmem:[%s9391_s7 + $0x58] sm:$0xff]  ;;  %v7404_v15 = vld [vmem:[%s9391_s7 + $0x50] sm:$0xff]  ;;  %v7407_v26 = vld [vmem:[%s9386_s2 + $0x108] sm:$0xff] }
0x2f2f   : > { %5111 = vmatpush.bf16.msra.mxu1 %v7405_v12  ;;  %v7408_v25 = vld [vmem:[%s9386_s2 + $0x110] sm:$0xff] }
0x2f30   : > { %5192 = vmatpush.bf16.msrb.mxu2 %v7408_v25 }
0x2f33   : > { %5112 = vmatpush.bf16.msra.mxu1 %v7404_v15 }
0x2f34   : > { %5193 = vmatpush.bf16.msrb.mxu2 %v7407_v26 }
0x2f46   : > { %v7554_v24 = vpop.permute.xlu2 %7553 }
0x2f47   : > { %v7556_v32 = vunpack.i.h.bf16 %v7554_v24  ;;  %v7555_v33 = vunpack.i.l.bf16 %v7554_v24 }
0x2f49   : > { %v4908_v28 = vsel %vm562_vm3, %v4906_v37, %v7555_v33  ;;  %v4909_v39 = vsel %vm562_vm3, %v4907_v36, %v7556_v32  ;;  %v7406_v32 = vld [vmem:[%s9386_s2 + $0x100] sm:$0xff] }
0x2f4a   : > { %5194 = vmatpush.bf16.msrb.mxu2 %v7406_v32 }
0x2f5e   : > { %v7559_v34 = vpop.permute.xlu2 %7558 }
0x2f5f   : > { %v7561_v38 = vunpack.i.h.bf16 %v7559_v34  ;;  %v7560_v29 = vunpack.i.l.bf16 %v7559_v34 }
0x2f61   : > { %v4910_v0 = vsel %vm835_vm4, %v4908_v28, %v7560_v29  ;;  %v4911_v44 = vsel %vm835_vm4, %v4909_v39, %v7561_v38  ;;  %v7415_v29 = vld [vmem:[%s9387_s3 + $0x48] sm:$0xff]  ;;  %v7414_v28 = vld [vmem:[%s9387_s3 + $0x40] sm:$0xff] }
0x2f62   : > { %v4912_v45 = vpack.c.bf16 %v4911_v44, %v4910_v0  ;;  %5228 = vmatpush.bf16.msra.mxu3 %v7415_v29 }
0x2f64   : > { %6966 = vmatmul.msk.bf16.vlgmr.msra.gmra.mxu2 %vm514_vm1, %v4912_v45 }
0x2f66   : > { %5229 = vmatpush.bf16.msra.mxu3 %v7414_v28 }
0x2fe7   : > { %v4942_v18 = vpop.f32.mrf.mxu2 }
0x2fe8   : > { %v4947_v19 = vadd.f32 %v4942_v18, %v9084_v40  ;;  %v7400_v40 = vld [vmem:[%s9455_s1 + $0x160] sm:$0xff] }
0x2fe9   : > { %5071 = vmatpush.bf16.msra.mxu0 %v7400_v40 }
0x2fef   : > { %v4944_v5 = vpop.f32.mrf.mxu2 }
0x2ff0   : > { %v4948_v49 = vadd.f32 %v4944_v5, %v9086_v56  ;;  %v7399_v56 = vld [vmem:[%s9455_s1 + $0x158] sm:$0xff] }
0x2ff1   : > { %5072 = vmatpush.bf16.msra.mxu0 %v7399_v56 }
0x2ff2   : > { %v4949_v50 = vpack.c.bf16 %v4948_v49, %v4947_v19 }
0x2ff4   : > { %6979 = vmatmul.msk.bf16.vlgmr.msrb.gmra.mxu3 %vm514_vm1, %v4949_v50 }
0x2ff5   : > { %5073 = vmatpush.bf16.msra.mxu0 %v7398_v14 }
0x2ff9   : > { %5074 = vmatpush.bf16.msra.mxu0 %v7397_v54 }
0x2ffd   : > { %5075 = vmatpush.bf16.msra.mxu0 %v7396_v35 }
0x3077   : > { %v4979_v13 = vpop.f32.mrf.mxu3 }
0x3078   : > { %v4984_v57 = vmul.f32 %v4979_v13, %v4979_v13 }
0x307a   : > { %v4986_v58 = vmul.f32 %v4984_v57, %v4979_v13 }
0x307c   : > { %v4988_v60 = vmul.f32 0.044715, %v4986_v58 }
0x307e   : > { %v4990_v61 = vadd.f32 %v4988_v60, %v4979_v13 }
0x307f   : > { %v4981_v62 = vpop.f32.mrf.mxu3 }
0x3080   : > { %v4992_v63 = vmul.f32 0.7978846, %v4990_v61  ;;  %v4985_v1 = vmul.f32 %v4981_v62, %v4981_v62 }
0x3082   : > { %v4987_v2 = vmul.f32 %v4985_v1, %v4981_v62  ;;  %7825 = vtanh.f32 %v4992_v63 }
0x3084   : > { %v4989_v3 = vmul.f32 0.044715, %v4987_v2 }
0x3086   : > { %v4991_v51 = vadd.f32 %v4989_v3, %v4981_v62 }
0x3088   : > { %v4993_v4 = vmul.f32 0.7978846, %v4991_v51  ;;  %v7826_v30 = vpop.eup %7825 }
0x3089   : > { %v4996_v6 = vadd.f32 1.0, %v7826_v30 }
0x308a   : > { %7827 = vtanh.f32 %v4993_v4 }
0x308b   : > { %v4998_v27 = vmul.f32 0.5, %v4996_v6 }
0x308d   : > { %v5000_v10 = vmul.f32 %v4998_v27, %v4979_v13 }
0x3090   : > { %v7828_v7 = vpop.eup %7827 }
0x3091   : > { %v4997_v55 = vadd.f32 1.0, %v7828_v7 }
0x3093   : > { %v4999_v9 = vmul.f32 0.5, %v4997_v55 }
0x3095   : > { %v5001_v59 = vmul.f32 %v4999_v9, %v4981_v62 }
0x3097   : > { %v5002_v11 = vpack.c.bf16 %v5001_v59, %v5000_v10 }
0x3099   : > { %5076 = vmatmul.bf16.vlgmr.msra.gmra.mxu0 %v5002_v11 }
0x3116   : > { %v5077_v41 = vpop.f32.mrf.mxu0 }
0x3117   : > { %v5082_v23 = vadd.f32 %v5077_v41, %v4947_v19 }
0x311e   : > { %v5079_v42 = vpop.f32.mrf.mxu0 }
0x311f   : > { %v5083_v43 = vadd.f32 %v5079_v42, %v4948_v49 }
0x3121   : > { %v5084_v24 = vpack.c.bf16 %v5083_v43, %v5082_v23 }
0x3123   : > { %7040 = vmatmul.msk.bf16.vlgmr.msra.gmra.mxu1 %vm514_vm1, %v5084_v24 }
0x31a0   : > { %v5114_v33 = vpop.f32.mrf.mxu1 }
0x31a1   : > { %v9233_v36 = vadd.f32 %v5114_v33, %v9072_v21 }
0x31a8   : > { %v5116_v34 = vpop.f32.mrf.mxu1 }
0x31a9   : > { %v9236_v37 = vadd.f32 %v5116_v34, %v9074_v22 }
0x31ab   : > { %v5121_v38 = vpack.c.bf16 %v9236_v37, %v9233_v36 }
0x31ad   : > { %5195 = vmatmul.bf16.vlgmr.msrb.gmra.mxu2 %v5121_v38 }
0x3230   : > { %v9246_v39 = vpop.f32.mrf.mxu2 }
0x3238   : > { %v9248_v21 = vpop.f32.mrf.mxu2 }
0x3239   : > { %v5201_v22 = vpack.c.bf16 %v9248_v21, %v9246_v39 }
0x323b   : > { %7101 = vmatmul.msk.bf16.vlgmr.msra.gmra.mxu3 %vm514_vm1, %v5201_v22 }
0x32be   : > { %v5231_v0 = vpop.f32.mrf.mxu3 }
0x32bf   : > { %v5236_v44 = vpack.c.bf16 %v5231_v0, %v5231_v0 }
0x32c1   : > { %v5240_v31 = vunpack.c.l.b16 %v5236_v44 }
0x32c6   : > { %v5233_v45 = vpop.f32.mrf.mxu3 }
0x32c7   : > { %v5237_v46 = vpack.c.bf16 %v5233_v45, %v5233_v45 }
0x32c9   : > { %v5241_v18 = vunpack.c.l.b16 %v5237_v46 }
0x32cb   : > { %v9253_v5 = vpack.c.b16 %v5241_v18, %v5240_v31 }
0x32cd   : > { %5308 = vrot.lane.b32.xlu0 %v9253_v5, %s9446_s16  ;;  %5310 = vrot.lane.b32.xlu2 %v9253_v5, %s9451_s12  ;;  %s9458_s16 = sld [smem:[#allocation9_spill]] }
0x32ce   : > { %5243 = vrot.lane.b32.xlu1 %v9253_v5, %s9445_s15 }
0x32d5   : > { %5375 = vrot.lane.b32.xlu2 %v9253_v5, %s9449_s22 }
0x32d6   : > { %5377 = vrot.lane.b32.xlu1 %v9253_v5, %s9447_s18 }
0x32dd   : > { %5442 = vrot.lane.b32.xlu2 %v9253_v5, %s9448_s21 }
0x32de   : > { %5444 = vrot.lane.b32.xlu1 %v9253_v5, %s9452_s20 }
0x3327   : > { %v5311_v19 = vpop.permute.xlu2 %5310 }
0x3328   : > { %v5316_v49 = vsel %vm541_vm2, %v5311_v19, 0 }
0x3329   : > { %5325 = vmatpush.bf16.xpose.msrb.mxu0 %v5316_v49 }
0x332f   : > { %v5376_v56 = vpop.permute.xlu2 %5375 }
0x3337   : > { %v5443_v35 = vpop.permute.xlu2 %5442 }
0x333f   : > { %v5309_v50 = vpop.permute.xlu0 %5308 }
0x3340   : > { %v5244_v8 = vpop.permute.xlu1 %5243  ;;  %7104 = vmatmul.msk.bf16.vlgmr.msrb.gmra.mxu0 %vm541_vm2, %v5309_v50 }
0x3341   : > { %v5249_v52 = vsel %vm541_vm2, %v5244_v8, 0 }
0x3342   : > { %5258 = vmatpush.bf16.xpose.msrb.mxu1 %v5249_v52 }
0x3348   : > { %v5378_v53 = vpop.permute.xlu1 %5377 }
0x3349   : > { %v5383_v40 = vsel %vm541_vm2, %v5378_v53, 0  ;;  %7102 = vmatmul.msk.bf16.vlgmr.msrb.gmra.mxu1 %vm541_vm2, %v9253_v5 }
0x334a   : > { %5392 = vmatpush.bf16.xpose.msra.mxu2 %v5383_v40 }
0x3350   : > { %v5445_v14 = vpop.permute.xlu1 %5444 }
0x3351   : > { %v5450_v54 = vsel %vm541_vm2, %v5445_v14, 0  ;;  %7106 = vmatmul.msk.bf16.vlgmr.msra.gmra.mxu2 %vm541_vm2, %v5376_v56 }
0x3352   : > { %5459 = vmatpush.bf16.xpose.msra.mxu0 %v5450_v54 }
0x3359   : > { %7108 = vmatmul.msk.bf16.vlgmr.msra.gmra.mxu0 %vm541_vm2, %v5443_v35 }
0x33bd   : > { %v5327_v13 = vpop.f32.mrf.mxu0 }
0x33be   : > { %v5332_v57 = vsel %vm562_vm3, %v5327_v13, -inf }
0x33bf   : > { %5333 = vmax.xlane.f32.xlu0 %v5332_v57 }
0x33c5   : > { %v5329_v61 = vpop.f32.mrf.mxu0 }
0x33c6   : > { %v5260_v58 = vpop.f32.mrf.mxu1  ;;  %v5335_v63 = vsel %vm562_vm3, %v5329_v61, -inf }
0x33c7   : > { %v5265_v60 = vsel %vm562_vm3, %v5260_v58, -inf }
0x33c8   : > { %5266 = vmax.xlane.f32.xlu1 %v5265_v60 }
0x33ce   : > { %v5262_v62 = vpop.f32.mrf.mxu1 }
0x33cf   : > { %v5268_v1 = vsel %vm562_vm3, %v5262_v62, -inf }
0x33d0   : > { %5336 = vmax.xlane.f32.xlu1 %v5335_v63  ;;  %5269 = vmax.xlane.f32.xlu2 %v5268_v1 }
0x33d4   : > { %v5394_v2 = vpop.f32.mrf.mxu2 }
0x33d5   : > { %v5399_v51 = vsel %vm562_vm3, %v5394_v2, -inf }
0x33d6   : > { %v9282_v3 = vpop.f32.mrf.mxu0 }
0x33d7   : > { %v5466_v4 = vsel %vm562_vm3, %v9282_v3, -inf }
0x33d8   : > { %5400 = vmax.xlane.f32.xlu2 %v5399_v51  ;;  %5467 = vmax.xlane.f32.xlu0 %v5466_v4 }
0x33dc   : > { %v5396_v30 = vpop.f32.mrf.mxu2 }
0x33dd   : > { %v5402_v6 = vsel %vm562_vm3, %v5396_v30, -inf }
0x33de   : > { %5403 = vmax.xlane.f32.xlu1 %v5402_v6  ;;  %v5463_v7 = vpop.f32.mrf.mxu0 }
0x33df   : > { %v5469_v27 = vsel %vm562_vm3, %v5463_v7, -inf }
0x33e0   : > { %5470 = vmax.xlane.f32.xlu2 %v5469_v27 }
0x3432   : > { %v5334_v55 = vpop.xlane.xlu0 %5333 }
0x3433   : > { %v5338_v9 = vsub.f32 %v5327_v13, %v5334_v55 }
0x3435   : > { %v5340_v10 = vmul.f32 1.442695, %v5338_v9 }
0x3437   : > { %7829 = vpow2.f32 %v5340_v10 }
0x343b   : > { %v5267_v59 = vpop.xlane.xlu1 %5266 }
0x343c   : > { %v5271_v11 = vsub.f32 %v5260_v58, %v5267_v59 }
0x343d   : > { %v9289_v12 = vpop.eup %7829 }
0x343e   : > { %v5273_v15 = vmul.f32 1.442695, %v5271_v11  ;;  %v5344_v16 = vsel %vm562_vm3, %v9289_v12, 0.0 }
0x343f   : > { %5345 = vadd.xlane.f32.xlu2 %v5344_v16 }
0x3440   : > { %7831 = vpow2.f32 %v5273_v15 }
0x3443   : > { %v5270_v47 = vpop.xlane.xlu2 %5269  ;;  %v5337_v42 = vpop.xlane.xlu1 %5336 }
0x3444   : > { %v5272_v17 = vsub.f32 %v5262_v62, %v5270_v47  ;;  %v5339_v25 = vsub.f32 %v5329_v61, %v5337_v42 }
0x3446   : > { %v7832_v48 = vpop.eup %7831  ;;  %v5275_v20 = vmul.f32 1.442695, %v5272_v17  ;;  %v5342_v33 = vmul.f32 1.442695, %v5339_v25 }
0x3447   : > { %v5277_v41 = vsel %vm562_vm3, %v7832_v48, 0.0 }
0x3448   : > { %7833 = vpow2.f32 %v5275_v20  ;;  %5278 = vadd.xlane.f32.xlu1 %v5277_v41 }
0x344b   : > { %v5401_v23 = vpop.xlane.xlu2 %5400  ;;  %v5468_v8 = vpop.xlane.xlu0 %5467 }
0x344c   : > { %v5405_v43 = vsub.f32 %v5394_v2, %v5401_v23  ;;  %v5472_v52 = vsub.f32 %v9282_v3, %v5468_v8 }
0x344e   : > { %v7834_v24 = vpop.eup %7833  ;;  %v5407_v26 = vmul.f32 1.442695, %v5405_v43  ;;  %v5474_v53 = vmul.f32 1.442695, %v5472_v52 }
0x344f   : > { %v5280_v32 = vsel %vm562_vm3, %v7834_v24, 0.0 }
0x3450   : > { %7835 = vpow2.f32 %v5407_v26  ;;  %5281 = vadd.xlane.f32.xlu0 %v5280_v32 }
0x3451   : > { %v5404_v34 = vpop.xlane.xlu1 %5403  ;;  %7837 = vpow2.f32 %v5342_v33 }
0x3452   : > { %v5406_v29 = vsub.f32 %v5396_v30, %v5404_v34 }
0x3453   : > { %v5471_v0 = vpop.xlane.xlu2 %5470 }
0x3454   : > { %v5409_v22 = vmul.f32 1.442695, %v5406_v29  ;;  %v5473_v45 = vsub.f32 %v5463_v7, %v5471_v0  ;;  %v7417_v29 = vld [vmem:[%s9388_s4 + $0x48] sm:$0xff] }
0x3455   : > { %5566 = vmatpush.bf16.msrb.mxu2 %v7417_v29 }
0x3456   : > { %v9295_v38 = vpop.eup %7835  ;;  %7839 = vpow2.f32 %v5409_v22  ;;  %v5476_v31 = vmul.f32 1.442695, %v5473_v45 }
0x3457   : > { %5355 = vrot.lane.b32.xlu2 %v9253_v5, %s9450_s23  ;;  %v5411_v28 = vsel %vm562_vm3, %v9295_v38, 0.0  ;;  %v7838_v44 = vpop.eup %7837 }
0x3458   : > { %5412 = vadd.xlane.f32.xlu1 %v5411_v28  ;;  %v5347_v46 = vsel %vm562_vm3, %v7838_v44, 0.0  ;;  %7841 = vpow2.f32 %v5476_v31  ;;  %v7416_v28 = vld [vmem:[%s9388_s4 + $0x40] sm:$0xff] }
0x3459   : > { %7843 = vpow2.f32 %v5474_v53  ;;  %5567 = vmatpush.bf16.msrb.mxu2 %v7416_v28 }
0x345c   : > { %v7840_v18 = vpop.eup %7839 }
0x345d   : > { %v5414_v19 = vsel %vm562_vm3, %v7840_v18, 0.0 }
0x345e   : > { %v7842_v49 = vpop.eup %7841 }
0x345f   : > { %5422 = vrot.lane.b32.xlu2 %v9253_v5, %s9439_s24  ;;  %v5481_v50 = vsel %vm562_vm3, %v7842_v49, 0.0  ;;  %v7844_v40 = vpop.eup %7843 }
0x3460   : > { %5348 = vadd.xlane.f32.xlu1 %v5347_v46  ;;  %v5478_v56 = vsel %vm562_vm3, %v7844_v40, 0.0 }
0x3464   : > { %5288 = vrot.lane.b32.xlu0 %v9253_v5, %s9440_s26 }
0x3468   : > { %5415 = vadd.xlane.f32.xlu1 %v5414_v19 }
0x3470   : > { %5482 = vadd.xlane.f32.xlu1 %v5481_v50 }
0x3489   : > { %5489 = vrot.lane.b32.xlu1 %v9253_v5, %s9441_s25 }
0x348e   : > { %5479 = vadd.xlane.f32.xlu0 %v5478_v56 }
0x34b2   : > { %v5346_v14 = vpop.xlane.xlu2 %5345 }
0x34ba   : > { %v5356_v54 = vpop.permute.xlu2 %5355 }
0x34bb   : > { %5368 = vmatpush.bf16.msra.mxu1 %v5356_v54  ;;  %v5279_v35 = vpop.xlane.xlu1 %5278  ;;  %v7419_v54 = vld [vmem:[%s9389_s5 + $0x48] sm:$0xff] }
0x34c2   : > { %v5423_v1 = vpop.permute.xlu2 %5422 }
0x34c3   : > { %v5282_v13 = vpop.xlane.xlu0 %5281 }
0x34c4   : > { %7845 = vrcp.f32 %v5282_v13 }
0x34c5   : > { %7847 = vrcp.f32 %v5279_v35  ;;  %v7418_v35 = vld [vmem:[%s9389_s5 + $0x40] sm:$0xff] }
0x34c6   : > { %7849 = vrcp.f32 %v5346_v14 }
0x34ca   : > { %v7846_v58 = vpop.eup %7845 }
0x34cb   : > { %v5413_v57 = vpop.xlane.xlu1 %5412  ;;  %v7848_v60 = vpop.eup %7847  ;;  %v5286_v62 = vmul.f32 %v7846_v58, %v7834_v24 }
0x34cc   : > { %v5285_v63 = vmul.f32 %v7848_v60, %v7832_v48  ;;  %v7850_v2 = vpop.eup %7849 }
0x34cd   : > { %v5352_v4 = vmul.f32 %v7850_v2, %v9289_v12  ;;  %v7421_v2 = vld [vmem:[%s9455_s1 + $0x108] sm:$0xff] }
0x34ce   : > { %v5287_v3 = vpack.c.bf16 %v5286_v62, %v5285_v63  ;;  %v7427_v62 = vld [vmem:[%s9455_s1 + $0x138] sm:$0xff]  ;;  %v7426_v63 = vld [vmem:[%s9455_s1 + $0x130] sm:$0xff] }
0x34cf   : > { %5695 = vmatpush.bf16.msrb.mxu0 %v7427_v62 }
0x34d3   : > { %v5349_v61 = vpop.xlane.xlu1 %5348  ;;  %5696 = vmatpush.bf16.msrb.mxu0 %v7426_v63 }
0x34d4   : > { %7851 = vrcp.f32 %v5349_v61 }
0x34d6   : > { %v5289_v5 = vpop.permute.xlu0 %5288 }
0x34d7   : > { %5301 = vmatpush.bf16.msrb.mxu3 %v5289_v5  ;;  %v7425_v5 = vld [vmem:[%s9455_s1 + $0x128] sm:$0xff] }
0x34d8   : > { %5697 = vmatpush.bf16.msrb.mxu0 %v7425_v5 }
0x34da   : > { %v7852_v51 = vpop.eup %7851  ;;  %7103 = vmatmul.msk.bf16.vlgmr.msrb.gmra.mxu3 %vm562_vm3, %v5287_v3  ;;  %v7420_v3 = vld [vmem:[%s9455_s1 + $0x100] sm:$0xff] }
0x34db   : > { %5435 = vmatpush.bf16.msra.mxu3 %v5423_v1  ;;  %v5353_v30 = vmul.f32 %v7852_v51, %v7838_v44  ;;  %v5416_v6 = vpop.xlane.xlu1 %5415  ;;  %v7422_v1 = vld [vmem:[%s9455_s1 + $0x110] sm:$0xff] }
0x34dc   : > { %7853 = vrcp.f32 %v5416_v6 }
0x34dd   : > { %7855 = vrcp.f32 %v5413_v57  ;;  %v5354_v7 = vpack.c.bf16 %v5353_v30, %v5352_v4 }
0x34df   : > { %7105 = vmatmul.msk.bf16.vlgmr.msra.gmra.mxu1 %vm562_vm3, %v5354_v7  ;;  %5603 = vmatpush.bf16.msrb.mxu3 %v7419_v54 }
0x34e2   : > { %v7854_v27 = vpop.eup %7853 }
0x34e3   : > { %v7856_v55 = vpop.eup %7855  ;;  %v5420_v9 = vmul.f32 %v7854_v27, %v7840_v18  ;;  %v5483_v11 = vpop.xlane.xlu1 %5482  ;;  %5604 = vmatpush.bf16.msrb.mxu3 %v7418_v35 }
0x34e4   : > { %v5419_v10 = vmul.f32 %v7856_v55, %v9295_v38  ;;  %7857 = vrcp.f32 %v5483_v11 }
0x34e6   : > { %v5421_v59 = vpack.c.bf16 %v5420_v9, %v5419_v10 }
0x34ea   : > { %7107 = vmatmul.msk.bf16.vlgmr.msra.gmra.mxu3 %vm562_vm3, %v5421_v59  ;;  %v7858_v16 = vpop.eup %7857 }
0x34eb   : > { %v5487_v17 = vmul.f32 %v7858_v16, %v7842_v49 }
0x34fb   : > { %v5490_v15 = vpop.permute.xlu1 %5489 }
0x34fc   : > { %5502 = vmatpush.bf16.msrb.mxu1 %v5490_v15 }
0x3501   : > { %v5480_v12 = vpop.xlane.xlu0 %5479 }
0x3502   : > { %7859 = vrcp.f32 %v5480_v12 }
0x3508   : > { %v7860_v47 = vpop.eup %7859 }
0x3509   : > { %v5486_v48 = vmul.f32 %v7860_v47, %v7844_v40 }
0x350b   : > { %v5488_v20 = vpack.c.bf16 %v5487_v17, %v5486_v48 }
0x350d   : > { %7109 = vmatmul.msk.bf16.vlgmr.msrb.gmra.mxu1 %vm562_vm3, %v5488_v20 }
0x355c   : > { %v5370_v41 = vpop.f32.mrf.mxu1 }
0x355d   : > { %v5303_v42 = vpop.f32.mrf.mxu3 }
0x3564   : > { %v5372_v23 = vpop.f32.mrf.mxu1 }
0x3565   : > { %v7562_v43 = vpack.i.bf16 %v5372_v23, %v5370_v41  ;;  %v5305_v24 = vpop.f32.mrf.mxu3 }
0x3567   : > { %7563 = vrot.lane.b32.xlu2 %v7562_v43, %s9442_s27  ;;  %v7429_v43 = vld [vmem:[%s9391_s7 + $0x48] sm:$0xff] }
0x3568   : > { %5738 = vmatpush.bf16.msra.mxu1 %v7429_v43 }
0x356d   : > { %v5437_v25 = vpop.f32.mrf.mxu3 }
0x3575   : > { %v5439_v26 = vpop.f32.mrf.mxu3 }
0x3576   : > { %v7567_v32 = vpack.i.bf16 %v5439_v26, %v5437_v25 }
0x3578   : > { %7568 = vrot.lane.b32.xlu2 %v7567_v32, %s9443_s28 }
0x358a   : > { %v5504_v33 = vpop.f32.mrf.mxu1 }
0x3592   : > { %v5506_v34 = vpop.f32.mrf.mxu1 }
0x3593   : > { %v7572_v38 = vpack.i.bf16 %v5506_v34, %v5504_v33 }
0x3595   : > { %7573 = vrot.lane.b32.xlu2 %v7572_v38, %s9444_s29 }
0x35c1   : > { %v7564_v22 = vpop.permute.xlu2 %7563 }
0x35c2   : > { %v7566_v44 = vunpack.i.h.bf16 %v7564_v22  ;;  %v7565_v45 = vunpack.i.l.bf16 %v7564_v22 }
0x35c4   : > { %v5534_v19 = vsel %vm541_vm2, %v5305_v24, %v7566_v44  ;;  %v5533_v49 = vsel %vm541_vm2, %v5303_v42, %v7565_v45  ;;  %v7428_v24 = vld [vmem:[%s9391_s7 + $0x40] sm:$0xff] }
0x35c5   : > { %5739 = vmatpush.bf16.msra.mxu1 %v7428_v24 }
0x35d2   : > { %v7569_v0 = vpop.permute.xlu2 %7568 }
0x35d3   : > { %v7571_v46 = vunpack.i.h.bf16 %v7569_v0  ;;  %v7570_v31 = vunpack.i.l.bf16 %v7569_v0 }
0x35d5   : > { %v5536_v52 = vsel %vm562_vm3, %v5534_v19, %v7571_v46  ;;  %v5535_v53 = vsel %vm562_vm3, %v5533_v49, %v7570_v31 }
0x35ef   : > { %v7574_v18 = vpop.permute.xlu2 %7573 }
0x35f0   : > { %v7576_v50 = vunpack.i.h.bf16 %v7574_v18  ;;  %v7575_v8 = vunpack.i.l.bf16 %v7574_v18 }
0x35f2   : > { %v5538_v40 = vsel %vm835_vm4, %v5536_v52, %v7576_v50  ;;  %v5537_v56 = vsel %vm835_vm4, %v5535_v53, %v7575_v8 }
0x35f3   : > { %v5539_v14 = vpack.c.bf16 %v5538_v40, %v5537_v56 }
0x35f5   : > { %7122 = vmatmul.msk.bf16.vlgmr.msrb.gmra.mxu2 %vm514_vm1, %v5539_v14 }
0x3678   : > { %v5569_v13 = vpop.f32.mrf.mxu2 }
0x3679   : > { %v5574_v58 = vadd.f32 %v5569_v13, %v9246_v39  ;;  %v7424_v39 = vld [vmem:[%s9455_s1 + $0x120] sm:$0xff] }
0x367a   : > { %5698 = vmatpush.bf16.msrb.mxu0 %v7424_v39 }
0x3680   : > { %v5571_v57 = vpop.f32.mrf.mxu2 }
0x3681   : > { %v5575_v60 = vadd.f32 %v5571_v57, %v9248_v21  ;;  %v7423_v21 = vld [vmem:[%s9455_s1 + $0x118] sm:$0xff]  ;;  %s9456_s1 = sld [smem:[#allocation3_spill]] }
0x3682   : > { %5699 = vmatpush.bf16.msrb.mxu0 %v7423_v21 }
0x3683   : > { %v5576_v61 = vpack.c.bf16 %v5575_v60, %v5574_v58 }
0x3685   : > { %7135 = vmatmul.msk.bf16.vlgmr.msrb.gmra.mxu3 %vm514_vm1, %v5576_v61 }
0x3686   : > { %5700 = vmatpush.bf16.msrb.mxu0 %v7422_v1 }
0x3687   : > { %s9457_s27 = sshll.u32 %s9456_s1, 3 }
0x3688   : > { %s359_s18 = scalar_lea.vmem %s9458_s16, %s9457_s27 }
0x368a   : > { %5701 = vmatpush.bf16.msrb.mxu0 %v7421_v2 }
0x368e   : > { %5702 = vmatpush.bf16.msrb.mxu0 %v7420_v3 }
0x3708   : > { %v5606_v51 = vpop.f32.mrf.mxu3 }
0x3709   : > { %v5611_v4 = vmul.f32 %v5606_v51, %v5606_v51 }
0x370b   : > { %v5613_v30 = vmul.f32 %v5611_v4, %v5606_v51 }
0x370d   : > { %v5615_v6 = vmul.f32 0.044715, %v5613_v30 }
0x370f   : > { %v5617_v7 = vadd.f32 %v5615_v6, %v5606_v51 }
0x3710   : > { %v5608_v27 = vpop.f32.mrf.mxu3 }
0x3711   : > { %v5619_v55 = vmul.f32 0.7978846, %v5617_v7  ;;  %v5612_v9 = vmul.f32 %v5608_v27, %v5608_v27 }
0x3713   : > { %v5614_v10 = vmul.f32 %v5612_v9, %v5608_v27  ;;  %7861 = vtanh.f32 %v5619_v55 }
0x3715   : > { %v5616_v59 = vmul.f32 0.044715, %v5614_v10 }
0x3717   : > { %v5618_v11 = vadd.f32 %v5616_v59, %v5608_v27 }
0x3719   : > { %v5620_v15 = vmul.f32 0.7978846, %v5618_v11  ;;  %v7862_v12 = vpop.eup %7861 }
0x371a   : > { %v5623_v16 = vadd.f32 1.0, %v7862_v12 }
0x371b   : > { %7863 = vtanh.f32 %v5620_v15 }
0x371c   : > { %v5625_v17 = vmul.f32 0.5, %v5623_v16 }
0x371e   : > { %v5627_v41 = vmul.f32 %v5625_v17, %v5606_v51 }
0x3721   : > { %v7864_v47 = vpop.eup %7863 }
0x3722   : > { %v5624_v48 = vadd.f32 1.0, %v7864_v47 }
0x3724   : > { %v5626_v20 = vmul.f32 0.5, %v5624_v48 }
0x3726   : > { %v5628_v42 = vmul.f32 %v5626_v20, %v5608_v27 }
0x3728   : > { %v5629_v23 = vpack.c.bf16 %v5628_v42, %v5627_v41 }
0x372a   : > { %5703 = vmatmul.bf16.vlgmr.msrb.gmra.mxu0 %v5629_v23 }
0x37a7   : > { %v5704_v25 = vpop.f32.mrf.mxu0 }
0x37a8   : > { %v5709_v32 = vadd.f32 %v5704_v25, %v5574_v58 }
0x37af   : > { %v5706_v26 = vpop.f32.mrf.mxu0 }
0x37b0   : > { %v5710_v33 = vadd.f32 %v5706_v26, %v5575_v60 }
0x37b2   : > { %v5711_v34 = vpack.c.bf16 %v5710_v33, %v5709_v32 }
0x37b4   : > { %7196 = vmatmul.msk.bf16.vlgmr.msra.gmra.mxu1 %vm514_vm1, %v5711_v34 }
0x3831   : > { %v5741_v38 = vpop.f32.mrf.mxu1 }
0x3832   : > { %v5746_v28 = vadd.f32 %v5741_v38, %v9233_v36 }
0x3839   : > { %v5743_v29 = vpop.f32.mrf.mxu1 }
0x383a   : > { %v5747_v22 = vadd.f32 %v5743_v29, %v9236_v37 }
0x383c   : > { %v7433_v0 = vpack.c.bf16 %v5747_v22, %v5746_v28 }
0x383e   : > { %7434 = vst [vmem:[%s359_s18] sm:$0xff] %v7433_v0  }
0x383f PF: > { %s9459_s21 = sld [smem:[#allocation2_spill]] }
0x3845   : > { %s20_s13 = sadd.s32 1, %s9459_s21  }
0x3846   : > { %p17_p4 = scmp.ge.s32.totalorder %s20_s13, 4  }
0x3848   :  { %19 = sbr.rel (!%p17_p4) target bundleno = 7 (0x7), region = 134 }

</bundles_post_ra>
